<compile_context>
chip_gen: v6e
topology: v6e:2x2x1
jax: 0.10.0
libtpu: 0.0.40
codegen_flags: <defaults>
</compile_context>

<pallas_src>
import math
import functools

import jax
import jax.numpy as jnp
from jax.experimental import pallas as pl
from jax.experimental.pallas import tpu as pltpu

LANE = 128


# --------------------------------------------------------------------------
# small helpers
# --------------------------------------------------------------------------
def _round_up(n, m=LANE):
    return ((n + m - 1) // m) * m


def _vmem_limit_bytes():
    # v5e/v6e: 128 MiB physical -> 96 MiB scoped; v7x: 64 MiB -> 48 MiB.
    try:
        cap = int(pltpu.get_tpu_info().vmem_capacity_bytes)
    except Exception:
        cap = 64 * 1024 * 1024            # conservative fallback (covers v7x)
    return int(min(cap * 3 // 4, 96 * 1024 * 1024))


def _elu(x):
    # PyTorch nn.ELU(alpha=1): x>0 ? x : exp(x)-1 ; clamp keeps the untaken
    # branch of the where finite.
    return jnp.where(x > 0, x, jnp.exp(jnp.minimum(x, 0.0)) - 1.0)


def _bf16(x):
    return x.astype(jnp.bfloat16)


def _const_spec(arr):
    nd = arr.ndim
    # TODO(synk): pipeline_mode=pl.Buffered(1) would halve weight VMEM for these
    # grid-invariant blocks (matters most on v7x's 64 MiB); left at the default
    # double-buffering to stay on the well-proven lowering path.
    return pl.BlockSpec(arr.shape, lambda *_: (0,) * nd)


def _pick_batch_tile(B):
    # Larger matmul M (= Bt*H*W) while keeping >=2 parallel grid blocks so both
    # TensorCores of a v7x chip stay busy.
    for bt in (4, 2):
        if B % bt == 0 and B // bt >= 2:
            return bt
    return 1


# --------------------------------------------------------------------------
# Pallas kernels
# --------------------------------------------------------------------------
def fused_resblocks_kernel(x_ref, w1_ref, b1_ref, w2_ref, b2_ref, o_ref,
                           xp_scr, hp_scr, *, k, cp, chp):
    """All n_res causal GatedResBlocks fused: grid axis 1 walks the res index,
    the activation stays resident in o_ref's VMEM block between iterations."""
    r = pl.program_id(1)
    Bt, H, W = x_ref.shape[0], x_ref.shape[1], x_ref.shape[2]
    pad = k // 2
    M = Bt * H * W

    # Zero the padding halo once per batch block (scratch persists across the
    # inner n_res axis); per-res stores below touch only the interior, so the
    # halo stays zero.  Guarding on program_id(1) (not on the parallel batch
    # axis) keeps this correct when the batch axis is sharded across cores.
    @pl.when(r == 0)
    def _():
        xp_scr[...] = jnp.zeros_like(xp_scr)
        hp_scr[...] = jnp.zeros_like(hp_scr)
        o_ref[...] = x_ref[...]            # resident activation lives in o_ref

    def store_interior(scr, val):
        scr[:, pl.ds(k - 1, H), pl.ds(pad, W), :] = val

    def windows(scr, ch):
        # k*k shifted windows flattened to one (M, k*k*ch) matrix -> a single
        # MXU call with K = k*k*ch (bf16 operands, f32 accumulate).
        cols = [scr[:, pl.ds(ky, H), pl.ds(kx, W), :].reshape(M, ch)
                for ky in range(k) for kx in range(k)]
        return _bf16(jnp.concatenate(cols, axis=-1))

    x = o_ref[...]                                        # (Bt, H, W, cp) f32

    # stage 1: h = ELU(conv1(pad(ELU(x)))) ; ELU applied once per element.
    store_interior(xp_scr, _elu(x))
    h = _elu(jnp.dot(windows(xp_scr, cp), w1_ref[0],
                     preferred_element_type=jnp.float32) + b1_ref[0])

    # stage 2: y = conv2(pad(h)) ; GLU with lane-aligned halves; residual add.
    store_interior(hp_scr, h.reshape(Bt, H, W, chp))
    y = jnp.dot(windows(hp_scr, chp), w2_ref[0],
                preferred_element_type=jnp.float32) + b2_ref[0]
    glu = y[:, :cp] * jax.nn.sigmoid(y[:, cp:])
    o_ref[...] = glu.reshape(Bt, H, W, cp) + x


def attn_block_kernel(x_ref, out_ref, bg_ref,
                      w1k_ref, b1k_ref, w2k_ref, b2k_ref, wkv_ref, bkv_ref,
                      w1q_ref, b1q_ref, w2q_ref, b2q_ref, wq_ref, bq_ref,
                      w1oa_ref, b1oa_ref, w2o_ref, b2o_ref,
                      o_ref, *, n_head, dim_head, cp, kcp, qcp, acp):
    """Fused key_rb + query_rb + CausalAttention + out_rb for one batch."""
    xf, of, bgf = x_ref[0], out_ref[0], bg_ref[0]          # (S, pad_ch)
    S = xf.shape[0]
    AC = n_head * dim_head
    ex, eo, eb = _elu(xf), _elu(of), _elu(bgf)             # ELU reused 3 ways

    # ---- key_resblock (1x1): sources stacked along lanes -> one matmul ----
    cat_k = _bf16(jnp.concatenate([ex, eo, eb], axis=-1))
    hk = _elu(jnp.dot(cat_k, w1k_ref[...],
                      preferred_element_type=jnp.float32) + b1k_ref[...])
    yk = jnp.dot(_bf16(hk), w2k_ref[...],
                 preferred_element_type=jnp.float32) + b2k_ref[...]
    glu_k = yk[:, :kcp] * jax.nn.sigmoid(yk[:, kcp:])      # lane-aligned halves

    # fused k/v projections of (glu_k + key_cat); residual distributed via the
    # stacked weight, [k | v] emitted side by side (both halves lane-aligned).
    cat_kv = _bf16(jnp.concatenate([glu_k, xf, of, bgf], axis=-1))
    kv = jnp.dot(cat_kv, wkv_ref[...],
                 preferred_element_type=jnp.float32) + bkv_ref[...]
    kmat, vmat = kv[:, :acp], kv[:, acp:]

    # ---- query_resblock (1x1) ----
    cat_q = _bf16(jnp.concatenate([eo, eb], axis=-1))
    hq = _elu(jnp.dot(cat_q, w1q_ref[...],
                      preferred_element_type=jnp.float32) + b1q_ref[...])
    yq = jnp.dot(_bf16(hq), w2q_ref[...],
                 preferred_element_type=jnp.float32) + b2q_ref[...]
    glu_q = yq[:, :qcp] * jax.nn.sigmoid(yq[:, qcp:])
    cat_qf = _bf16(jnp.concatenate([glu_q, of, bgf], axis=-1))
    # 1/sqrt(dim_head) is folded into wq/bq at parameter build time.
    qmat = jnp.dot(cat_qf, wq_ref[...],
                   preferred_element_type=jnp.float32) + bq_ref[...]

    # ---- strictly-causal multi-head attention ----
    row = jax.lax.broadcasted_iota(jnp.int32, (S, S), 0)
    col = jax.lax.broadcasted_iota(jnp.int32, (S, S), 1)
    allowed = col < row
    start_mask = (jax.lax.broadcasted_iota(jnp.int32, (S, 1), 0) > 0
                  ).astype(jnp.float32)

    # K^T computed ONCE (not once per head); every head contracts only its own
    # dim_head lanes, so there is no n_head x redundant full-K MXU work.
    kT = _bf16(jnp.transpose(kmat))                        # (acp, S)
    # TODO(synk): for large S add a flash-style query-row grid axis (m/l/acc in
    # VMEM scratch) so scores never materialize at (S, S) and v7x's two cores
    # get >=2 grid steps each.
    outs = []
    for h in range(n_head):                                # static unroll
        lo = h * dim_head
        q_h = _bf16(qmat[:, lo:lo + dim_head])             # (S, dh)
        s = jnp.dot(q_h, kT[lo:lo + dim_head, :],
                    preferred_element_type=jnp.float32)    # (S, S)
        s = jnp.where(allowed, s, -10000.0)
        m = jnp.max(s, axis=-1, keepdims=True)
        e = jnp.exp(s - m)
        p = e * pl.reciprocal(jnp.sum(e, axis=-1, keepdims=True), approx=True)
        p = p * start_mask
        v_h = _bf16(vmat[:, lo:lo + dim_head])             # (S, dh)
        outs.append(jnp.dot(_bf16(p), v_h,
                            preferred_element_type=jnp.float32))
    if acp > AC:
        outs.append(jnp.zeros((S, acp - AC), jnp.float32))
    attn = jnp.concatenate(outs, axis=-1)                  # (S, acp)

    # ---- out_resblock: conv1 + aux_conv merged into ONE K=cp+acp matmul ----
    cat_o = _bf16(jnp.concatenate([eo, _elu(attn)], axis=-1))
    ho = _elu(jnp.dot(cat_o, w1oa_ref[...],
                      preferred_element_type=jnp.float32) + b1oa_ref[...])
    yo = jnp.dot(_bf16(ho), w2o_ref[...],
                 preferred_element_type=jnp.float32) + b2o_ref[...]
    o_ref[0] = yo[:, :cp] * jax.nn.sigmoid(yo[:, cp:]) + of


# --------------------------------------------------------------------------
# wrappers around pallas_call
# --------------------------------------------------------------------------
def fused_causal_resblocks(x_p, rp, k, n_res):
    B, H, W, cp = x_p.shape
    chp = rp['b1'].shape[-1]
    pad = k // 2
    Bt = _pick_batch_tile(B)
    nb = B // Bt
    kernel = functools.partial(fused_resblocks_kernel, k=k, cp=cp, chp=chp)

    flops = int(2 * n_res * B * H * W * (k * k * cp * chp + k * k * chp * 2 * cp))
    trans = int(2 * n_res * B * H * W * (cp + chp))
    bytes_acc = int(2 * B * H * W * cp * 4
                    + (rp['w1'].size + rp['w2'].size) * 2
                    + (rp['b1'].size + rp['b2'].size) * 4)

    return pl.pallas_call(
        kernel,
        out_shape=jax.ShapeDtypeStruct((B, H, W, cp), jnp.float32),
        grid=(nb, n_res),
        in_specs=[
            pl.BlockSpec((Bt, H, W, cp), lambda b, r: (b, 0, 0, 0)),
            pl.BlockSpec((1,) + tuple(rp['w1'].shape[1:]), lambda b, r: (r, 0, 0)),
            pl.BlockSpec((1,) + tuple(rp['b1'].shape[1:]), lambda b, r: (r, 0, 0)),
            pl.BlockSpec((1,) + tuple(rp['w2'].shape[1:]), lambda b, r: (r, 0, 0)),
            pl.BlockSpec((1,) + tuple(rp['b2'].shape[1:]), lambda b, r: (r, 0, 0)),
        ],
        out_specs=pl.BlockSpec((Bt, H, W, cp), lambda b, r: (b, 0, 0, 0)),
        scratch_shapes=[
            pltpu.VMEM((Bt, H + k - 1, W + 2 * pad, cp), jnp.float32),
            pltpu.VMEM((Bt, H + k - 1, W + 2 * pad, chp), jnp.float32),
        ],
        compiler_params=pltpu.CompilerParams(
            dimension_semantics=("parallel", "arbitrary"),
            vmem_limit_bytes=_vmem_limit_bytes()),
        cost_estimate=pl.CostEstimate(flops=flops, transcendentals=trans,
                                      bytes_accessed=bytes_acc),
    )(x_p, rp['w1'], rp['b1'], rp['w2'], rp['b2'])


_ATTN_PARAM_ORDER = ('w1k', 'b1k', 'w2k', 'b2k', 'wkv', 'bkv',
                     'w1q', 'b1q', 'w2q', 'b2q', 'wq', 'bq',
                     'w1oa', 'b1oa', 'w2o', 'b2o')
_ATTN_WEIGHTS = ('w1k', 'w2k', 'wkv', 'w1q', 'w2q', 'wq', 'w1oa', 'w2o')


def attention_block(x_flat, out_flat, bg_flat, p, *, C, n_head):
    B, S, cp = x_flat.shape
    bgp = bg_flat.shape[-1]
    AC = C // 2
    acp, kcp, qcp = _round_up(AC), _round_up(2 * C + 2), _round_up(C + 2)
    dim_head = AC // n_head

    kernel = functools.partial(attn_block_kernel, n_head=n_head,
                               dim_head=dim_head, cp=cp, kcp=kcp, qcp=qcp,
                               acp=acp)
    in_specs = ([pl.BlockSpec((1, S, cp), lambda b: (b, 0, 0)),
                 pl.BlockSpec((1, S, cp), lambda b: (b, 0, 0)),
                 pl.BlockSpec((1, S, bgp), lambda b: (b, 0, 0))]
                + [_const_spec(p[name]) for name in _ATTN_PARAM_ORDER])

    mm_flops = 2 * B * S * sum(int(p[n].shape[-2]) * int(p[n].shape[-1])
                               for n in _ATTN_WEIGHTS)
    attn_flops = 4 * B * S * S * AC
    trans = B * S * (S * n_head + 8 * cp)
    bytes_acc = int(4 * B * S * cp * 4
                    + sum(int(p[n].size) * 2 for n in _ATTN_WEIGHTS)
                    + sum(int(p[n].size) * 4 for n in _ATTN_PARAM_ORDER
                          if n not in _ATTN_WEIGHTS))

    return pl.pallas_call(
        kernel,
        out_shape=jax.ShapeDtypeStruct((B, S, cp), jnp.float32),
        grid=(B,),
        in_specs=in_specs,
        out_specs=pl.BlockSpec((1, S, cp), lambda b: (b, 0, 0)),
        compiler_params=pltpu.CompilerParams(
            dimension_semantics=("parallel",),
            vmem_limit_bytes=_vmem_limit_bytes()),
        cost_estimate=pl.CostEstimate(flops=int(mm_flops + attn_flops),
                                      transcendentals=int(trans),
                                      bytes_accessed=bytes_acc),
    )(x_flat, out_flat, bg_flat, *[p[name] for name in _ATTN_PARAM_ORDER])


# --------------------------------------------------------------------------
# parameter construction (deterministic, weight-norm + lane padding applied)
# --------------------------------------------------------------------------
def _wn_conv(key, out_c, in_c, kh, kw, causal=0):
    kv_, kb = jax.random.split(key)
    v = 0.1 * jax.random.normal(kv_, (out_c, in_c, kh, kw), jnp.float32)
    g = jnp.sqrt(jnp.sum(v ** 2, axis=(1, 2, 3)))          # weight_norm init g=||v||
    if causal > 0:                                         # CausalConv2d masks weight_v
        v = v.at[:, :, -1, causal:].set(0.0)
    norm = jnp.sqrt(jnp.sum(v ** 2, axis=(1, 2, 3), keepdims=True))
    w = g[:, None, None, None] * v / norm
    b = 0.05 * jax.random.normal(kb, (out_c,), jnp.float32)
    return w, b


def _wn_linear(key, out_d, in_d):
    kv_, kb = jax.random.split(key)
    v = 0.1 * jax.random.normal(kv_, (out_d, in_d), jnp.float32)
    g = jnp.sqrt(jnp.sum(v ** 2, axis=1, keepdims=True))
    w = g * v / jnp.sqrt(jnp.sum(v ** 2, axis=1, keepdims=True))
    b = 0.05 * jax.random.normal(kb, (out_d,), jnp.float32)
    return w.T, b.reshape(1, -1)                           # (in, out), (1, out)


def _pad2(a, rows, cols):
    return jnp.pad(a, ((0, rows - a.shape[0]), (0, cols - a.shape[1])))


def _pad_bias(b, cols):                                    # b: (1, n)
    return jnp.pad(b, ((0, 0), (0, cols - b.shape[1])))


def _conv_matrix(w, in_pad, out_pad):
    # (out, in, kh, kw) -> (kh*kw*in_pad, out_pad); row = (ky*kw + kx)*in_pad + c
    out_c, in_c, kh, kw = w.shape
    wt = jnp.transpose(w, (2, 3, 1, 0))
    wt = jnp.pad(wt, ((0, 0), (0, 0), (0, in_pad - in_c), (0, out_pad - out_c)))
    return wt.reshape(kh * kw * in_pad, out_pad)


def _conv_matrix_glu(w, in_pad, half_pad):
    # (2*half, in, kh, kw) -> (kh*kw*in_pad, 2*half_pad); cols = [value | gate]
    out_c, in_c, kh, kw = w.shape
    half = out_c // 2
    wt = jnp.transpose(w, (2, 3, 1, 0))
    wt = jnp.pad(wt, ((0, 0), (0, 0), (0, in_pad - in_c), (0, 0)))
    val = jnp.pad(wt[..., :half], ((0, 0),) * 3 + ((0, half_pad - half),))
    gate = jnp.pad(wt[..., half:], ((0, 0),) * 3 + ((0, half_pad - half),))
    return jnp.concatenate([val, gate], axis=-1).reshape(kh * kw * in_pad,
                                                         2 * half_pad)


def _bias_glu(b, half_pad):
    half = b.shape[0] // 2
    return jnp.concatenate([jnp.pad(b[:half], (0, half_pad - half)),
                            jnp.pad(b[half:], (0, half_pad - half))]
                           ).reshape(1, 2 * half_pad)


def init_params(key, C, channel, k, n_res, n_head=8):
    cp, chp, bgp = _round_up(C), _round_up(channel), _round_up(2)
    KC, QC, AC = 2 * C + 2, C + 2, C // 2
    kcp, qcp, acp = _round_up(KC), _round_up(QC), _round_up(AC)
    dim_head = AC // n_head
    assert dim_head * n_head == AC, "C//2 must be divisible by n_head"

    keys = list(jax.random.split(key, 2 * max(n_res, 1) + 10))
    it = iter(keys)
    causal = k // 2

    # ---- fused resblock chain: weights stacked on a leading n_res dim ----
    w1s, b1s, w2s, b2s = [], [], [], []
    for _ in range(n_res):
        w1, b1 = _wn_conv(next(it), channel, C, k, k, causal=causal)
        w2, b2 = _wn_conv(next(it), 2 * C, channel, k, k, causal=causal)
        w1s.append(_conv_matrix(w1, cp, chp))
        b1s.append(jnp.pad(b1, (0, chp - channel)).reshape(1, chp))
        w2s.append(_conv_matrix_glu(w2, chp, cp))
        b2s.append(_bias_glu(b2, cp))
    res = None
    if n_res > 0:
        res = {'w1': jnp.stack(w1s).astype(jnp.bfloat16),
               'b1': jnp.stack(b1s),
               'w2': jnp.stack(w2s).astype(jnp.bfloat16),
               'b2': jnp.stack(b2s)}

    def pw(key_, out_c, in_c):
        w, b = _wn_conv(key_, out_c, in_c, 1, 1)
        return w[:, :, 0, 0], b                            # (out, in), (out,)

    ab = {}
    # key_resblock: GatedResBlock(2C+2, C, 1); conv1 split by source [x,out,bg]
    w1, b1 = pw(next(it), C, KC)
    w1 = w1.T                                              # (KC, C)
    ab['w1k'] = jnp.concatenate([_pad2(w1[:C], cp, cp),
                                 _pad2(w1[C:2 * C], cp, cp),
                                 _pad2(w1[2 * C:], bgp, cp)], axis=0)
    ab['b1k'] = jnp.pad(b1, (0, cp - C)).reshape(1, cp)
    w2, b2 = pw(next(it), 2 * KC, C)
    ab['w2k'] = _conv_matrix_glu(w2[:, :, None, None], cp, kcp)
    ab['b2k'] = _bias_glu(b2, kcp)

    # query_resblock: GatedResBlock(C+2, C, 1); conv1 split by source [out,bg]
    w1, b1 = pw(next(it), C, QC)
    w1 = w1.T                                              # (QC, C)
    ab['w1q'] = jnp.concatenate([_pad2(w1[:C], cp, cp),
                                 _pad2(w1[C:], bgp, cp)], axis=0)
    ab['b1q'] = jnp.pad(b1, (0, cp - C)).reshape(1, cp)
    w2, b2 = pw(next(it), 2 * QC, C)
    ab['w2q'] = _conv_matrix_glu(w2[:, :, None, None], cp, qcp)
    ab['b2q'] = _bias_glu(b2, qcp)

    # CausalAttention(C+2, 2C+2, C//2); residual distributed through q/k/v.
    wq, bq = _wn_linear(next(it), AC, QC)
    wk, bk = _wn_linear(next(it), AC, KC)
    wv, bv = _wn_linear(next(it), AC, KC)
    scale = 1.0 / math.sqrt(dim_head)
    wq, bq = wq * scale, bq * scale                        # fold attention scale

    ab['wq'] = jnp.concatenate([_pad2(wq, qcp, acp),       # glu_q block
                                _pad2(wq[:C], cp, acp),    # query_cat: out part
                                _pad2(wq[C:], bgp, acp)], axis=0)
    ab['bq'] = _pad_bias(bq, acp)

    def stack_key(w):                                      # w: (KC, AC)
        return jnp.concatenate([_pad2(w, kcp, acp),        # glu_k block
                                _pad2(w[:C], cp, acp),     # key_cat: x part
                                _pad2(w[C:2 * C], cp, acp),  # key_cat: out part
                                _pad2(w[2 * C:], bgp, acp)], axis=0)
    ab['wkv'] = jnp.concatenate([stack_key(wk), stack_key(wv)], axis=1)
    ab['bkv'] = jnp.concatenate([_pad_bias(bk, acp), _pad_bias(bv, acp)], axis=1)

    # out_resblock: conv1 and aux_conv merged into one stacked (cp+acp, cp)
    # weight; the two biases are summed into one.
    w1, b1 = pw(next(it), C, C)
    wa, ba = pw(next(it), C, AC)
    ab['w1oa'] = jnp.concatenate([_pad2(w1.T, cp, cp),
                                  _pad2(wa.T, acp, cp)], axis=0)
    ab['b1oa'] = jnp.pad(b1 + ba, (0, cp - C)).reshape(1, cp)
    w2, b2 = pw(next(it), 2 * C, C)
    ab['w2o'] = _conv_matrix_glu(w2[:, :, None, None], cp, cp)
    ab['b2o'] = _bias_glu(b2, cp)

    # matmul weights in bf16 (MXU-native); biases stay f32 (added to f32 acc).
    for name in _ATTN_WEIGHTS:
        ab[name] = ab[name].astype(jnp.bfloat16)

    return {'res': res, 'attn_block': ab}


# --------------------------------------------------------------------------
# PixelBlock forward (attention=True, condition=None, eval mode)
# --------------------------------------------------------------------------
def pixel_block_forward(x_nchw, bg_nchw, params, k, n_res, n_head=8):
    # TODO(synk): dropout layers are treated as eval-mode identity (no RNG).
    x = jnp.transpose(x_nchw, (0, 2, 3, 1)).astype(jnp.float32)   # NHWC
    bg = jnp.transpose(bg_nchw, (0, 2, 3, 1)).astype(jnp.float32)
    B, H, W, C = x.shape
    cp = _round_up(C)
    bgp = _round_up(bg.shape[-1])

    # one-time lane padding (zero channels stay zero through every kernel)
    x_p = jnp.pad(x, ((0, 0), (0, 0), (0, 0), (0, cp - C)))
    bg_p = jnp.pad(bg, ((0, 0), (0, 0), (0, 0), (0, bgp - bg.shape[-1])))

    out = x_p
    if n_res > 0:
        out = fused_causal_resblocks(x_p, params['res'], k, n_res)

    S = H * W
    final = attention_block(x_p.reshape(B, S, cp),
                            out.reshape(B, S, cp),
                            bg_p.reshape(B, S, bgp),
                            params['attn_block'], C=C, n_head=n_head)
    final = final.reshape(B, H, W, cp)[..., :C]
    return jnp.transpose(final, (0, 3, 1, 2))                     # back to NCHW


# --------------------------------------------------------------------------
if __name__ == "__main__":
    B, C, H, W = 2, 32, 8, 8
    channel, ksize, n_res, n_head = 32, 3, 2, 8

    key = jax.random.PRNGKey(0)
    kx, kbg, kp = jax.random.split(key, 3)
    x = jax.random.normal(kx, (B, C, H, W), jnp.float32)
    background = jax.random.normal(kbg, (B, 2, H, W), jnp.float32)

    params = init_params(kp, C, channel, ksize, n_res, n_head=n_head)
    fwd = jax.jit(functools.partial(pixel_block_forward,
                                    k=ksize, n_res=n_res, n_head=n_head))
    out = jax.block_until_ready(fwd(x, background, params))

    assert out.shape == (B, C, H, W), out.shape
    assert bool(jnp.all(jnp.isfinite(out)))
    print("KERNEL_OK")
</pallas_src>

<mosaic_0001>
module attributes {stable_mosaic.version = 11 : i64} {
  func.func @fused_resblocks_kernel(%arg0: i32, %arg1: i32, %arg2: memref<1x8x8x128xf32, #tpu.memory_space<vmem>>, %arg3: memref<1x1152x128xbf16, #tpu.memory_space<vmem>>, %arg4: memref<1x1x128xf32, #tpu.memory_space<vmem>>, %arg5: memref<1x1152x256xbf16, #tpu.memory_space<vmem>>, %arg6: memref<1x1x256xf32, #tpu.memory_space<vmem>>, %arg7: memref<1x8x8x128xf32, #tpu.memory_space<vmem>>, %arg8: memref<1x10x10x128xf32, #tpu.memory_space<vmem>>, %arg9: memref<1x10x10x128xf32, #tpu.memory_space<vmem>>) attributes {dimension_semantics = [#tpu.dimension_semantics<parallel>, #tpu.dimension_semantics<arbitrary>], iteration_bounds = array<i64: 2, 2>, scalar_prefetch = 0 : i64, scratch_operands = 2 : i64, tpu.core_type = #tpu.core_type<tc>, window_params = [{transform_indices = @transform_0, window_bounds = array<i64: 1, 8, 8, 128>}, {transform_indices = @transform_1, window_bounds = array<i64: 1, 1152, 128>}, {transform_indices = @transform_2, window_bounds = array<i64: 1, 1, 128>}, {transform_indices = @transform_3, window_bounds = array<i64: 1, 1152, 256>}, {transform_indices = @transform_4, window_bounds = array<i64: 1, 1, 256>}, {transform_indices = @transform_5, window_bounds = array<i64: 1, 8, 8, 128>}]} {
    %c0_i32 = arith.constant 0 : i32
    %0 = arith.cmpi eq, %arg1, %c0_i32 : i32
    %1 = arith.extui %0 : i1 to i32
    %c0_i32_0 = arith.constant 0 : i32
    %2 = arith.cmpi ne, %1, %c0_i32_0 : i32
    scf.if %2 {
      %cst_106 = arith.constant 0.000000e+00 : f32
      %88 = vector.broadcast %cst_106 : f32 to vector<1x10x10x128xf32>
      %c0_107 = arith.constant 0 : index
      %c0_108 = arith.constant 0 : index
      %c0_109 = arith.constant 0 : index
      %c0_110 = arith.constant 0 : index
      %89 = vector.load %arg8[%c0_107, %c0_108, %c0_109, %c0_110] : memref<1x10x10x128xf32, #tpu.memory_space<vmem>>, vector<1x10x10x128xf32>
      tpu.vector_store %arg8[%c0_107, %c0_108, %c0_109, %c0_110], %88 {strides = array<i32>} : memref<1x10x10x128xf32, #tpu.memory_space<vmem>>, vector<1x10x10x128xf32>,
      %cst_111 = arith.constant 0.000000e+00 : f32
      %90 = vector.broadcast %cst_111 : f32 to vector<1x10x10x128xf32>
      %c0_112 = arith.constant 0 : index
      %c0_113 = arith.constant 0 : index
      %c0_114 = arith.constant 0 : index
      %c0_115 = arith.constant 0 : index
      %91 = vector.load %arg9[%c0_112, %c0_113, %c0_114, %c0_115] : memref<1x10x10x128xf32, #tpu.memory_space<vmem>>, vector<1x10x10x128xf32>
      tpu.vector_store %arg9[%c0_112, %c0_113, %c0_114, %c0_115], %90 {strides = array<i32>} : memref<1x10x10x128xf32, #tpu.memory_space<vmem>>, vector<1x10x10x128xf32>,
      %c0_116 = arith.constant 0 : index
      %c0_117 = arith.constant 0 : index
      %c0_118 = arith.constant 0 : index
      %c0_119 = arith.constant 0 : index
      %92 = vector.load %arg2[%c0_116, %c0_117, %c0_118, %c0_119] : memref<1x8x8x128xf32, #tpu.memory_space<vmem>>, vector<1x8x8x128xf32>
      %c0_120 = arith.constant 0 : index
      %c0_121 = arith.constant 0 : index
      %c0_122 = arith.constant 0 : index
      %c0_123 = arith.constant 0 : index
      %93 = vector.load %arg7[%c0_120, %c0_121, %c0_122, %c0_123] : memref<1x8x8x128xf32, #tpu.memory_space<vmem>>, vector<1x8x8x128xf32>
      tpu.vector_store %arg7[%c0_120, %c0_121, %c0_122, %c0_123], %92 {strides = array<i32>} : memref<1x8x8x128xf32, #tpu.memory_space<vmem>>, vector<1x8x8x128xf32>,
    } else {
    }
    %c0 = arith.constant 0 : index
    %c0_1 = arith.constant 0 : index
    %c0_2 = arith.constant 0 : index
    %c0_3 = arith.constant 0 : index
    %3 = vector.load %arg7[%c0, %c0_1, %c0_2, %c0_3] : memref<1x8x8x128xf32, #tpu.memory_space<vmem>>, vector<1x8x8x128xf32>
    %cst = arith.constant 0.000000e+00 : f32
    %4 = vector.broadcast %cst : f32 to vector<1x8x8x128xf32>
    %5 = arith.cmpf ogt, %3, %4 : vector<1x8x8x128xf32>
    %cst_4 = arith.constant 0.000000e+00 : f32
    %6 = vector.broadcast %cst_4 : f32 to vector<1x8x8x128xf32>
    %7 = arith.minimumf %3, %6 : vector<1x8x8x128xf32>
    %8 = math.exp %7 : vector<1x8x8x128xf32>
    %cst_5 = arith.constant 1.000000e+00 : f32
    %9 = vector.broadcast %cst_5 : f32 to vector<1x8x8x128xf32>
    %10 = arith.subf %8, %9 : vector<1x8x8x128xf32>
    %11 = arith.select %5, %3, %10 : vector<1x8x8x128xi1>, vector<1x8x8x128xf32>
    %c0_6 = arith.constant 0 : index
    %c2 = arith.constant 2 : index
    %c1 = arith.constant 1 : index
    %c0_7 = arith.constant 0 : index
    %12 = vector.load %arg8[%c0_6, %c2, %c1, %c0_7] : memref<1x10x10x128xf32, #tpu.memory_space<vmem>>, vector<1x8x8x128xf32>
    tpu.vector_store %arg8[%c0_6, %c2, %c1, %c0_7], %11 {strides = array<i32>} : memref<1x10x10x128xf32, #tpu.memory_space<vmem>>, vector<1x8x8x128xf32>,
    %c0_8 = arith.constant 0 : index
    %c0_9 = arith.constant 0 : index
    %c0_10 = arith.constant 0 : index
    %c0_11 = arith.constant 0 : index
    %13 = vector.load %arg8[%c0_8, %c0_9, %c0_10, %c0_11] : memref<1x10x10x128xf32, #tpu.memory_space<vmem>>, vector<1x8x8x128xf32>
    %14 = vector.shape_cast %13 : vector<1x8x8x128xf32> to vector<64x128xf32>
    %c0_12 = arith.constant 0 : index
    %c0_13 = arith.constant 0 : index
    %c1_14 = arith.constant 1 : index
    %c0_15 = arith.constant 0 : index
    %15 = vector.load %arg8[%c0_12, %c0_13, %c1_14, %c0_15] : memref<1x10x10x128xf32, #tpu.memory_space<vmem>>, vector<1x8x8x128xf32>
    %16 = vector.shape_cast %15 : vector<1x8x8x128xf32> to vector<64x128xf32>
    %c0_16 = arith.constant 0 : index
    %c0_17 = arith.constant 0 : index
    %c2_18 = arith.constant 2 : index
    %c0_19 = arith.constant 0 : index
    %17 = vector.load %arg8[%c0_16, %c0_17, %c2_18, %c0_19] : memref<1x10x10x128xf32, #tpu.memory_space<vmem>>, vector<1x8x8x128xf32>
    %18 = vector.shape_cast %17 : vector<1x8x8x128xf32> to vector<64x128xf32>
    %c0_20 = arith.constant 0 : index
    %c1_21 = arith.constant 1 : index
    %c0_22 = arith.constant 0 : index
    %c0_23 = arith.constant 0 : index
    %19 = vector.load %arg8[%c0_20, %c1_21, %c0_22, %c0_23] : memref<1x10x10x128xf32, #tpu.memory_space<vmem>>, vector<1x8x8x128xf32>
    %20 = vector.shape_cast %19 : vector<1x8x8x128xf32> to vector<64x128xf32>
    %c0_24 = arith.constant 0 : index
    %c1_25 = arith.constant 1 : index
    %c1_26 = arith.constant 1 : index
    %c0_27 = arith.constant 0 : index
    %21 = vector.load %arg8[%c0_24, %c1_25, %c1_26, %c0_27] : memref<1x10x10x128xf32, #tpu.memory_space<vmem>>, vector<1x8x8x128xf32>
    %22 = vector.shape_cast %21 : vector<1x8x8x128xf32> to vector<64x128xf32>
    %c0_28 = arith.constant 0 : index
    %c1_29 = arith.constant 1 : index
    %c2_30 = arith.constant 2 : index
    %c0_31 = arith.constant 0 : index
    %23 = vector.load %arg8[%c0_28, %c1_29, %c2_30, %c0_31] : memref<1x10x10x128xf32, #tpu.memory_space<vmem>>, vector<1x8x8x128xf32>
    %24 = vector.shape_cast %23 : vector<1x8x8x128xf32> to vector<64x128xf32>
    %c0_32 = arith.constant 0 : index
    %c2_33 = arith.constant 2 : index
    %c0_34 = arith.constant 0 : index
    %c0_35 = arith.constant 0 : index
    %25 = vector.load %arg8[%c0_32, %c2_33, %c0_34, %c0_35] : memref<1x10x10x128xf32, #tpu.memory_space<vmem>>, vector<1x8x8x128xf32>
    %26 = vector.shape_cast %25 : vector<1x8x8x128xf32> to vector<64x128xf32>
    %c0_36 = arith.constant 0 : index
    %c2_37 = arith.constant 2 : index
    %c1_38 = arith.constant 1 : index
    %c0_39 = arith.constant 0 : index
    %27 = vector.load %arg8[%c0_36, %c2_37, %c1_38, %c0_39] : memref<1x10x10x128xf32, #tpu.memory_space<vmem>>, vector<1x8x8x128xf32>
    %28 = vector.shape_cast %27 : vector<1x8x8x128xf32> to vector<64x128xf32>
    %c0_40 = arith.constant 0 : index
    %c2_41 = arith.constant 2 : index
    %c2_42 = arith.constant 2 : index
    %c0_43 = arith.constant 0 : index
    %29 = vector.load %arg8[%c0_40, %c2_41, %c2_42, %c0_43] : memref<1x10x10x128xf32, #tpu.memory_space<vmem>>, vector<1x8x8x128xf32>
    %30 = vector.shape_cast %29 : vector<1x8x8x128xf32> to vector<64x128xf32>
    %31 = tpu.concatenate %14, %16, %18, %20, %22, %24, %26, %28, %30 in 1 : vector<64x128xf32>, vector<64x128xf32>, vector<64x128xf32>, vector<64x128xf32>, vector<64x128xf32>, vector<64x128xf32>, vector<64x128xf32>, vector<64x128xf32>, vector<64x128xf32> -> vector<64x1152xf32>
    %32 = arith.truncf %31 : vector<64x1152xf32> to vector<64x1152xbf16>
    %c0_44 = arith.constant 0 : index
    %c0_45 = arith.constant 0 : index
    %c0_46 = arith.constant 0 : index
    %33 = vector.load %arg3[%c0_44, %c0_45, %c0_46] : memref<1x1152x128xbf16, #tpu.memory_space<vmem>>, vector<1x1152x128xbf16>
    %34 = vector.shape_cast %33 : vector<1x1152x128xbf16> to vector<1152x128xbf16>
    %cst_47 = arith.constant dense<0.000000e+00> : vector<64x128xf32>
    %35 = tpu.matmul %32, %34, %cst_47 {dimension_numbers = #tpu.dot_dimension_numbers<[1], [0], [0], [1], [0, 0, 1, 1], [], []>} : vector<64x1152xbf16>, vector<1152x128xbf16>, vector<64x128xf32> -> vector<64x128xf32>
    %c0_48 = arith.constant 0 : index
    %c0_49 = arith.constant 0 : index
    %c0_50 = arith.constant 0 : index
    %36 = vector.load %arg4[%c0_48, %c0_49, %c0_50] : memref<1x1x128xf32, #tpu.memory_space<vmem>>, vector<1x1x128xf32>
    %37 = vector.shape_cast %36 : vector<1x1x128xf32> to vector<1x128xf32>
    %38 = vector.broadcast %37 : vector<1x128xf32> to vector<64x128xf32>
    %39 = arith.addf %35, %38 : vector<64x128xf32>
    %cst_51 = arith.constant 0.000000e+00 : f32
    %40 = vector.broadcast %cst_51 : f32 to vector<64x128xf32>
    %41 = arith.cmpf ogt, %39, %40 : vector<64x128xf32>
    %cst_52 = arith.constant 0.000000e+00 : f32
    %42 = vector.broadcast %cst_52 : f32 to vector<64x128xf32>
    %43 = arith.minimumf %39, %42 : vector<64x128xf32>
    %44 = math.exp %43 : vector<64x128xf32>
    %cst_53 = arith.constant 1.000000e+00 : f32
    %45 = vector.broadcast %cst_53 : f32 to vector<64x128xf32>
    %46 = arith.subf %44, %45 : vector<64x128xf32>
    %47 = arith.select %41, %39, %46 : vector<64x128xi1>, vector<64x128xf32>
    %48 = vector.shape_cast %47 : vector<64x128xf32> to vector<1x8x8x128xf32>
    %c0_54 = arith.constant 0 : index
    %c2_55 = arith.constant 2 : index
    %c1_56 = arith.constant 1 : index
    %c0_57 = arith.constant 0 : index
    %49 = vector.load %arg9[%c0_54, %c2_55, %c1_56, %c0_57] : memref<1x10x10x128xf32, #tpu.memory_space<vmem>>, vector<1x8x8x128xf32>
    tpu.vector_store %arg9[%c0_54, %c2_55, %c1_56, %c0_57], %48 {strides = array<i32>} : memref<1x10x10x128xf32, #tpu.memory_space<vmem>>, vector<1x8x8x128xf32>,
    %c0_58 = arith.constant 0 : index
    %c0_59 = arith.constant 0 : index
    %c0_60 = arith.constant 0 : index
    %c0_61 = arith.constant 0 : index
    %50 = vector.load %arg9[%c0_58, %c0_59, %c0_60, %c0_61] : memref<1x10x10x128xf32, #tpu.memory_space<vmem>>, vector<1x8x8x128xf32>
    %51 = vector.shape_cast %50 : vector<1x8x8x128xf32> to vector<64x128xf32>
    %c0_62 = arith.constant 0 : index
    %c0_63 = arith.constant 0 : index
    %c1_64 = arith.constant 1 : index
    %c0_65 = arith.constant 0 : index
    %52 = vector.load %arg9[%c0_62, %c0_63, %c1_64, %c0_65] : memref<1x10x10x128xf32, #tpu.memory_space<vmem>>, vector<1x8x8x128xf32>
    %53 = vector.shape_cast %52 : vector<1x8x8x128xf32> to vector<64x128xf32>
    %c0_66 = arith.constant 0 : index
    %c0_67 = arith.constant 0 : index
    %c2_68 = arith.constant 2 : index
    %c0_69 = arith.constant 0 : index
    %54 = vector.load %arg9[%c0_66, %c0_67, %c2_68, %c0_69] : memref<1x10x10x128xf32, #tpu.memory_space<vmem>>, vector<1x8x8x128xf32>
    %55 = vector.shape_cast %54 : vector<1x8x8x128xf32> to vector<64x128xf32>
    %c0_70 = arith.constant 0 : index
    %c1_71 = arith.constant 1 : index
    %c0_72 = arith.constant 0 : index
    %c0_73 = arith.constant 0 : index
    %56 = vector.load %arg9[%c0_70, %c1_71, %c0_72, %c0_73] : memref<1x10x10x128xf32, #tpu.memory_space<vmem>>, vector<1x8x8x128xf32>
    %57 = vector.shape_cast %56 : vector<1x8x8x128xf32> to vector<64x128xf32>
    %c0_74 = arith.constant 0 : index
    %c1_75 = arith.constant 1 : index
    %c1_76 = arith.constant 1 : index
    %c0_77 = arith.constant 0 : index
    %58 = vector.load %arg9[%c0_74, %c1_75, %c1_76, %c0_77] : memref<1x10x10x128xf32, #tpu.memory_space<vmem>>, vector<1x8x8x128xf32>
    %59 = vector.shape_cast %58 : vector<1x8x8x128xf32> to vector<64x128xf32>
    %c0_78 = arith.constant 0 : index
    %c1_79 = arith.constant 1 : index
    %c2_80 = arith.constant 2 : index
    %c0_81 = arith.constant 0 : index
    %60 = vector.load %arg9[%c0_78, %c1_79, %c2_80, %c0_81] : memref<1x10x10x128xf32, #tpu.memory_space<vmem>>, vector<1x8x8x128xf32>
    %61 = vector.shape_cast %60 : vector<1x8x8x128xf32> to vector<64x128xf32>
    %c0_82 = arith.constant 0 : index
    %c2_83 = arith.constant 2 : index
    %c0_84 = arith.constant 0 : index
    %c0_85 = arith.constant 0 : index
    %62 = vector.load %arg9[%c0_82, %c2_83, %c0_84, %c0_85] : memref<1x10x10x128xf32, #tpu.memory_space<vmem>>, vector<1x8x8x128xf32>
    %63 = vector.shape_cast %62 : vector<1x8x8x128xf32> to vector<64x128xf32>
    %c0_86 = arith.constant 0 : index
    %c2_87 = arith.constant 2 : index
    %c1_88 = arith.constant 1 : index
    %c0_89 = arith.constant 0 : index
    %64 = vector.load %arg9[%c0_86, %c2_87, %c1_88, %c0_89] : memref<1x10x10x128xf32, #tpu.memory_space<vmem>>, vector<1x8x8x128xf32>
    %65 = vector.shape_cast %64 : vector<1x8x8x128xf32> to vector<64x128xf32>
    %c0_90 = arith.constant 0 : index
    %c2_91 = arith.constant 2 : index
    %c2_92 = arith.constant 2 : index
    %c0_93 = arith.constant 0 : index
    %66 = vector.load %arg9[%c0_90, %c2_91, %c2_92, %c0_93] : memref<1x10x10x128xf32, #tpu.memory_space<vmem>>, vector<1x8x8x128xf32>
    %67 = vector.shape_cast %66 : vector<1x8x8x128xf32> to vector<64x128xf32>
    %68 = tpu.concatenate %51, %53, %55, %57, %59, %61, %63, %65, %67 in 1 : vector<64x128xf32>, vector<64x128xf32>, vector<64x128xf32>, vector<64x128xf32>, vector<64x128xf32>, vector<64x128xf32>, vector<64x128xf32>, vector<64x128xf32>, vector<64x128xf32> -> vector<64x1152xf32>
    %69 = arith.truncf %68 : vector<64x1152xf32> to vector<64x1152xbf16>
    %c0_94 = arith.constant 0 : index
    %c0_95 = arith.constant 0 : index
    %c0_96 = arith.constant 0 : index
    %70 = vector.load %arg5[%c0_94, %c0_95, %c0_96] : memref<1x1152x256xbf16, #tpu.memory_space<vmem>>, vector<1x1152x256xbf16>
    %71 = vector.shape_cast %70 : vector<1x1152x256xbf16> to vector<1152x256xbf16>
    %cst_97 = arith.constant dense<0.000000e+00> : vector<64x256xf32>
    %72 = tpu.matmul %69, %71, %cst_97 {dimension_numbers = #tpu.dot_dimension_numbers<[1], [0], [0], [1], [0, 0, 1, 1], [], []>} : vector<64x1152xbf16>, vector<1152x256xbf16>, vector<64x256xf32> -> vector<64x256xf32>
    %c0_98 = arith.constant 0 : index
    %c0_99 = arith.constant 0 : index
    %c0_100 = arith.constant 0 : index
    %73 = vector.load %arg6[%c0_98, %c0_99, %c0_100] : memref<1x1x256xf32, #tpu.memory_space<vmem>>, vector<1x1x256xf32>
    %74 = vector.shape_cast %73 : vector<1x1x256xf32> to vector<1x256xf32>
    %75 = vector.broadcast %74 : vector<1x256xf32> to vector<64x256xf32>
    %76 = arith.addf %72, %75 : vector<64x256xf32>
    %77 = vector.extract_strided_slice %76 {offsets = [0, 0], sizes = [64, 128], strides = [1, 1]} : vector<64x256xf32> to vector<64x128xf32>
    %78 = vector.extract_strided_slice %76 {offsets = [0, 128], sizes = [64, 128], strides = [1, 1]} : vector<64x256xf32> to vector<64x128xf32>
    %79 = arith.negf %78 : vector<64x128xf32>
    %80 = math.exp %79 : vector<64x128xf32>
    %cst_101 = arith.constant 1.000000e+00 : f32
    %81 = vector.broadcast %cst_101 : f32 to vector<64x128xf32>
    %82 = arith.addf %81, %80 : vector<64x128xf32>
    %83 = arith.divf %81, %82 : vector<64x128xf32>
    %84 = arith.mulf %77, %83 : vector<64x128xf32>
    %85 = vector.shape_cast %84 : vector<64x128xf32> to vector<1x8x8x128xf32>
    %86 = arith.addf %85, %3 : vector<1x8x8x128xf32>
    %c0_102 = arith.constant 0 : index
    %c0_103 = arith.constant 0 : index
    %c0_104 = arith.constant 0 : index
    %c0_105 = arith.constant 0 : index
    %87 = vector.load %arg7[%c0_102, %c0_103, %c0_104, %c0_105] : memref<1x8x8x128xf32, #tpu.memory_space<vmem>>, vector<1x8x8x128xf32>
    tpu.vector_store %arg7[%c0_102, %c0_103, %c0_104, %c0_105], %86 {strides = array<i32>} : memref<1x8x8x128xf32, #tpu.memory_space<vmem>>, vector<1x8x8x128xf32>,
    return
  }
  func.func @transform_0(%arg0: i32, %arg1: i32) -> (i32, i32, i32, i32) {
    %c0_i32 = arith.constant 0 : i32
    %c0_i32_0 = arith.constant 0 : i32
    %c0_i32_1 = arith.constant 0 : i32
    %c0_i32_2 = arith.constant 0 : i32
    return %arg0, %c0_i32, %c0_i32_0, %c0_i32_1 : i32, i32, i32, i32
  }
  func.func @transform_1(%arg0: i32, %arg1: i32) -> (i32, i32, i32) {
    %c0_i32 = arith.constant 0 : i32
    %c0_i32_0 = arith.constant 0 : i32
    %c0_i32_1 = arith.constant 0 : i32
    return %arg1, %c0_i32, %c0_i32_0 : i32, i32, i32
  }
  func.func @transform_2(%arg0: i32, %arg1: i32) -> (i32, i32, i32) {
    %c0_i32 = arith.constant 0 : i32
    %c0_i32_0 = arith.constant 0 : i32
    %c0_i32_1 = arith.constant 0 : i32
    return %arg1, %c0_i32, %c0_i32_0 : i32, i32, i32
  }
  func.func @transform_3(%arg0: i32, %arg1: i32) -> (i32, i32, i32) {
    %c0_i32 = arith.constant 0 : i32
    %c0_i32_0 = arith.constant 0 : i32
    %c0_i32_1 = arith.constant 0 : i32
    return %arg1, %c0_i32, %c0_i32_0 : i32, i32, i32
  }
  func.func @transform_4(%arg0: i32, %arg1: i32) -> (i32, i32, i32) {
    %c0_i32 = arith.constant 0 : i32
    %c0_i32_0 = arith.constant 0 : i32
    %c0_i32_1 = arith.constant 0 : i32
    return %arg1, %c0_i32, %c0_i32_0 : i32, i32, i32
  }
  func.func @transform_5(%arg0: i32, %arg1: i32) -> (i32, i32, i32, i32) {
    %c0_i32 = arith.constant 0 : i32
    %c0_i32_0 = arith.constant 0 : i32
    %c0_i32_1 = arith.constant 0 : i32
    %c0_i32_2 = arith.constant 0 : i32
    return %arg0, %c0_i32, %c0_i32_0, %c0_i32_1 : i32, i32, i32, i32
  }
}

module attributes {stable_mosaic.version = 11 : i64} {
  func.func @attn_block_kernel(%arg0: i32, %arg1: memref<1x64x128xf32, #tpu.memory_space<vmem>>, %arg2: memref<1x64x128xf32, #tpu.memory_space<vmem>>, %arg3: memref<1x64x128xf32, #tpu.memory_space<vmem>>, %arg4: memref<384x128xbf16, #tpu.memory_space<vmem>>, %arg5: memref<1x128xf32, #tpu.memory_space<vmem>>, %arg6: memref<128x256xbf16, #tpu.memory_space<vmem>>, %arg7: memref<1x256xf32, #tpu.memory_space<vmem>>, %arg8: memref<512x256xbf16, #tpu.memory_space<vmem>>, %arg9: memref<1x256xf32, #tpu.memory_space<vmem>>, %arg10: memref<256x128xbf16, #tpu.memory_space<vmem>>, %arg11: memref<1x128xf32, #tpu.memory_space<vmem>>, %arg12: memref<128x256xbf16, #tpu.memory_space<vmem>>, %arg13: memref<1x256xf32, #tpu.memory_space<vmem>>, %arg14: memref<384x128xbf16, #tpu.memory_space<vmem>>, %arg15: memref<1x128xf32, #tpu.memory_space<vmem>>, %arg16: memref<256x128xbf16, #tpu.memory_space<vmem>>, %arg17: memref<1x128xf32, #tpu.memory_space<vmem>>, %arg18: memref<128x256xbf16, #tpu.memory_space<vmem>>, %arg19: memref<1x256xf32, #tpu.memory_space<vmem>>, %arg20: memref<1x64x128xf32, #tpu.memory_space<vmem>>) attributes {dimension_semantics = [#tpu.dimension_semantics<parallel>], iteration_bounds = array<i64: 2>, scalar_prefetch = 0 : i64, scratch_operands = 0 : i64, tpu.core_type = #tpu.core_type<tc>, window_params = [{transform_indices = @transform_0, window_bounds = array<i64: 1, 64, 128>}, {transform_indices = @transform_1, window_bounds = array<i64: 1, 64, 128>}, {transform_indices = @transform_2, window_bounds = array<i64: 1, 64, 128>}, {pipeline_mode = #tpu.pipeline_mode<synchronous>, transform_indices = @transform_3, window_bounds = array<i64: 384, 128>}, {pipeline_mode = #tpu.pipeline_mode<synchronous>, transform_indices = @transform_4, window_bounds = array<i64: 1, 128>}, {pipeline_mode = #tpu.pipeline_mode<synchronous>, transform_indices = @transform_5, window_bounds = array<i64: 128, 256>}, {pipeline_mode = #tpu.pipeline_mode<synchronous>, transform_indices = @transform_6, window_bounds = array<i64: 1, 256>}, {pipeline_mode = #tpu.pipeline_mode<synchronous>, transform_indices = @transform_7, window_bounds = array<i64: 512, 256>}, {pipeline_mode = #tpu.pipeline_mode<synchronous>, transform_indices = @transform_8, window_bounds = array<i64: 1, 256>}, {pipeline_mode = #tpu.pipeline_mode<synchronous>, transform_indices = @transform_9, window_bounds = array<i64: 256, 128>}, {pipeline_mode = #tpu.pipeline_mode<synchronous>, transform_indices = @transform_10, window_bounds = array<i64: 1, 128>}, {pipeline_mode = #tpu.pipeline_mode<synchronous>, transform_indices = @transform_11, window_bounds = array<i64: 128, 256>}, {pipeline_mode = #tpu.pipeline_mode<synchronous>, transform_indices = @transform_12, window_bounds = array<i64: 1, 256>}, {pipeline_mode = #tpu.pipeline_mode<synchronous>, transform_indices = @transform_13, window_bounds = array<i64: 384, 128>}, {pipeline_mode = #tpu.pipeline_mode<synchronous>, transform_indices = @transform_14, window_bounds = array<i64: 1, 128>}, {pipeline_mode = #tpu.pipeline_mode<synchronous>, transform_indices = @transform_15, window_bounds = array<i64: 256, 128>}, {pipeline_mode = #tpu.pipeline_mode<synchronous>, transform_indices = @transform_16, window_bounds = array<i64: 1, 128>}, {pipeline_mode = #tpu.pipeline_mode<synchronous>, transform_indices = @transform_17, window_bounds = array<i64: 128, 256>}, {pipeline_mode = #tpu.pipeline_mode<synchronous>, transform_indices = @transform_18, window_bounds = array<i64: 1, 256>}, {transform_indices = @transform_19, window_bounds = array<i64: 1, 64, 128>}]} {
    %c0 = arith.constant 0 : index
    %c0_0 = arith.constant 0 : index
    %c0_1 = arith.constant 0 : index
    %0 = vector.load %arg1[%c0, %c0_0, %c0_1] : memref<1x64x128xf32, #tpu.memory_space<vmem>>, vector<1x64x128xf32>
    %1 = vector.shape_cast %0 : vector<1x64x128xf32> to vector<64x128xf32>
    %c0_2 = arith.constant 0 : index
    %c0_3 = arith.constant 0 : index
    %c0_4 = arith.constant 0 : index
    %2 = vector.load %arg2[%c0_2, %c0_3, %c0_4] : memref<1x64x128xf32, #tpu.memory_space<vmem>>, vector<1x64x128xf32>
    %3 = vector.shape_cast %2 : vector<1x64x128xf32> to vector<64x128xf32>
    %c0_5 = arith.constant 0 : index
    %c0_6 = arith.constant 0 : index
    %c0_7 = arith.constant 0 : index
    %4 = vector.load %arg3[%c0_5, %c0_6, %c0_7] : memref<1x64x128xf32, #tpu.memory_space<vmem>>, vector<1x64x128xf32>
    %5 = vector.shape_cast %4 : vector<1x64x128xf32> to vector<64x128xf32>
    %cst = arith.constant 0.000000e+00 : f32
    %6 = vector.broadcast %cst : f32 to vector<64x128xf32>
    %7 = arith.cmpf ogt, %1, %6 : vector<64x128xf32>
    %cst_8 = arith.constant 0.000000e+00 : f32
    %8 = vector.broadcast %cst_8 : f32 to vector<64x128xf32>
    %9 = arith.minimumf %1, %8 : vector<64x128xf32>
    %10 = math.exp %9 : vector<64x128xf32>
    %cst_9 = arith.constant 1.000000e+00 : f32
    %11 = vector.broadcast %cst_9 : f32 to vector<64x128xf32>
    %12 = arith.subf %10, %11 : vector<64x128xf32>
    %13 = arith.select %7, %1, %12 : vector<64x128xi1>, vector<64x128xf32>
    %cst_10 = arith.constant 0.000000e+00 : f32
    %14 = vector.broadcast %cst_10 : f32 to vector<64x128xf32>
    %15 = arith.cmpf ogt, %3, %14 : vector<64x128xf32>
    %cst_11 = arith.constant 0.000000e+00 : f32
    %16 = vector.broadcast %cst_11 : f32 to vector<64x128xf32>
    %17 = arith.minimumf %3, %16 : vector<64x128xf32>
    %18 = math.exp %17 : vector<64x128xf32>
    %cst_12 = arith.constant 1.000000e+00 : f32
    %19 = vector.broadcast %cst_12 : f32 to vector<64x128xf32>
    %20 = arith.subf %18, %19 : vector<64x128xf32>
    %21 = arith.select %15, %3, %20 : vector<64x128xi1>, vector<64x128xf32>
    %cst_13 = arith.constant 0.000000e+00 : f32
    %22 = vector.broadcast %cst_13 : f32 to vector<64x128xf32>
    %23 = arith.cmpf ogt, %5, %22 : vector<64x128xf32>
    %cst_14 = arith.constant 0.000000e+00 : f32
    %24 = vector.broadcast %cst_14 : f32 to vector<64x128xf32>
    %25 = arith.minimumf %5, %24 : vector<64x128xf32>
    %26 = math.exp %25 : vector<64x128xf32>
    %cst_15 = arith.constant 1.000000e+00 : f32
    %27 = vector.broadcast %cst_15 : f32 to vector<64x128xf32>
    %28 = arith.subf %26, %27 : vector<64x128xf32>
    %29 = arith.select %23, %5, %28 : vector<64x128xi1>, vector<64x128xf32>
    %30 = tpu.concatenate %13, %21, %29 in 1 : vector<64x128xf32>, vector<64x128xf32>, vector<64x128xf32> -> vector<64x384xf32>
    %31 = arith.truncf %30 : vector<64x384xf32> to vector<64x384xbf16>
    %c0_16 = arith.constant 0 : index
    %c0_17 = arith.constant 0 : index
    %32 = vector.load %arg4[%c0_16, %c0_17] : memref<384x128xbf16, #tpu.memory_space<vmem>>, vector<384x128xbf16>
    %cst_18 = arith.constant dense<0.000000e+00> : vector<64x128xf32>
    %33 = tpu.matmul %31, %32, %cst_18 {dimension_numbers = #tpu.dot_dimension_numbers<[1], [0], [0], [1], [0, 0, 1, 1], [], []>} : vector<64x384xbf16>, vector<384x128xbf16>, vector<64x128xf32> -> vector<64x128xf32>
    %c0_19 = arith.constant 0 : index
    %c0_20 = arith.constant 0 : index
    %34 = vector.load %arg5[%c0_19, %c0_20] : memref<1x128xf32, #tpu.memory_space<vmem>>, vector<1x128xf32>
    %35 = vector.broadcast %34 : vector<1x128xf32> to vector<64x128xf32>
    %36 = arith.addf %33, %35 : vector<64x128xf32>
    %cst_21 = arith.constant 0.000000e+00 : f32
    %37 = vector.broadcast %cst_21 : f32 to vector<64x128xf32>
    %38 = arith.cmpf ogt, %36, %37 : vector<64x128xf32>
    %cst_22 = arith.constant 0.000000e+00 : f32
    %39 = vector.broadcast %cst_22 : f32 to vector<64x128xf32>
    %40 = arith.minimumf %36, %39 : vector<64x128xf32>
    %41 = math.exp %40 : vector<64x128xf32>
    %cst_23 = arith.constant 1.000000e+00 : f32
    %42 = vector.broadcast %cst_23 : f32 to vector<64x128xf32>
    %43 = arith.subf %41, %42 : vector<64x128xf32>
    %44 = arith.select %38, %36, %43 : vector<64x128xi1>, vector<64x128xf32>
    %45 = arith.truncf %44 : vector<64x128xf32> to vector<64x128xbf16>
    %c0_24 = arith.constant 0 : index
    %c0_25 = arith.constant 0 : index
    %46 = vector.load %arg6[%c0_24, %c0_25] : memref<128x256xbf16, #tpu.memory_space<vmem>>, vector<128x256xbf16>
    %cst_26 = arith.constant dense<0.000000e+00> : vector<64x256xf32>
    %47 = tpu.matmul %45, %46, %cst_26 {dimension_numbers = #tpu.dot_dimension_numbers<[1], [0], [0], [1], [0, 0, 1, 1], [], []>} : vector<64x128xbf16>, vector<128x256xbf16>, vector<64x256xf32> -> vector<64x256xf32>
    %c0_27 = arith.constant 0 : index
    %c0_28 = arith.constant 0 : index
    %48 = vector.load %arg7[%c0_27, %c0_28] : memref<1x256xf32, #tpu.memory_space<vmem>>, vector<1x256xf32>
    %49 = vector.broadcast %48 : vector<1x256xf32> to vector<64x256xf32>
    %50 = arith.addf %47, %49 : vector<64x256xf32>
    %51 = vector.extract_strided_slice %50 {offsets = [0, 0], sizes = [64, 128], strides = [1, 1]} : vector<64x256xf32> to vector<64x128xf32>
    %52 = vector.extract_strided_slice %50 {offsets = [0, 128], sizes = [64, 128], strides = [1, 1]} : vector<64x256xf32> to vector<64x128xf32>
    %53 = arith.negf %52 : vector<64x128xf32>
    %54 = math.exp %53 : vector<64x128xf32>
    %cst_29 = arith.constant 1.000000e+00 : f32
    %55 = vector.broadcast %cst_29 : f32 to vector<64x128xf32>
    %56 = arith.addf %55, %54 : vector<64x128xf32>
    %57 = arith.divf %55, %56 : vector<64x128xf32>
    %58 = arith.mulf %51, %57 : vector<64x128xf32>
    %59 = tpu.concatenate %58, %1, %3, %5 in 1 : vector<64x128xf32>, vector<64x128xf32>, vector<64x128xf32>, vector<64x128xf32> -> vector<64x512xf32>
    %60 = arith.truncf %59 : vector<64x512xf32> to vector<64x512xbf16>
    %c0_30 = arith.constant 0 : index
    %c0_31 = arith.constant 0 : index
    %61 = vector.load %arg8[%c0_30, %c0_31] : memref<512x256xbf16, #tpu.memory_space<vmem>>, vector<512x256xbf16>
    %cst_32 = arith.constant dense<0.000000e+00> : vector<64x256xf32>
    %62 = tpu.matmul %60, %61, %cst_32 {dimension_numbers = #tpu.dot_dimension_numbers<[1], [0], [0], [1], [0, 0, 1, 1], [], []>} : vector<64x512xbf16>, vector<512x256xbf16>, vector<64x256xf32> -> vector<64x256xf32>
    %c0_33 = arith.constant 0 : index
    %c0_34 = arith.constant 0 : index
    %63 = vector.load %arg9[%c0_33, %c0_34] : memref<1x256xf32, #tpu.memory_space<vmem>>, vector<1x256xf32>
    %64 = vector.broadcast %63 : vector<1x256xf32> to vector<64x256xf32>
    %65 = arith.addf %62, %64 : vector<64x256xf32>
    %66 = vector.extract_strided_slice %65 {offsets = [0, 0], sizes = [64, 128], strides = [1, 1]} : vector<64x256xf32> to vector<64x128xf32>
    %67 = vector.extract_strided_slice %65 {offsets = [0, 128], sizes = [64, 128], strides = [1, 1]} : vector<64x256xf32> to vector<64x128xf32>
    %68 = tpu.concatenate %21, %29 in 1 : vector<64x128xf32>, vector<64x128xf32> -> vector<64x256xf32>
    %69 = arith.truncf %68 : vector<64x256xf32> to vector<64x256xbf16>
    %c0_35 = arith.constant 0 : index
    %c0_36 = arith.constant 0 : index
    %70 = vector.load %arg10[%c0_35, %c0_36] : memref<256x128xbf16, #tpu.memory_space<vmem>>, vector<256x128xbf16>
    %cst_37 = arith.constant dense<0.000000e+00> : vector<64x128xf32>
    %71 = tpu.matmul %69, %70, %cst_37 {dimension_numbers = #tpu.dot_dimension_numbers<[1], [0], [0], [1], [0, 0, 1, 1], [], []>} : vector<64x256xbf16>, vector<256x128xbf16>, vector<64x128xf32> -> vector<64x128xf32>
    %c0_38 = arith.constant 0 : index
    %c0_39 = arith.constant 0 : index
    %72 = vector.load %arg11[%c0_38, %c0_39] : memref<1x128xf32, #tpu.memory_space<vmem>>, vector<1x128xf32>
    %73 = vector.broadcast %72 : vector<1x128xf32> to vector<64x128xf32>
    %74 = arith.addf %71, %73 : vector<64x128xf32>
    %cst_40 = arith.constant 0.000000e+00 : f32
    %75 = vector.broadcast %cst_40 : f32 to vector<64x128xf32>
    %76 = arith.cmpf ogt, %74, %75 : vector<64x128xf32>
    %cst_41 = arith.constant 0.000000e+00 : f32
    %77 = vector.broadcast %cst_41 : f32 to vector<64x128xf32>
    %78 = arith.minimumf %74, %77 : vector<64x128xf32>
    %79 = math.exp %78 : vector<64x128xf32>
    %cst_42 = arith.constant 1.000000e+00 : f32
    %80 = vector.broadcast %cst_42 : f32 to vector<64x128xf32>
    %81 = arith.subf %79, %80 : vector<64x128xf32>
    %82 = arith.select %76, %74, %81 : vector<64x128xi1>, vector<64x128xf32>
    %83 = arith.truncf %82 : vector<64x128xf32> to vector<64x128xbf16>
    %c0_43 = arith.constant 0 : index
    %c0_44 = arith.constant 0 : index
    %84 = vector.load %arg12[%c0_43, %c0_44] : memref<128x256xbf16, #tpu.memory_space<vmem>>, vector<128x256xbf16>
    %cst_45 = arith.constant dense<0.000000e+00> : vector<64x256xf32>
    %85 = tpu.matmul %83, %84, %cst_45 {dimension_numbers = #tpu.dot_dimension_numbers<[1], [0], [0], [1], [0, 0, 1, 1], [], []>} : vector<64x128xbf16>, vector<128x256xbf16>, vector<64x256xf32> -> vector<64x256xf32>
    %c0_46 = arith.constant 0 : index
    %c0_47 = arith.constant 0 : index
    %86 = vector.load %arg13[%c0_46, %c0_47] : memref<1x256xf32, #tpu.memory_space<vmem>>, vector<1x256xf32>
    %87 = vector.broadcast %86 : vector<1x256xf32> to vector<64x256xf32>
    %88 = arith.addf %85, %87 : vector<64x256xf32>
    %89 = vector.extract_strided_slice %88 {offsets = [0, 0], sizes = [64, 128], strides = [1, 1]} : vector<64x256xf32> to vector<64x128xf32>
    %90 = vector.extract_strided_slice %88 {offsets = [0, 128], sizes = [64, 128], strides = [1, 1]} : vector<64x256xf32> to vector<64x128xf32>
    %91 = arith.negf %90 : vector<64x128xf32>
    %92 = math.exp %91 : vector<64x128xf32>
    %cst_48 = arith.constant 1.000000e+00 : f32
    %93 = vector.broadcast %cst_48 : f32 to vector<64x128xf32>
    %94 = arith.addf %93, %92 : vector<64x128xf32>
    %95 = arith.divf %93, %94 : vector<64x128xf32>
    %96 = arith.mulf %89, %95 : vector<64x128xf32>
    %97 = tpu.concatenate %96, %3, %5 in 1 : vector<64x128xf32>, vector<64x128xf32>, vector<64x128xf32> -> vector<64x384xf32>
    %98 = arith.truncf %97 : vector<64x384xf32> to vector<64x384xbf16>
    %c0_49 = arith.constant 0 : index
    %c0_50 = arith.constant 0 : index
    %99 = vector.load %arg14[%c0_49, %c0_50] : memref<384x128xbf16, #tpu.memory_space<vmem>>, vector<384x128xbf16>
    %cst_51 = arith.constant dense<0.000000e+00> : vector<64x128xf32>
    %100 = tpu.matmul %98, %99, %cst_51 {dimension_numbers = #tpu.dot_dimension_numbers<[1], [0], [0], [1], [0, 0, 1, 1], [], []>} : vector<64x384xbf16>, vector<384x128xbf16>, vector<64x128xf32> -> vector<64x128xf32>
    %c0_52 = arith.constant 0 : index
    %c0_53 = arith.constant 0 : index
    %101 = vector.load %arg15[%c0_52, %c0_53] : memref<1x128xf32, #tpu.memory_space<vmem>>, vector<1x128xf32>
    %102 = vector.broadcast %101 : vector<1x128xf32> to vector<64x128xf32>
    %103 = arith.addf %100, %102 : vector<64x128xf32>
    %104 = tpu.iota {dimensions = array<i32: 0>} : vector<64x64xi32>
    %105 = tpu.iota {dimensions = array<i32: 1>} : vector<64x64xi32>
    %106 = arith.cmpi slt, %105, %104 : vector<64x64xi32>
    %107 = tpu.iota {dimensions = array<i32: 0>} : vector<64x1xi32>
    %c0_i32 = arith.constant 0 : i32
    %108 = vector.broadcast %c0_i32 : i32 to vector<64x1xi32>
    %109 = arith.cmpi sgt, %107, %108 : vector<64x1xi32>
    %110 = arith.extui %109 : vector<64x1xi1> to vector<64x1xi32>
    %111 = arith.sitofp %110 : vector<64x1xi32> to vector<64x1xf32>
    %112 = tpu.transpose %66, [1, 0] : vector<64x128xf32> -> vector<128x64xf32>
    %113 = arith.truncf %112 : vector<128x64xf32> to vector<128x64xbf16>
    %114 = vector.extract_strided_slice %103 {offsets = [0, 0], sizes = [64, 2], strides = [1, 1]} : vector<64x128xf32> to vector<64x2xf32>
    %115 = arith.truncf %114 : vector<64x2xf32> to vector<64x2xbf16>
    %116 = vector.extract_strided_slice %113 {offsets = [0, 0], sizes = [2, 64], strides = [1, 1]} : vector<128x64xbf16> to vector<2x64xbf16>
    %cst_54 = arith.constant dense<0.000000e+00> : vector<64x64xf32>
    %117 = tpu.matmul %115, %116, %cst_54 {dimension_numbers = #tpu.dot_dimension_numbers<[1], [0], [0], [1], [0, 0, 1, 1], [], []>} : vector<64x2xbf16>, vector<2x64xbf16>, vector<64x64xf32> -> vector<64x64xf32>
    %cst_55 = arith.constant -1.000000e+04 : f32
    %118 = vector.broadcast %cst_55 : f32 to vector<64x64xf32>
    %119 = arith.select %106, %117, %118 : vector<64x64xi1>, vector<64x64xf32>
    %cst_56 = arith.constant dense<0xFF800000> : vector<64xf32>
    %120 = vector.multi_reduction <maximumf>, %119, %cst_56 [1] : vector<64x64xf32> to vector<64xf32>
    %121 = vector.shape_cast %120 : vector<64xf32> to vector<64x1xf32>
    %122 = vector.broadcast %121 : vector<64x1xf32> to vector<64x64xf32>
    %123 = arith.subf %119, %122 : vector<64x64xf32>
    %124 = math.exp %123 : vector<64x64xf32>
    %cst_57 = arith.constant dense<0.000000e+00> : vector<64xf32>
    %125 = vector.multi_reduction <add>, %124, %cst_57 [1] : vector<64x64xf32> to vector<64xf32>
    %126 = vector.shape_cast %125 : vector<64xf32> to vector<64x1xf32>
    %127 = tpu.reciprocal %126 {approx = true} : vector<64x1xf32> -> vector<64x1xf32>
    %128 = vector.broadcast %127 : vector<64x1xf32> to vector<64x64xf32>
    %129 = arith.mulf %124, %128 : vector<64x64xf32>
    %130 = vector.broadcast %111 : vector<64x1xf32> to vector<64x64xf32>
    %131 = arith.mulf %129, %130 : vector<64x64xf32>
    %132 = vector.extract_strided_slice %67 {offsets = [0, 0], sizes = [64, 2], strides = [1, 1]} : vector<64x128xf32> to vector<64x2xf32>
    %133 = arith.truncf %132 : vector<64x2xf32> to vector<64x2xbf16>
    %134 = arith.truncf %131 : vector<64x64xf32> to vector<64x64xbf16>
    %cst_58 = arith.constant dense<0.000000e+00> : vector<64x2xf32>
    %135 = tpu.matmul %134, %133, %cst_58 {dimension_numbers = #tpu.dot_dimension_numbers<[1], [0], [0], [1], [0, 0, 1, 1], [], []>} : vector<64x64xbf16>, vector<64x2xbf16>, vector<64x2xf32> -> vector<64x2xf32>
    %136 = vector.extract_strided_slice %103 {offsets = [0, 2], sizes = [64, 2], strides = [1, 1]} : vector<64x128xf32> to vector<64x2xf32>
    %137 = arith.truncf %136 : vector<64x2xf32> to vector<64x2xbf16>
    %138 = vector.extract_strided_slice %113 {offsets = [2, 0], sizes = [2, 64], strides = [1, 1]} : vector<128x64xbf16> to vector<2x64xbf16>
    %cst_59 = arith.constant dense<0.000000e+00> : vector<64x64xf32>
    %139 = tpu.matmul %137, %138, %cst_59 {dimension_numbers = #tpu.dot_dimension_numbers<[1], [0], [0], [1], [0, 0, 1, 1], [], []>} : vector<64x2xbf16>, vector<2x64xbf16>, vector<64x64xf32> -> vector<64x64xf32>
    %cst_60 = arith.constant -1.000000e+04 : f32
    %140 = vector.broadcast %cst_60 : f32 to vector<64x64xf32>
    %141 = arith.select %106, %139, %140 : vector<64x64xi1>, vector<64x64xf32>
    %cst_61 = arith.constant dense<0xFF800000> : vector<64xf32>
    %142 = vector.multi_reduction <maximumf>, %141, %cst_61 [1] : vector<64x64xf32> to vector<64xf32>
    %143 = vector.shape_cast %142 : vector<64xf32> to vector<64x1xf32>
    %144 = vector.broadcast %143 : vector<64x1xf32> to vector<64x64xf32>
    %145 = arith.subf %141, %144 : vector<64x64xf32>
    %146 = math.exp %145 : vector<64x64xf32>
    %cst_62 = arith.constant dense<0.000000e+00> : vector<64xf32>
    %147 = vector.multi_reduction <add>, %146, %cst_62 [1] : vector<64x64xf32> to vector<64xf32>
    %148 = vector.shape_cast %147 : vector<64xf32> to vector<64x1xf32>
    %149 = tpu.reciprocal %148 {approx = true} : vector<64x1xf32> -> vector<64x1xf32>
    %150 = vector.broadcast %149 : vector<64x1xf32> to vector<64x64xf32>
    %151 = arith.mulf %146, %150 : vector<64x64xf32>
    %152 = vector.broadcast %111 : vector<64x1xf32> to vector<64x64xf32>
    %153 = arith.mulf %151, %152 : vector<64x64xf32>
    %154 = vector.extract_strided_slice %67 {offsets = [0, 2], sizes = [64, 2], strides = [1, 1]} : vector<64x128xf32> to vector<64x2xf32>
    %155 = arith.truncf %154 : vector<64x2xf32> to vector<64x2xbf16>
    %156 = arith.truncf %153 : vector<64x64xf32> to vector<64x64xbf16>
    %cst_63 = arith.constant dense<0.000000e+00> : vector<64x2xf32>
    %157 = tpu.matmul %156, %155, %cst_63 {dimension_numbers = #tpu.dot_dimension_numbers<[1], [0], [0], [1], [0, 0, 1, 1], [], []>} : vector<64x64xbf16>, vector<64x2xbf16>, vector<64x2xf32> -> vector<64x2xf32>
    %158 = vector.extract_strided_slice %103 {offsets = [0, 4], sizes = [64, 2], strides = [1, 1]} : vector<64x128xf32> to vector<64x2xf32>
    %159 = arith.truncf %158 : vector<64x2xf32> to vector<64x2xbf16>
    %160 = vector.extract_strided_slice %113 {offsets = [4, 0], sizes = [2, 64], strides = [1, 1]} : vector<128x64xbf16> to vector<2x64xbf16>
    %cst_64 = arith.constant dense<0.000000e+00> : vector<64x64xf32>
    %161 = tpu.matmul %159, %160, %cst_64 {dimension_numbers = #tpu.dot_dimension_numbers<[1], [0], [0], [1], [0, 0, 1, 1], [], []>} : vector<64x2xbf16>, vector<2x64xbf16>, vector<64x64xf32> -> vector<64x64xf32>
    %cst_65 = arith.constant -1.000000e+04 : f32
    %162 = vector.broadcast %cst_65 : f32 to vector<64x64xf32>
    %163 = arith.select %106, %161, %162 : vector<64x64xi1>, vector<64x64xf32>
    %cst_66 = arith.constant dense<0xFF800000> : vector<64xf32>
    %164 = vector.multi_reduction <maximumf>, %163, %cst_66 [1] : vector<64x64xf32> to vector<64xf32>
    %165 = vector.shape_cast %164 : vector<64xf32> to vector<64x1xf32>
    %166 = vector.broadcast %165 : vector<64x1xf32> to vector<64x64xf32>
    %167 = arith.subf %163, %166 : vector<64x64xf32>
    %168 = math.exp %167 : vector<64x64xf32>
    %cst_67 = arith.constant dense<0.000000e+00> : vector<64xf32>
    %169 = vector.multi_reduction <add>, %168, %cst_67 [1] : vector<64x64xf32> to vector<64xf32>
    %170 = vector.shape_cast %169 : vector<64xf32> to vector<64x1xf32>
    %171 = tpu.reciprocal %170 {approx = true} : vector<64x1xf32> -> vector<64x1xf32>
    %172 = vector.broadcast %171 : vector<64x1xf32> to vector<64x64xf32>
    %173 = arith.mulf %168, %172 : vector<64x64xf32>
    %174 = vector.broadcast %111 : vector<64x1xf32> to vector<64x64xf32>
    %175 = arith.mulf %173, %174 : vector<64x64xf32>
    %176 = vector.extract_strided_slice %67 {offsets = [0, 4], sizes = [64, 2], strides = [1, 1]} : vector<64x128xf32> to vector<64x2xf32>
    %177 = arith.truncf %176 : vector<64x2xf32> to vector<64x2xbf16>
    %178 = arith.truncf %175 : vector<64x64xf32> to vector<64x64xbf16>
    %cst_68 = arith.constant dense<0.000000e+00> : vector<64x2xf32>
    %179 = tpu.matmul %178, %177, %cst_68 {dimension_numbers = #tpu.dot_dimension_numbers<[1], [0], [0], [1], [0, 0, 1, 1], [], []>} : vector<64x64xbf16>, vector<64x2xbf16>, vector<64x2xf32> -> vector<64x2xf32>
    %180 = vector.extract_strided_slice %103 {offsets = [0, 6], sizes = [64, 2], strides = [1, 1]} : vector<64x128xf32> to vector<64x2xf32>
    %181 = arith.truncf %180 : vector<64x2xf32> to vector<64x2xbf16>
    %182 = vector.extract_strided_slice %113 {offsets = [6, 0], sizes = [2, 64], strides = [1, 1]} : vector<128x64xbf16> to vector<2x64xbf16>
    %cst_69 = arith.constant dense<0.000000e+00> : vector<64x64xf32>
    %183 = tpu.matmul %181, %182, %cst_69 {dimension_numbers = #tpu.dot_dimension_numbers<[1], [0], [0], [1], [0, 0, 1, 1], [], []>} : vector<64x2xbf16>, vector<2x64xbf16>, vector<64x64xf32> -> vector<64x64xf32>
    %cst_70 = arith.constant -1.000000e+04 : f32
    %184 = vector.broadcast %cst_70 : f32 to vector<64x64xf32>
    %185 = arith.select %106, %183, %184 : vector<64x64xi1>, vector<64x64xf32>
    %cst_71 = arith.constant dense<0xFF800000> : vector<64xf32>
    %186 = vector.multi_reduction <maximumf>, %185, %cst_71 [1] : vector<64x64xf32> to vector<64xf32>
    %187 = vector.shape_cast %186 : vector<64xf32> to vector<64x1xf32>
    %188 = vector.broadcast %187 : vector<64x1xf32> to vector<64x64xf32>
    %189 = arith.subf %185, %188 : vector<64x64xf32>
    %190 = math.exp %189 : vector<64x64xf32>
    %cst_72 = arith.constant dense<0.000000e+00> : vector<64xf32>
    %191 = vector.multi_reduction <add>, %190, %cst_72 [1] : vector<64x64xf32> to vector<64xf32>
    %192 = vector.shape_cast %191 : vector<64xf32> to vector<64x1xf32>
    %193 = tpu.reciprocal %192 {approx = true} : vector<64x1xf32> -> vector<64x1xf32>
    %194 = vector.broadcast %193 : vector<64x1xf32> to vector<64x64xf32>
    %195 = arith.mulf %190, %194 : vector<64x64xf32>
    %196 = vector.broadcast %111 : vector<64x1xf32> to vector<64x64xf32>
    %197 = arith.mulf %195, %196 : vector<64x64xf32>
    %198 = vector.extract_strided_slice %67 {offsets = [0, 6], sizes = [64, 2], strides = [1, 1]} : vector<64x128xf32> to vector<64x2xf32>
    %199 = arith.truncf %198 : vector<64x2xf32> to vector<64x2xbf16>
    %200 = arith.truncf %197 : vector<64x64xf32> to vector<64x64xbf16>
    %cst_73 = arith.constant dense<0.000000e+00> : vector<64x2xf32>
    %201 = tpu.matmul %200, %199, %cst_73 {dimension_numbers = #tpu.dot_dimension_numbers<[1], [0], [0], [1], [0, 0, 1, 1], [], []>} : vector<64x64xbf16>, vector<64x2xbf16>, vector<64x2xf32> -> vector<64x2xf32>
    %202 = vector.extract_strided_slice %103 {offsets = [0, 8], sizes = [64, 2], strides = [1, 1]} : vector<64x128xf32> to vector<64x2xf32>
    %203 = arith.truncf %202 : vector<64x2xf32> to vector<64x2xbf16>
    %204 = vector.extract_strided_slice %113 {offsets = [8, 0], sizes = [2, 64], strides = [1, 1]} : vector<128x64xbf16> to vector<2x64xbf16>
    %cst_74 = arith.constant dense<0.000000e+00> : vector<64x64xf32>
    %205 = tpu.matmul %203, %204, %cst_74 {dimension_numbers = #tpu.dot_dimension_numbers<[1], [0], [0], [1], [0, 0, 1, 1], [], []>} : vector<64x2xbf16>, vector<2x64xbf16>, vector<64x64xf32> -> vector<64x64xf32>
    %cst_75 = arith.constant -1.000000e+04 : f32
    %206 = vector.broadcast %cst_75 : f32 to vector<64x64xf32>
    %207 = arith.select %106, %205, %206 : vector<64x64xi1>, vector<64x64xf32>
    %cst_76 = arith.constant dense<0xFF800000> : vector<64xf32>
    %208 = vector.multi_reduction <maximumf>, %207, %cst_76 [1] : vector<64x64xf32> to vector<64xf32>
    %209 = vector.shape_cast %208 : vector<64xf32> to vector<64x1xf32>
    %210 = vector.broadcast %209 : vector<64x1xf32> to vector<64x64xf32>
    %211 = arith.subf %207, %210 : vector<64x64xf32>
    %212 = math.exp %211 : vector<64x64xf32>
    %cst_77 = arith.constant dense<0.000000e+00> : vector<64xf32>
    %213 = vector.multi_reduction <add>, %212, %cst_77 [1] : vector<64x64xf32> to vector<64xf32>
    %214 = vector.shape_cast %213 : vector<64xf32> to vector<64x1xf32>
    %215 = tpu.reciprocal %214 {approx = true} : vector<64x1xf32> -> vector<64x1xf32>
    %216 = vector.broadcast %215 : vector<64x1xf32> to vector<64x64xf32>
    %217 = arith.mulf %212, %216 : vector<64x64xf32>
    %218 = vector.broadcast %111 : vector<64x1xf32> to vector<64x64xf32>
    %219 = arith.mulf %217, %218 : vector<64x64xf32>
    %220 = vector.extract_strided_slice %67 {offsets = [0, 8], sizes = [64, 2], strides = [1, 1]} : vector<64x128xf32> to vector<64x2xf32>
    %221 = arith.truncf %220 : vector<64x2xf32> to vector<64x2xbf16>
    %222 = arith.truncf %219 : vector<64x64xf32> to vector<64x64xbf16>
    %cst_78 = arith.constant dense<0.000000e+00> : vector<64x2xf32>
    %223 = tpu.matmul %222, %221, %cst_78 {dimension_numbers = #tpu.dot_dimension_numbers<[1], [0], [0], [1], [0, 0, 1, 1], [], []>} : vector<64x64xbf16>, vector<64x2xbf16>, vector<64x2xf32> -> vector<64x2xf32>
    %224 = vector.extract_strided_slice %103 {offsets = [0, 10], sizes = [64, 2], strides = [1, 1]} : vector<64x128xf32> to vector<64x2xf32>
    %225 = arith.truncf %224 : vector<64x2xf32> to vector<64x2xbf16>
    %226 = vector.extract_strided_slice %113 {offsets = [10, 0], sizes = [2, 64], strides = [1, 1]} : vector<128x64xbf16> to vector<2x64xbf16>
    %cst_79 = arith.constant dense<0.000000e+00> : vector<64x64xf32>
    %227 = tpu.matmul %225, %226, %cst_79 {dimension_numbers = #tpu.dot_dimension_numbers<[1], [0], [0], [1], [0, 0, 1, 1], [], []>} : vector<64x2xbf16>, vector<2x64xbf16>, vector<64x64xf32> -> vector<64x64xf32>
    %cst_80 = arith.constant -1.000000e+04 : f32
    %228 = vector.broadcast %cst_80 : f32 to vector<64x64xf32>
    %229 = arith.select %106, %227, %228 : vector<64x64xi1>, vector<64x64xf32>
    %cst_81 = arith.constant dense<0xFF800000> : vector<64xf32>
    %230 = vector.multi_reduction <maximumf>, %229, %cst_81 [1] : vector<64x64xf32> to vector<64xf32>
    %231 = vector.shape_cast %230 : vector<64xf32> to vector<64x1xf32>
    %232 = vector.broadcast %231 : vector<64x1xf32> to vector<64x64xf32>
    %233 = arith.subf %229, %232 : vector<64x64xf32>
    %234 = math.exp %233 : vector<64x64xf32>
    %cst_82 = arith.constant dense<0.000000e+00> : vector<64xf32>
    %235 = vector.multi_reduction <add>, %234, %cst_82 [1] : vector<64x64xf32> to vector<64xf32>
    %236 = vector.shape_cast %235 : vector<64xf32> to vector<64x1xf32>
    %237 = tpu.reciprocal %236 {approx = true} : vector<64x1xf32> -> vector<64x1xf32>
    %238 = vector.broadcast %237 : vector<64x1xf32> to vector<64x64xf32>
    %239 = arith.mulf %234, %238 : vector<64x64xf32>
    %240 = vector.broadcast %111 : vector<64x1xf32> to vector<64x64xf32>
    %241 = arith.mulf %239, %240 : vector<64x64xf32>
    %242 = vector.extract_strided_slice %67 {offsets = [0, 10], sizes = [64, 2], strides = [1, 1]} : vector<64x128xf32> to vector<64x2xf32>
    %243 = arith.truncf %242 : vector<64x2xf32> to vector<64x2xbf16>
    %244 = arith.truncf %241 : vector<64x64xf32> to vector<64x64xbf16>
    %cst_83 = arith.constant dense<0.000000e+00> : vector<64x2xf32>
    %245 = tpu.matmul %244, %243, %cst_83 {dimension_numbers = #tpu.dot_dimension_numbers<[1], [0], [0], [1], [0, 0, 1, 1], [], []>} : vector<64x64xbf16>, vector<64x2xbf16>, vector<64x2xf32> -> vector<64x2xf32>
    %246 = vector.extract_strided_slice %103 {offsets = [0, 12], sizes = [64, 2], strides = [1, 1]} : vector<64x128xf32> to vector<64x2xf32>
    %247 = arith.truncf %246 : vector<64x2xf32> to vector<64x2xbf16>
    %248 = vector.extract_strided_slice %113 {offsets = [12, 0], sizes = [2, 64], strides = [1, 1]} : vector<128x64xbf16> to vector<2x64xbf16>
    %cst_84 = arith.constant dense<0.000000e+00> : vector<64x64xf32>
    %249 = tpu.matmul %247, %248, %cst_84 {dimension_numbers = #tpu.dot_dimension_numbers<[1], [0], [0], [1], [0, 0, 1, 1], [], []>} : vector<64x2xbf16>, vector<2x64xbf16>, vector<64x64xf32> -> vector<64x64xf32>
    %cst_85 = arith.constant -1.000000e+04 : f32
    %250 = vector.broadcast %cst_85 : f32 to vector<64x64xf32>
    %251 = arith.select %106, %249, %250 : vector<64x64xi1>, vector<64x64xf32>
    %cst_86 = arith.constant dense<0xFF800000> : vector<64xf32>
    %252 = vector.multi_reduction <maximumf>, %251, %cst_86 [1] : vector<64x64xf32> to vector<64xf32>
    %253 = vector.shape_cast %252 : vector<64xf32> to vector<64x1xf32>
    %254 = vector.broadcast %253 : vector<64x1xf32> to vector<64x64xf32>
    %255 = arith.subf %251, %254 : vector<64x64xf32>
    %256 = math.exp %255 : vector<64x64xf32>
    %cst_87 = arith.constant dense<0.000000e+00> : vector<64xf32>
    %257 = vector.multi_reduction <add>, %256, %cst_87 [1] : vector<64x64xf32> to vector<64xf32>
    %258 = vector.shape_cast %257 : vector<64xf32> to vector<64x1xf32>
    %259 = tpu.reciprocal %258 {approx = true} : vector<64x1xf32> -> vector<64x1xf32>
    %260 = vector.broadcast %259 : vector<64x1xf32> to vector<64x64xf32>
    %261 = arith.mulf %256, %260 : vector<64x64xf32>
    %262 = vector.broadcast %111 : vector<64x1xf32> to vector<64x64xf32>
    %263 = arith.mulf %261, %262 : vector<64x64xf32>
    %264 = vector.extract_strided_slice %67 {offsets = [0, 12], sizes = [64, 2], strides = [1, 1]} : vector<64x128xf32> to vector<64x2xf32>
    %265 = arith.truncf %264 : vector<64x2xf32> to vector<64x2xbf16>
    %266 = arith.truncf %263 : vector<64x64xf32> to vector<64x64xbf16>
    %cst_88 = arith.constant dense<0.000000e+00> : vector<64x2xf32>
    %267 = tpu.matmul %266, %265, %cst_88 {dimension_numbers = #tpu.dot_dimension_numbers<[1], [0], [0], [1], [0, 0, 1, 1], [], []>} : vector<64x64xbf16>, vector<64x2xbf16>, vector<64x2xf32> -> vector<64x2xf32>
    %268 = vector.extract_strided_slice %103 {offsets = [0, 14], sizes = [64, 2], strides = [1, 1]} : vector<64x128xf32> to vector<64x2xf32>
    %269 = arith.truncf %268 : vector<64x2xf32> to vector<64x2xbf16>
    %270 = vector.extract_strided_slice %113 {offsets = [14, 0], sizes = [2, 64], strides = [1, 1]} : vector<128x64xbf16> to vector<2x64xbf16>
    %cst_89 = arith.constant dense<0.000000e+00> : vector<64x64xf32>
    %271 = tpu.matmul %269, %270, %cst_89 {dimension_numbers = #tpu.dot_dimension_numbers<[1], [0], [0], [1], [0, 0, 1, 1], [], []>} : vector<64x2xbf16>, vector<2x64xbf16>, vector<64x64xf32> -> vector<64x64xf32>
    %cst_90 = arith.constant -1.000000e+04 : f32
    %272 = vector.broadcast %cst_90 : f32 to vector<64x64xf32>
    %273 = arith.select %106, %271, %272 : vector<64x64xi1>, vector<64x64xf32>
    %cst_91 = arith.constant dense<0xFF800000> : vector<64xf32>
    %274 = vector.multi_reduction <maximumf>, %273, %cst_91 [1] : vector<64x64xf32> to vector<64xf32>
    %275 = vector.shape_cast %274 : vector<64xf32> to vector<64x1xf32>
    %276 = vector.broadcast %275 : vector<64x1xf32> to vector<64x64xf32>
    %277 = arith.subf %273, %276 : vector<64x64xf32>
    %278 = math.exp %277 : vector<64x64xf32>
    %cst_92 = arith.constant dense<0.000000e+00> : vector<64xf32>
    %279 = vector.multi_reduction <add>, %278, %cst_92 [1] : vector<64x64xf32> to vector<64xf32>
    %280 = vector.shape_cast %279 : vector<64xf32> to vector<64x1xf32>
    %281 = tpu.reciprocal %280 {approx = true} : vector<64x1xf32> -> vector<64x1xf32>
    %282 = vector.broadcast %281 : vector<64x1xf32> to vector<64x64xf32>
    %283 = arith.mulf %278, %282 : vector<64x64xf32>
    %284 = vector.broadcast %111 : vector<64x1xf32> to vector<64x64xf32>
    %285 = arith.mulf %283, %284 : vector<64x64xf32>
    %286 = vector.extract_strided_slice %67 {offsets = [0, 14], sizes = [64, 2], strides = [1, 1]} : vector<64x128xf32> to vector<64x2xf32>
    %287 = arith.truncf %286 : vector<64x2xf32> to vector<64x2xbf16>
    %288 = arith.truncf %285 : vector<64x64xf32> to vector<64x64xbf16>
    %cst_93 = arith.constant dense<0.000000e+00> : vector<64x2xf32>
    %289 = tpu.matmul %288, %287, %cst_93 {dimension_numbers = #tpu.dot_dimension_numbers<[1], [0], [0], [1], [0, 0, 1, 1], [], []>} : vector<64x64xbf16>, vector<64x2xbf16>, vector<64x2xf32> -> vector<64x2xf32>
    %cst_94 = arith.constant 0.000000e+00 : f32
    %290 = vector.broadcast %cst_94 : f32 to vector<64x112xf32>
    %291 = tpu.concatenate %135, %157, %179, %201, %223, %245, %267, %289, %290 in 1 : vector<64x2xf32>, vector<64x2xf32>, vector<64x2xf32>, vector<64x2xf32>, vector<64x2xf32>, vector<64x2xf32>, vector<64x2xf32>, vector<64x2xf32>, vector<64x112xf32> -> vector<64x128xf32>
    %cst_95 = arith.constant 0.000000e+00 : f32
    %292 = vector.broadcast %cst_95 : f32 to vector<64x128xf32>
    %293 = arith.cmpf ogt, %291, %292 : vector<64x128xf32>
    %cst_96 = arith.constant 0.000000e+00 : f32
    %294 = vector.broadcast %cst_96 : f32 to vector<64x128xf32>
    %295 = arith.minimumf %291, %294 : vector<64x128xf32>
    %296 = math.exp %295 : vector<64x128xf32>
    %cst_97 = arith.constant 1.000000e+00 : f32
    %297 = vector.broadcast %cst_97 : f32 to vector<64x128xf32>
    %298 = arith.subf %296, %297 : vector<64x128xf32>
    %299 = arith.select %293, %291, %298 : vector<64x128xi1>, vector<64x128xf32>
    %300 = tpu.concatenate %21, %299 in 1 : vector<64x128xf32>, vector<64x128xf32> -> vector<64x256xf32>
    %301 = arith.truncf %300 : vector<64x256xf32> to vector<64x256xbf16>
    %c0_98 = arith.constant 0 : index
    %c0_99 = arith.constant 0 : index
    %302 = vector.load %arg16[%c0_98, %c0_99] : memref<256x128xbf16, #tpu.memory_space<vmem>>, vector<256x128xbf16>
    %cst_100 = arith.constant dense<0.000000e+00> : vector<64x128xf32>
    %303 = tpu.matmul %301, %302, %cst_100 {dimension_numbers = #tpu.dot_dimension_numbers<[1], [0], [0], [1], [0, 0, 1, 1], [], []>} : vector<64x256xbf16>, vector<256x128xbf16>, vector<64x128xf32> -> vector<64x128xf32>
    %c0_101 = arith.constant 0 : index
    %c0_102 = arith.constant 0 : index
    %304 = vector.load %arg17[%c0_101, %c0_102] : memref<1x128xf32, #tpu.memory_space<vmem>>, vector<1x128xf32>
    %305 = vector.broadcast %304 : vector<1x128xf32> to vector<64x128xf32>
    %306 = arith.addf %303, %305 : vector<64x128xf32>
    %cst_103 = arith.constant 0.000000e+00 : f32
    %307 = vector.broadcast %cst_103 : f32 to vector<64x128xf32>
    %308 = arith.cmpf ogt, %306, %307 : vector<64x128xf32>
    %cst_104 = arith.constant 0.000000e+00 : f32
    %309 = vector.broadcast %cst_104 : f32 to vector<64x128xf32>
    %310 = arith.minimumf %306, %309 : vector<64x128xf32>
    %311 = math.exp %310 : vector<64x128xf32>
    %cst_105 = arith.constant 1.000000e+00 : f32
    %312 = vector.broadcast %cst_105 : f32 to vector<64x128xf32>
    %313 = arith.subf %311, %312 : vector<64x128xf32>
    %314 = arith.select %308, %306, %313 : vector<64x128xi1>, vector<64x128xf32>
    %315 = arith.truncf %314 : vector<64x128xf32> to vector<64x128xbf16>
    %c0_106 = arith.constant 0 : index
    %c0_107 = arith.constant 0 : index
    %316 = vector.load %arg18[%c0_106, %c0_107] : memref<128x256xbf16, #tpu.memory_space<vmem>>, vector<128x256xbf16>
    %cst_108 = arith.constant dense<0.000000e+00> : vector<64x256xf32>
    %317 = tpu.matmul %315, %316, %cst_108 {dimension_numbers = #tpu.dot_dimension_numbers<[1], [0], [0], [1], [0, 0, 1, 1], [], []>} : vector<64x128xbf16>, vector<128x256xbf16>, vector<64x256xf32> -> vector<64x256xf32>
    %c0_109 = arith.constant 0 : index
    %c0_110 = arith.constant 0 : index
    %318 = vector.load %arg19[%c0_109, %c0_110] : memref<1x256xf32, #tpu.memory_space<vmem>>, vector<1x256xf32>
    %319 = vector.broadcast %318 : vector<1x256xf32> to vector<64x256xf32>
    %320 = arith.addf %317, %319 : vector<64x256xf32>
    %321 = vector.extract_strided_slice %320 {offsets = [0, 0], sizes = [64, 128], strides = [1, 1]} : vector<64x256xf32> to vector<64x128xf32>
    %322 = vector.extract_strided_slice %320 {offsets = [0, 128], sizes = [64, 128], strides = [1, 1]} : vector<64x256xf32> to vector<64x128xf32>
    %323 = arith.negf %322 : vector<64x128xf32>
    %324 = math.exp %323 : vector<64x128xf32>
    %cst_111 = arith.constant 1.000000e+00 : f32
    %325 = vector.broadcast %cst_111 : f32 to vector<64x128xf32>
    %326 = arith.addf %325, %324 : vector<64x128xf32>
    %327 = arith.divf %325, %326 : vector<64x128xf32>
    %328 = arith.mulf %321, %327 : vector<64x128xf32>
    %329 = arith.addf %328, %3 : vector<64x128xf32>
    %c0_112 = arith.constant 0 : index
    %c0_113 = arith.constant 0 : index
    %c0_114 = arith.constant 0 : index
    %330 = vector.load %arg20[%c0_112, %c0_113, %c0_114] : memref<1x64x128xf32, #tpu.memory_space<vmem>>, vector<1x64x128xf32>
    %331 = vector.shape_cast %330 : vector<1x64x128xf32> to vector<64x128xf32>
    %332 = vector.shape_cast %329 : vector<64x128xf32> to vector<1x64x128xf32>
    tpu.vector_store %arg20[%c0_112, %c0_113, %c0_114], %332 {strides = array<i32>} : memref<1x64x128xf32, #tpu.memory_space<vmem>>, vector<1x64x128xf32>,
    return
  }
  func.func @transform_0(%arg0: i32) -> (i32, i32, i32) {
    %c0_i32 = arith.constant 0 : i32
    %c0_i32_0 = arith.constant 0 : i32
    %c0_i32_1 = arith.constant 0 : i32
    return %arg0, %c0_i32, %c0_i32_0 : i32, i32, i32
  }
  func.func @transform_1(%arg0: i32) -> (i32, i32, i32) {
    %c0_i32 = arith.constant 0 : i32
    %c0_i32_0 = arith.constant 0 : i32
    %c0_i32_1 = arith.constant 0 : i32
    return %arg0, %c0_i32, %c0_i32_0 : i32, i32, i32
  }
  func.func @transform_2(%arg0: i32) -> (i32, i32, i32) {
    %c0_i32 = arith.constant 0 : i32
    %c0_i32_0 = arith.constant 0 : i32
    %c0_i32_1 = arith.constant 0 : i32
    return %arg0, %c0_i32, %c0_i32_0 : i32, i32, i32
  }
  func.func @transform_3(%arg0: i32) -> (i32, i32) {
    %c0_i32 = arith.constant 0 : i32
    %c0_i32_0 = arith.constant 0 : i32
    %c0_i32_1 = arith.constant 0 : i32
    return %c0_i32, %c0_i32_0 : i32, i32
  }
  func.func @transform_4(%arg0: i32) -> (i32, i32) {
    %c0_i32 = arith.constant 0 : i32
    %c0_i32_0 = arith.constant 0 : i32
    %c0_i32_1 = arith.constant 0 : i32
    return %c0_i32, %c0_i32_0 : i32, i32
  }
  func.func @transform_5(%arg0: i32) -> (i32, i32) {
    %c0_i32 = arith.constant 0 : i32
    %c0_i32_0 = arith.constant 0 : i32
    %c0_i32_1 = arith.constant 0 : i32
    return %c0_i32, %c0_i32_0 : i32, i32
  }
  func.func @transform_6(%arg0: i32) -> (i32, i32) {
    %c0_i32 = arith.constant 0 : i32
    %c0_i32_0 = arith.constant 0 : i32
    %c0_i32_1 = arith.constant 0 : i32
    return %c0_i32, %c0_i32_0 : i32, i32
  }
  func.func @transform_7(%arg0: i32) -> (i32, i32) {
    %c0_i32 = arith.constant 0 : i32
    %c0_i32_0 = arith.constant 0 : i32
    %c0_i32_1 = arith.constant 0 : i32
    return %c0_i32, %c0_i32_0 : i32, i32
  }
  func.func @transform_8(%arg0: i32) -> (i32, i32) {
    %c0_i32 = arith.constant 0 : i32
    %c0_i32_0 = arith.constant 0 : i32
    %c0_i32_1 = arith.constant 0 : i32
    return %c0_i32, %c0_i32_0 : i32, i32
  }
  func.func @transform_9(%arg0: i32) -> (i32, i32) {
    %c0_i32 = arith.constant 0 : i32
    %c0_i32_0 = arith.constant 0 : i32
    %c0_i32_1 = arith.constant 0 : i32
    return %c0_i32, %c0_i32_0 : i32, i32
  }
  func.func @transform_10(%arg0: i32) -> (i32, i32) {
    %c0_i32 = arith.constant 0 : i32
    %c0_i32_0 = arith.constant 0 : i32
    %c0_i32_1 = arith.constant 0 : i32
    return %c0_i32, %c0_i32_0 : i32, i32
  }
  func.func @transform_11(%arg0: i32) -> (i32, i32) {
    %c0_i32 = arith.constant 0 : i32
    %c0_i32_0 = arith.constant 0 : i32
    %c0_i32_1 = arith.constant 0 : i32
    return %c0_i32, %c0_i32_0 : i32, i32
  }
  func.func @transform_12(%arg0: i32) -> (i32, i32) {
    %c0_i32 = arith.constant 0 : i32
    %c0_i32_0 = arith.constant 0 : i32
    %c0_i32_1 = arith.constant 0 : i32
    return %c0_i32, %c0_i32_0 : i32, i32
  }
  func.func @transform_13(%arg0: i32) -> (i32, i32) {
    %c0_i32 = arith.constant 0 : i32
    %c0_i32_0 = arith.constant 0 : i32
    %c0_i32_1 = arith.constant 0 : i32
    return %c0_i32, %c0_i32_0 : i32, i32
  }
  func.func @transform_14(%arg0: i32) -> (i32, i32) {
    %c0_i32 = arith.constant 0 : i32
    %c0_i32_0 = arith.constant 0 : i32
    %c0_i32_1 = arith.constant 0 : i32
    return %c0_i32, %c0_i32_0 : i32, i32
  }
  func.func @transform_15(%arg0: i32) -> (i32, i32) {
    %c0_i32 = arith.constant 0 : i32
    %c0_i32_0 = arith.constant 0 : i32
    %c0_i32_1 = arith.constant 0 : i32
    return %c0_i32, %c0_i32_0 : i32, i32
  }
  func.func @transform_16(%arg0: i32) -> (i32, i32) {
    %c0_i32 = arith.constant 0 : i32
    %c0_i32_0 = arith.constant 0 : i32
    %c0_i32_1 = arith.constant 0 : i32
    return %c0_i32, %c0_i32_0 : i32, i32
  }
  func.func @transform_17(%arg0: i32) -> (i32, i32) {
    %c0_i32 = arith.constant 0 : i32
    %c0_i32_0 = arith.constant 0 : i32
    %c0_i32_1 = arith.constant 0 : i32
    return %c0_i32, %c0_i32_0 : i32, i32
  }
  func.func @transform_18(%arg0: i32) -> (i32, i32) {
    %c0_i32 = arith.constant 0 : i32
    %c0_i32_0 = arith.constant 0 : i32
    %c0_i32_1 = arith.constant 0 : i32
    return %c0_i32, %c0_i32_0 : i32, i32
  }
  func.func @transform_19(%arg0: i32) -> (i32, i32, i32) {
    %c0_i32 = arith.constant 0 : i32
    %c0_i32_0 = arith.constant 0 : i32
    %c0_i32_1 = arith.constant 0 : i32
    return %arg0, %c0_i32, %c0_i32_0 : i32, i32, i32
  }
}

</mosaic_0001>

<bundles_post_ra>
// kernel: pixel_block_forward.2
= control target key start
LH: loop header
LB: loop body
LE: loop exit
PB: predicated region body
PF: predicated region fallthrough
CT: control target
= control target key end

     0   :  { %s5243_s0 = inlined_call_operand.vmem [shape: f32[2,8,8,128], index: 0, kind: input, shape index: {}]   ;;  %s5244_s1 = inlined_call_operand.hbm [shape: bf16[2,1152,128], index: 1, kind: input, shape index: {}]   ;;  %s5245_s2 = inlined_call_operand.hbm [shape: f32[2,1,128], index: 2, kind: input, shape index: {}]   ;;  %s5246_s3 = inlined_call_operand.hbm [shape: bf16[2,1152,256], index: 3, kind: input, shape index: {}]   ;;  %s5247_s4 = inlined_call_operand.hbm [shape: f32[2,1,256], index: 4, kind: input, shape index: {}]   ;;  %s5248_s5 = inlined_call_operand.vmem [shape: f32[2,8,8,128], index: 5, kind: output, shape index: {}]  }
   0x1   :  { %5254 = sst [smem:[#allocation23_spill]] %s5244_s1 }
   0x2   :  { %5255 = sst [smem:[#allocation24_spill]] %s5245_s2 }
   0x3   :  { %10 = vsyncpa [#allocation5], 0 }
   0x4   :  { %12 = vsyncpa [#allocation5 + $0x1], 0 }
   0x5   :  { %13 = vsyncpa [#allocation7], 0 }
   0x6   :  { %15 = vsyncpa [#allocation7 + $0x1], 0 }
   0x7   :  { %16 = vsyncpa [#allocation10], 0 }
   0x8   :  { %18 = vsyncpa [#allocation10 + $0x1], 0  ;;  %s4306_s18 = smov 0   ;;  %s4308_s19 = smov 0  }
   0x9   :  { %s4310_s20 = smov 0   ;;  %s4312_s21 = smov 0  }
   0xa   :  { %s4314_s22 = smov 0   ;;  %s4316_s23 = smov 0  }
   0xb   :  { %s4318_s24 = smov 0   ;;  %s4320_s25 = smov 0  }
   0xc LB: > { %5256 = sst [smem:[#allocation14_spill]] %s4260_s24  ;;  %s5249_s26 = sadd.s32 4294967295, %s4264_s25   ;;  %s4264_s25 = sphi %s4320_s25, %s24_s25   ;;  %s4260_s24 = sphi %s4318_s24, %s5285_s24   ;;  %s4256_s23 = sphi %s4316_s23, %s5290_s23   ;;  %s4252_s22 = sphi %s4314_s22, %s5283_s22   ;;  %s4248_s21 = sphi %s4312_s21, %s5289_s21   ;;  %s4244_s20 = sphi %s4310_s20, %s5288_s20   ;;  %s4240_s19 = sphi %s4308_s19, %s5287_s19   ;;  %s4236_s18 = sphi %s4306_s18, %s5286_s18  }
   0xd   : > { %s33_s27 = sadd.s32 1, %s4256_s23  ;;  %s36_s28 = sadd.s32 1, %s4260_s24 }
   0xe   : > { %p34_p0 = scmp.ge.s32.totalorder %s33_s27, 2  ;;  %s69_s29 = sadd.s32 1, %s4244_s20 }
   0xf   : > { %p76_p1 = scmp.ne.s32.totalorder %s4244_s20, %s4240_s19  ;;  %p77_p2 = scmp.eq.s32.totalorder %s4264_s25, 0 }
  0x10   : > { %s5292_s27 = smov (%p34_p0, %s33_s27), 0  ;;  %s5294_s28 = smov (!%p34_p0, %s36_s28), %s4260_s24 }
  0x11   : > { %5257 = sst [smem:[#allocation15_spill]] %s5292_s27  ;;  %s66_s30 = ssub.s32 %s4256_s23, %s5292_s27 }
  0x12   : > { %p38_p3 = scmp.ge.s32.totalorder %s5294_s28, 2  ;;  %p67_p4 = scmp.eq.s32.totalorder %s66_s30, 0 }
  0x13   : > { %p78_p5 = por %p77_p2, %p76_p1  ;;  %p82_p6 = scmp.ne.s32.totalorder %s4240_s19, %s4236_s18 }
  0x14   : > { %s5296_s28 = smov (%p38_p3, %s5294_s28), 0  ;;  %p83_p7 = scmp.eq.s32.totalorder %s5249_s26, 0 }
  0x15   : > { %5258 = sst [smem:[#allocation16_spill]] %s5296_s28  ;;  %p3647_p8 = scmp.lt.s32.totalorder %s4264_s25, 4 }
  0x16   : > { %s4360_s6 = scalar_select %p67_p4, %s4244_s20, %s69_s29  }
  0x17   : > { %s4366_s7 = sand.u32 1, %s4244_s20   ;;  %p4368_p9 = por %p83_p7, %p82_p6 }
  0x18   : > { %5259 = sst [smem:[#allocation17_spill]] %s4360_s6  ;;  %s239_s9 = sand.u32 1, %s4264_s25  }
  0x19   : > { %p4373_p10 = pnand %p3647_p8, %p78_p5  ;;  %s3166_s11 = sshll.u32 %s4256_s23, 4 }
  0x1a   : > { %s5262_s2 = sld [smem:[#allocation24_spill]]  ;;  %s242_s15 = scalar_lea.vmem [#allocation6], %s4366_s7 }
  0x1b   : > { %s249_s16 = sshll.u32 %s242_s15, 4  ;;  %p3171_p11 = scmp.ge.s32.totalorder %s4264_s25, 1  ;;  %s250_s16 = int_to_ptr.vmem [resolvable:$true] %s249_s16 }
  0x1c   : > { %p294_p12 = scmp.lt.s32.totalorder %s4264_s25, 5  ;;  %s4384_s17 = scalar_lea.sflag [#allocation7], %s239_s9 }
  0x1d   : > { %p4080_p13 = pneg %p4373_p10  ;;  %s4091_s18 = scalar_lea.vmem %s250_s16, 16 }
  0x1e   : > { %p4092_p0 = scmp.ne.s32.totalorder %s250_s16, %s4091_s18  ;;  %s4266_s29 = smov [#allocation6]  }
  0x1f   : > { %s4096_s30 = sshll.u32 %s4266_s29, 4  ;;  %s4097_s30 = int_to_ptr.vmem [resolvable:$false] %s4096_s30 }
  0x20   : > { %s247_s14 = scalar_lea.hbm %s5262_s2, %s3166_s11  ;;  %p4094_p1 = pnand %p4092_p0, %p4080_p13 }
  0x21   : > { %s4098_s12 = scalar_lea.vmem %s4097_s30, 32  ;;  %p4099_p3 = scmp.lt.s32.totalorder %s250_s16, %s4097_s30 }
  0x22   : > { %p4095_p2 = pneg %p4094_p1  ;;  %p4100_p4 = scmp.lt.s32.totalorder %s4098_s12, %s4091_s18 }
  0x24   : > { %p4101_p5 = por %p4100_p4, %p4099_p3 }
  0x26   : > { %p4102_p6 = pnand %p4101_p5, %p4095_p2 }
  0x28   : > { %4105 = shalt.err (!%p4102_p6)
}
  0x29   : > { %3640 = dma.hbm_to_vmem [thread:$0]  (!%p4373_p10), %s247_s14, 16, %s250_s16, %s4384_s17  }
  0x2a   : > { %p4398_p7 = pnand %p3171_p11, %p294_p12  ;;  %s3620_s11 = smul.u32 576, %s4366_s7 }
  0x2b   : > { %s3621_s13 = smul.u32 9216, %s4256_s23  ;;  %s5264_s1 = sld [smem:[#allocation23_spill]] }
  0x2c   : > { %s3622_s15 = smul.u32 1152, %s4366_s7  ;;  %s222_s12 = scalar_lea.vmem [#allocation4], %s3620_s11 }
  0x2d   : > { %s229_s26 = sshll.u32 %s222_s12, 4  ;;  %s219_s2 = scalar_lea.sflag [#allocation5], %s4366_s7  ;;  %s230_s26 = int_to_ptr.vmem [resolvable:$true] %s229_s26 }
  0x2e   : > { %s4119_s28 = scalar_lea.vmem %s230_s26, 9216  ;;  %s4267_s14 = smov [#allocation4]  }
  0x2f   : > { %p4120_p8 = scmp.ne.s32.totalorder %s230_s26, %s4119_s28  ;;  %s4124_s16 = sshll.u32 %s4267_s14, 4  ;;  %s4125_s16 = int_to_ptr.vmem [resolvable:$false] %s4124_s16 }
  0x30   : > { %s4126_s27 = scalar_lea.vmem %s4125_s16, 18432  ;;  %p4127_p12 = scmp.lt.s32.totalorder %s230_s26, %s4125_s16 }
  0x31   : > { %s228_s30 = scalar_lea.hbm %s5264_s1, %s3621_s13  ;;  %p4122_p0 = pnand %p4120_p8, %p4080_p13 }
  0x32   : > { %p4128_p1 = scmp.lt.s32.totalorder %s4126_s27, %s4119_s28 }
  0x33   : > { %p4123_p11 = pneg %p4122_p0 }
  0x34   : > { %p4129_p2 = por %p4128_p1, %p4127_p12 }
  0x36   : > { %p4130_p3 = pnand %p4129_p2, %p4123_p11 }
  0x38   : > { %4133 = shalt.err (!%p4130_p3)
}
  0x39   : > { %s4268_s13 = smov 64   ;;  %s4269_s11 = smov 4  }
  0x3a   : > { %3637 = dma.hbm_to_vmem [thread:$0]  (!%p4373_p10), %s228_s30, 9216, %s230_s26, %s219_s2, %s4268_s13, %s4268_s13, %s4269_s11  }
  0x3b   : > { %s3623_s18 = smul.u32 18432, %s4256_s23  ;;  %s260_s29 = scalar_lea.vmem [#allocation8], %s3622_s15 }
  0x3c   : > { %s267_s12 = sshll.u32 %s260_s29, 4  ;;  %s4270_s27 = smov [#allocation8]   ;;  %s268_s12 = int_to_ptr.vmem [resolvable:$true] %s267_s12 }
  0x3d   : > { %s266_s24 = scalar_lea.hbm %s5246_s3, %s3623_s18  ;;  %s4147_s16 = scalar_lea.vmem %s268_s12, 18432 }
  0x3e   : > { %p4148_p4 = scmp.ne.s32.totalorder %s268_s12, %s4147_s16  ;;  %s4152_s28 = sshll.u32 %s4270_s27, 4  ;;  %s4153_s28 = int_to_ptr.vmem [resolvable:$false] %s4152_s28 }
  0x3f   : > { %s4154_s6 = scalar_lea.vmem %s4153_s28, 36864  ;;  %p4155_p8 = scmp.lt.s32.totalorder %s268_s12, %s4153_s28 }
  0x40   : > { %p4150_p5 = pnand %p4148_p4, %p4080_p13  ;;  %p4156_p0 = scmp.lt.s32.totalorder %s4154_s6, %s4147_s16 }
  0x42   : > { %p4151_p6 = pneg %p4150_p5  ;;  %p4157_p11 = por %p4156_p0, %p4155_p8 }
  0x44   : > { %p4158_p12 = pnand %p4157_p11, %p4151_p6 }
  0x46   : > { %4161 = shalt.err (!%p4158_p12)
}
  0x47   : > { %s4271_s2 = smov 128   ;;  %s4272_s1 = smov 8  }
  0x48   : > { %3643 = dma.hbm_to_vmem [thread:$0]  (!%p4373_p10), %s266_s24, 18432, %s268_s12, %s4384_s17, %s4271_s2, %s4271_s2, %s4272_s1  }
  0x49   : > { %s3168_s26 = sshll.u32 %s4366_s7, 1  ;;  %s3421_s15 = sshll.u32 %s4256_s23, 5 }
  0x4a   : > { %s287_s11 = scalar_lea.hbm %s5247_s4, %s3421_s15  ;;  %s281_s6 = scalar_lea.vmem [#allocation9], %s3168_s26 }
  0x4b   : > { %s289_s18 = sshll.u32 %s281_s6, 4  ;;  %s278_s29 = scalar_lea.sflag [#allocation10], %s4366_s7  ;;  %s290_s18 = int_to_ptr.vmem [resolvable:$true] %s289_s18 }
  0x4c   : > { %s4175_s14 = scalar_lea.vmem %s290_s18, 32  ;;  %s4273_s16 = smov [#allocation9]  }
  0x4d   : > { %p4176_p1 = scmp.ne.s32.totalorder %s290_s18, %s4175_s14  ;;  %s4180_s27 = sshll.u32 %s4273_s16, 4  ;;  %s4181_s27 = int_to_ptr.vmem [resolvable:$false] %s4180_s27 }
  0x4e   : > { %s4182_s24 = scalar_lea.vmem %s4181_s27, 64  ;;  %p4183_p4 = scmp.lt.s32.totalorder %s290_s18, %s4181_s27 }
  0x4f   : > { %p4178_p2 = pnand %p4176_p1, %p4080_p13  ;;  %p4184_p5 = scmp.lt.s32.totalorder %s4182_s24, %s4175_s14 }
  0x51   : > { %p4179_p3 = pneg %p4178_p2  ;;  %p4185_p6 = por %p4184_p5, %p4183_p4 }
  0x53   : > { %p4186_p8 = pnand %p4185_p6, %p4179_p3 }
  0x55   : > { %4189 = shalt.err (!%p4186_p8)
}
  0x56   : > { %3646 = dma.hbm_to_vmem [thread:$0]  (!%p4373_p10), %s287_s11, 32, %s290_s18, %s278_s29  }
  0x57   : > { %298 = sbr.rel (%p4398_p7) target bundleno = 800 (0x320), region = 40 }
  0x5c   : > { %s4438_s7 = sand.u32 1, %s4240_s19  }
  0x5d   : > { %s3624_s17 = smul.u32 576, %s4438_s7  ;;  %s301_s12 = scalar_lea.sflag [#allocation5], %s4438_s7 }
  0x5f   : > { %s4442_s28 = scalar_lea.vmem [#allocation4], %s3624_s17 }
  0x60   : > { %4223 = dma.done.wait (%p4368_p9), %s301_s12, 9216  }
  0x61   : > { %4225 = vsyncadd (%p4368_p9), %s301_s12, 4294958080  ;;  %s5265_s10 = sadd.s32 4294967295, %s4264_s25   ;;  %s312_s1 = scalar_lea.vmem [#allocation6], %s4438_s7 }
  0x62   : > { %s309_s9 = sand.u32 1, %s5265_s10  }
  0x63   : > { %s310_s2 = scalar_lea.sflag [#allocation7], %s309_s9 }
  0x64   : > { %4227 = dma.done.wait (%p4368_p9), %s310_s2, 18448  }
  0x65   : > { %4229 = vsyncadd (%p4368_p9), %s310_s2, 4294948848  ;;  %s3625_s26 = smul.u32 1152, %s4438_s7  ;;  %s3172_s15 = sshll.u32 %s4438_s7, 1 }
  0x66   : > { %s327_s13 = scalar_lea.sflag [#allocation10], %s4438_s7  ;;  %s4460_s11 = scalar_lea.vmem [#allocation9], %s3172_s15 }
  0x67   : > { %s4457_s30 = scalar_lea.vmem [#allocation8], %s3625_s26 }
  0x68   : > { %4231 = dma.done.wait (%p4368_p9), %s327_s13, 32  }
  0x69   : > { %4233 = vsyncadd (%p4368_p9), %s327_s13, 4294967264  ;;  %p376_p10 = scmp.lt.s32.totalorder %s4252_s22, 1  ;;  %p3177_p13 = scmp.ne.s32.totalorder %s4248_s21, 0 }
  0x6b   : > { %s5298_s22 = smov (!%p376_p10, %s4252_s22), 1  ;;  %390 = sbr.rel (%p3177_p13) target bundleno = 137 (0x89), region = 60 }
  0x6c   : > { %s3422_s6 = sshll.u32 %s5298_s22, 6 }
  0x6d   : > { %s4471_s14 = scalar_lea.vmem %s5243_s0, %s3422_s6  ;;  %s4476_s24 = scalar_lea.vmem %s5248_s5, %s3422_s6 }
  0x70   : > { %v431_v0 = vld [vmem:[%s4471_s14] sm:$0xff]  ;;  %v432_v1 = vld [vmem:[%s4471_s14 + $0x8] sm:$0xff]  ;;  %v433_v2 = vld [vmem:[%s4471_s14 + $0x10] sm:$0xff]  ;;  %v4274_v3 = vmov 0.0  }
  0x71   : > { %391 = vst [vmem:[#allocation2] sm:$0xff] %v4274_v3  ;;  %392 = vst [vmem:[#allocation2 + $0x8] sm:$0x3] %v4274_v3  ;;  %v434_v4 = vld [vmem:[%s4471_s14 + $0x18] sm:$0xff]  ;;  %v435_v5 = vld [vmem:[%s4471_s14 + $0x20] sm:$0xff] }
  0x72   : > { %393 = vst [vmem:[#allocation2 + $0x10] sm:$0xff] %v4274_v3  ;;  %394 = vst [vmem:[#allocation2 + $0x18] sm:$0x3] %v4274_v3  ;;  %v436_v6 = vld [vmem:[%s4471_s14 + $0x28] sm:$0xff]  ;;  %v437_v7 = vld [vmem:[%s4471_s14 + $0x30] sm:$0xff] }
  0x73   : > { %395 = vst [vmem:[#allocation2 + $0x20] sm:$0xff] %v4274_v3  ;;  %396 = vst [vmem:[#allocation2 + $0x28] sm:$0x3] %v4274_v3  ;;  %v438_v8 = vld [vmem:[%s4471_s14 + $0x38] sm:$0xff] }
  0x74   : > { %397 = vst [vmem:[#allocation2 + $0x30] sm:$0xff] %v4274_v3  ;;  %398 = vst [vmem:[#allocation2 + $0x38] sm:$0x3] %v4274_v3 }
  0x75   : > { %399 = vst [vmem:[#allocation2 + $0x40] sm:$0xff] %v4274_v3  ;;  %400 = vst [vmem:[#allocation2 + $0x48] sm:$0x3] %v4274_v3 }
  0x76   : > { %401 = vst [vmem:[#allocation2 + $0x50] sm:$0xff] %v4274_v3  ;;  %402 = vst [vmem:[#allocation2 + $0x58] sm:$0x3] %v4274_v3 }
  0x77   : > { %403 = vst [vmem:[#allocation2 + $0x60] sm:$0xff] %v4274_v3  ;;  %404 = vst [vmem:[#allocation2 + $0x68] sm:$0x3] %v4274_v3 }
  0x78   : > { %405 = vst [vmem:[#allocation2 + $0x70] sm:$0xff] %v4274_v3  ;;  %406 = vst [vmem:[#allocation2 + $0x78] sm:$0x3] %v4274_v3 }
  0x79   : > { %407 = vst [vmem:[#allocation2 + $0x80] sm:$0xff] %v4274_v3  ;;  %408 = vst [vmem:[#allocation2 + $0x88] sm:$0x3] %v4274_v3 }
  0x7a   : > { %409 = vst [vmem:[#allocation2 + $0x90] sm:$0xff] %v4274_v3  ;;  %410 = vst [vmem:[#allocation2 + $0x98] sm:$0x3] %v4274_v3 }
  0x7b   : > { %411 = vst [vmem:[#allocation3] sm:$0xff] %v4274_v3  ;;  %412 = vst [vmem:[#allocation3 + $0x8] sm:$0x3] %v4274_v3 }
  0x7c   : > { %413 = vst [vmem:[#allocation3 + $0x10] sm:$0xff] %v4274_v3  ;;  %414 = vst [vmem:[#allocation3 + $0x18] sm:$0x3] %v4274_v3 }
  0x7d   : > { %415 = vst [vmem:[#allocation3 + $0x20] sm:$0xff] %v4274_v3  ;;  %416 = vst [vmem:[#allocation3 + $0x28] sm:$0x3] %v4274_v3 }
  0x7e   : > { %417 = vst [vmem:[#allocation3 + $0x30] sm:$0xff] %v4274_v3  ;;  %418 = vst [vmem:[#allocation3 + $0x38] sm:$0x3] %v4274_v3 }
  0x7f   : > { %419 = vst [vmem:[#allocation3 + $0x40] sm:$0xff] %v4274_v3  ;;  %420 = vst [vmem:[#allocation3 + $0x48] sm:$0x3] %v4274_v3 }
  0x80   : > { %421 = vst [vmem:[#allocation3 + $0x50] sm:$0xff] %v4274_v3  ;;  %422 = vst [vmem:[#allocation3 + $0x58] sm:$0x3] %v4274_v3 }
  0x81   : > { %423 = vst [vmem:[#allocation3 + $0x60] sm:$0xff] %v4274_v3  ;;  %424 = vst [vmem:[#allocation3 + $0x68] sm:$0x3] %v4274_v3 }
  0x82   : > { %425 = vst [vmem:[#allocation3 + $0x70] sm:$0xff] %v4274_v3  ;;  %426 = vst [vmem:[#allocation3 + $0x78] sm:$0x3] %v4274_v3 }
  0x83   : > { %427 = vst [vmem:[#allocation3 + $0x80] sm:$0xff] %v4274_v3  ;;  %428 = vst [vmem:[#allocation3 + $0x88] sm:$0x3] %v4274_v3 }
  0x84   : > { %429 = vst [vmem:[#allocation3 + $0x90] sm:$0xff] %v4274_v3  ;;  %430 = vst [vmem:[#allocation3 + $0x98] sm:$0x3] %v4274_v3 }
  0x85   : > { %439 = vst [vmem:[%s4476_s24] sm:$0xff] %v431_v0  ;;  %440 = vst [vmem:[%s4476_s24 + $0x8] sm:$0xff] %v432_v1 }
  0x86   : > { %441 = vst [vmem:[%s4476_s24 + $0x10] sm:$0xff] %v433_v2  ;;  %442 = vst [vmem:[%s4476_s24 + $0x18] sm:$0xff] %v434_v4 }
  0x87   : > { %443 = vst [vmem:[%s4476_s24 + $0x20] sm:$0xff] %v435_v5  ;;  %444 = vst [vmem:[%s4476_s24 + $0x28] sm:$0xff] %v436_v6 }
  0x88   : > { %445 = vst [vmem:[%s4476_s24 + $0x30] sm:$0xff] %v437_v7  ;;  %446 = vst [vmem:[%s4476_s24 + $0x38] sm:$0xff] %v438_v8 }
  0x89 PF: > { %v3718_v9 = vld [vmem:[%s4442_s28 + $0x78] sm:$0xff]   ;;  %v3722_v13 = vld [vmem:[%s4442_s28 + $0x70] sm:$0xff]   ;;  %v3726_v17 = vld [vmem:[%s4442_s28 + $0x68] sm:$0xff]  }
  0x8a   : > { %v3719_v10 = vld [vmem:[%s4442_s28 + $0x38] sm:$0xff]   ;;  %3424 = vmatprep.subr.bf16.mxu0 %v3718_v9  ;;  %v3723_v14 = vld [vmem:[%s4442_s28 + $0x30] sm:$0xff]   ;;  %v3727_v18 = vld [vmem:[%s4442_s28 + $0x28] sm:$0xff]  }
  0x8b   : > { %v3720_v11 = vld [vmem:[%s4442_s28 + $0xf8] sm:$0xff]   ;;  %3425 = vmatpush3.bf16.msra.mxu0 %v3719_v10  ;;  %v3724_v15 = vld [vmem:[%s4442_s28 + $0xf0] sm:$0xff]   ;;  %v3728_v19 = vld [vmem:[%s4442_s28 + $0xe8] sm:$0xff]  }
  0x8c   : > { %v3721_v12 = vld [vmem:[%s4442_s28 + $0xb8] sm:$0xff]   ;;  %3464 = vmatprep.subr.bf16.mxu1 %v3720_v11  ;;  %3426 = vmatprep.subr.bf16.mxu0 %v3722_v13  ;;  %v3725_v16 = vld [vmem:[%s4442_s28 + $0xb0] sm:$0xff]   ;;  %v3729_v20 = vld [vmem:[%s4442_s28 + $0xa8] sm:$0xff]  }
  0x8d   : > { %3465 = vmatpush3.bf16.msra.mxu1 %v3721_v12  ;;  %v3730_v21 = vld [vmem:[%s4442_s28 + $0x60] sm:$0xff]   ;;  %v3734_v25 = vld [vmem:[%s4442_s28 + $0x58] sm:$0xff]   ;;  %v3738_v29 = vld [vmem:[%s4442_s28 + $0x50] sm:$0xff]  }
  0x8e   : > { %3466 = vmatprep.subr.bf16.mxu1 %v3724_v15  ;;  %v3731_v22 = vld [vmem:[%s4442_s28 + $0x20] sm:$0xff]   ;;  %v3735_v26 = vld [vmem:[%s4442_s28 + $0x18] sm:$0xff]   ;;  %v3739_v30 = vld [vmem:[%s4442_s28 + $0x10] sm:$0xff]  }
  0x8f   : > { %3427 = vmatpush3.bf16.msra.mxu0 %v3723_v14  ;;  %v3732_v23 = vld [vmem:[%s4442_s28 + $0xe0] sm:$0xff]   ;;  %v3736_v27 = vld [vmem:[%s4442_s28 + $0xd8] sm:$0xff]   ;;  %v3740_v31 = vld [vmem:[%s4442_s28 + $0xd0] sm:$0xff]  }
  0x90   : > { %3428 = vmatprep.subr.bf16.mxu0 %v3726_v17  ;;  %v3733_v24 = vld [vmem:[%s4442_s28 + $0xa0] sm:$0xff]   ;;  %v3737_v28 = vld [vmem:[%s4442_s28 + $0x98] sm:$0xff]   ;;  %v3741_v32 = vld [vmem:[%s4442_s28 + $0x90] sm:$0xff]  }
  0x91   : > { %3467 = vmatpush3.bf16.msra.mxu1 %v3725_v16  ;;  %v3742_v33 = vld [vmem:[%s4442_s28 + $0x48] sm:$0xff]   ;;  %v3746_v37 = vld [vmem:[%s4442_s28 + $0x40] sm:$0xff]   ;;  %v4526_v41 = vld [vmem:[#allocation2 + $0x11] sm:$0xff] }
  0x92   : > { %3468 = vmatprep.subr.bf16.mxu1 %v3728_v19  ;;  %v3743_v34 = vld [vmem:[%s4442_s28 + $0x8] sm:$0xff]   ;;  %v3747_v38 = vld [vmem:[%s4442_s28] sm:$0xff]   ;;  %v4530_v45 = vld [vmem:[#allocation2 + $0x10] sm:$0xff] }
  0x93   : > { %3429 = vmatpush3.bf16.msra.mxu0 %v3727_v18  ;;  %v3744_v35 = vld [vmem:[%s4442_s28 + $0xc8] sm:$0xff]   ;;  %v3748_v39 = vld [vmem:[%s4442_s28 + $0xc0] sm:$0xff]   ;;  %v3750_v47 = vld [vmem:[%s4442_s28 + $0x178] sm:$0xff]  }
  0x94   : > { %3430 = vmatprep.subr.bf16.mxu0 %v3730_v21  ;;  %v3745_v36 = vld [vmem:[%s4442_s28 + $0x88] sm:$0xff]   ;;  %v3749_v43 = vld [vmem:[%s4442_s28 + $0x80] sm:$0xff]   ;;  %v3751_v50 = vld [vmem:[%s4442_s28 + $0x138] sm:$0xff]  }
  0x95   : > { %3469 = vmatpush3.bf16.msra.mxu1 %v3729_v20  ;;  %v520_v40 = vld [vmem:[#allocation2 + $0x1] sm:$0xff]  ;;  %v3752_v52 = vld [vmem:[%s4442_s28 + $0x1f8] sm:$0xff]   ;;  %v3754_v53 = vld [vmem:[%s4442_s28 + $0x170] sm:$0xff]  }
  0x96   : > { %3470 = vmatprep.subr.bf16.mxu1 %v3732_v23  ;;  %v586_v42 = vpack.c.bf16 %v4526_v41, %v520_v40  ;;  %v512_v44 = vld [vmem:[#allocation2] sm:$0xff]  ;;  %v3755_v54 = vld [vmem:[%s4442_s28 + $0x130] sm:$0xff]   ;;  %v448_v55 = vld [vmem:[%s4476_s24 + $0x8] sm:$0xff] }
  0x97   : > { %3431 = vmatpush3.bf16.msra.mxu0 %v3731_v22  ;;  %v585_v46 = vpack.c.bf16 %v4530_v45, %v512_v44  ;;  %v447_v48 = vld [vmem:[%s4476_s24] sm:$0xff]  ;;  %v464_v56 = vmin.f32 %v448_v55, 0.0  ;;  %v3758_v57 = vld [vmem:[%s4442_s28 + $0x168] sm:$0xff]   ;;  %v449_v58 = vld [vmem:[%s4476_s24 + $0x10] sm:$0xff]  ;;  %vm456_vm1 = vcmp.gt.f32.partialorder %v448_v55, 0.0 }
  0x98   : > { %3432 = vmatprep.subr.bf16.mxu0 %v3734_v25  ;;  %1236 = vmatprep.mubr.bf16.mxu0 %v586_v42  ;;  %v463_v49 = vmin.f32 %v447_v48, 0.0  ;;  %v465_v60 = vmin.f32 %v449_v58, 0.0  ;;  %v3759_v61 = vld [vmem:[%s4442_s28 + $0x128] sm:$0xff]   ;;  %v3762_v63 = vld [vmem:[%s4442_s28 + $0x160] sm:$0xff]   ;;  %v4546_v1 = vld [vmem:[%s4476_s24 + $0x18] sm:$0xff]  ;;  %vm455_vm0 = vcmp.gt.f32.partialorder %v447_v48, 0.0 }
  0x99   : > { %3471 = vmatpush3.bf16.msra.mxu1 %v3733_v24  ;;  %v473_v59 = vmul.f32 1.442695, %v464_v56  ;;  %v3763_v0 = vld [vmem:[%s4442_s28 + $0x120] sm:$0xff]   ;;  %v466_v2 = vmin.f32 %v4546_v1, 0.0  ;;  %v3766_v6 = vld [vmem:[%s4442_s28 + $0x158] sm:$0xff]   ;;  %v3770_v13 = vld [vmem:[%s4442_s28 + $0x150] sm:$0xff]  }
  0x9a   : > { %3472 = vmatprep.subr.bf16.mxu1 %v3736_v27  ;;  %v471_v51 = vmul.f32 1.442695, %v463_v49  ;;  %v475_v62 = vmul.f32 1.442695, %v465_v60  ;;  %v4551_v7 = vld [vmem:[%s4476_s24 + $0x20] sm:$0xff]  ;;  %v3767_v8 = vld [vmem:[%s4442_s28 + $0x118] sm:$0xff]  }
  0x9b   : > { %3433 = vmatpush3.bf16.msra.mxu0 %v3735_v26  ;;  %v477_v5 = vmul.f32 1.442695, %v466_v2  ;;  %v467_v9 = vmin.f32 %v4551_v7, 0.0  ;;  %v528_v12 = vld [vmem:[#allocation2 + $0x2] sm:$0xff]  ;;  %v3771_v15 = vld [vmem:[%s4442_s28 + $0x110] sm:$0xff]   ;;  %vm457_vm2 = vcmp.gt.f32.partialorder %v449_v58, 0.0 }
  0x9c   : > { %3434 = vmatprep.subr.bf16.mxu0 %v3738_v29  ;;  %4006 = vpow2.f32 %v471_v51  ;;  %v4560_v16 = vld [vmem:[#allocation2 + $0x12] sm:$0xff]  ;;  %v4563_v18 = vld [vmem:[%s4476_s24 + $0x28] sm:$0xff]  ;;  %vm458_vm3 = vcmp.gt.f32.partialorder %v4546_v1, 0.0  ;;  %v3778_v40 = vld [vmem:[%s4442_s28 + $0x140] sm:$0xff]   ;;  %vm459_vm4 = vcmp.gt.f32.partialorder %v4551_v7, 0.0 }
  0x9d   : > { %3473 = vmatpush3.bf16.msra.mxu1 %v3737_v28  ;;  %4008 = vpow2.f32 %v473_v59  ;;  %v479_v11 = vmul.f32 1.442695, %v467_v9  ;;  %v468_v20 = vmin.f32 %v4563_v18, 0.0  ;;  %v3774_v21 = vld [vmem:[%s4442_s28 + $0x148] sm:$0xff]   ;;  %v4570_v24 = vld [vmem:[%s4476_s24 + $0x30] sm:$0xff]  ;;  %v587_v26 = vpack.c.bf16 %v4560_v16, %v528_v12  ;;  %v3753_v27 = vld [vmem:[%s4442_s28 + $0x1b8] sm:$0xff]  }
  0x9e   : > { %3474 = vmatprep.subr.bf16.mxu1 %v3740_v31  ;;  %4010 = vpow2.f32 %v475_v62  ;;  %v3756_v28 = vld [vmem:[%s4442_s28 + $0x1f0] sm:$0xff]   ;;  %v469_v31 = vmin.f32 %v4570_v24, 0.0  ;;  %v3761_v51 = vld [vmem:[%s4442_s28 + $0x1a8] sm:$0xff]   ;;  %v3764_v56 = vld [vmem:[%s4442_s28 + $0x1e0] sm:$0xff]   ;;  %vm460_vm5 = vcmp.gt.f32.partialorder %v4563_v18, 0.0  ;;  %vm461_vm6 = vcmp.gt.f32.partialorder %v4570_v24, 0.0 }
  0x9f   : > { %3435 = vmatpush3.bf16.msra.mxu0 %v3739_v30  ;;  %4012 = vpow2.f32 %v477_v5  ;;  %v481_v30 = vmul.f32 1.442695, %v468_v20  ;;  %v3768_v59 = vld [vmem:[%s4442_s28 + $0x1d8] sm:$0xff]   ;;  %v3777_v20 = vld [vmem:[%s4442_s28 + $0x188] sm:$0xff]  }
  0xa0   : > { %3436 = vmatprep.subr.bf16.mxu0 %v3742_v33  ;;  %4014 = vpow2.f32 %v479_v11  ;;  %v3772_v11 = vld [vmem:[%s4442_s28 + $0x1d0] sm:$0xff]  }
  0xa1   : > { %3475 = vmatpush3.bf16.msra.mxu1 %v3741_v32  ;;  %4016 = vpow2.f32 %v481_v30  ;;  %v3781_v30 = vld [vmem:[%s4442_s28 + $0x180] sm:$0xff]  }
  0xa2   : > { %3476 = vmatprep.subr.bf16.mxu1 %v3744_v35  ;;  %v483_v35 = vmul.f32 1.442695, %v469_v31 }
  0xa3   : > { %3437 = vmatpush3.bf16.msra.mxu0 %v3743_v34  ;;  %v3775_v34 = vld [vmem:[%s4442_s28 + $0x108] sm:$0xff]  }
  0xa4   : > { %3438 = vmatprep.subr.bf16.mxu0 %v3746_v37  ;;  %4018 = vpow2.f32 %v483_v35 }
  0xa5   : > { %3477 = vmatpush3.bf16.msra.mxu1 %v3745_v36  ;;  %v3757_v36 = vld [vmem:[%s4442_s28 + $0x1b0] sm:$0xff]  }
  0xa6   : > { %3478 = vmatprep.subr.bf16.mxu1 %v3748_v39 }
  0xa7   : > { %3439 = vmatpush3.bf16.msra.mxu0 %v3747_v38  ;;  %v3760_v38 = vld [vmem:[%s4442_s28 + $0x1e8] sm:$0xff]  }
  0xa8   : > { %3504 = vmatprep.subr.bf16.mxu0 %v3750_v47 }
  0xa9   : > { %3479 = vmatpush3.bf16.msra.mxu1 %v3749_v43  ;;  %v4007_v3 = vpop.eup %4006  ;;  %v3779_v43 = vld [vmem:[%s4442_s28 + $0x100] sm:$0xff]  }
  0xaa   : > { %1237 = vmatmul.mubr.bf16.vlgmr.msra.gmra.mxu0 %v585_v46  ;;  %3544 = vmatprep.subr.bf16.mxu1 %v3752_v52  ;;  %v3178_v4 = vadd.f32 -1.0, %v4007_v3  ;;  %v4009_v14 = vpop.eup %4008  ;;  %v454_v3 = vld [vmem:[%s4476_s24 + $0x38] sm:$0xff] }
  0xab   : > { %3505 = vmatpush3.bf16.msra.mxu0 %v3751_v50  ;;  %v3179_v17 = vadd.f32 -1.0, %v4009_v14  ;;  %v4011_v19 = vpop.eup %4010  ;;  %v3773_v14 = vld [vmem:[%s4442_s28 + $0x190] sm:$0xff]   ;;  %vm462_vm7 = vcmp.gt.f32.partialorder %v454_v3, 0.0 }
  0xac   : > { %3506 = vmatprep.subr.bf16.mxu0 %v3754_v53  ;;  %v4555_v10 = vsel %vm455_vm0, %v447_v48, %v3178_v4  ;;  %v3180_v23 = vadd.f32 -1.0, %v4011_v19  ;;  %v4013_v39 = vpop.eup %4012  ;;  %v3769_v4 = vld [vmem:[%s4442_s28 + $0x198] sm:$0xff]  }
  0xad   : > { %504 = vst [vmem:[#allocation2 + $0x21] sm:$0xff] %v4555_v10  ;;  %v4567_v22 = vsel %vm456_vm1, %v448_v55, %v3179_v17  ;;  %v3181_v42 = vadd.f32 -1.0, %v4013_v39  ;;  %v4015_v46 = vpop.eup %4014  ;;  %v4615_v55 = vld [vmem:[%s4442_s28 + $0x238] sm:$0xff]  }
  0xae   : > { %505 = vst [vmem:[#allocation2 + $0x31] sm:$0xff] %v4567_v22  ;;  %v4578_v29 = vpack.c.bf16 %v4567_v22, %v4555_v10  ;;  %v4583_v33 = vsel %vm457_vm2, %v449_v58, %v3180_v23  ;;  %v3182_v53 = vadd.f32 -1.0, %v4015_v46  ;;  %v3765_v58 = vld [vmem:[%s4442_s28 + $0x1a0] sm:$0xff]   ;;  %v4017_v60 = vpop.eup %4016 }
  0xaf   : > { %3507 = vmatpush3.bf16.msra.mxu0 %v3755_v54  ;;  %506 = vst [vmem:[#allocation2 + $0x41] sm:$0xff] %v4583_v33  ;;  %v4600_v48 = vsel %vm458_vm3, %v4546_v1, %v3181_v42  ;;  %v3792_v39 = vld [vmem:[%s4457_s30 + $0x74] ss:$8 sps:$4 sm:$0xff]  }
  0xb0   : > { %3508 = vmatprep.subr.bf16.mxu0 %v3758_v57  ;;  %1244 = vmatprep.mubr.bf16.mxu0 %v4578_v29  ;;  %507 = vst [vmem:[#allocation2 + $0x51] sm:$0xff] %v4600_v48  ;;  %v4611_v52 = vpack.c.bf16 %v4600_v48, %v4583_v33  ;;  %v4620_v57 = vsel %vm459_vm4, %v4551_v7, %v3182_v53  ;;  %v470_v7 = vmin.f32 %v454_v3, 0.0  ;;  %v3786_v42 = vld [vmem:[%s4442_s28 + $0x218] sm:$0xff]   ;;  %v3795_v53 = vld [vmem:[%s4457_s30 + $0x64] ss:$8 sps:$4 sm:$0xff]  }
  0xb1   : > { %508 = vst [vmem:[#allocation2 + $0x61] sm:$0xff] %v4620_v57  ;;  %v4019_v1 = vpop.eup %4018 }
  0xb2   : > { %v485_v17 = vmul.f32 1.442695, %v470_v7  ;;  %v3817_v7 = vld [vmem:[%s4457_s30 + $0x170] ss:$8 sps:$4 sm:$0xff]  }
  0xb3   : > { %3509 = vmatpush3.bf16.msra.mxu0 %v3759_v61 }
  0xb4   : > { %3510 = vmatprep.subr.bf16.mxu0 %v3762_v63  ;;  %v538_v25 = vld [vmem:[#allocation2 + $0x20] sm:$0xff]  ;;  %4020 = vpow2.f32 %v485_v17  ;;  %v3829_v17 = vld [vmem:[%s4457_s30 + $0x150] ss:$8 sps:$4 sm:$0xff]  }
  0xb5   : > { %v588_v32 = vpack.c.bf16 %v538_v25, %v4530_v45  ;;  %v4589_v37 = vld [vmem:[#allocation2 + $0x22] sm:$0xff]  ;;  %v515_v44 = vld [vmem:[#allocation2 + $0x30] sm:$0xff] }
  0xb6   : > { %v4595_v45 = vld [vmem:[#allocation2 + $0x32] sm:$0xff]  ;;  %v4597_v47 = vpack.c.bf16 %v515_v44, %v538_v25  ;;  %v540_v49 = vld [vmem:[#allocation2 + $0x40] sm:$0xff]  ;;  %v590_v25 = vpack.c.bf16 %v4589_v37, %v4560_v16  ;;  %v589_v16 = vpack.c.bf16 %v4555_v10, %v4526_v41  ;;  %v598_v10 = vpack.c.bf16 %v4583_v33, %v4567_v22 }
  0xb7   : > { %3511 = vmatpush3.bf16.msra.mxu0 %v3763_v0  ;;  %1301 = vmatprep.mubr.bf16.mxu1 %v588_v32  ;;  %v4605_v50 = vpack.c.bf16 %v4595_v45, %v4589_v37  ;;  %v597_v54 = vpack.c.bf16 %v540_v49, %v515_v44  ;;  %v4627_v61 = vld [vmem:[#allocation2 + $0x42] sm:$0xff]  ;;  %v517_v62 = vld [vmem:[#allocation2 + $0x50] sm:$0xff]  ;;  %v3183_v0 = vadd.f32 -1.0, %v4017_v60  ;;  %v607_v22 = vpack.c.bf16 %v4620_v57, %v4600_v48 }
  0xb8   : > { %3512 = vmatprep.subr.bf16.mxu0 %v3766_v6  ;;  %1302 = vmatmul.mubr.bf16.vlgmr.msra.gmra.mxu1 %v587_v26  ;;  %v4630_v63 = vld [vmem:[#allocation2 + $0x52] sm:$0xff]  ;;  %v4632_v2 = vpack.c.bf16 %v517_v62, %v540_v49  ;;  %v3184_v6 = vadd.f32 -1.0, %v4019_v1  ;;  %v534_v19 = vld [vmem:[#allocation2 + $0x62] sm:$0xff] }
  0xb9   : > { %3545 = vmatpush3.bf16.msra.mxu1 %v3753_v27  ;;  %1245 = vmatmul.mubr.bf16.gmra.mxu0 %v4597_v47  ;;  %v4638_v5 = vsel %vm460_vm5, %v4563_v18, %v3183_v0  ;;  %v4643_v9 = vpack.c.bf16 %v4630_v63, %v4627_v61  ;;  %v3776_v18 = vld [vmem:[%s4442_s28 + $0x1c8] sm:$0xff]   ;;  %v3783_v32 = vld [vmem:[%s4442_s28 + $0x230] sm:$0xff]   ;;  %v3789_v49 = vld [vmem:[%s4442_s28 + $0x200] sm:$0xff]  }
  0xba   : > { %3546 = vmatprep.subr.bf16.mxu1 %v3756_v28  ;;  %1252 = vmatprep.mubr.bf16.mxu0 %v4611_v52  ;;  %509 = vst [vmem:[#allocation2 + $0x71] sm:$0xff] %v4638_v5  ;;  %v4649_v12 = vpack.c.bf16 %v4638_v5, %v4620_v57  ;;  %v3784_v37 = vld [vmem:[%s4442_s28 + $0x228] sm:$0xff]   ;;  %v3787_v33 = vld [vmem:[%s4442_s28 + $0x210] sm:$0xff]  }
  0xbb   : > { %3513 = vmatpush3.bf16.msra.mxu0 %v3767_v8  ;;  %1309 = vmatprep.mubr.bf16.mxu1 %v597_v54  ;;  %v542_v8 = vld [vmem:[#allocation2 + $0x60] sm:$0xff]  ;;  %v3802_v60 = vld [vmem:[%s4457_s30 + $0x30] ss:$8 sps:$4 sm:$0xff]  }
  0xbc   : > { %3514 = vmatprep.subr.bf16.mxu0 %v3770_v13  ;;  %v606_v13 = vpack.c.bf16 %v542_v8, %v517_v62  ;;  %v3801_v57 = vld [vmem:[%s4457_s30 + $0x44] ss:$8 sps:$4 sm:$0xff]   ;;  %v3805_v62 = vld [vmem:[%s4457_s30 + $0x20] ss:$8 sps:$4 sm:$0xff]   ;;  %v3808_v0 = vld [vmem:[%s4457_s30 + $0x10] ss:$8 sps:$4 sm:$0xff]  }
  0xbd   : > { %3547 = vmatpush3.bf16.msra.mxu1 %v3757_v36  ;;  %v3813_v1 = vld [vmem:[%s4457_s30 + $0x4] ss:$8 sps:$4 sm:$0xff]  }
  0xbe   : > { %3548 = vmatprep.subr.bf16.mxu1 %v3760_v38  ;;  %v3790_v38 = vld [vmem:[%s4457_s30 + $0x70] ss:$8 sps:$4 sm:$0xff]  }
  0xbf   : > { %3515 = vmatpush3.bf16.msra.mxu0 %v3771_v15  ;;  %v4655_v15 = vsel %vm461_vm6, %v4570_v24, %v3184_v6  ;;  %v3822_v6 = vld [vmem:[%s4457_s30 + $0xe4] ss:$8 sps:$4 sm:$0xff]  }
  0xc0   : > { %3516 = vmatprep.subr.bf16.mxu0 %v3774_v21  ;;  %1310 = vmatmul.mubr.bf16.gmra.mxu1 %v4605_v50  ;;  %510 = vst [vmem:[#allocation2 + $0x81] sm:$0xff] %v4655_v15  ;;  %v3780_v21 = vld [vmem:[%s4442_s28 + $0x1c0] sm:$0xff]   ;;  %v616_v48 = vpack.c.bf16 %v4655_v15, %v4638_v5 }
  0xc1   : > { %3549 = vmatpush3.bf16.msra.mxu1 %v3761_v51  ;;  %1253 = vmatmul.mubr.bf16.gmra.mxu0 %v4632_v2  ;;  %v519_v23 = vld [vmem:[#allocation2 + $0x70] sm:$0xff]  ;;  %v4021_v35 = vpop.eup %4020 }
  0xc2   : > { %3550 = vmatprep.subr.bf16.mxu1 %v3764_v56  ;;  %1260 = vmatprep.mubr.bf16.mxu0 %v4649_v12  ;;  %v535_v24 = vld [vmem:[#allocation2 + $0x72] sm:$0xff]  ;;  %v612_v26 = vpack.c.bf16 %v519_v23, %v542_v8  ;;  %v3185_v36 = vadd.f32 -1.0, %v4021_v35  ;;  %v3820_v8 = vld [vmem:[%s4457_s30 + $0xe0] ss:$8 sps:$4 sm:$0xff]  }
  0xc3   : > { %3517 = vmatpush3.bf16.msra.mxu0 %v3775_v34  ;;  %1317 = vmatprep.mubr.bf16.mxu1 %v606_v13  ;;  %v4667_v28 = vpack.c.bf16 %v535_v24, %v534_v19  ;;  %v599_v34 = vpack.c.bf16 %v4627_v61, %v4595_v45  ;;  %v3788_v45 = vld [vmem:[%s4442_s28 + $0x208] sm:$0xff]   ;;  %v3796_v56 = vld [vmem:[%s4457_s30 + $0x50] ss:$8 sps:$4 sm:$0xff]   ;;  %v3819_v5 = vld [vmem:[%s4457_s30 + $0x174] ss:$8 sps:$4 sm:$0xff]  }
  0xc4   : > { %3518 = vmatprep.subr.bf16.mxu0 %v3778_v40  ;;  %v502_v41 = vsel %vm462_vm7, %v454_v3, %v3185_v36  ;;  %v608_v40 = vpack.c.bf16 %v534_v19, %v4630_v63  ;;  %v3807_v61 = vld [vmem:[%s4457_s30 + $0x24] ss:$8 sps:$4 sm:$0xff]   ;;  %v3810_v63 = vld [vmem:[%s4457_s30 + $0x14] ss:$8 sps:$4 sm:$0xff]   ;;  %v3826_v13 = vld [vmem:[%s4457_s30 + $0xd0] ss:$8 sps:$4 sm:$0xff]  }
  0xc5   : > { %3551 = vmatpush3.bf16.msra.mxu1 %v3765_v58  ;;  %511 = vst [vmem:[#allocation2 + $0x91] sm:$0xff] %v502_v41  ;;  %v619_v46 = vpack.c.bf16 %v502_v41, %v4655_v15  ;;  %v3799_v58 = vld [vmem:[%s4457_s30 + $0x40] ss:$8 sps:$4 sm:$0xff]   ;;  %v3816_v3 = vld [vmem:[%s4457_s30 + $0xf4] ss:$8 sps:$4 sm:$0xff]  }
  0xc6   : > { %3552 = vmatprep.subr.bf16.mxu1 %v3768_v59  ;;  %v3804_v59 = vld [vmem:[%s4457_s30 + $0x34] ss:$8 sps:$4 sm:$0xff]   ;;  %v3834_v15 = vld [vmem:[%s4457_s30 + $0xc4] ss:$8 sps:$4 sm:$0xff]   ;;  %v3853_v35 = vld [vmem:[%s4457_s30 + $0x110] ss:$8 sps:$4 sm:$0xff]  }
  0xc7   : > { %3519 = vmatpush3.bf16.msra.mxu0 %v3779_v43  ;;  %v4665_v27 = vld [vmem:[#allocation2 + $0x80] sm:$0xff] }
  0xc8   : > { %3596 = vmatprep.subr.bf16.mxu0 %v4615_v55  ;;  %1318 = vmatmul.mubr.bf16.gmra.mxu1 %v4643_v9  ;;  %v615_v31 = vpack.c.bf16 %v4665_v27, %v519_v23  ;;  %v560_v43 = vld [vmem:[#allocation2 + $0x82] sm:$0xff]  ;;  %v3838_v23 = vld [vmem:[%s4457_s30 + $0xb0] ss:$8 sps:$4 sm:$0xff]  }
  0xc9   : > { %3553 = vmatpush3.bf16.msra.mxu1 %v3769_v4  ;;  %1261 = vmatmul.mubr.bf16.gmra.mxu0 %v612_v26  ;;  %v617_v44 = vpack.c.bf16 %v560_v43, %v535_v24  ;;  %v3814_v4 = vld [vmem:[%s4457_s30 + $0xf0] ss:$8 sps:$4 sm:$0xff]   ;;  %v3837_v19 = vld [vmem:[%s4457_s30 + $0x144] ss:$8 sps:$4 sm:$0xff]   ;;  %v3843_v24 = vld [vmem:[%s4457_s30 + $0x134] ss:$8 sps:$4 sm:$0xff]  }
  0xca   : > { %3554 = vmatprep.subr.bf16.mxu1 %v3772_v11  ;;  %1366 = vmatprep.mubr.bf16.mxu0 %v590_v25  ;;  %v3828_v11 = vld [vmem:[%s4457_s30 + $0xd4] ss:$8 sps:$4 sm:$0xff]   ;;  %v3846_v25 = vld [vmem:[%s4457_s30 + $0xa4] ss:$8 sps:$4 sm:$0xff]   ;;  %v3856_v36 = vld [vmem:[%s4457_s30 + $0x80] ss:$8 sps:$4 sm:$0xff]  }
  0xcb   : > { %1325 = vmatprep.mubr.bf16.mxu1 %v615_v31  ;;  %v3847_v31 = vld [vmem:[%s4457_s30 + $0x120] ss:$8 sps:$4 sm:$0xff]   ;;  %v3861_v41 = vld [vmem:[%s4457_s30 + $0x104] ss:$8 sps:$4 sm:$0xff]  }
  0xcd   : > { %3555 = vmatpush3.bf16.msra.mxu1 %v3773_v14  ;;  %v3831_v14 = vld [vmem:[%s4457_s30 + $0x154] ss:$8 sps:$4 sm:$0xff]  }
  0xce   : > { %3556 = vmatprep.subr.bf16.mxu1 %v3776_v18  ;;  %v3832_v18 = vld [vmem:[%s4457_s30 + $0xc0] ss:$8 sps:$4 sm:$0xff]  }
  0xd0   : > { %1326 = vmatmul.mubr.bf16.gmra.mxu1 %v4667_v28 }
  0xd1   : > { %3557 = vmatpush3.bf16.msra.mxu1 %v3777_v20  ;;  %1431 = vmatprep.mubr.bf16.mxu1 %v4578_v29  ;;  %v3785_v29 = vld [vmem:[%s4442_s28 + $0x220] sm:$0xff]  }
  0xd2   : > { %3558 = vmatprep.subr.bf16.mxu1 %v3780_v21  ;;  %1367 = vmatmul.mubr.bf16.vlgmr.msra.gmra.mxu0 %v589_v16  ;;  %v3840_v20 = vld [vmem:[%s4457_s30 + $0xb4] ss:$8 sps:$4 sm:$0xff]   ;;  %v3835_v21 = vld [vmem:[%s4457_s30 + $0x140] ss:$8 sps:$4 sm:$0xff]   ;;  %v3850_v16 = vld [vmem:[%s4457_s30 + $0x90] ss:$8 sps:$4 sm:$0xff]  }
  0xd3   : > { %3597 = vmatpush3.bf16.msra.mxu0 %v4615_v55  ;;  %1374 = vmatprep.mubr.bf16.mxu0 %v599_v34  ;;  %v3793_v55 = vld [vmem:[%s4457_s30 + $0x60] ss:$8 sps:$4 sm:$0xff]   ;;  %v3858_v34 = vld [vmem:[%s4457_s30 + $0x84] ss:$8 sps:$4 sm:$0xff]  }
  0xd4   : > { %3598 = vmatprep.subr.bf16.mxu0 %v3783_v32 }
  0xd5   : > { %3559 = vmatpush3.bf16.msra.mxu1 %v3781_v30  ;;  %v3852_v30 = vld [vmem:[%s4457_s30 + $0x94] ss:$8 sps:$4 sm:$0xff]  }
  0xd6   : > { %2571 = vmatprep.subr.bf16.mxu1 %v3792_v39 }
  0xd7   : > { %3599 = vmatpush3.bf16.msra.mxu0 %v3783_v32  ;;  %v3855_v32 = vld [vmem:[%s4457_s30 + $0x114] ss:$8 sps:$4 sm:$0xff]  }
  0xd8   : > { %1432 = vmatmul.mubr.bf16.vlgmr.msra.gmra.mxu1 %v4597_v47  ;;  %3600 = vmatprep.subr.bf16.mxu0 %v3784_v37  ;;  %v568_v47 = vld [vmem:[#allocation2 + $0x90] sm:$0xff] }
  0xd9   : > { %1439 = vmatprep.mubr.bf16.mxu1 %v4611_v52  ;;  %2572 = vmatpush1.bf16.msra.mxu1 %v3790_v38  ;;  %v618_v51 = vpack.c.bf16 %v568_v47, %v4665_v27  ;;  %v584_v52 = vld [vmem:[#allocation2 + $0x92] sm:$0xff]  ;;  %v3844_v27 = vld [vmem:[%s4457_s30 + $0xa0] ss:$8 sps:$4 sm:$0xff]   ;;  %v3873_v47 = vld [vmem:[%s4457_s30 + $0x1e4] ss:$8 sps:$4 sm:$0xff]  }
  0xda   : > { %1375 = vmatmul.mubr.bf16.gmra.mxu0 %v598_v10  ;;  %v620_v54 = vpack.c.bf16 %v584_v52, %v560_v43  ;;  %2573 = vmatprep.subr.bf16.mxu1 %v3795_v53  ;;  %v4747_v38 = vld [vmem:[#allocation3 + $0x11] sm:$0xff]  ;;  %v1586_v10 = vld [vmem:[#allocation3] sm:$0xff] }
  0xdb   : > { %3601 = vmatpush3.bf16.msra.mxu0 %v3784_v37  ;;  %1382 = vmatprep.mubr.bf16.mxu0 %v608_v40  ;;  %v1594_v37 = vld [vmem:[#allocation3 + $0x1] sm:$0xff]  ;;  %5266 = vst [vmem:[#allocation18_spill] sm:$0xff] %v4747_v38  ;;  %v3862_v43 = vld [vmem:[%s4457_s30 + $0x270] ss:$8 sps:$4 sm:$0xff]  }
  0xdc   : > { %3602 = vmatprep.subr.bf16.mxu0 %v3785_v29  ;;  %v1660_v39 = vpack.c.bf16 %v4747_v38, %v1594_v37  ;;  %v3859_v40 = vld [vmem:[%s4457_s30 + $0x100] ss:$8 sps:$4 sm:$0xff]   ;;  %v3879_v52 = vld [vmem:[%s4457_s30 + $0x1d4] ss:$8 sps:$4 sm:$0xff]   ;;  %v3882_v53 = vld [vmem:[%s4457_s30 + $0x244] ss:$8 sps:$4 sm:$0xff]  }
  0xdd   : > { %2574 = vmatpush1.bf16.msra.mxu1 %v3793_v55  ;;  %v3880_v55 = vld [vmem:[%s4457_s30 + $0x240] ss:$8 sps:$4 sm:$0xff]  }
  0xdf   : > { %3603 = vmatpush3.bf16.msra.mxu0 %v3785_v29  ;;  %v4751_v29 = vld [vmem:[#allocation3 + $0x10] sm:$0xff] }
  0xe0   : > { %1440 = vmatmul.mubr.bf16.gmra.mxu1 %v4632_v2  ;;  %3604 = vmatprep.subr.bf16.mxu0 %v3786_v42  ;;  %v3811_v2 = vld [vmem:[%s4457_s30] ss:$8 sps:$4 sm:$0xff]   ;;  %5267 = vst [vmem:[#allocation19_spill] sm:$0xff] %v4751_v29 }
  0xe1   : > { %1447 = vmatprep.mubr.bf16.mxu1 %v4649_v12  ;;  %v3823_v12 = vld [vmem:[%s4457_s30 + $0x160] ss:$8 sps:$4 sm:$0xff]  }
  0xe2   : > { %1383 = vmatmul.mubr.bf16.gmra.mxu0 %v607_v22  ;;  %v3864_v22 = vld [vmem:[%s4457_s30 + $0x274] ss:$8 sps:$4 sm:$0xff]  }
  0xe3   : > { %3605 = vmatpush3.bf16.msra.mxu0 %v3786_v42  ;;  %1390 = vmatprep.mubr.bf16.mxu0 %v617_v44  ;;  %v1659_v42 = vpack.c.bf16 %v4751_v29, %v1586_v10  ;;  %v3870_v44 = vld [vmem:[%s4457_s30 + $0x264] ss:$8 sps:$4 sm:$0xff]  }
  0xe4   : > { %3606 = vmatprep.subr.bf16.mxu0 %v3787_v33 }
  0xe7   : > { %3607 = vmatpush3.bf16.msra.mxu0 %v3787_v33  ;;  %v3867_v33 = vld [vmem:[%s4457_s30 + $0x1f4] ss:$8 sps:$4 sm:$0xff]  }
  0xe8   : > { %1448 = vmatmul.mubr.bf16.gmra.mxu1 %v612_v26  ;;  %3608 = vmatprep.subr.bf16.mxu0 %v3788_v45  ;;  %v3841_v26 = vld [vmem:[%s4457_s30 + $0x130] ss:$8 sps:$4 sm:$0xff]  }
  0xe9   : > { %1455 = vmatprep.mubr.bf16.mxu1 %v619_v46  ;;  %v3868_v46 = vld [vmem:[%s4457_s30 + $0x260] ss:$8 sps:$4 sm:$0xff]  }
  0xea   : > { %1391 = vmatmul.mubr.bf16.gmra.mxu0 %v616_v48  ;;  %v3876_v48 = vld [vmem:[%s4457_s30 + $0x254] ss:$8 sps:$4 sm:$0xff]  }
  0xeb   : > { %3609 = vmatpush3.bf16.msra.mxu0 %v3788_v45  ;;  %3612 = vmatprep.mubr.bf16.mxu0 %v4605_v50  ;;  %v3798_v50 = vld [vmem:[%s4457_s30 + $0x54] ss:$8 sps:$4 sm:$0xff]   ;;  %v3865_v45 = vld [vmem:[%s4457_s30 + $0x1f0] ss:$8 sps:$4 sm:$0xff]  }
  0xec   : > { %3610 = vmatprep.subr.bf16.mxu0 %v3789_v49  ;;  %2575 = vmatprep.subr.bf16.mxu1 %v3798_v50  ;;  %v3885_v50 = vld [vmem:[%s4457_s30 + $0x1c4] ss:$8 sps:$4 sm:$0xff]  }
  0xed   : > { %2576 = vmatpush1.bf16.msra.mxu1 %v3796_v56  ;;  %v3888_v56 = vld [vmem:[%s4457_s30 + $0x234] ss:$8 sps:$4 sm:$0xff]  }
  0xee   : > { %2577 = vmatprep.subr.bf16.mxu1 %v3801_v57  ;;  %v3883_v57 = vld [vmem:[%s4457_s30 + $0x1c0] ss:$8 sps:$4 sm:$0xff]  }
  0xef   : > { %3611 = vmatpush3.bf16.msra.mxu0 %v3789_v49  ;;  %v3871_v49 = vld [vmem:[%s4457_s30 + $0x1e0] ss:$8 sps:$4 sm:$0xff]  }
  0xf0   : > { %1456 = vmatmul.mubr.bf16.gmra.mxu1 %v618_v51  ;;  %2644 = vmatprep.subr.bf16.mxu0 %v3819_v5  ;;  %v3874_v51 = vld [vmem:[%s4457_s30 + $0x250] ss:$8 sps:$4 sm:$0xff]  }
  0xf1   : > { %2578 = vmatpush1.bf16.msra.mxu1 %v3799_v58  ;;  %2603 = vmatprep.mubr.bf16.mxu1 %v1660_v39  ;;  %v3886_v58 = vld [vmem:[%s4457_s30 + $0x230] ss:$8 sps:$4 sm:$0xff]  }
  0xf2   : > { %3613 = vmatmul.mubr.bf16.vlgmr.msra.gmra.mxu0 %v4643_v9  ;;  %2579 = vmatprep.subr.bf16.mxu1 %v3804_v59  ;;  %v3825_v9 = vld [vmem:[%s4457_s30 + $0x164] ss:$8 sps:$4 sm:$0xff]   ;;  %v3891_v59 = vld [vmem:[%s4457_s30 + $0x1b4] ss:$8 sps:$4 sm:$0xff]   ;;  %v3901_v5 = vld [vmem:[%s4457_s30 + $0x190] ss:$8 sps:$4 sm:$0xff]  }
  0xf3   : > { %3616 = vmatprep.mubr.bf16.mxu0 %v4667_v28  ;;  %2645 = vmatpush1.bf16.msra.mxu0 %v3817_v7  ;;  %v3849_v28 = vld [vmem:[%s4457_s30 + $0x124] ss:$8 sps:$4 sm:$0xff]  }
  0xf4   : > { %2646 = vmatprep.subr.bf16.mxu0 %v3825_v9  ;;  %v3909_v7 = vld [vmem:[%s4457_s30 + $0x184] ss:$8 sps:$4 sm:$0xff]   ;;  %v3907_v9 = vld [vmem:[%s4457_s30 + $0x180] ss:$8 sps:$4 sm:$0xff]  }
  0xf5   : > { %2580 = vmatpush1.bf16.msra.mxu1 %v3802_v60  ;;  %v3894_v60 = vld [vmem:[%s4457_s30 + $0x224] ss:$8 sps:$4 sm:$0xff]  }
  0xf6   : > { %2581 = vmatprep.subr.bf16.mxu1 %v3807_v61  ;;  %v3889_v61 = vld [vmem:[%s4457_s30 + $0x1b0] ss:$8 sps:$4 sm:$0xff]  }
  0xf7   : > { %2647 = vmatpush1.bf16.msra.mxu0 %v3823_v12  ;;  %v3915_v12 = vld [vmem:[%s4457_s30 + $0x374] ss:$8 sps:$4 sm:$0xff]  }
  0xf8   : > { %2648 = vmatprep.subr.bf16.mxu0 %v3831_v14  ;;  %v3916_v14 = vld [vmem:[%s4457_s30 + $0x2e0] ss:$8 sps:$4 sm:$0xff]  }
  0xf9   : > { %2582 = vmatpush1.bf16.msra.mxu1 %v3805_v62  ;;  %v3892_v62 = vld [vmem:[%s4457_s30 + $0x220] ss:$8 sps:$4 sm:$0xff]  }
  0xfa   : > { %3617 = vmatmul.mubr.bf16.gmra.mxu0 %v620_v54  ;;  %2583 = vmatprep.subr.bf16.mxu1 %v3810_v63  ;;  %v3877_v54 = vld [vmem:[%s4457_s30 + $0x1d0] ss:$8 sps:$4 sm:$0xff]   ;;  %v3897_v63 = vld [vmem:[%s4457_s30 + $0x1a4] ss:$8 sps:$4 sm:$0xff]  }
  0xfb   : > { %2649 = vmatpush1.bf16.msra.mxu0 %v3829_v17  ;;  %v3922_v17 = vld [vmem:[%s4457_s30 + $0x2d0] ss:$8 sps:$4 sm:$0xff]  }
  0xfc   : > { %2650 = vmatprep.subr.bf16.mxu0 %v3837_v19  ;;  %v3928_v19 = vld [vmem:[%s4457_s30 + $0x2c0] ss:$8 sps:$4 sm:$0xff]  }
  0xfd   : > { %2584 = vmatpush1.bf16.msra.mxu1 %v3808_v0  ;;  %v3900_v0 = vld [vmem:[%s4457_s30 + $0x214] ss:$8 sps:$4 sm:$0xff]  }
  0xfe   : > { %2585 = vmatprep.subr.bf16.mxu1 %v3813_v1  ;;  %v3895_v1 = vld [vmem:[%s4457_s30 + $0x1a0] ss:$8 sps:$4 sm:$0xff]  }
  0xff   : > { %2651 = vmatpush1.bf16.msra.mxu0 %v3835_v21  ;;  %v3934_v21 = vld [vmem:[%s4457_s30 + $0x2b0] ss:$8 sps:$4 sm:$0xff]  }
 0x100   : > { %2652 = vmatprep.subr.bf16.mxu0 %v3843_v24  ;;  %v3940_v24 = vld [vmem:[%s4457_s30 + $0x2a0] ss:$8 sps:$4 sm:$0xff]  }
 0x101   : > { %2586 = vmatpush1.bf16.msra.mxu1 %v3811_v2  ;;  %v3898_v2 = vld [vmem:[%s4457_s30 + $0x210] ss:$8 sps:$4 sm:$0xff]  }
 0x102   : > { %2587 = vmatprep.subr.bf16.mxu1 %v3816_v3  ;;  %v3903_v3 = vld [vmem:[%s4457_s30 + $0x194] ss:$8 sps:$4 sm:$0xff]  }
 0x103   : > { %2653 = vmatpush1.bf16.msra.mxu0 %v3841_v26  ;;  %v3948_v26 = vld [vmem:[%s4457_s30 + $0x294] ss:$8 sps:$4 sm:$0xff]  }
 0x104   : > { %2654 = vmatprep.subr.bf16.mxu0 %v3849_v28 }
 0x105   : > { %2588 = vmatpush2.bf16.msra.mxu1 %v3814_v4  ;;  %v3906_v4 = vld [vmem:[%s4457_s30 + $0x204] ss:$8 sps:$4 sm:$0xff]  }
 0x106   : > { %2589 = vmatprep.subr.bf16.mxu1 %v3822_v6  ;;  %v3904_v6 = vld [vmem:[%s4457_s30 + $0x200] ss:$8 sps:$4 sm:$0xff]  }
 0x107   : > { %2655 = vmatpush1.bf16.msra.mxu0 %v3847_v31  ;;  %v3952_v31 = vld [vmem:[%s4457_s30 + $0x280] ss:$8 sps:$4 sm:$0xff]  }
 0x108   : > { %2656 = vmatprep.subr.bf16.mxu0 %v3855_v32 }
 0x109   : > { %2590 = vmatpush2.bf16.msra.mxu1 %v3820_v8  ;;  %v3912_v8 = vld [vmem:[%s4457_s30 + $0x2f4] ss:$8 sps:$4 sm:$0xff]  }
 0x10a   : > { %2591 = vmatprep.subr.bf16.mxu1 %v3828_v11  ;;  %v3910_v11 = vld [vmem:[%s4457_s30 + $0x2f0] ss:$8 sps:$4 sm:$0xff]  }
 0x10b   : > { %2657 = vmatpush1.bf16.msra.mxu0 %v3853_v35 }
 0x10c   : > { %2658 = vmatprep.subr.bf16.mxu0 %v3861_v41 }
 0x10d   : > { %2592 = vmatpush2.bf16.msra.mxu1 %v3826_v13  ;;  %v3918_v13 = vld [vmem:[%s4457_s30 + $0x2e4] ss:$8 sps:$4 sm:$0xff]  }
 0x10e   : > { %2593 = vmatprep.subr.bf16.mxu1 %v3834_v15  ;;  %v3924_v15 = vld [vmem:[%s4457_s30 + $0x2d4] ss:$8 sps:$4 sm:$0xff]  }
 0x10f   : > { %2659 = vmatpush1.bf16.msra.mxu0 %v3859_v40 }
 0x110   : > { %2660 = vmatprep.subr.bf16.mxu0 %v3867_v33 }
 0x111   : > { %2594 = vmatpush2.bf16.msra.mxu1 %v3832_v18  ;;  %v3930_v18 = vld [vmem:[%s4457_s30 + $0x2c4] ss:$8 sps:$4 sm:$0xff]  }
 0x112   : > { %2595 = vmatprep.subr.bf16.mxu1 %v3840_v20  ;;  %v3936_v20 = vld [vmem:[%s4457_s30 + $0x2b4] ss:$8 sps:$4 sm:$0xff]  }
 0x113   : > { %2661 = vmatpush2.bf16.msra.mxu0 %v3865_v45 }
 0x114   : > { %2662 = vmatprep.subr.bf16.mxu0 %v3873_v47 }
 0x115   : > { %2596 = vmatpush2.bf16.msra.mxu1 %v3838_v23  ;;  %v3942_v23 = vld [vmem:[%s4457_s30 + $0x2a4] ss:$8 sps:$4 sm:$0xff]  }
 0x116   : > { %2597 = vmatprep.subr.bf16.mxu1 %v3846_v25 }
 0x117   : > { %2663 = vmatpush2.bf16.msra.mxu0 %v3871_v49 }
 0x118   : > { %2664 = vmatprep.subr.bf16.mxu0 %v3879_v52 }
 0x119   : > { %2598 = vmatpush2.bf16.msra.mxu1 %v3844_v27  ;;  %v3946_v27 = vld [vmem:[%s4457_s30 + $0x290] ss:$8 sps:$4 sm:$0xff]  }
 0x11a   : > { %2599 = vmatprep.subr.bf16.mxu1 %v3852_v30  ;;  %v3954_v30 = vld [vmem:[%s4457_s30 + $0x284] ss:$8 sps:$4 sm:$0xff]  }
 0x11b   : > { %2665 = vmatpush2.bf16.msra.mxu0 %v3877_v54 }
 0x11c   : > { %2666 = vmatprep.subr.bf16.mxu0 %v3885_v50 }
 0x11d   : > { %2600 = vmatpush2.bf16.msra.mxu1 %v3850_v16 }
 0x11e   : > { %2601 = vmatprep.subr.bf16.mxu1 %v3858_v34  ;;  %v3960_v34 = vld [vmem:[%s4457_s30 + $0x474] ss:$8 sps:$4 sm:$0xff]  }
 0x11f   : > { %2667 = vmatpush2.bf16.msra.mxu0 %v3883_v57 }
 0x120   : > { %2668 = vmatprep.subr.bf16.mxu0 %v3891_v59 }
 0x121   : > { %2602 = vmatpush2.bf16.msra.mxu1 %v3856_v36 }
 0x122   : > { %2717 = vmatprep.subr.bf16.mxu1 %v3864_v22 }
 0x123   : > { %2669 = vmatpush2.bf16.msra.mxu0 %v3889_v61 }
 0x124   : > { %2604 = vmatmul.mubr.bf16.vlgmr.msra.gmra.mxu1 %v1659_v42  ;;  %2670 = vmatprep.subr.bf16.mxu0 %v3897_v63 }
 0x125   : > { %2718 = vmatpush1.bf16.msra.mxu1 %v3862_v43 }
 0x126   : > { %2719 = vmatprep.subr.bf16.mxu1 %v3870_v44 }
 0x127   : > { %2671 = vmatpush2.bf16.msra.mxu0 %v3895_v1 }
 0x128   : > { %2672 = vmatprep.subr.bf16.mxu0 %v3903_v3 }
 0x129   : > { %2720 = vmatpush1.bf16.msra.mxu1 %v3868_v46 }
 0x12a   : > { %2721 = vmatprep.subr.bf16.mxu1 %v3876_v48 }
 0x12b   : > { %2673 = vmatpush2.bf16.msra.mxu0 %v3901_v5 }
 0x12c   : > { %2674 = vmatprep.subr.bf16.mxu0 %v3909_v7 }
 0x12d   : > { %2722 = vmatpush1.bf16.msra.mxu1 %v3874_v51 }
 0x12e   : > { %2723 = vmatprep.subr.bf16.mxu1 %v3882_v53 }
 0x12f   : > { %2675 = vmatpush2.bf16.msra.mxu0 %v3907_v9 }
 0x130   : > { %2790 = vmatprep.subr.bf16.mxu0 %v3915_v12 }
 0x131   : > { %2724 = vmatpush1.bf16.msra.mxu1 %v3880_v55 }
 0x132   : > { %2725 = vmatprep.subr.bf16.mxu1 %v3888_v56 }
 0x135   : > { %2726 = vmatpush1.bf16.msra.mxu1 %v3886_v58 }
 0x136   : > { %2727 = vmatprep.subr.bf16.mxu1 %v3894_v60 }
 0x139   : > { %2728 = vmatpush1.bf16.msra.mxu1 %v3892_v62 }
 0x13a   : > { %2729 = vmatprep.subr.bf16.mxu1 %v3900_v0 }
 0x13d   : > { %2730 = vmatpush1.bf16.msra.mxu1 %v3898_v2 }
 0x13e   : > { %2731 = vmatprep.subr.bf16.mxu1 %v3906_v4 }
 0x141   : > { %2732 = vmatpush1.bf16.msra.mxu1 %v3904_v6 }
 0x142   : > { %2733 = vmatprep.subr.bf16.mxu1 %v3912_v8 }
 0x145   : > { %2734 = vmatpush2.bf16.msra.mxu1 %v3910_v11 }
 0x146   : > { %2735 = vmatprep.subr.bf16.mxu1 %v3918_v13 }
 0x149   : > { %2736 = vmatpush2.bf16.msra.mxu1 %v3916_v14 }
 0x14a   : > { %2737 = vmatprep.subr.bf16.mxu1 %v3924_v15 }
 0x14d   : > { %2738 = vmatpush2.bf16.msra.mxu1 %v3922_v17 }
 0x14e   : > { %2739 = vmatprep.subr.bf16.mxu1 %v3930_v18 }
 0x151   : > { %2740 = vmatpush2.bf16.msra.mxu1 %v3928_v19  ;;  %v4833_v19 = vld [vmem:[%s312_s1] ss:$0 sm:$0xff] }
 0x152   : > { %2741 = vmatprep.subr.bf16.mxu1 %v3936_v20 }
 0x155   : > { %2742 = vmatpush2.bf16.msra.mxu1 %v3934_v21 }
 0x156   : > { %2743 = vmatprep.subr.bf16.mxu1 %v3942_v23 }
 0x159   : > { %2744 = vmatpush2.bf16.msra.mxu1 %v3940_v24 }
 0x15a   : > { %2745 = vmatprep.subr.bf16.mxu1 %v3948_v26 }
 0x15d   : > { %2746 = vmatpush2.bf16.msra.mxu1 %v3946_v27 }
 0x15e   : > { %2747 = vmatprep.subr.bf16.mxu1 %v3954_v30 }
 0x161   : > { %2748 = vmatpush2.bf16.msra.mxu1 %v3952_v31 }
 0x162   : > { %2863 = vmatprep.subr.bf16.mxu1 %v3960_v34 }
 0x16a   : > { %v3440_v25 = vpop.f32.mrf.mxu0 }
 0x16c   : > { %v3441_v28 = vpop.f32.mrf.mxu0 }
 0x16d   : > { %v3442_v17 = vadd.f32 %v3441_v28, %v3440_v25 }
 0x16e   : > { %v4804_v16 = vpop.f32.mrf.mxu0 }
 0x16f   : > { %v1239_v30 = vadd.f32 %v3442_v17, %v4833_v19 }
 0x170   : > { %v3444_v36 = vpop.f32.mrf.mxu0 }
 0x171   : > { %v3445_v34 = vadd.f32 %v3444_v36, %v4804_v16 }
 0x178   : > { %v3480_v32 = vpop.f32.mrf.mxu1 }
 0x179   : > { %v3446_v39 = vpop.f32.mrf.mxu0 }
 0x17a   : > { %v3481_v35 = vpop.f32.mrf.mxu1 }
 0x17b   : > { %v3447_v10 = vpop.f32.mrf.mxu0  ;;  %v3482_v31 = vadd.f32 %v3481_v35, %v3480_v32  ;;  %v1242_v32 = vadd.f32 %v3445_v34, %v4833_v19 }
 0x17c   : > { %v4807_v37 = vpop.f32.mrf.mxu1  ;;  %v3448_v14 = vadd.f32 %v3447_v10, %v3446_v39 }
 0x17d   : > { %v3449_v42 = vpop.f32.mrf.mxu0 }
 0x17e   : > { %v4809_v41 = vpop.f32.mrf.mxu1  ;;  %v1247_v24 = vadd.f32 %v3448_v14, %v4833_v19 }
 0x17f   : > { %v3450_v22 = vpop.f32.mrf.mxu0  ;;  %v3485_v16 = vadd.f32 %v4809_v41, %v4807_v37 }
 0x180   : > { %v3486_v40 = vpop.f32.mrf.mxu1  ;;  %v3451_v20 = vadd.f32 %v3450_v22, %v3449_v42 }
 0x181   : > { %v3452_v44 = vpop.f32.mrf.mxu0  ;;  %v1307_v41 = vadd.f32 %v3485_v16, %v1242_v32 }
 0x182   : > { %v3487_v43 = vpop.f32.mrf.mxu1  ;;  %v1250_v28 = vadd.f32 %v3451_v20, %v4833_v19 }
 0x183   : > { %v3453_v46 = vpop.f32.mrf.mxu0  ;;  %v3488_v26 = vadd.f32 %v3487_v43, %v3486_v40 }
 0x184   : > { %v3489_v33 = vpop.f32.mrf.mxu1  ;;  %v3454_v22 = vadd.f32 %v3453_v46, %v3452_v44 }
 0x185   : > { %v4813_v48 = vpop.f32.mrf.mxu0  ;;  %v1312_v14 = vadd.f32 %v3488_v26, %v1247_v24 }
 0x186   : > { %v3490_v45 = vpop.f32.mrf.mxu1  ;;  %v1255_v44 = vadd.f32 %v3454_v22, %v4833_v19 }
 0x187   : > { %v4817_v51 = vpop.f32.mrf.mxu0  ;;  %v3491_v39 = vadd.f32 %v3490_v45, %v3489_v33 }
 0x188   : > { %v4811_v47 = vpop.f32.mrf.mxu1 }
 0x189   : > { %v3458_v53 = vpop.f32.mrf.mxu0  ;;  %v1315_v36 = vadd.f32 %v3491_v39, %v1250_v28 }
 0x18a   : > { %v4815_v49 = vpop.f32.mrf.mxu1 }
 0x18b   : > { %v3459_v55 = vpop.f32.mrf.mxu0 }
 0x18c   : > { %v4819_v52 = vpop.f32.mrf.mxu1  ;;  %v3460_v38 = vadd.f32 %v3459_v55, %v3458_v53 }
 0x18d   : > { %v3461_v56 = vpop.f32.mrf.mxu0 }
 0x18e   : > { %v4821_v54 = vpop.f32.mrf.mxu1  ;;  %v1263_v46 = vadd.f32 %v3460_v38, %v4833_v19 }
 0x18f   : > { %v3462_v58 = vpop.f32.mrf.mxu0 }
 0x190   : > { %v3498_v50 = vpop.f32.mrf.mxu1  ;;  %v3463_v55 = vadd.f32 %v3462_v58, %v3461_v56 }
 0x192   : > { %v3499_v57 = vpop.f32.mrf.mxu1  ;;  %v3520_v60 = vpop.f32.mrf.mxu0 }
 0x193   : > { %v3500_v53 = vadd.f32 %v3499_v57, %v3498_v50  ;;  %v1266_v50 = vadd.f32 %v3463_v55, %v4833_v19 }
 0x194   : > { %v4823_v59 = vpop.f32.mrf.mxu1  ;;  %v3521_v62 = vpop.f32.mrf.mxu0 }
 0x195   : > { %v3522_v40 = vadd.f32 %v3521_v62, %v3520_v60  ;;  %v3494_v62 = vadd.f32 %v4815_v49, %v4811_v47  ;;  %v1328_v38 = vadd.f32 %v3500_v53, %v1263_v46 }
 0x196   : > { %v4825_v61 = vpop.f32.mrf.mxu1  ;;  %v3523_v0 = vpop.f32.mrf.mxu0 }
 0x197   : > { %v3503_v56 = vadd.f32 %v4825_v61, %v4823_v59  ;;  %v1320_v58 = vadd.f32 %v3494_v62, %v1255_v44 }
 0x198   : > { %v3560_v63 = vpop.f32.mrf.mxu1  ;;  %v3524_v2 = vpop.f32.mrf.mxu0 }
 0x199   : > { %v3525_v24 = vadd.f32 %v3524_v2, %v3523_v0 }
 0x19a   : > { %v3561_v1 = vpop.f32.mrf.mxu1  ;;  %v3526_v4 = vpop.f32.mrf.mxu0 }
 0x19b   : > { %v3562_v20 = vadd.f32 %v3561_v1, %v3560_v63  ;;  %v1372_v63 = vadd.f32 %v3525_v24, %v1307_v41 }
 0x19c   : > { %v4827_v3 = vpop.f32.mrf.mxu1  ;;  %v3527_v6 = vpop.f32.mrf.mxu0 }
 0x19d   : > { %v3528_v10 = vadd.f32 %v3527_v6, %v3526_v4 }
 0x19e   : > { %v4829_v5 = vpop.f32.mrf.mxu1  ;;  %v3529_v8 = vpop.f32.mrf.mxu0 }
 0x19f   : > { %v1377_v17 = vadd.f32 %v3528_v10, %v1312_v14 }
 0x1a0   : > { %v3566_v7 = vpop.f32.mrf.mxu1  ;;  %v3530_v11 = vpop.f32.mrf.mxu0 }
 0x1a1   : > { %v3531_v45 = vadd.f32 %v3530_v11, %v3529_v8 }
 0x1a2   : > { %v3567_v9 = vpop.f32.mrf.mxu1  ;;  %v3532_v13 = vpop.f32.mrf.mxu0 }
 0x1a3   : > { %v3568_v33 = vadd.f32 %v3567_v9, %v3566_v7  ;;  %v3457_v7 = vadd.f32 %v4817_v51, %v4813_v48  ;;  %v1380_v8 = vadd.f32 %v3531_v45, %v1315_v36  ;;  %v3565_v48 = vadd.f32 %v4829_v5, %v4827_v3 }
 0x1a4   : > { %v3569_v12 = vpop.f32.mrf.mxu1  ;;  %v3533_v18 = vpop.f32.mrf.mxu0 }
 0x1a5   : > { %v1442_v11 = vadd.f32 %v3568_v33, %v1377_v17  ;;  %v3534_v47 = vadd.f32 %v3533_v18, %v3532_v13  ;;  %v1258_v61 = vadd.f32 %v3457_v7, %v4833_v19  ;;  %v3497_v13 = vadd.f32 %v4821_v54, %v4819_v52 }
 0x1a6   : > { %v3570_v15 = vpop.f32.mrf.mxu1  ;;  %v4837_v23 = vpop.f32.mrf.mxu0  ;;  %v1331_v18 = vadd.f32 %v3503_v56, %v1266_v50  ;;  %v1437_v32 = vadd.f32 %v3565_v48, %v1372_v63 }
 0x1a7   : > { %5268 = vst [vmem:[#allocation20_spill] sm:$0xff] %v4837_v23  ;;  %v1304_v23 = vadd.f32 %v3482_v31, %v1239_v30  ;;  %v3571_v9 = vadd.f32 %v3570_v15, %v3569_v12  ;;  %v1385_v31 = vadd.f32 %v3534_v47, %v1320_v58  ;;  %v1323_v36 = vadd.f32 %v3497_v13, %v1258_v61 }
 0x1a8   : > { %v4835_v21 = vpop.f32.mrf.mxu1  ;;  %v4844_v25 = vpop.f32.mrf.mxu0 }
 0x1a9   : > { %v1369_v6 = vadd.f32 %v3522_v40, %v1304_v23  ;;  %v1445_v59 = vadd.f32 %v3571_v9, %v1380_v8 }
 0x1aa   : > { %v4840_v27 = vpop.f32.mrf.mxu1  ;;  %v3538_v29 = vpop.f32.mrf.mxu0 }
 0x1ab   : > { %v3574_v3 = vadd.f32 %v4840_v27, %v4835_v21 }
 0x1ac   : > { %v4847_v42 = vpop.f32.mrf.mxu1  ;;  %v3539_v35 = vpop.f32.mrf.mxu0 }
 0x1ad   : > { %v3540_v26 = vadd.f32 %v3539_v35, %v3538_v29  ;;  %v1434_v29 = vadd.f32 %v3562_v20, %v1369_v6  ;;  %v1450_v45 = vadd.f32 %v3574_v3, %v1385_v31  ;;  %v5270_v3 = vld [vmem:[#allocation19_spill] sm:$0xff] }
 0x1ae   : > { %v4849_v43 = vpop.f32.mrf.mxu1  ;;  %v3541_v60 = vpop.f32.mrf.mxu0  ;;  %v5269_v22 = vld [vmem:[#allocation20_spill] sm:$0xff] }
 0x1af   : > { %v1393_v51 = vadd.f32 %v3540_v26, %v1328_v38  ;;  %v3537_v14 = vadd.f32 %v4844_v25, %v5269_v22  ;;  %v3577_v44 = vadd.f32 %v4849_v43, %v4847_v42 }
 0x1b0   : > { %v3578_v4 = vpop.f32.mrf.mxu1  ;;  %v3542_v30 = vpop.f32.mrf.mxu0 }
 0x1b1   : > { %v3543_v2 = vadd.f32 %v3542_v30, %v3541_v60 }
 0x1b2   : > { %v3579_v37 = vpop.f32.mrf.mxu1  ;;  %v3614_v57 = vpop.f32.mrf.mxu0 }
 0x1b3   : > { %v4863_v0 = vadd.f32 %v3614_v57, %v1442_v11  ;;  %v3580_v1 = vadd.f32 %v3579_v37, %v3578_v4  ;;  %v1396_v40 = vadd.f32 %v3543_v2, %v1331_v18  ;;  %v1388_v4 = vadd.f32 %v3537_v14, %v1323_v36  ;;  %v3921_v14 = vld [vmem:[%s4457_s30 + $0x364] ss:$8 sps:$4 sm:$0xff]  }
 0x1b4   : > { %v3581_v49 = vpop.f32.mrf.mxu1  ;;  %v1498_v12 = vpop.f32.mrf.mxu0 }
 0x1b5   : > { %v1539_v15 = vmin.f32 %v4863_v0, 0.0  ;;  %v4868_v23 = vadd.f32 %v1498_v12, %v1434_v29  ;;  %v1458_v16 = vadd.f32 %v3580_v1, %v1393_v51  ;;  %v1453_v41 = vadd.f32 %v3577_v44, %v1388_v4  ;;  %v1602_v12 = vld [vmem:[#allocation3 + $0x2] sm:$0xff] }
 0x1b6   : > { %v3582_v34 = vpop.f32.mrf.mxu1  ;;  %v3615_v28 = vpop.f32.mrf.mxu0  ;;  %vm1531_vm8 = vcmp.gt.f32.partialorder %v4863_v0, 0.0 }
 0x1b7   : > { %v1549_v5 = vmul.f32 1.442695, %v1539_v15  ;;  %v1537_v39 = vmin.f32 %v4868_v23, 0.0  ;;  %v1510_v10 = vadd.f32 %v3615_v28, %v1445_v59  ;;  %v3583_v35 = vadd.f32 %v3582_v34, %v3581_v49  ;;  %v4895_v15 = vld [vmem:[#allocation3 + $0x12] sm:$0xff] }
 0x1b8   : > { %v1501_v19 = vpop.f32.mrf.mxu0  ;;  %vm1529_vm9 = vcmp.gt.f32.partialorder %v4868_v23, 0.0  ;;  %v1661_v28 = vpack.c.bf16 %v4895_v15, %v1602_v12 }
 0x1b9   : > { %4022 = vpow2.f32 %v1549_v5  ;;  %v1545_v52 = vmul.f32 1.442695, %v1537_v39  ;;  %v1540_v54 = vmin.f32 %v1510_v10, 0.0  ;;  %v1502_v17 = vadd.f32 %v1501_v19, %v1437_v32  ;;  %v3913_v39 = vld [vmem:[%s4457_s30 + $0x370] ss:$8 sps:$4 sm:$0xff]  }
 0x1ba   : > { %v3618_v33 = vpop.f32.mrf.mxu0  ;;  %v1461_v60 = vadd.f32 %v3583_v35, %v1396_v40  ;;  %vm1532_vm10 = vcmp.gt.f32.partialorder %v1510_v10, 0.0 }
 0x1bb   : > { %4024 = vpow2.f32 %v1545_v52  ;;  %v1551_v21 = vmul.f32 1.442695, %v1540_v54  ;;  %v1523_v27 = vadd.f32 %v3618_v33, %v1458_v16  ;;  %v1538_v25 = vmin.f32 %v1502_v17, 0.0  ;;  %v3919_v52 = vld [vmem:[%s4457_s30 + $0x360] ss:$8 sps:$4 sm:$0xff]  }
 0x1bc   : > { %v1514_v46 = vpop.f32.mrf.mxu0  ;;  %vm1530_vm11 = vcmp.gt.f32.partialorder %v1502_v17, 0.0 }
 0x1bd   : > { %4026 = vpow2.f32 %v1551_v21  ;;  %v1543_v53 = vmin.f32 %v1523_v27, 0.0  ;;  %v1515_v55 = vadd.f32 %v1514_v46, %v1450_v45  ;;  %v1547_v62 = vmul.f32 1.442695, %v1538_v25  ;;  %v3925_v45 = vld [vmem:[%s4457_s30 + $0x350] ss:$8 sps:$4 sm:$0xff]  }
 0x1be   : > { %v3619_v6 = vpop.f32.mrf.mxu0  ;;  %vm1535_vm12 = vcmp.gt.f32.partialorder %v1523_v27, 0.0  ;;  %v3933_v46 = vld [vmem:[%s4457_s30 + $0x344] ss:$8 sps:$4 sm:$0xff]  }
 0x1bf   : > { %v1557_v20 = vmul.f32 1.442695, %v1543_v53  ;;  %v1541_v24 = vmin.f32 %v1515_v55, 0.0  ;;  %v1526_v37 = vadd.f32 %v3619_v6, %v1461_v60  ;;  %4028 = vpow2.f32 %v1547_v62  ;;  %v3939_v62 = vld [vmem:[%s4457_s30 + $0x334] ss:$8 sps:$4 sm:$0xff]  }
 0x1c0   : > { %v1517_v26 = vpop.f32.mrf.mxu0  ;;  %vm1533_vm13 = vcmp.gt.f32.partialorder %v1515_v55, 0.0 }
 0x1c1   : > { %4030 = vpow2.f32 %v1557_v20  ;;  %v1553_v30 = vmul.f32 1.442695, %v1541_v24  ;;  %v1544_v7 = vmin.f32 %v1526_v37, 0.0  ;;  %v1518_v8 = vadd.f32 %v1517_v26, %v1453_v41 }
 0x1c2   : > { %vm1536_vm14 = vcmp.gt.f32.partialorder %v1526_v37, 0.0 }
 0x1c3   : > { %4032 = vpow2.f32 %v1553_v30  ;;  %v1559_v42 = vmul.f32 1.442695, %v1544_v7  ;;  %v1542_v43 = vmin.f32 %v1518_v8, 0.0  ;;  %vm1534_vm15 = vcmp.gt.f32.partialorder %v1518_v8, 0.0  ;;  %v3945_v7 = vld [vmem:[%s4457_s30 + $0x324] ss:$8 sps:$4 sm:$0xff]  }
 0x1c5   : > { %4034 = vpow2.f32 %v1559_v42  ;;  %v1555_v11 = vmul.f32 1.442695, %v1542_v43  ;;  %v3943_v42 = vld [vmem:[%s4457_s30 + $0x320] ss:$8 sps:$4 sm:$0xff]  }
 0x1c6   : > { %v4023_v9 = vpop.eup %4022 }
 0x1c7   : > { %v3261_v38 = vadd.f32 -1.0, %v4023_v9  ;;  %4036 = vpow2.f32 %v1555_v11  ;;  %v3951_v9 = vld [vmem:[%s4457_s30 + $0x314] ss:$8 sps:$4 sm:$0xff]  }
 0x1c8   : > { %v4025_v50 = vpop.eup %4024 }
 0x1c9   : > { %v4882_v56 = vsel %vm1531_vm8, %v4863_v0, %v3261_v38  ;;  %v3259_v47 = vadd.f32 -1.0, %v4025_v50  ;;  %v3949_v50 = vld [vmem:[%s4457_s30 + $0x310] ss:$8 sps:$4 sm:$0xff]  }
 0x1ca   : > { %v4027_v49 = vpop.eup %4026  ;;  %1580 = vst [vmem:[#allocation3 + $0x41] sm:$0xff] %v4882_v56 }
 0x1cb   : > { %v4887_v57 = vsel %vm1529_vm9, %v4868_v23, %v3259_v47  ;;  %v3262_v58 = vadd.f32 -1.0, %v4027_v49 }
 0x1cc   : > { %1578 = vst [vmem:[#allocation3 + $0x21] sm:$0xff] %v4887_v57  ;;  %v4029_v63 = vpop.eup %4028 }
 0x1cd   : > { %v4890_v29 = vsel %vm1532_vm10, %v1510_v10, %v3262_v58  ;;  %v3260_v0 = vadd.f32 -1.0, %v4029_v63  ;;  %v3957_v58 = vld [vmem:[%s4457_s30 + $0x304] ss:$8 sps:$4 sm:$0xff]   ;;  %v3955_v63 = vld [vmem:[%s4457_s30 + $0x300] ss:$8 sps:$4 sm:$0xff]  }
 0x1ce   : > { %v4031_v48 = vpop.eup %4030  ;;  %1581 = vst [vmem:[#allocation3 + $0x51] sm:$0xff] %v4890_v29  ;;  %v4927_v33 = vpack.c.bf16 %v4890_v29, %v4882_v56 }
 0x1cf   : > { %v3265_v51 = vadd.f32 -1.0, %v4031_v48  ;;  %v4893_v2 = vsel %vm1530_vm11, %v1502_v17, %v3260_v0  ;;  %v3927_v17 = vld [vmem:[%s4457_s30 + $0x354] ss:$8 sps:$4 sm:$0xff]   ;;  %v5271_v48 = vld [vmem:[#allocation18_spill] sm:$0xff] }
 0x1d0   : > { %v4033_v1 = vpop.eup %4032  ;;  %1579 = vst [vmem:[#allocation3 + $0x31] sm:$0xff] %v4893_v2  ;;  %v4902_v61 = vpack.c.bf16 %v4893_v2, %v4887_v57  ;;  %v1663_v0 = vpack.c.bf16 %v4887_v57, %v5271_v48  ;;  %v3967_v57 = vld [vmem:[%s4457_s30 + $0x3e0] ss:$8 sps:$4 sm:$0xff]  }
 0x1d1   : > { %v4898_v23 = vsel %vm1535_vm12, %v1523_v27, %v3265_v51  ;;  %v3263_v59 = vadd.f32 -1.0, %v4033_v1  ;;  %v1614_v35 = vld [vmem:[#allocation3 + $0x40] sm:$0xff]  ;;  %v3958_v51 = vld [vmem:[%s4457_s30 + $0x470] ss:$8 sps:$4 sm:$0xff]  }
 0x1d2   : > { %v4035_v13 = vpop.eup %4034  ;;  %1584 = vst [vmem:[#allocation3 + $0x81] sm:$0xff] %v4898_v23  ;;  %2613 = vmatprep.mubr.bf16.mxu1 %v4902_v61  ;;  %v1606_v41 = vld [vmem:[#allocation3 + $0x42] sm:$0xff]  ;;  %v3963_v1 = vld [vmem:[%s4457_s30 + $0x3f4] ss:$8 sps:$4 sm:$0xff]  }
 0x1d3   : > { %v4905_v18 = vsel %vm1533_vm13, %v1515_v55, %v3263_v59  ;;  %v3266_v31 = vadd.f32 -1.0, %v4035_v13  ;;  %v1612_v34 = vld [vmem:[#allocation3 + $0x20] sm:$0xff]  ;;  %v3961_v59 = vld [vmem:[%s4457_s30 + $0x3f0] ss:$8 sps:$4 sm:$0xff]  }
 0x1d4   : > { %1582 = vst [vmem:[#allocation3 + $0x61] sm:$0xff] %v4905_v18  ;;  %v1662_v5 = vpack.c.bf16 %v1612_v34, %v5270_v3  ;;  %v4037_v10 = vpop.eup %4036  ;;  %v1604_v4 = vld [vmem:[#allocation3 + $0x22] sm:$0xff]  ;;  %v3975_v3 = vld [vmem:[%s4457_s30 + $0x3d4] ss:$8 sps:$4 sm:$0xff]  }
 0x1d5   : > { %v4912_v22 = vsel %vm1536_vm14, %v1526_v37, %v3266_v31  ;;  %v3264_v40 = vadd.f32 -1.0, %v4037_v10  ;;  %v1615_v25 = vld [vmem:[#allocation3 + $0x50] sm:$0xff]  ;;  %v3931_v55 = vld [vmem:[%s4457_s30 + $0x340] ss:$8 sps:$4 sm:$0xff]   ;;  %v1664_v11 = vpack.c.bf16 %v1604_v4, %v4895_v15 }
 0x1d6   : > { %1585 = vst [vmem:[#allocation3 + $0x91] sm:$0xff] %v4912_v22  ;;  %2676 = vmatprep.mubr.bf16.mxu0 %v1662_v5  ;;  %v1693_v32 = vpack.c.bf16 %v4912_v22, %v4898_v23  ;;  %v4937_v60 = vpack.c.bf16 %v1615_v25, %v1614_v35  ;;  %v1607_v20 = vld [vmem:[#allocation3 + $0x52] sm:$0xff]  ;;  %v3966_v15 = vld [vmem:[%s4457_s30 + $0x464] ss:$8 sps:$4 sm:$0xff]  }
 0x1d7   : > { %2677 = vmatmul.mubr.bf16.vlgmr.msra.gmra.mxu0 %v1661_v28  ;;  %v4918_v19 = vsel %vm1534_vm15, %v1518_v8, %v3264_v40  ;;  %v1613_v16 = vld [vmem:[#allocation3 + $0x30] sm:$0xff]  ;;  %v4947_v26 = vpack.c.bf16 %v1607_v20, %v1606_v41 }
 0x1d8   : > { %2791 = vmatpush1.bf16.msra.mxu0 %v3913_v39  ;;  %1583 = vst [vmem:[#allocation3 + $0x71] sm:$0xff] %v4918_v19  ;;  %v1671_v54 = vpack.c.bf16 %v1614_v35, %v1613_v16  ;;  %v4922_v36 = vpack.c.bf16 %v1613_v16, %v1612_v34  ;;  %v1605_v21 = vld [vmem:[#allocation3 + $0x32] sm:$0xff]  ;;  %v4942_v6 = vpack.c.bf16 %v4918_v19, %v4905_v18  ;;  %v3969_v13 = vld [vmem:[%s4457_s30 + $0x3e4] ss:$8 sps:$4 sm:$0xff]  }
 0x1d9   : > { %2792 = vmatprep.subr.bf16.mxu0 %v3921_v14  ;;  %v4932_v44 = vpack.c.bf16 %v1605_v21, %v1604_v4  ;;  %v3937_v37 = vld [vmem:[%s4457_s30 + $0x330] ss:$8 sps:$4 sm:$0xff]   ;;  %v4949_v30 = vld [vmem:[#allocation3 + $0x80] sm:$0xff]  ;;  %v1673_v12 = vpack.c.bf16 %v1606_v41, %v1605_v21  ;;  %v1672_v34 = vpack.c.bf16 %v4882_v56, %v4893_v2  ;;  %v1681_v16 = vpack.c.bf16 %v4905_v18, %v4890_v29 }
 0x1da   : > { %2686 = vmatprep.mubr.bf16.mxu0 %v1671_v54  ;;  %2614 = vmatmul.mubr.bf16.gmra.mxu1 %v4922_v36  ;;  %v3972_v31 = vld [vmem:[%s4457_s30 + $0x454] ss:$8 sps:$4 sm:$0xff]   ;;  %v3970_v28 = vld [vmem:[%s4457_s30 + $0x450] ss:$8 sps:$4 sm:$0xff]   ;;  %v3978_v39 = vld [vmem:[%s4457_s30 + $0x444] ss:$8 sps:$4 sm:$0xff]  }
 0x1db   : > { %v1616_v27 = vld [vmem:[#allocation3 + $0x60] sm:$0xff]  ;;  %2623 = vmatprep.mubr.bf16.mxu1 %v4927_v33  ;;  %v3973_v10 = vld [vmem:[%s4457_s30 + $0x3d0] ss:$8 sps:$4 sm:$0xff]  }
 0x1dc   : > { %2793 = vmatpush1.bf16.msra.mxu0 %v3919_v52  ;;  %v1680_v53 = vpack.c.bf16 %v1616_v27, %v1615_v25  ;;  %v1608_v47 = vld [vmem:[#allocation3 + $0x62] sm:$0xff]  ;;  %v3984_v56 = vld [vmem:[%s4457_s30 + $0x434] ss:$8 sps:$4 sm:$0xff]   ;;  %v3982_v35 = vld [vmem:[%s4457_s30 + $0x430] ss:$8 sps:$4 sm:$0xff]   ;;  %v1690_v25 = vpack.c.bf16 %v4898_v23, %v4918_v19 }
 0x1dd   : > { %2794 = vmatprep.subr.bf16.mxu0 %v3927_v17  ;;  %v1682_v5 = vpack.c.bf16 %v1608_v47, %v1607_v20  ;;  %v3976_v14 = vld [vmem:[%s4457_s30 + $0x440] ss:$8 sps:$4 sm:$0xff]   ;;  %v3981_v40 = vld [vmem:[%s4457_s30 + $0x3c4] ss:$8 sps:$4 sm:$0xff]   ;;  %v3987_v54 = vld [vmem:[%s4457_s30 + $0x3b4] ss:$8 sps:$4 sm:$0xff]  }
 0x1de   : > { %v3979_v2 = vld [vmem:[%s4457_s30 + $0x3c0] ss:$8 sps:$4 sm:$0xff]   ;;  %v3990_v21 = vld [vmem:[%s4457_s30 + $0x424] ss:$8 sps:$4 sm:$0xff]   ;;  %v3996_v18 = vld [vmem:[%s4457_s30 + $0x414] ss:$8 sps:$4 sm:$0xff]  }
 0x1df   : > { %2687 = vmatmul.mubr.bf16.gmra.mxu0 %v4932_v44  ;;  %v1617_v24 = vld [vmem:[#allocation3 + $0x70] sm:$0xff]  ;;  %v1634_v52 = vld [vmem:[#allocation3 + $0x82] sm:$0xff]  ;;  %v4275_v20 = vmov 0  }
 0x1e0   : > { %2795 = vmatpush1.bf16.msra.mxu0 %v3925_v45  ;;  %2696 = vmatprep.mubr.bf16.mxu0 %v1680_v53  ;;  %v1689_v8 = vpack.c.bf16 %v4949_v30, %v1617_v24  ;;  %v4955_v43 = vpack.c.bf16 %v1617_v24, %v1616_v27  ;;  %v1609_v38 = vld [vmem:[#allocation3 + $0x72] sm:$0xff]  ;;  %v3988_v45 = vld [vmem:[%s4457_s30 + $0x420] ss:$8 sps:$4 sm:$0xff]   ;;  %v3993_v29 = vld [vmem:[%s4457_s30 + $0x3a4] ss:$8 sps:$4 sm:$0xff]  }
 0x1e1   : > { %2796 = vmatprep.subr.bf16.mxu0 %v3933_v46  ;;  %v4961_v49 = vpack.c.bf16 %v1609_v38, %v1608_v47  ;;  %v1691_v17 = vpack.c.bf16 %v1634_v52, %v1609_v38  ;;  %v3985_v27 = vld [vmem:[%s4457_s30 + $0x3b0] ss:$8 sps:$4 sm:$0xff]   ;;  %v3991_v4 = vld [vmem:[%s4457_s30 + $0x3a0] ss:$8 sps:$4 sm:$0xff]   ;;  %v3999_v53 = vld [vmem:[%s4457_s30 + $0x394] ss:$8 sps:$4 sm:$0xff]  }
 0x1e2   : > { %2624 = vmatmul.mubr.bf16.gmra.mxu1 %v4937_v60  ;;  %v3994_v46 = vld [vmem:[%s4457_s30 + $0x410] ss:$8 sps:$4 sm:$0xff]   ;;  %v4000_v24 = vld [vmem:[%s4457_s30 + $0x400] ss:$8 sps:$4 sm:$0xff]  }
 0x1e3   : > { %2633 = vmatprep.mubr.bf16.mxu1 %v4942_v6  ;;  %v4003_v41 = vld [vmem:[%s4457_s30 + $0x380] ss:$8 sps:$4 sm:$0xff]   ;;  %v1658_v19 = vld [vmem:[#allocation3 + $0x92] sm:$0xff] }
 0x1e4   : > { %2797 = vmatpush1.bf16.msra.mxu0 %v3931_v55  ;;  %v4002_v55 = vld [vmem:[%s4457_s30 + $0x404] ss:$8 sps:$4 sm:$0xff]  }
 0x1e5   : > { %2798 = vmatprep.subr.bf16.mxu0 %v3939_v62  ;;  %v3997_v62 = vld [vmem:[%s4457_s30 + $0x390] ss:$8 sps:$4 sm:$0xff]  }
 0x1e7   : > { %2697 = vmatmul.mubr.bf16.gmra.mxu0 %v4947_v26 }
 0x1e8   : > { %2799 = vmatpush1.bf16.msra.mxu0 %v3937_v37  ;;  %2706 = vmatprep.mubr.bf16.mxu0 %v1689_v8  ;;  %v4005_v37 = vld [vmem:[%s4457_s30 + $0x384] ss:$8 sps:$4 sm:$0xff]  }
 0x1e9   : > { %2800 = vmatprep.subr.bf16.mxu0 %v3945_v7 }
 0x1ea   : > { %2634 = vmatmul.mubr.bf16.gmra.mxu1 %v4955_v43 }
 0x1eb   : > { %2749 = vmatprep.mubr.bf16.mxu1 %v1664_v11 }
 0x1ec   : > { %2801 = vmatpush1.bf16.msra.mxu0 %v3943_v42 }
 0x1ed   : > { %2802 = vmatprep.subr.bf16.mxu0 %v3951_v9 }
 0x1ef   : > { %2707 = vmatmul.mubr.bf16.gmra.mxu0 %v4961_v49 }
 0x1f0   : > { %2803 = vmatpush1.bf16.msra.mxu0 %v3949_v50  ;;  %2822 = vmatprep.mubr.bf16.mxu0 %v4902_v61  ;;  %v3964_v61 = vld [vmem:[%s4457_s30 + $0x460] ss:$8 sps:$4 sm:$0xff]  }
 0x1f1   : > { %2804 = vmatprep.subr.bf16.mxu0 %v3957_v58 }
 0x1f2   : > { %2750 = vmatmul.mubr.bf16.vlgmr.msra.gmra.mxu1 %v1663_v0 }
 0x1f3   : > { %2759 = vmatprep.mubr.bf16.mxu1 %v1673_v12  ;;  %2864 = vmatpush1.bf16.msra.mxu1 %v3958_v51 }
 0x1f4   : > { %2805 = vmatpush1.bf16.msra.mxu0 %v3955_v63  ;;  %2865 = vmatprep.subr.bf16.mxu1 %v3966_v15 }
 0x1f5   : > { %2806 = vmatprep.subr.bf16.mxu0 %v3963_v1 }
 0x1f7   : > { %2866 = vmatpush1.bf16.msra.mxu1 %v3964_v61 }
 0x1f8   : > { %2807 = vmatpush2.bf16.msra.mxu0 %v3961_v59  ;;  %2867 = vmatprep.subr.bf16.mxu1 %v3972_v31 }
 0x1f9   : > { %2808 = vmatprep.subr.bf16.mxu0 %v3969_v13 }
 0x1fa   : > { %2760 = vmatmul.mubr.bf16.gmra.mxu1 %v1672_v34 }
 0x1fb   : > { %2769 = vmatprep.mubr.bf16.mxu1 %v1682_v5  ;;  %2868 = vmatpush1.bf16.msra.mxu1 %v3970_v28 }
 0x1fc   : > { %2809 = vmatpush2.bf16.msra.mxu0 %v3967_v57  ;;  %2869 = vmatprep.subr.bf16.mxu1 %v3978_v39 }
 0x1fd   : > { %2810 = vmatprep.subr.bf16.mxu0 %v3975_v3 }
 0x1ff   : > { %2870 = vmatpush1.bf16.msra.mxu1 %v3976_v14  ;;  %v1841_v14 = vlaneseq }
 0x200   : > { %2811 = vmatpush2.bf16.msra.mxu0 %v3973_v10  ;;  %2871 = vmatprep.subr.bf16.mxu1 %v3984_v56 }
 0x201   : > { %2812 = vmatprep.subr.bf16.mxu0 %v3981_v40 }
 0x202   : > { %2770 = vmatmul.mubr.bf16.gmra.mxu1 %v1681_v16  ;;  %v5072_v16 = vshrl.u32 %v1841_v14, 7 }
 0x203   : > { %2779 = vmatprep.mubr.bf16.mxu1 %v1691_v17  ;;  %2872 = vmatpush1.bf16.msra.mxu1 %v3982_v35 }
 0x204   : > { %2813 = vmatpush2.bf16.msra.mxu0 %v3979_v2  ;;  %2873 = vmatprep.subr.bf16.mxu1 %v3990_v21  ;;  %v1847_v17 = vsub.s32 1, %v5072_v16  ;;  %v5082_v21 = vld [vmem:[%s4460_s11] sm:$0x3] }
 0x205   : > { %2814 = vmatprep.subr.bf16.mxu0 %v3987_v54 }
 0x207   : > { %2874 = vmatpush1.bf16.msra.mxu1 %v3988_v45 }
 0x208   : > { %2815 = vmatpush2.bf16.msra.mxu0 %v3985_v27  ;;  %2875 = vmatprep.subr.bf16.mxu1 %v3996_v18  ;;  %v5091_v18 = vrot.slane %v5082_v21, %v1847_v17 }
 0x209   : > { %2816 = vmatprep.subr.bf16.mxu0 %v3993_v29 }
 0x20a   : > { %2780 = vmatmul.mubr.bf16.gmra.mxu1 %v1690_v25 }
 0x20b   : > { %2895 = vmatprep.mubr.bf16.mxu1 %v4275_v20  ;;  %2876 = vmatpush1.bf16.msra.mxu1 %v3994_v46 }
 0x20c   : > { %2817 = vmatpush2.bf16.msra.mxu0 %v3991_v4  ;;  %2877 = vmatprep.subr.bf16.mxu1 %v4002_v55 }
 0x20d   : > { %2818 = vmatprep.subr.bf16.mxu0 %v3999_v53 }
 0x20f   : > { %2878 = vmatpush1.bf16.msra.mxu1 %v4000_v24 }
 0x210   : > { %2819 = vmatpush2.bf16.msra.mxu0 %v3997_v62 }
 0x211   : > { %2820 = vmatprep.subr.bf16.mxu0 %v4005_v37 }
 0x212   : > { %2896 = vmatmul.mubr.bf16.vlgmr.msra.gmra.mxu1 %v4932_v44  ;;  %v1642_v44 = vld [vmem:[#allocation3 + $0x90] sm:$0xff] }
 0x213   : > { %2905 = vmatprep.mubr.bf16.mxu1 %v4275_v20 }
 0x214   : > { %2821 = vmatpush2.bf16.msra.mxu0 %v4003_v41 }
 0x217   : > { %2823 = vmatmul.mubr.bf16.vlgmr.msra.gmra.mxu0 %v4922_v36  ;;  %v1694_v36 = vpack.c.bf16 %v1658_v19, %v1634_v52 }
 0x218   : > { %2832 = vmatprep.mubr.bf16.mxu0 %v4927_v33  ;;  %v1692_v33 = vpack.c.bf16 %v1642_v44, %v4949_v30 }
 0x21a   : > { %2906 = vmatmul.mubr.bf16.gmra.mxu1 %v4947_v26  ;;  %v5018_v26 = vpop.f32.mrf.mxu1 }
 0x21b   : > { %2915 = vmatprep.mubr.bf16.mxu1 %v4275_v20 }
 0x21f   : > { %2833 = vmatmul.mubr.bf16.gmra.mxu0 %v4937_v60  ;;  %v2607_v60 = vpop.f32.mrf.mxu1 }
 0x220   : > { %2842 = vmatprep.mubr.bf16.mxu0 %v4942_v6  ;;  %v2608_v46 = vadd.f32 %v2607_v60, %v5091_v18 }
 0x221   : > { %v5020_v6 = vpop.f32.mrf.mxu1 }
 0x222   : > { %2916 = vmatmul.mubr.bf16.gmra.mxu1 %v4961_v49 }
 0x223   : > { %2925 = vmatprep.mubr.bf16.mxu1 %v4275_v20  ;;  %v2611_v7 = vpop.f32.mrf.mxu1 }
 0x224   : > { %v2612_v37 = vadd.f32 %v2611_v7, %v5091_v18 }
 0x227   : > { %2843 = vmatmul.mubr.bf16.gmra.mxu0 %v4955_v43 }
 0x228   : > { %2852 = vmatprep.mubr.bf16.mxu0 %v1693_v32 }
 0x22a   : > { %2926 = vmatmul.mubr.bf16.gmra.mxu1 %v1694_v36 }
 0x22f   : > { %2853 = vmatmul.mubr.bf16.gmra.mxu0 %v1692_v33 }
 0x297   : > { %v5022_v8 = vpop.f32.mrf.mxu0 }
 0x299   : > { %v2680_v43 = vpop.f32.mrf.mxu0 }
 0x29a   : > { %v5024_v42 = vpop.f32.mrf.mxu1  ;;  %v2681_v62 = vadd.f32 %v2680_v43, %v2608_v46 }
 0x29b   : > { %v5028_v22 = vpop.f32.mrf.mxu0 }
 0x29c   : > { %v2617_v9 = vpop.f32.mrf.mxu1 }
 0x29d   : > { %v2684_v11 = vpop.f32.mrf.mxu0  ;;  %v2618_v60 = vadd.f32 %v2617_v9, %v5091_v18 }
 0x29e   : > { %v5026_v23 = vpop.f32.mrf.mxu1  ;;  %v2685_v44 = vadd.f32 %v2684_v11, %v2612_v37 }
 0x29f   : > { %v5038_v47 = vpop.f32.mrf.mxu0 }
 0x2a0   : > { %v5030_v32 = vpop.f32.mrf.mxu1 }
 0x2a1   : > { %v2690_v63 = vpop.f32.mrf.mxu0  ;;  %v2622_v11 = vadd.f32 %v5030_v32, %v5091_v18 }
 0x2a2   : > { %v5032_v30 = vpop.f32.mrf.mxu1  ;;  %v2691_v46 = vadd.f32 %v2690_v63, %v2618_v60 }
 0x2a3   : > { %v5048_v51 = vpop.f32.mrf.mxu0 }
 0x2a4   : > { %v5034_v38 = vpop.f32.mrf.mxu1 }
 0x2a5   : > { %v2694_v15 = vpop.f32.mrf.mxu0  ;;  %v2628_v63 = vadd.f32 %v5034_v38, %v5091_v18 }
 0x2a6   : > { %v5036_v50 = vpop.f32.mrf.mxu1 }
 0x2a7   : > { %v5056_v13 = vpop.f32.mrf.mxu0 }
 0x2a8   : > { %v5040_v49 = vpop.f32.mrf.mxu1 }
 0x2a9   : > { %v5060_v34 = vpop.f32.mrf.mxu0 }
 0x2aa   : > { %v5042_v58 = vpop.f32.mrf.mxu1 }
 0x2ab   : > { %v5064_v5 = vpop.f32.mrf.mxu0 }
 0x2ac   : > { %v5044_v48 = vpop.f32.mrf.mxu1 }
 0x2ad   : > { %v5068_v40 = vpop.f32.mrf.mxu0 }
 0x2ae   : > { %v5046_v0 = vpop.f32.mrf.mxu1 }
 0x2af   : > { %5272 = vst [vmem:[#allocation20_spill] sm:$0xff] %v5046_v0  ;;  %v5074_v35 = vpop.f32.mrf.mxu0 }
 0x2b0   : > { %v5050_v1 = vpop.f32.mrf.mxu1  ;;  %5273 = vst [vmem:[#allocation19_spill] sm:$0xff] %v5074_v35 }
 0x2b1   : > { %v5084_v27 = vpop.f32.mrf.mxu0 }
 0x2b2   : > { %v5052_v12 = vpop.f32.mrf.mxu1 }
 0x2b3   : > { %v5093_v4 = vpop.f32.mrf.mxu0 }
 0x2b4   : > { %v2753_v59 = vpop.f32.mrf.mxu1  ;;  %5276 = vst [vmem:[#allocation22_spill] sm:$0xff] %v5093_v4 }
 0x2b5   : > { %v5100_v55 = vpop.f32.mrf.mxu0  ;;  %v2754_v41 = vadd.f32 %v2753_v59, %v2681_v62 }
 0x2b6   : > { %v5054_v61 = vpop.f32.mrf.mxu1 }
 0x2b8   : > { %v2757_v31 = vpop.f32.mrf.mxu1 }
 0x2ba   : > { %v5058_v57 = vpop.f32.mrf.mxu1 }
 0x2bc   : > { %v2763_v28 = vpop.f32.mrf.mxu1 }
 0x2bd   : > { %v2764_v62 = vadd.f32 %v2763_v28, %v2691_v46 }
 0x2be   : > { %v5062_v3 = vpop.f32.mrf.mxu1 }
 0x2c0   : > { %v2767_v39 = vpop.f32.mrf.mxu1 }
 0x2c2   : > { %v5066_v10 = vpop.f32.mrf.mxu1 }
 0x2c4   : > { %v2773_v56 = vpop.f32.mrf.mxu1 }
 0x2c6   : > { %v5070_v2 = vpop.f32.mrf.mxu1 }
 0x2c8   : > { %v5076_v52 = vpop.f32.mrf.mxu1 }
 0x2ca   : > { %v5078_v54 = vpop.f32.mrf.mxu1 }
 0x2cb   : > { %5274 = vst [vmem:[#allocation18_spill] sm:$0xff] %v5078_v54 }
 0x2cc   : > { %v5086_v45 = vpop.f32.mrf.mxu1 }
 0x2ce   : > { %v5088_v29 = vpop.f32.mrf.mxu1 }
 0x2cf   : > { %5275 = vst [vmem:[#allocation21_spill] sm:$0xff] %v5088_v29  ;;  %v2758_v29 = vadd.f32 %v2757_v31, %v2685_v44  ;;  %v2695_v31 = vadd.f32 %v2694_v15, %v2622_v11 }
 0x2d0   : > { %v5095_v25 = vpop.f32.mrf.mxu1 }
 0x2d2   : > { %v5098_v53 = vpop.f32.mrf.mxu1 }
 0x2d4   : > { %v2899_v20 = vpop.f32.mrf.mxu1 }
 0x2d6   : > { %v5105_v19 = vpop.f32.mrf.mxu1 }
 0x2d7   : > { %v5102_v24 = vpop.f32.mrf.mxu0 }
 0x2d8   : > { %v2903_v14 = vpop.f32.mrf.mxu1 }
 0x2d9   : > { %v2826_v36 = vpop.f32.mrf.mxu0 }
 0x2da   : > { %v2827_v33 = vadd.f32 %v2826_v36, %v2754_v41  ;;  %v5110_v54 = vpop.f32.mrf.mxu1 }
 0x2db   : > { %v5107_v17 = vpop.f32.mrf.mxu0 }
 0x2dc   : > { %v2900_v4 = vadd.f32 %v2899_v20, %v2827_v33  ;;  %v2909_v7 = vpop.f32.mrf.mxu1 }
 0x2dd   : > { %v2830_v43 = vpop.f32.mrf.mxu0 }
 0x2de   : > { %v3411_v0 = vmul.f32 -1.442695, %v2900_v4  ;;  %v2831_v35 = vadd.f32 %v2830_v43, %v2758_v29  ;;  %v5116_v41 = vpop.f32.mrf.mxu1  ;;  %v2768_v29 = vadd.f32 %v2767_v39, %v2695_v31  ;;  %v2632_v43 = vadd.f32 %v5040_v49, %v5091_v18 }
 0x2df   : > { %v5112_v59 = vpop.f32.mrf.mxu0  ;;  %v1843_v39 = vsub.s32 0, %v5072_v16 }
 0x2e0   : > { %4038 = vpow2.f32 %v3411_v0  ;;  %v2904_v37 = vadd.f32 %v2903_v14, %v2831_v35  ;;  %v2913_v44 = vpop.f32.mrf.mxu1  ;;  %v2701_v0 = vadd.f32 %v5060_v34, %v2628_v63 }
 0x2e1   : > { %v2836_v9 = vpop.f32.mrf.mxu0  ;;  %v5141_v16 = vrot.slane %v5082_v21, %v1843_v39 }
 0x2e2   : > { %v3412_v20 = vmul.f32 -1.442695, %v2904_v37  ;;  %v2837_v36 = vadd.f32 %v2836_v9, %v2764_v62  ;;  %v5122_v60 = vpop.f32.mrf.mxu1  ;;  %v2774_v46 = vadd.f32 %v2773_v56, %v2701_v0  ;;  %v2705_v62 = vadd.f32 %v5068_v40, %v2632_v43 }
 0x2e3   : > { %v5118_v33 = vpop.f32.mrf.mxu0  ;;  %v2606_v21 = vadd.f32 %v5018_v26, %v5141_v16  ;;  %v2610_v26 = vadd.f32 %v5020_v6, %v5141_v16 }
 0x2e4   : > { %4040 = vpow2.f32 %v3412_v20  ;;  %v2910_v4 = vadd.f32 %v2909_v7, %v2837_v36  ;;  %v2919_v14 = vpop.f32.mrf.mxu1  ;;  %v2638_v20 = vadd.f32 %v5044_v48, %v5091_v18  ;;  %v2778_v49 = vadd.f32 %v5076_v52, %v2705_v62 }
 0x2e5   : > { %v2840_v32 = vpop.f32.mrf.mxu0  ;;  %v2642_v48 = vadd.f32 %v5050_v1, %v5091_v18  ;;  %v2679_v1 = vadd.f32 %v5022_v8, %v2606_v21 }
 0x2e6   : > { %v3413_v28 = vmul.f32 -1.442695, %v2910_v4  ;;  %v2841_v35 = vadd.f32 %v2840_v32, %v2768_v29  ;;  %v5129_v38 = vpop.f32.mrf.mxu1  ;;  %v2711_v40 = vadd.f32 %v5084_v27, %v2638_v20 }
 0x2e7   : > { %v5125_v15 = vpop.f32.mrf.mxu0  ;;  %v2715_v27 = vadd.f32 %v5100_v55, %v2642_v48  ;;  %v2752_v55 = vadd.f32 %v5052_v12, %v2679_v1  ;;  %v2620_v48 = vadd.f32 %v5026_v23, %v5141_v16 }
 0x2e8   : > { %4042 = vpow2.f32 %v3413_v28  ;;  %v2914_v11 = vadd.f32 %v2913_v44, %v2841_v35  ;;  %v2923_v9 = vpop.f32.mrf.mxu1  ;;  %v2784_v52 = vadd.f32 %v5086_v45, %v2711_v40  ;;  %v2616_v40 = vadd.f32 %v5024_v42, %v5141_v16 }
 0x2e9   : > { %v2846_v7 = vpop.f32.mrf.mxu0  ;;  %v2788_v45 = vadd.f32 %v5095_v25, %v2715_v27  ;;  %v2825_v8 = vadd.f32 %v5102_v24, %v2752_v55 }
 0x2ea   : > { %v3414_v37 = vmul.f32 -1.442695, %v2914_v11  ;;  %v2847_v34 = vadd.f32 %v2846_v7, %v2774_v46  ;;  %v5138_v36 = vpop.f32.mrf.mxu1 }
 0x2eb   : > { %v5133_v31 = vpop.f32.mrf.mxu0 }
 0x2ec   : > { %4044 = vpow2.f32 %v3414_v37  ;;  %v2920_v56 = vadd.f32 %v2919_v14, %v2847_v34  ;;  %v2929_v0 = vpop.f32.mrf.mxu1 }
 0x2ed   : > { %v4039_v44 = vpop.eup %4038  ;;  %v2850_v63 = vpop.f32.mrf.mxu0 }
 0x2ee   : > { %v2960_v29 = vadd.f32 1.0, %v4039_v44  ;;  %v3415_v4 = vmul.f32 -1.442695, %v2920_v56  ;;  %v2851_v32 = vadd.f32 %v2850_v63, %v2778_v49  ;;  %v5152_v7 = vpop.f32.mrf.mxu1  ;;  %v2683_v44 = vadd.f32 %v5028_v22, %v2610_v26  ;;  %v4072_v26 = vld [vmem:[%s4476_s24 + $0x10] sm:$0xff] }
 0x2ef   : > { %v5144_v28 = vpop.f32.mrf.mxu0 }
 0x2f0   : > { %4046 = vrcp.f32 %v2960_v29  ;;  %v2924_v35 = vadd.f32 %v2923_v9, %v2851_v32  ;;  %v2933_v56 = vpop.f32.mrf.mxu1  ;;  %v2756_v6 = vadd.f32 %v5054_v61, %v2683_v44  ;;  %v2898_v32 = vadd.f32 %v5098_v53, %v2825_v8 }
 0x2f1   : > { %v4041_v14 = vpop.eup %4040  ;;  %4048 = vpow2.f32 %v3415_v4  ;;  %v2856_v43 = vpop.f32.mrf.mxu0  ;;  %v2689_v4 = vadd.f32 %v5038_v47, %v2616_v40  ;;  %v4070_v47 = vld [vmem:[%s4476_s24] sm:$0xff] }
 0x2f2   : > { %v2961_v46 = vadd.f32 1.0, %v4041_v14  ;;  %v3416_v11 = vmul.f32 -1.442695, %v2924_v35  ;;  %v2857_v39 = vadd.f32 %v2856_v43, %v2784_v52  ;;  %v2829_v22 = vadd.f32 %v5107_v17, %v2756_v6 }
 0x2f3   : > { %v5154_v62 = vpop.f32.mrf.mxu0  ;;  %v2762_v42 = vadd.f32 %v5058_v57, %v2689_v4  ;;  %v2693_v35 = vadd.f32 %v5048_v51, %v2620_v48  ;;  %v2626_v57 = vadd.f32 %v5032_v30, %v5141_v16  ;;  %v4071_v51 = vld [vmem:[%s4476_s24 + $0x8] sm:$0xff]  ;;  %v4074_v4 = vld [vmem:[%s4476_s24 + $0x20] sm:$0xff] }
 0x2f4   : > { %4050 = vrcp.f32 %v2961_v46  ;;  %v2930_v18 = vadd.f32 %v2929_v0, %v2857_v39  ;;  %v2902_v53 = vadd.f32 %v5105_v19, %v2829_v22  ;;  %v4075_v48 = vld [vmem:[%s4476_s24 + $0x28] sm:$0xff] }
 0x2f5   : > { %v4043_v37 = vpop.eup %4042  ;;  %4052 = vpow2.f32 %v3416_v11  ;;  %v2860_v34 = vpop.f32.mrf.mxu0  ;;  %v2835_v17 = vadd.f32 %v5112_v59, %v2762_v42  ;;  %v2766_v27 = vadd.f32 %v5062_v3, %v2693_v35  ;;  %v2699_v1 = vadd.f32 %v5056_v13, %v2626_v57 }
 0x2f6   : > { %v2962_v9 = vadd.f32 1.0, %v4043_v37  ;;  %v3417_v20 = vmul.f32 -1.442695, %v2930_v18  ;;  %v2861_v49 = vadd.f32 %v2860_v34, %v2788_v45  ;;  %v2630_v18 = vadd.f32 %v5036_v50, %v5141_v16 }
 0x2f7   : > { %v2908_v39 = vadd.f32 %v5110_v54, %v2835_v17  ;;  %v2839_v19 = vadd.f32 %v5118_v33, %v2766_v27  ;;  %v2772_v30 = vadd.f32 %v5066_v10, %v2699_v1  ;;  %v2636_v50 = vadd.f32 %v5042_v58, %v5141_v16  ;;  %v5279_v58 = vld [vmem:[#allocation18_spill] sm:$0xff] }
 0x2f8   : > { %4054 = vrcp.f32 %v2962_v9  ;;  %v2934_v25 = vadd.f32 %v2933_v56, %v2861_v49  ;;  %v2703_v55 = vadd.f32 %v5064_v5, %v2630_v18  ;;  %v4073_v56 = vld [vmem:[%s4476_s24 + $0x18] sm:$0xff] }
 0x2f9   : > { %v4045_v63 = vpop.eup %4044  ;;  %4056 = vpow2.f32 %v3417_v20  ;;  %v2912_v54 = vadd.f32 %v5116_v41, %v2839_v19  ;;  %v2845_v13 = vadd.f32 %v5125_v15, %v2772_v30  ;;  %v5277_v41 = vld [vmem:[#allocation19_spill] sm:$0xff] }
 0x2fa   : > { %v2963_v29 = vadd.f32 1.0, %v4045_v63  ;;  %v3418_v12 = vmul.f32 -1.442695, %v2934_v25  ;;  %v2776_v10 = vadd.f32 %v5070_v2, %v2703_v55  ;;  %v2709_v8 = vadd.f32 %v5277_v41, %v2636_v50  ;;  %v5278_v63 = vld [vmem:[#allocation20_spill] sm:$0xff] }
 0x2fb   : > { %v2918_v5 = vadd.f32 %v5122_v60, %v2845_v13  ;;  %v2640_v40 = vadd.f32 %v5278_v63, %v5141_v16 }
 0x2fc   : > { %4058 = vrcp.f32 %v2963_v29  ;;  %v2849_v15 = vadd.f32 %v5133_v31, %v2776_v10  ;;  %v2782_v6 = vadd.f32 %v5279_v58, %v2709_v8  ;;  %v5280_v29 = vld [vmem:[#allocation22_spill] sm:$0xff] }
 0x2fd   : > { %v4047_v24 = vpop.eup %4046  ;;  %4060 = vpow2.f32 %v3418_v12  ;;  %v2713_v12 = vadd.f32 %v5280_v29, %v2640_v40 }
 0x2fe   : > { %v4049_v0 = vpop.eup %4048  ;;  %v2984_v61 = vmul.f32 %v4047_v24, %v2898_v32  ;;  %v2922_v60 = vadd.f32 %v5129_v38, %v2849_v15  ;;  %v2855_v31 = vadd.f32 %v5144_v28, %v2782_v6  ;;  %v5281_v24 = vld [vmem:[#allocation21_spill] sm:$0xff]  ;;  %v4076_v38 = vld [vmem:[%s4476_s24 + $0x30] sm:$0xff] }
 0x2ff   : > { %v2964_v52 = vadd.f32 1.0, %v4049_v0  ;;  %v2786_v0 = vadd.f32 %v5281_v24, %v2713_v12 }
 0x300   : > { %v2992_v14 = vadd.f32 %v4070_v47, %v2984_v61  ;;  %v2928_v61 = vadd.f32 %v5138_v36, %v2855_v31 }
 0x301   : > { %v4051_v21 = vpop.eup %4050  ;;  %4062 = vrcp.f32 %v2964_v52  ;;  %v2859_v52 = vadd.f32 %v5154_v62, %v2786_v0 }
 0x302   : > { %v4053_v43 = vpop.eup %4052  ;;  %3000 = vst [vmem:[%s4476_s24] sm:$0xff] %v2992_v14  ;;  %v2985_v23 = vmul.f32 %v4051_v21, %v2902_v53  ;;  %v4077_v21 = vld [vmem:[%s4476_s24 + $0x38] sm:$0xff] }
 0x303   : > { %v2965_v46 = vadd.f32 1.0, %v4053_v43  ;;  %v2932_v28 = vadd.f32 %v5152_v7, %v2859_v52 }
 0x304   : > { %v2993_v11 = vadd.f32 %v4071_v51, %v2985_v23 }
 0x305   : > { %v4055_v59 = vpop.eup %4054  ;;  %4064 = vrcp.f32 %v2965_v46 }
 0x306   : > { %v4057_v45 = vpop.eup %4056  ;;  %3001 = vst [vmem:[%s4476_s24 + $0x8] sm:$0xff] %v2993_v11  ;;  %v2986_v3 = vmul.f32 %v4055_v59, %v2908_v39 }
 0x307   : > { %v2966_v37 = vadd.f32 1.0, %v4057_v45 }
 0x308   : > { %v2994_v34 = vadd.f32 %v4072_v26, %v2986_v3 }
 0x309   : > { %v4059_v33 = vpop.eup %4058  ;;  %4066 = vrcp.f32 %v2966_v37 }
 0x30a   : > { %v4061_v9 = vpop.eup %4060  ;;  %3002 = vst [vmem:[%s4476_s24 + $0x10] sm:$0xff] %v2994_v34  ;;  %v2987_v20 = vmul.f32 %v4059_v33, %v2912_v54 }
 0x30b   : > { %v2967_v49 = vadd.f32 1.0, %v4061_v9 }
 0x30c   : > { %v2995_v44 = vadd.f32 %v4073_v56, %v2987_v20 }
 0x30d   : > { %4068 = vrcp.f32 %v2967_v49 }
 0x30e   : > { %v4063_v25 = vpop.eup %4062  ;;  %3003 = vst [vmem:[%s4476_s24 + $0x18] sm:$0xff] %v2995_v44 }
 0x30f   : > { %v2988_v2 = vmul.f32 %v4063_v25, %v2918_v5 }
 0x311   : > { %v2996_v32 = vadd.f32 %v4074_v4, %v2988_v2 }
 0x312   : > { %v4065_v22 = vpop.eup %4064 }
 0x313   : > { %3004 = vst [vmem:[%s4476_s24 + $0x20] sm:$0xff] %v2996_v32  ;;  %v2989_v16 = vmul.f32 %v4065_v22, %v2922_v60 }
 0x315   : > { %v2997_v42 = vadd.f32 %v4075_v48, %v2989_v16 }
 0x316   : > { %v4067_v35 = vpop.eup %4066 }
 0x317   : > { %3005 = vst [vmem:[%s4476_s24 + $0x28] sm:$0xff] %v2997_v42  ;;  %v2990_v47 = vmul.f32 %v4067_v35, %v2928_v61 }
 0x319   : > { %v2998_v14 = vadd.f32 %v4076_v38, %v2990_v47 }
 0x31a   : > { %v4069_v53 = vpop.eup %4068 }
 0x31b   : > { %3006 = vst [vmem:[%s4476_s24 + $0x30] sm:$0xff] %v2998_v14  ;;  %v2991_v17 = vmul.f32 %v4069_v53, %v2932_v28 }
 0x31d   : > { %v2999_v43 = vadd.f32 %v4077_v21, %v2991_v17 }
 0x31f   : > { %3007 = vst [vmem:[%s4476_s24 + $0x38] sm:$0xff] %v2999_v43 }
 0x320 PF: > { %s24_s25 = sadd.s32 1, %s4264_s25   ;;  %s5282_s21 = sld [smem:[#allocation17_spill]] }
 0x321   : > { %p21_p9 = scmp.ge.s32.totalorder %s24_s25, 6   ;;  %s5283_s22 = sld [smem:[#allocation14_spill]] }
 0x322   : > { %s5284_s8 = sld [smem:[#allocation15_spill]]  ;;  %s5286_s18 = smov %s4240_s19 }
 0x323   : > { %s5285_s24 = sld [smem:[#allocation16_spill]]  ;;  %s5287_s19 = smov %s4244_s20 }
 0x324   :  { %23 = sbr.rel (!%p21_p9) target bundleno = 12 (0xc), region = 128 }
 0x326   : > { %s5288_s20 = smov %s5282_s21  ;;  %s5289_s21 = smov %s4256_s23 }
 0x328   : > { %s5290_s23 = smov %s5284_s8 }
 0x329   :  { %3029 = vsyncpa [#allocation5], 1 }
 0x32a   :  { %3031 = vsyncpa [#allocation5 + $0x1], 1 }
 0x32b   :  { %3032 = vsyncpa [#allocation7], 1 }
 0x32c   :  { %3034 = vsyncpa [#allocation7 + $0x1], 1 }
 0x32d   :  { %3035 = vsyncpa [#allocation10], 1 }
 0x32e   :  { %3037 = vsyncpa [#allocation10 + $0x1], 1 }

// kernel: pixel_block_forward.3
= control target key start
LH: loop header
LB: loop body
LE: loop exit
PB: predicated region body
PF: predicated region fallthrough
CT: control target
= control target key end

     0   :  { %s10375_s0 = inlined_call_operand.vmem [shape: f32[2,64,128], index: 0, kind: input, shape index: {}]   ;;  %s10376_s1 = inlined_call_operand.vmem [shape: f32[2,64,128], index: 1, kind: input, shape index: {}]   ;;  %s10377_s2 = inlined_call_operand.vmem [shape: f32[2,64,128], index: 2, kind: input, shape index: {}]   ;;  %s10378_s3 = inlined_call_operand.vmem [shape: bf16[384,128], index: 3, kind: input, shape index: {}]   ;;  %s10379_s4 = inlined_call_operand.vmem [shape: f32[1,128], index: 4, kind: input, shape index: {}]   ;;  %s10380_s5 = inlined_call_operand.vmem [shape: bf16[128,256], index: 5, kind: input, shape index: {}]   ;;  %s10381_s6 = inlined_call_operand.vmem [shape: f32[1,256], index: 6, kind: input, shape index: {}]   ;;  %s10382_s7 = inlined_call_operand.vmem [shape: bf16[512,256], index: 7, kind: input, shape index: {}]   ;;  %s10383_s8 = inlined_call_operand.vmem [shape: f32[1,256], index: 8, kind: input, shape index: {}]   ;;  %s10384_s9 = inlined_call_operand.vmem [shape: bf16[256,128], index: 9, kind: input, shape index: {}]   ;;  %s10385_s10 = inlined_call_operand.vmem [shape: f32[1,128], index: 10, kind: input, shape index: {}]   ;;  %s10386_s11 = inlined_call_operand.vmem [shape: bf16[128,256], index: 11, kind: input, shape index: {}]   ;;  %s10387_s12 = inlined_call_operand.vmem [shape: f32[1,256], index: 12, kind: input, shape index: {}]   ;;  %s10388_s13 = inlined_call_operand.vmem [shape: bf16[384,128], index: 13, kind: input, shape index: {}]   ;;  %s10389_s14 = inlined_call_operand.vmem [shape: f32[1,128], index: 14, kind: input, shape index: {}]   ;;  %s10390_s15 = inlined_call_operand.vmem [shape: bf16[256,128], index: 15, kind: input, shape index: {}]   ;;  %s10391_s16 = inlined_call_operand.vmem [shape: f32[1,128], index: 16, kind: input, shape index: {}]   ;;  %s10392_s17 = inlined_call_operand.vmem [shape: bf16[128,256], index: 17, kind: input, shape index: {}]   ;;  %s10393_s18 = inlined_call_operand.vmem [shape: f32[1,256], index: 18, kind: input, shape index: {}]   ;;  %s10394_s19 = inlined_call_operand.vmem [shape: f32[2,64,128], index: 19, kind: output, shape index: {}]  }
   0x1   :  { %10456 = sst [smem:[#allocation53_spill]] %s10375_s0  ;;  %s7936_s0 = smov 0  }
   0x2   :  { %10457 = sst [smem:[#allocation54_spill]] %s10376_s1 }
   0x3   :  { %10458 = sst [smem:[#allocation55_spill]] %s10377_s2 }
   0x4   :  { %10459 = sst [smem:[#allocation56_spill]] %s10378_s3 }
   0x5   :  { %10460 = sst [smem:[#allocation57_spill]] %s10394_s19 }
   0x6 LB: > { %10461 = sst [smem:[#allocation2_spill]] %s7818_s0  ;;  %s6116_s30 = sadd.s32 4294967295, %s7818_s0   ;;  %s7818_s0 = sphi %s7936_s0, %s29_s0  }
   0x7   : > { %p6120_p0 = scmp.ge.s32.totalorder %s7818_s0, 1  ;;  %p557_p1 = scmp.lt.s32.totalorder %s7818_s0, 3 }
   0x9   : > { %p558_p2 = pnand %p6120_p0, %p557_p1 }
   0xb   : > { %561 = sbr.rel (%p558_p2) target bundleno = 2828 (0xb0c), region = 96 }
  0x10   : > { %s10462_s1 = sld [smem:[#allocation56_spill]]  ;;  %p623_p3 = scmp.lt.s32.totalorder %s6116_s30, 1 }
  0x11   : > { %s10463_s25 = sld [smem:[#allocation54_spill]]  ;;  %s7821_s22 = smov 126  }
  0x12   : > { %s10600_s30 = smov (!%p623_p3, %s6116_s30), 1  ;;  %s10464_s29 = sld [smem:[#allocation55_spill]] }
  0x13   : > { %s7999_s28 = sshll.u32 %s10600_s30, 6  ;;  %s10465_s0 = sld [smem:[#allocation53_spill]] }
  0x14   : > { %s7822_s2 = smov 122   ;;  %s7823_s23 = smov 118  }
  0x15   : > { %s7824_s30 = smov 124   ;;  %s7825_s24 = smov 116  }
  0x16   : > { %v7068_v0 = vld [vmem:[%s10462_s1 + $0x78] sm:$0xff]   ;;  %v7071_v3 = vld [vmem:[%s10462_s1 + $0x70] sm:$0xff]   ;;  %v7074_v6 = vld [vmem:[%s10462_s1 + $0x68] sm:$0xff]   ;;  %s7829_s26 = smov 2   ;;  %s7832_s27 = smov 8  }
  0x17   : > { %v7069_v1 = vld [vmem:[%s10462_s1 + $0xb8] sm:$0xff]   ;;  %6476 = vmatprep.subr.bf16.mxu0 %v7068_v0  ;;  %v7072_v4 = vld [vmem:[%s10462_s1 + $0xb0] sm:$0xff]   ;;  %v7075_v7 = vld [vmem:[%s10462_s1 + $0xa8] sm:$0xff]   ;;  %s8014_s3 = scalar_lea.vmem %s10463_s25, %s7999_s28  ;;  %s7826_s25 = smov 114  }
  0x18   : > { %v7070_v2 = vld [vmem:[%s10462_s1 + $0x38] sm:$0xff]   ;;  %6764 = vmatprep.subr.bf16.mxu1 %v7069_v1  ;;  %v7073_v5 = vld [vmem:[%s10462_s1 + $0x30] sm:$0xff]   ;;  %v7076_v8 = vld [vmem:[%s10462_s1 + $0x28] sm:$0xff]   ;;  %s8020_s20 = scalar_lea.vmem %s10464_s29, %s7999_s28  ;;  %s7833_s29 = smov 10  }
  0x19   : > { %6477 = vmatpush3.bf16.msra.mxu0 %v7070_v2  ;;  %6765 = vmatpush3.bf16.msra.mxu1 %v7069_v1  ;;  %v7077_v9 = vld [vmem:[%s10462_s1 + $0x60] sm:$0xff]   ;;  %v7080_v12 = vld [vmem:[%s10462_s1 + $0x58] sm:$0xff]   ;;  %v7083_v15 = vld [vmem:[%s10462_s1 + $0x50] sm:$0xff]   ;;  %s8029_s19 = scalar_lea.vmem %s10465_s0, %s7999_s28  ;;  %s7827_s0 = smov 120  }
  0x1a   : > { %6478 = vmatprep.subr.bf16.mxu0 %v7071_v3  ;;  %6766 = vmatprep.subr.bf16.mxu1 %v7072_v4  ;;  %v7078_v10 = vld [vmem:[%s10462_s1 + $0xa0] sm:$0xff]   ;;  %v7081_v13 = vld [vmem:[%s10462_s1 + $0x98] sm:$0xff]   ;;  %v7084_v16 = vld [vmem:[%s10462_s1 + $0x90] sm:$0xff]   ;;  %s7834_s21 = smov 12  }
  0x1b   : > { %v7079_v11 = vld [vmem:[%s10462_s1 + $0x20] sm:$0xff]   ;;  %v7082_v14 = vld [vmem:[%s10462_s1 + $0x18] sm:$0xff]   ;;  %v7085_v17 = vld [vmem:[%s10462_s1 + $0x10] sm:$0xff]  }
  0x1c   : > { %v7086_v18 = vld [vmem:[%s10462_s1 + $0x48] sm:$0xff]   ;;  %v7089_v21 = vld [vmem:[%s10462_s1 + $0x40] sm:$0xff]   ;;  %v8060_v33 = vld [vmem:[%s8020_s20 + $0x10] sm:$0xff] }
  0x1d   : > { %6479 = vmatpush3.bf16.msra.mxu0 %v7073_v5  ;;  %6767 = vmatpush3.bf16.msra.mxu1 %v7072_v4  ;;  %v7087_v19 = vld [vmem:[%s10462_s1 + $0x88] sm:$0xff]   ;;  %v8035_v22 = vld [vmem:[%s8014_s3] sm:$0xff]  ;;  %v8068_v41 = vld [vmem:[%s8020_s20 + $0x18] sm:$0xff]  ;;  %v774_v42 = vmin.f32 %v8060_v33, 0.0  ;;  %vm766_vm6 = vcmp.gt.f32.partialorder %v8060_v33, 0.0 }
  0x1e   : > { %6480 = vmatprep.subr.bf16.mxu0 %v7074_v6  ;;  %6768 = vmatprep.subr.bf16.mxu1 %v7075_v7  ;;  %v7088_v20 = vld [vmem:[%s10462_s1 + $0x8] sm:$0xff]   ;;  %v8041_v24 = vld [vmem:[%s8020_s20] sm:$0xff]  ;;  %v724_v26 = vmin.f32 %v8035_v22, 0.0  ;;  %v8072_v43 = vld [vmem:[%s8014_s3 + $0x10] sm:$0xff]  ;;  %v775_v47 = vmin.f32 %v8068_v41, 0.0  ;;  %vm716_vm0 = vcmp.gt.f32.partialorder %v8035_v22, 0.0 }
  0x1f   : > { %v8038_v23 = vld [vmem:[%s8014_s3 + $0x8] sm:$0xff]  ;;  %v7090_v25 = vld [vmem:[%s10462_s1 + $0x80] sm:$0xff]   ;;  %v772_v30 = vmin.f32 %v8041_v24, 0.0  ;;  %v8075_v44 = vld [vmem:[%s8014_s3 + $0x18] sm:$0xff]  ;;  %v784_v48 = vmul.f32 1.442695, %v774_v42 }
  0x20   : > { %v725_v27 = vmin.f32 %v8038_v23, 0.0  ;;  %v8049_v28 = vld [vmem:[%s8020_s20 + $0x8] sm:$0xff]  ;;  %v8052_v29 = vld [vmem:[%s8029_s19] sm:$0xff]  ;;  %v732_v35 = vmul.f32 1.442695, %v724_v26  ;;  %v8079_v49 = vld [vmem:[%s8029_s19 + $0x10] sm:$0xff] }
  0x21   : > { %6481 = vmatpush3.bf16.msra.mxu0 %v7076_v8  ;;  %6769 = vmatpush3.bf16.msra.mxu1 %v7075_v7  ;;  %v773_v31 = vmin.f32 %v8049_v28, 0.0  ;;  %v8057_v32 = vld [vmem:[%s8029_s19 + $0x8] sm:$0xff]  ;;  %v7091_v34 = vld [vmem:[%s10462_s1] sm:$0xff]   ;;  %v780_v37 = vmul.f32 1.442695, %v772_v30  ;;  %v676_v39 = vmin.f32 %v8052_v29, 0.0 }
  0x22   : > { %6482 = vmatprep.subr.bf16.mxu0 %v7077_v9  ;;  %6770 = vmatprep.subr.bf16.mxu1 %v7078_v10  ;;  %v734_v36 = vmul.f32 1.442695, %v725_v27  ;;  %v677_v40 = vmin.f32 %v8057_v32, 0.0  ;;  %7316 = vpow2.f32 %v732_v35  ;;  %v726_v50 = vmin.f32 %v8072_v43, 0.0  ;;  %v8084_v52 = vld [vmem:[%s8029_s19 + $0x18] sm:$0xff]  ;;  %v8087_v54 = vld [vmem:[%s8020_s20 + $0x20] sm:$0xff] }
  0x23   : > { %v782_v38 = vmul.f32 1.442695, %v773_v31  ;;  %v684_v45 = vmul.f32 1.442695, %v676_v39  ;;  %v727_v51 = vmin.f32 %v8075_v44, 0.0  ;;  %v8090_v55 = vld [vmem:[%s8020_s20 + $0x28] sm:$0xff] }
  0x24   : > { %7318 = vpow2.f32 %v734_v36  ;;  %v686_v46 = vmul.f32 1.442695, %v677_v40  ;;  %v786_v53 = vmul.f32 1.442695, %v775_v47  ;;  %v736_v56 = vmul.f32 1.442695, %v726_v50 }
  0x25   : > { %6483 = vmatpush3.bf16.msra.mxu0 %v7079_v11  ;;  %6771 = vmatpush3.bf16.msra.mxu1 %v7078_v10  ;;  %7320 = vpow2.f32 %v780_v37  ;;  %v738_v57 = vmul.f32 1.442695, %v727_v51  ;;  %v678_v58 = vmin.f32 %v8079_v49, 0.0  ;;  %vm717_vm1 = vcmp.gt.f32.partialorder %v8038_v23, 0.0  ;;  %v8097_v60 = vld [vmem:[%s8020_s20 + $0x30] sm:$0xff]  ;;  %v8100_v61 = vld [vmem:[%s8020_s20 + $0x38] sm:$0xff] }
  0x26   : > { %6484 = vmatprep.subr.bf16.mxu0 %v7080_v12  ;;  %6772 = vmatprep.subr.bf16.mxu1 %v7081_v13  ;;  %7322 = vpow2.f32 %v782_v38  ;;  %v679_v59 = vmin.f32 %v8084_v52, 0.0  ;;  %vm764_vm2 = vcmp.gt.f32.partialorder %v8041_v24, 0.0  ;;  %v776_v63 = vmin.f32 %v8087_v54, 0.0  ;;  %v8106_v1 = vld [vmem:[%s8014_s3 + $0x20] sm:$0xff]  ;;  %v8109_v2 = vld [vmem:[%s8014_s3 + $0x28] sm:$0xff]  ;;  %v8135_v30 = vld [vmem:[%s8014_s3 + $0x38] sm:$0xff] }
  0x27   : > { %7324 = vpow2.f32 %v684_v45  ;;  %v688_v62 = vmul.f32 1.442695, %v678_v58  ;;  %v777_v0 = vmin.f32 %v8090_v55, 0.0  ;;  %vm765_vm3 = vcmp.gt.f32.partialorder %v8049_v28, 0.0  ;;  %v8113_v4 = vld [vmem:[%s8029_s19 + $0x20] sm:$0xff]  ;;  %v8117_v8 = vld [vmem:[%s8029_s19 + $0x28] sm:$0xff] }
  0x28   : > { %7326 = vpow2.f32 %v686_v46  ;;  %v690_v3 = vmul.f32 1.442695, %v679_v59  ;;  %v788_v5 = vmul.f32 1.442695, %v776_v63  ;;  %v778_v7 = vmin.f32 %v8097_v60, 0.0  ;;  %v8157_v51 = vld [vmem:[%s8029_s19 + $0x30] sm:$0xff] }
  0x29   : > { %6485 = vmatpush3.bf16.msra.mxu0 %v7082_v14  ;;  %6773 = vmatpush3.bf16.msra.mxu1 %v7081_v13  ;;  %7328 = vpow2.f32 %v784_v48  ;;  %v790_v6 = vmul.f32 1.442695, %v777_v0  ;;  %vm668_vm4 = vcmp.gt.f32.partialorder %v8052_v29, 0.0  ;;  %vm669_vm5 = vcmp.gt.f32.partialorder %v8057_v32, 0.0  ;;  %v8127_v14 = vld [vmem:[%s8014_s3 + $0x30] sm:$0xff]  ;;  %v8169_v0 = vld [vmem:[%s8029_s19 + $0x38] sm:$0xff] }
  0x2a   : > { %6486 = vmatprep.subr.bf16.mxu0 %v7083_v15  ;;  %6774 = vmatprep.subr.bf16.mxu1 %v7084_v16  ;;  %7330 = vpow2.f32 %v786_v53  ;;  %v779_v9 = vmin.f32 %v8100_v61, 0.0  ;;  %v792_v10 = vmul.f32 1.442695, %v778_v7  ;;  %v728_v11 = vmin.f32 %v8106_v1, 0.0 }
  0x2b   : > { %7332 = vpow2.f32 %v736_v56  ;;  %v729_v12 = vmin.f32 %v8109_v2, 0.0  ;;  %vm767_vm7 = vcmp.gt.f32.partialorder %v8068_v41, 0.0  ;;  %vm718_vm8 = vcmp.gt.f32.partialorder %v8072_v43, 0.0 }
  0x2c   : > { %7334 = vpow2.f32 %v738_v57  ;;  %v794_v13 = vmul.f32 1.442695, %v779_v9  ;;  %vm719_vm9 = vcmp.gt.f32.partialorder %v8075_v44, 0.0  ;;  %vm670_vm10 = vcmp.gt.f32.partialorder %v8079_v49, 0.0 }
  0x2d   : > { %6487 = vmatpush3.bf16.msra.mxu0 %v7085_v17  ;;  %6775 = vmatpush3.bf16.msra.mxu1 %v7084_v16  ;;  %7336 = vpow2.f32 %v688_v62  ;;  %v740_v16 = vmul.f32 1.442695, %v728_v11  ;;  %v742_v17 = vmul.f32 1.442695, %v729_v12  ;;  %vm671_vm11 = vcmp.gt.f32.partialorder %v8084_v52, 0.0 }
  0x2e   : > { %6488 = vmatprep.subr.bf16.mxu0 %v7086_v18  ;;  %6776 = vmatprep.subr.bf16.mxu1 %v7087_v19  ;;  %7338 = vpow2.f32 %v690_v3  ;;  %v680_v18 = vmin.f32 %v8113_v4, 0.0  ;;  %vm768_vm12 = vcmp.gt.f32.partialorder %v8087_v54, 0.0  ;;  %v730_v40 = vmin.f32 %v8127_v14, 0.0 }
  0x2f   : > { %7340 = vpow2.f32 %v788_v5  ;;  %v7317_v15 = vpop.eup %7316  ;;  %vm769_vm13 = vcmp.gt.f32.partialorder %v8090_v55, 0.0  ;;  %v731_v50 = vmin.f32 %v8135_v30, 0.0  ;;  %vm770_vm14 = vcmp.gt.f32.partialorder %v8097_v60, 0.0 }
  0x30   : > { %7342 = vpow2.f32 %v790_v6  ;;  %v692_v27 = vmul.f32 1.442695, %v680_v18  ;;  %v744_v58 = vmul.f32 1.442695, %v730_v40  ;;  %vm771_vm15 = vcmp.gt.f32.partialorder %v8100_v61, 0.0 }
  0x31   : > { %6489 = vmatpush3.bf16.msra.mxu0 %v7088_v20  ;;  %6777 = vmatpush3.bf16.msra.mxu1 %v7087_v19  ;;  %v7319_v19 = vpop.eup %7318  ;;  %v6137_v20 = vadd.f32 -1.0, %v7317_v15  ;;  %7344 = vpow2.f32 %v792_v10  ;;  %v746_v63 = vmul.f32 1.442695, %v731_v50 }
  0x32   : > { %6490 = vmatprep.subr.bf16.mxu0 %v7089_v21  ;;  %6778 = vmatprep.subr.bf16.mxu1 %v7090_v25  ;;  %v681_v21 = vmin.f32 %v8117_v8, 0.0  ;;  %v6138_v26 = vadd.f32 -1.0, %v7319_v19  ;;  %7346 = vpow2.f32 %v794_v13  ;;  %v682_v13 = vmin.f32 %v8157_v51, 0.0 }
  0x33   : > { %7348 = vpow2.f32 %v740_v16 }
  0x34   : > { %v694_v36 = vmul.f32 1.442695, %v681_v21  ;;  %v757_v38 = vsel %vm717_vm1, %v8038_v23, %v6138_v26  ;;  %7350 = vpow2.f32 %v742_v17  ;;  %v683_v17 = vmin.f32 %v8169_v0, 0.0 }
  0x35   : > { %6491 = vmatpush3.bf16.msra.mxu0 %v7091_v34  ;;  %6779 = vmatpush3.bf16.msra.mxu1 %v7090_v25  ;;  %v7321_v25 = vpop.eup %7320  ;;  %v756_v34 = vsel %vm716_vm0, %v8035_v22, %v6137_v20  ;;  %7352 = vpow2.f32 %v692_v27  ;;  %v696_v21 = vmul.f32 1.442695, %v682_v13  ;;  %vm720_vm0 = vcmp.gt.f32.partialorder %v8106_v1, 0.0  ;;  %v7104_v13 = vld [vmem:[%s10380_s5 + $0x30] ss:$8 sps:$4 sm:$0xff]  }
  0x36   : > { %v7323_v31 = vpop.eup %7322  ;;  %v6145_v35 = vadd.f32 -1.0, %v7321_v25  ;;  %v8146_v45 = vpack.c.bf16 %v757_v38, %v756_v34  ;;  %7354 = vpow2.f32 %v694_v36  ;;  %v698_v27 = vmul.f32 1.442695, %v683_v17  ;;  %v7110_v17 = vld [vmem:[%s10380_s5 + $0x10] ss:$8 sps:$4 sm:$0xff]  }
  0x37   : > { %v7325_v37 = vpop.eup %7324  ;;  %v6146_v39 = vadd.f32 -1.0, %v7323_v31  ;;  %7356 = vpow2.f32 %v744_v58  ;;  %vm721_vm1 = vcmp.gt.f32.partialorder %v8109_v2, 0.0 }
  0x38   : > { %v7327_v42 = vpop.eup %7326  ;;  %10466 = vst [vmem:[#allocation3_spill] sm:$0xff] %v8146_v45  ;;  %v804_v22 = vsel %vm764_vm2, %v8041_v24, %v6145_v35  ;;  %v6129_v46 = vadd.f32 -1.0, %v7325_v37  ;;  %1055 = vmatprep.mubr.bf16.mxu0 %v8146_v45  ;;  %7358 = vpow2.f32 %v746_v63  ;;  %vm672_vm2 = vcmp.gt.f32.partialorder %v8113_v4, 0.0 }
  0x39   : > { %v7329_v47 = vpop.eup %7328  ;;  %v805_v23 = vsel %vm765_vm3, %v8049_v28, %v6146_v39  ;;  %v6130_v48 = vadd.f32 -1.0, %v7327_v42  ;;  %7360 = vpow2.f32 %v696_v21  ;;  %vm673_vm3 = vcmp.gt.f32.partialorder %v8117_v8, 0.0  ;;  %v7116_v21 = vld [vmem:[%s10382_s7 + $0x70] ss:$8 sps:$4 sm:$0xff]  }
  0x3a   : > { %v7331_v53 = vpop.eup %7330  ;;  %v8160_v24 = vpack.c.bf16 %v805_v23, %v804_v22  ;;  %v708_v56 = vsel %vm668_vm4, %v8052_v29, %v6129_v46  ;;  %v6147_v57 = vadd.f32 -1.0, %v7329_v47  ;;  %7362 = vpow2.f32 %v698_v27  ;;  %v7122_v27 = vld [vmem:[%s10382_s7 + $0x60] ss:$8 sps:$4 sm:$0xff]  }
  0x3b   : > { %v7333_v59 = vpop.eup %7332  ;;  %v709_v28 = vsel %vm669_vm5, %v8057_v32, %v6130_v48  ;;  %v6148_v62 = vadd.f32 -1.0, %v7331_v53  ;;  %vm722_vm4 = vcmp.gt.f32.partialorder %v8127_v14, 0.0  ;;  %vm723_vm5 = vcmp.gt.f32.partialorder %v8135_v30, 0.0 }
  0x3c   : > { %v7335_v3 = vpop.eup %7334  ;;  %6780 = vmatprep.mubr.bf16.mxu1 %v8160_v24  ;;  %v812_v5 = vpack.c.bf16 %v709_v28, %v708_v56  ;;  %v806_v6 = vsel %vm766_vm6, %v8060_v33, %v6147_v57  ;;  %v6139_v29 = vadd.f32 -1.0, %v7333_v59  ;;  %vm674_vm6 = vcmp.gt.f32.partialorder %v8157_v51, 0.0 }
  0x3d   : > { %v7337_v7 = vpop.eup %7336  ;;  %v807_v9 = vsel %vm767_vm7, %v8068_v41, %v6148_v62  ;;  %v6140_v32 = vadd.f32 -1.0, %v7335_v3  ;;  %vm675_vm7 = vcmp.gt.f32.partialorder %v8169_v0, 0.0 }
  0x3e   : > { %v7339_v10 = vpop.eup %7338  ;;  %1056 = vmatmul.mubr.bf16.vlgmr.msra.gmra.mxu0 %v812_v5  ;;  %v8179_v11 = vpack.c.bf16 %v807_v9, %v806_v6  ;;  %v758_v12 = vsel %vm718_vm8, %v8072_v43, %v6139_v29  ;;  %v6131_v33 = vadd.f32 -1.0, %v7337_v7  ;;  %v7097_v9 = vld [vmem:[%s10380_s5 + $0x64] ss:$8 sps:$4 sm:$0xff]  }
  0x3f   : > { %v7341_v15 = vpop.eup %7340  ;;  %v759_v41 = vsel %vm719_vm9, %v8075_v44, %v6140_v32  ;;  %v6132_v16 = vadd.f32 -1.0, %v7339_v10  ;;  %v7098_v32 = vld [vmem:[%s10380_s5 + $0x50] ss:$8 sps:$4 sm:$0xff]   ;;  %v7103_v10 = vld [vmem:[%s10380_s5 + $0x44] ss:$8 sps:$4 sm:$0xff]  }
  0x40   : > { %v7343_v18 = vpop.eup %7342  ;;  %6781 = vmatmul.mubr.bf16.vlgmr.msra.gmra.mxu1 %v8179_v11  ;;  %v8191_v19 = vpack.c.bf16 %v759_v41, %v758_v12  ;;  %v710_v43 = vsel %vm670_vm10, %v8079_v49, %v6131_v33  ;;  %v6149_v20 = vadd.f32 -1.0, %v7341_v15  ;;  %v7101_v12 = vld [vmem:[%s10380_s5 + $0x40] ss:$8 sps:$4 sm:$0xff]   ;;  %v7106_v33 = vld [vmem:[%s10380_s5 + $0x34] ss:$8 sps:$4 sm:$0xff]  }
  0x41   : > { %v7345_v25 = vpop.eup %7344  ;;  %v711_v44 = vsel %vm671_vm11, %v8084_v52, %v6132_v16  ;;  %v6150_v26 = vadd.f32 -1.0, %v7343_v18  ;;  %v7109_v15 = vld [vmem:[%s10380_s5 + $0x24] ss:$8 sps:$4 sm:$0xff]   ;;  %v7107_v41 = vld [vmem:[%s10380_s5 + $0x20] ss:$8 sps:$4 sm:$0xff]  }
  0x42   : > { %10467 = vst [vmem:[#allocation4_spill] sm:$0xff] %v8191_v19  ;;  %v7347_v31 = vpop.eup %7346  ;;  %1063 = vmatprep.mubr.bf16.mxu0 %v8191_v19  ;;  %v815_v34 = vpack.c.bf16 %v711_v44, %v710_v43  ;;  %v808_v35 = vsel %vm768_vm12, %v8087_v54, %v6149_v20  ;;  %v6151_v36 = vadd.f32 -1.0, %v7345_v25  ;;  %v7112_v16 = vld [vmem:[%s10380_s5 + $0x14] ss:$8 sps:$4 sm:$0xff]   ;;  %v7115_v18 = vld [vmem:[%s10380_s5 + $0x4] ss:$8 sps:$4 sm:$0xff]  }
  0x43   : > { %v7349_v49 = vpop.eup %7348  ;;  %v809_v37 = vsel %vm769_vm13, %v8090_v55, %v6150_v26  ;;  %v6152_v38 = vadd.f32 -1.0, %v7347_v31  ;;  %v7113_v43 = vld [vmem:[%s10380_s5] ss:$8 sps:$4 sm:$0xff]   ;;  %v10397_v20 = vmov 0   ;;  %v7118_v25 = vld [vmem:[%s10382_s7 + $0x74] ss:$8 sps:$4 sm:$0xff]  }
  0x44   : > { %v7351_v52 = vpop.eup %7350  ;;  %v8207_v39 = vpack.c.bf16 %v809_v37, %v808_v35  ;;  %v810_v40 = vsel %vm770_vm14, %v8097_v60, %v6151_v36  ;;  %v6141_v54 = vadd.f32 -1.0, %v7349_v49  ;;  %v7121_v44 = vld [vmem:[%s10382_s7 + $0x174] ss:$8 sps:$4 sm:$0xff]   ;;  %v7124_v26 = vld [vmem:[%s10382_s7 + $0x64] ss:$8 sps:$4 sm:$0xff]   ;;  %1854 = vmatprep.subr.bf16.mxu1 %v7118_v25 }
  0x45   : > { %v7353_v42 = vpop.eup %7352  ;;  %v811_v22 = vsel %vm771_vm15, %v8100_v61, %v6152_v38  ;;  %v6142_v55 = vadd.f32 -1.0, %v7351_v52  ;;  %1855 = vmatpush1.bf16.msra.mxu1 %v7116_v21  ;;  %v7130_v31 = vld [vmem:[%s10382_s7 + $0x54] ss:$8 sps:$4 sm:$0xff]   ;;  %v7136_v35 = vld [vmem:[%s10382_s7 + $0x44] ss:$8 sps:$4 sm:$0xff]  }
  0x46   : > { %v7355_v46 = vpop.eup %7354  ;;  %1064 = vmatmul.mubr.bf16.gmra.mxu0 %v815_v34  ;;  %6784 = vmatprep.mubr.bf16.mxu1 %v8207_v39  ;;  %v8218_v47 = vpack.c.bf16 %v811_v22, %v810_v40  ;;  %v760_v23 = vsel %vm720_vm0, %v8106_v1, %v6141_v54  ;;  %v6133_v60 = vadd.f32 -1.0, %v7353_v42  ;;  %v7128_v34 = vld [vmem:[%s10382_s7 + $0x50] ss:$8 sps:$4 sm:$0xff]   ;;  %v7134_v36 = vld [vmem:[%s10382_s7 + $0x40] ss:$8 sps:$4 sm:$0xff]  }
  0x47   : > { %v761_v48 = vsel %vm721_vm1, %v8109_v2, %v6142_v55  ;;  %v6134_v50 = vadd.f32 -1.0, %v7355_v46  ;;  %v7357_v56 = vpop.eup %7356  ;;  %1856 = vmatprep.subr.bf16.mxu1 %v7124_v26  ;;  %v7142_v49 = vld [vmem:[%s10382_s7 + $0x34] ss:$8 sps:$4 sm:$0xff]   ;;  %v7140_v37 = vld [vmem:[%s10382_s7 + $0x30] ss:$8 sps:$4 sm:$0xff]  }
  0x48   : > { %6785 = vmatmul.mubr.bf16.gmra.mxu1 %v8218_v47  ;;  %v8224_v61 = vpack.c.bf16 %v761_v48, %v760_v23  ;;  %v712_v53 = vsel %vm672_vm2, %v8113_v4, %v6133_v60  ;;  %v7359_v58 = vpop.eup %7358  ;;  %v6143_v59 = vadd.f32 -1.0, %v7357_v56  ;;  %v8325_v54 = vld [vmem:[%s10379_s4] ss:$0 sm:$0xff] }
  0x49   : > { %v713_v57 = vsel %vm673_vm3, %v8117_v8, %v6134_v50  ;;  %v6144_v2 = vadd.f32 -1.0, %v7359_v58  ;;  %v7361_v62 = vpop.eup %7360  ;;  %1857 = vmatpush1.bf16.msra.mxu1 %v7122_v27 }
  0x4a   : > { %10468 = vst [vmem:[#allocation5_spill] sm:$0xff] %v8224_v61  ;;  %1071 = vmatprep.mubr.bf16.mxu0 %v8224_v61  ;;  %v818_v1 = vpack.c.bf16 %v713_v57, %v712_v53  ;;  %v762_v28 = vsel %vm722_vm4, %v8127_v14, %v6143_v59  ;;  %v7363_v63 = vpop.eup %7362  ;;  %v6135_v3 = vadd.f32 -1.0, %v7361_v62  ;;  %v7094_v14 = vld [vmem:[%s10380_s5 + $0x74] ss:$8 sps:$4 sm:$0xff]   ;;  %1858 = vmatprep.subr.bf16.mxu1 %v7130_v31 }
  0x4b   : > { %v763_v4 = vsel %vm723_vm5, %v8135_v30, %v6144_v2  ;;  %v6136_v5 = vadd.f32 -1.0, %v7363_v63  ;;  %v7092_v30 = vld [vmem:[%s10380_s5 + $0x70] ss:$8 sps:$4 sm:$0xff]   ;;  %1313 = vmatprep.subr.bf16.mxu0 %v7094_v14 }
  0x4c   : > { %v8235_v8 = vpack.c.bf16 %v763_v4, %v762_v28  ;;  %v714_v6 = vsel %vm674_vm6, %v8157_v51, %v6135_v3  ;;  %1314 = vmatpush1.bf16.msra.mxu0 %v7092_v30  ;;  %v7095_v51 = vld [vmem:[%s10380_s5 + $0x60] ss:$8 sps:$4 sm:$0xff]  }
  0x4d   : > { %v715_v29 = vsel %vm675_vm7, %v8169_v0, %v6136_v5  ;;  %1315 = vmatprep.subr.bf16.mxu0 %v7097_v9  ;;  %v7100_v0 = vld [vmem:[%s10380_s5 + $0x54] ss:$8 sps:$4 sm:$0xff]   ;;  %1859 = vmatpush1.bf16.msra.mxu1 %v7128_v34 }
  0x4e   : > { %1072 = vmatmul.mubr.bf16.gmra.mxu0 %v818_v1  ;;  %10469 = vst [vmem:[#allocation6_spill] sm:$0xff] %v8235_v8  ;;  %v821_v7 = vpack.c.bf16 %v715_v29, %v714_v6  ;;  %1860 = vmatprep.subr.bf16.mxu1 %v7136_v35 }
  0x4f   : > { %1079 = vmatprep.mubr.bf16.mxu0 %v8235_v8 }
  0x50   : > { %1316 = vmatpush1.bf16.msra.mxu0 %v7095_v51 }
  0x51   : > { %1317 = vmatprep.subr.bf16.mxu0 %v7100_v0  ;;  %1861 = vmatpush1.bf16.msra.mxu1 %v7134_v36 }
  0x52   : > { %1862 = vmatprep.subr.bf16.mxu1 %v7142_v49 }
  0x54   : > { %1318 = vmatpush1.bf16.msra.mxu0 %v7098_v32 }
  0x55   : > { %1319 = vmatprep.subr.bf16.mxu0 %v7103_v10  ;;  %1863 = vmatpush1.bf16.msra.mxu1 %v7140_v37 }
  0x56   : > { %1080 = vmatmul.mubr.bf16.gmra.mxu0 %v821_v7 }
  0x57   : > { %1345 = vmatprep.mubr.bf16.mxu0 %v10397_v20 }
  0x58   : > { %1320 = vmatpush1.bf16.msra.mxu0 %v7101_v12 }
  0x59   : > { %1321 = vmatprep.subr.bf16.mxu0 %v7106_v33 }
  0x5c   : > { %1322 = vmatpush1.bf16.msra.mxu0 %v7104_v13 }
  0x5d   : > { %1323 = vmatprep.subr.bf16.mxu0 %v7109_v15 }
  0x60   : > { %1324 = vmatpush1.bf16.msra.mxu0 %v7107_v41 }
  0x61   : > { %1325 = vmatprep.subr.bf16.mxu0 %v7112_v16 }
  0x64   : > { %1326 = vmatpush1.bf16.msra.mxu0 %v7110_v17 }
  0x65   : > { %1327 = vmatprep.subr.bf16.mxu0 %v7115_v18 }
  0x68   : > { %1328 = vmatpush1.bf16.msra.mxu0 %v7113_v43 }
  0x69   : > { %1927 = vmatprep.subr.bf16.mxu0 %v7121_v44 }
  0xfe   : > { %v6492_v38 = vpop.f32.mrf.mxu0 }
 0x100   : > { %v6782_v52 = vpop.f32.mrf.mxu1  ;;  %v6493_v40 = vpop.f32.mrf.mxu0 }
 0x101   : > { %v6494_v42 = vadd.f32 %v6493_v40, %v6492_v38 }
 0x102   : > { %v1122_v22 = vpop.f32.mrf.mxu1  ;;  %v6495_v55 = vpop.f32.mrf.mxu0 }
 0x103   : > { %v1058_v46 = vadd.f32 %v6494_v42, %v8325_v54 }
 0x104   : > { %v6783_v23 = vpop.f32.mrf.mxu1  ;;  %v6496_v60 = vpop.f32.mrf.mxu0 }
 0x105   : > { %v1123_v48 = vadd.f32 %v1122_v22, %v1058_v46  ;;  %v6497_v50 = vadd.f32 %v6496_v60, %v6495_v55 }
 0x106   : > { %v6498_v53 = vpop.f32.mrf.mxu0  ;;  %v1125_v58 = vpop.f32.mrf.mxu1 }
 0x107   : > { %v1161_v56 = vmin.f32 %v1123_v48, 0.0  ;;  %v1061_v57 = vadd.f32 %v6497_v50, %v8325_v54  ;;  %vm1153_vm8 = vcmp.gt.f32.partialorder %v1123_v48, 0.0 }
 0x108   : > { %v6499_v1 = vpop.f32.mrf.mxu0  ;;  %v6786_v5 = vpop.f32.mrf.mxu1 }
 0x109   : > { %v1169_v59 = vmul.f32 1.442695, %v1161_v56  ;;  %v1126_v2 = vadd.f32 %v1125_v58, %v1061_v57  ;;  %v6500_v28 = vadd.f32 %v6499_v1, %v6498_v53  ;;  %v7119_v57 = vld [vmem:[%s10382_s7 + $0x170] ss:$8 sps:$4 sm:$0xff]  }
 0x10a   : > { %v6501_v4 = vpop.f32.mrf.mxu0  ;;  %v1138_v51 = vpop.f32.mrf.mxu1 }
 0x10b   : > { %7364 = vpow2.f32 %v1169_v59  ;;  %v1162_v62 = vmin.f32 %v1126_v2, 0.0  ;;  %v1066_v63 = vadd.f32 %v6500_v28, %v8325_v54  ;;  %vm1154_vm9 = vcmp.gt.f32.partialorder %v1126_v2, 0.0  ;;  %v7127_v59 = vld [vmem:[%s10382_s7 + $0x164] ss:$8 sps:$4 sm:$0xff]  }
 0x10c   : > { %v6502_v3 = vpop.f32.mrf.mxu0  ;;  %v6787_v41 = vpop.f32.mrf.mxu1 }
 0x10d   : > { %v1171_v6 = vmul.f32 1.442695, %v1162_v62  ;;  %v8330_v29 = vadd.f32 %v6782_v52, %v1066_v63  ;;  %v6503_v7 = vadd.f32 %v6502_v3, %v6501_v4  ;;  %v7133_v63 = vld [vmem:[%s10382_s7 + $0x154] ss:$8 sps:$4 sm:$0xff]  }
 0x10e   : > { %v6504_v14 = vpop.f32.mrf.mxu0  ;;  %v1141_v27 = vpop.f32.mrf.mxu1 }
 0x10f   : > { %7366 = vpow2.f32 %v1171_v6  ;;  %v1163_v30 = vmin.f32 %v8330_v29, 0.0  ;;  %v1069_v9 = vadd.f32 %v6503_v7, %v8325_v54  ;;  %vm1155_vm10 = vcmp.gt.f32.partialorder %v8330_v29, 0.0 }
 0x110   : > { %v6505_v0 = vpop.f32.mrf.mxu0 }
 0x111   : > { %v1173_v32 = vmul.f32 1.442695, %v1163_v30  ;;  %v1134_v10 = vadd.f32 %v6783_v23, %v1069_v9  ;;  %v6506_v12 = vadd.f32 %v6505_v0, %v6504_v14  ;;  %v7131_v14 = vld [vmem:[%s10382_s7 + $0x150] ss:$8 sps:$4 sm:$0xff]  }
 0x112   : > { %v6507_v33 = vpop.f32.mrf.mxu0 }
 0x113   : > { %7368 = vpow2.f32 %v1173_v32  ;;  %v1164_v13 = vmin.f32 %v1134_v10, 0.0  ;;  %v1074_v15 = vadd.f32 %v6506_v12, %v8325_v54  ;;  %vm1156_vm11 = vcmp.gt.f32.partialorder %v1134_v10, 0.0 }
 0x114   : > { %v6508_v16 = vpop.f32.mrf.mxu0 }
 0x115   : > { %v1175_v17 = vmul.f32 1.442695, %v1164_v13  ;;  %v8335_v18 = vadd.f32 %v1138_v51, %v1074_v15  ;;  %v6509_v43 = vadd.f32 %v6508_v16, %v6507_v33  ;;  %v7139_v51 = vld [vmem:[%s10382_s7 + $0x144] ss:$8 sps:$4 sm:$0xff]   ;;  %v7143_v15 = vld [vmem:[%s10382_s7 + $0x130] ss:$8 sps:$4 sm:$0xff]  }
 0x116   : > { %v6510_v21 = vpop.f32.mrf.mxu0 }
 0x117   : > { %7370 = vpow2.f32 %v1175_v17  ;;  %v1165_v25 = vmin.f32 %v8335_v18, 0.0  ;;  %v1077_v44 = vadd.f32 %v6509_v43, %v8325_v54  ;;  %vm1157_vm12 = vcmp.gt.f32.partialorder %v8335_v18, 0.0 }
 0x118   : > { %v7365_v26 = vpop.eup %7364  ;;  %v6511_v31 = vpop.f32.mrf.mxu0 }
 0x119   : > { %v1177_v34 = vmul.f32 1.442695, %v1165_v25  ;;  %v1142_v35 = vadd.f32 %v1141_v27, %v1077_v44  ;;  %v6512_v36 = vadd.f32 %v6511_v31, %v6510_v21  ;;  %v6178_v49 = vadd.f32 -1.0, %v7365_v26  ;;  %v7146_v26 = vld [vmem:[%s10382_s7 + $0x20] ss:$8 sps:$4 sm:$0xff]  }
 0x11a   : > { %v6513_v37 = vpop.f32.mrf.mxu0  ;;  %v7148_v27 = vld [vmem:[%s10382_s7 + $0x24] ss:$8 sps:$4 sm:$0xff]  }
 0x11b   : > { %7372 = vpow2.f32 %v1177_v34  ;;  %v1166_v38 = vmin.f32 %v1142_v35, 0.0  ;;  %v1082_v52 = vadd.f32 %v6512_v36, %v8325_v54  ;;  %v1193_v60 = vsel %vm1153_vm8, %v1123_v48, %v6178_v49  ;;  %1864 = vmatprep.subr.bf16.mxu1 %v7148_v27  ;;  %v7151_v31 = vld [vmem:[%s10382_s7 + $0x124] ss:$8 sps:$4 sm:$0xff]   ;;  %v7149_v34 = vld [vmem:[%s10382_s7 + $0x120] ss:$8 sps:$4 sm:$0xff]  }
 0x11c   : > { %v7367_v40 = vpop.eup %7366  ;;  %v6514_v42 = vpop.f32.mrf.mxu0  ;;  %vm1158_vm13 = vcmp.gt.f32.partialorder %v1142_v35, 0.0  ;;  %1865 = vmatpush1.bf16.msra.mxu1 %v7146_v26  ;;  %v7152_v36 = vld [vmem:[%s10382_s7 + $0x10] ss:$8 sps:$4 sm:$0xff]   ;;  %v7157_v49 = vld [vmem:[%s10382_s7 + $0x114] ss:$8 sps:$4 sm:$0xff]   ;;  %vm2915_vm8 = vcmask 1040384  }
 0x11d   : > { %v6179_v22 = vadd.f32 -1.0, %v7367_v40  ;;  %v1179_v55 = vmul.f32 1.442695, %v1166_v38  ;;  %v8340_v46 = vadd.f32 %v6786_v5, %v1082_v52  ;;  %v6515_v23 = vadd.f32 %v6514_v42, %v6513_v37  ;;  %v7155_v37 = vld [vmem:[%s10382_s7 + $0x110] ss:$8 sps:$4 sm:$0xff]  }
 0x11e   : > { %v7160_v38 = vld [vmem:[%s10382_s7 + $0x4] ss:$8 sps:$4 sm:$0xff]   ;;  %v7158_v52 = vld [vmem:[%s10382_s7] ss:$8 sps:$4 sm:$0xff]   ;;  %v7787_v26 = vld [vmem:[%s8020_s20 + $0x18] sm:$0xff] }
 0x11f   : > { %v1194_v50 = vsel %vm1154_vm9, %v1126_v2, %v6179_v22  ;;  %7374 = vpow2.f32 %v1179_v55  ;;  %v1167_v53 = vmin.f32 %v8340_v46, 0.0  ;;  %v1085_v56 = vadd.f32 %v6515_v23, %v8325_v54  ;;  %v7125_v54 = vld [vmem:[%s10382_s7 + $0x160] ss:$8 sps:$4 sm:$0xff]   ;;  %v7163_v40 = vld [vmem:[%s10382_s7 + $0x104] ss:$8 sps:$4 sm:$0xff]  }
 0x120   : > { %v7369_v58 = vpop.eup %7368  ;;  %v1201_v1 = vpack.c.bf16 %v1194_v50, %v1193_v60  ;;  %vm1159_vm14 = vcmp.gt.f32.partialorder %v8340_v46, 0.0  ;;  %v7161_v42 = vld [vmem:[%s10382_s7 + $0x100] ss:$8 sps:$4 sm:$0xff]   ;;  %v7166_v22 = vld [vmem:[%s10382_s7 + $0xf4] ss:$8 sps:$4 sm:$0xff]   ;;  %vm2902_vm9 = vcmask 15360  }
 0x121   : > { %v1181_v28 = vmul.f32 1.442695, %v1167_v53  ;;  %v1150_v4 = vadd.f32 %v6787_v41, %v1085_v56  ;;  %v6180_v2 = vadd.f32 -1.0, %v7369_v58  ;;  %v7164_v55 = vld [vmem:[%s10382_s7 + $0xf0] ss:$8 sps:$4 sm:$0xff]  }
 0x122   : > { %1346 = vmatmul.mubr.bf16.vlgmr.msra.gmra.mxu0 %v1201_v1  ;;  %v7167_v23 = vld [vmem:[%s10382_s7 + $0x1f0] ss:$8 sps:$4 sm:$0xff]   ;;  %v7172_v60 = vld [vmem:[%s10382_s7 + $0xe4] ss:$8 sps:$4 sm:$0xff]   ;;  %v7170_v50 = vld [vmem:[%s10382_s7 + $0xe0] ss:$8 sps:$4 sm:$0xff]  }
 0x123   : > { %7376 = vpow2.f32 %v1181_v28  ;;  %v1168_v48 = vmin.f32 %v1150_v4, 0.0  ;;  %1355 = vmatprep.mubr.bf16.mxu0 %v10397_v20  ;;  %1928 = vmatpush1.bf16.msra.mxu0 %v7119_v57  ;;  %v1195_v6 = vsel %vm1155_vm10, %v8330_v29, %v6180_v2  ;;  %v7137_v29 = vld [vmem:[%s10382_s7 + $0x140] ss:$8 sps:$4 sm:$0xff]   ;;  %vm1160_vm15 = vcmp.gt.f32.partialorder %v1150_v4, 0.0  ;;  %v7175_v53 = vld [vmem:[%s10382_s7 + $0x1e4] ss:$8 sps:$4 sm:$0xff]  }
 0x124   : > { %v7371_v62 = vpop.eup %7370  ;;  %1929 = vmatprep.subr.bf16.mxu0 %v7127_v59  ;;  %v7173_v56 = vld [vmem:[%s10382_s7 + $0x1e0] ss:$8 sps:$4 sm:$0xff]   ;;  %v7178_v57 = vld [vmem:[%s10382_s7 + $0xd4] ss:$8 sps:$4 sm:$0xff]   ;;  %v7176_v58 = vld [vmem:[%s10382_s7 + $0xd0] ss:$8 sps:$4 sm:$0xff]  }
 0x125   : > { %v1183_v3 = vmul.f32 1.442695, %v1168_v48  ;;  %v6181_v5 = vadd.f32 -1.0, %v7371_v62  ;;  %v7181_v1 = vld [vmem:[%s10382_s7 + $0x1d4] ss:$8 sps:$4 sm:$0xff]  }
 0x126   : > { %v7179_v59 = vld [vmem:[%s10382_s7 + $0x1d0] ss:$8 sps:$4 sm:$0xff]   ;;  %v7184_v28 = vld [vmem:[%s10382_s7 + $0xc4] ss:$8 sps:$4 sm:$0xff]   ;;  %v7185_v2 = vld [vmem:[%s10382_s7 + $0x1c0] ss:$8 sps:$4 sm:$0xff]  }
 0x127   : > { %7378 = vpow2.f32 %v1183_v3  ;;  %v1196_v7 = vsel %vm1156_vm11, %v1134_v10, %v6181_v5  ;;  %1930 = vmatpush1.bf16.msra.mxu0 %v7125_v54  ;;  %v7145_v10 = vld [vmem:[%s10382_s7 + $0x134] ss:$8 sps:$4 sm:$0xff]   ;;  %v7187_v48 = vld [vmem:[%s10382_s7 + $0x1c4] ss:$8 sps:$4 sm:$0xff]   ;;  %v7188_v62 = vld [vmem:[%s10382_s7 + $0xb0] ss:$8 sps:$4 sm:$0xff]  }
 0x128   : > { %v7373_v30 = vpop.eup %7372  ;;  %v1202_v9 = vpack.c.bf16 %v1196_v7, %v1195_v6  ;;  %1931 = vmatprep.subr.bf16.mxu0 %v7133_v63  ;;  %v7190_v54 = vld [vmem:[%s10382_s7 + $0xb4] ss:$8 sps:$4 sm:$0xff]   ;;  %v7191_v3 = vld [vmem:[%s10382_s7 + $0x1b0] ss:$8 sps:$4 sm:$0xff]   ;;  %v7196_v5 = vld [vmem:[%s10382_s7 + $0xa4] ss:$8 sps:$4 sm:$0xff]  }
 0x129   : > { %v6182_v0 = vadd.f32 -1.0, %v7373_v30  ;;  %v7193_v63 = vld [vmem:[%s10382_s7 + $0x1b4] ss:$8 sps:$4 sm:$0xff]   ;;  %v7194_v6 = vld [vmem:[%s10382_s7 + $0xa0] ss:$8 sps:$4 sm:$0xff]   ;;  %vm2992_vm11 = vcmask 523264  }
 0x12a   : > { %1356 = vmatmul.mubr.bf16.gmra.mxu0 %v1202_v9  ;;  %v7199_v7 = vld [vmem:[%s10382_s7 + $0x1a4] ss:$8 sps:$4 sm:$0xff]   ;;  %v7202_v30 = vld [vmem:[%s10382_s7 + $0x94] ss:$8 sps:$4 sm:$0xff]   ;;  %v7200_v9 = vld [vmem:[%s10382_s7 + $0x90] ss:$8 sps:$4 sm:$0xff]  }
 0x12b   : > { %1365 = vmatprep.mubr.bf16.mxu0 %v10397_v20  ;;  %1932 = vmatpush1.bf16.msra.mxu0 %v7131_v14  ;;  %v1197_v33 = vsel %vm1157_vm12, %v8335_v18, %v6182_v0  ;;  %v7197_v14 = vld [vmem:[%s10382_s7 + $0x1a0] ss:$8 sps:$4 sm:$0xff]   ;;  %v7203_v0 = vld [vmem:[%s10382_s7 + $0x190] ss:$8 sps:$4 sm:$0xff]  }
 0x12c   : > { %v7375_v32 = vpop.eup %7374  ;;  %1933 = vmatprep.subr.bf16.mxu0 %v7139_v51  ;;  %v7205_v51 = vld [vmem:[%s10382_s7 + $0x194] ss:$8 sps:$4 sm:$0xff]  }
 0x12d   : > { %v6183_v12 = vadd.f32 -1.0, %v7375_v32  ;;  %v7206_v32 = vld [vmem:[%s10382_s7 + $0x80] ss:$8 sps:$4 sm:$0xff]  }
 0x12f   : > { %v1198_v13 = vsel %vm1158_vm13, %v1142_v35, %v6183_v12  ;;  %1934 = vmatpush1.bf16.msra.mxu0 %v7137_v29  ;;  %v7154_v35 = vld [vmem:[%s10382_s7 + $0x14] ss:$8 sps:$4 sm:$0xff]   ;;  %v7208_v29 = vld [vmem:[%s10382_s7 + $0x84] ss:$8 sps:$4 sm:$0xff]   ;;  %v7209_v12 = vld [vmem:[%s10382_s7 + $0x180] ss:$8 sps:$4 sm:$0xff]  }
 0x130   : > { %v7377_v41 = vpop.eup %7376  ;;  %v1203_v16 = vpack.c.bf16 %v1198_v13, %v1197_v33  ;;  %1935 = vmatprep.subr.bf16.mxu0 %v7145_v10  ;;  %1866 = vmatprep.subr.bf16.mxu1 %v7154_v35  ;;  %v7211_v10 = vld [vmem:[%s10382_s7 + $0x184] ss:$8 sps:$4 sm:$0xff]  }
 0x131   : > { %v6184_v17 = vadd.f32 -1.0, %v7377_v41  ;;  %1867 = vmatpush1.bf16.msra.mxu1 %v7152_v36  ;;  %v7780_v33 = vld [vmem:[%s8029_s19] sm:$0xff]  ;;  %v7781_v13 = vld [vmem:[%s8029_s19 + $0x8] sm:$0xff]  ;;  %v7212_v41 = vld [vmem:[%s10384_s9 + $0x78] sm:$0xff]  }
 0x132   : > { %1366 = vmatmul.mubr.bf16.gmra.mxu0 %v1203_v16  ;;  %1868 = vmatprep.subr.bf16.mxu1 %v7160_v38  ;;  %v7782_v16 = vld [vmem:[%s8020_s20] sm:$0xff] }
 0x133   : > { %1375 = vmatprep.mubr.bf16.mxu0 %v10397_v20  ;;  %1936 = vmatpush1.bf16.msra.mxu0 %v7143_v15  ;;  %v1199_v18 = vsel %vm1159_vm14, %v8340_v46, %v6184_v17  ;;  %v7169_v46 = vld [vmem:[%s10382_s7 + $0x1f4] ss:$8 sps:$4 sm:$0xff]   ;;  %v1443_v15 = vpack.c.bf16 %v7781_v13, %v7780_v33  ;;  %v7783_v17 = vld [vmem:[%s8020_s20 + $0x8] sm:$0xff]  ;;  %v7790_v36 = vld [vmem:[%s8020_s20 + $0x20] sm:$0xff] }
 0x134   : > { %v7379_v43 = vpop.eup %7378  ;;  %1937 = vmatprep.subr.bf16.mxu0 %v7151_v31  ;;  %v7788_v31 = vld [vmem:[%s8014_s3 + $0x10] sm:$0xff]  ;;  %v7792_v38 = vld [vmem:[%s8014_s3 + $0x20] sm:$0xff] }
 0x135   : > { %v6185_v21 = vadd.f32 -1.0, %v7379_v43  ;;  %1869 = vmatpush1.bf16.msra.mxu1 %v7158_v52  ;;  %1886 = vmatprep.mubr.bf16.mxu1 %v1443_v15  ;;  %v8519_v43 = vpack.c.bf16 %v7783_v17, %v7782_v16  ;;  %v7793_v52 = vld [vmem:[%s8014_s3 + $0x28] sm:$0xff] }
 0x136   : > { %1870 = vmatprep.subr.bf16.mxu1 %v7166_v22  ;;  %v7795_v22 = vld [vmem:[%s8020_s20 + $0x38] sm:$0xff] }
 0x137   : > { %v1200_v25 = vsel %vm1160_vm15, %v1150_v4, %v6185_v21  ;;  %1938 = vmatpush1.bf16.msra.mxu0 %v7149_v34  ;;  %v7182_v4 = vld [vmem:[%s10382_s7 + $0xc0] ss:$8 sps:$4 sm:$0xff]   ;;  %v7789_v34 = vld [vmem:[%s8014_s3 + $0x18] sm:$0xff] }
 0x138   : > { %v1204_v44 = vpack.c.bf16 %v1200_v25, %v1199_v18  ;;  %1939 = vmatprep.subr.bf16.mxu0 %v7157_v49  ;;  %v7784_v21 = vld [vmem:[%s8014_s3] sm:$0xff]  ;;  %v7785_v18 = vld [vmem:[%s8014_s3 + $0x8] sm:$0xff]  ;;  %v8533_v35 = vpack.c.bf16 %v7789_v34, %v7788_v31 }
 0x139   : > { %1871 = vmatpush2.bf16.msra.mxu1 %v7164_v55  ;;  %v8523_v25 = vpack.c.bf16 %v7785_v18, %v7784_v21  ;;  %v7791_v49 = vld [vmem:[%s8020_s20 + $0x28] sm:$0xff] }
 0x13a   : > { %1376 = vmatmul.mubr.bf16.gmra.mxu0 %v1204_v44  ;;  %1872 = vmatprep.subr.bf16.mxu1 %v7172_v60  ;;  %v7786_v44 = vld [vmem:[%s8020_s20 + $0x10] sm:$0xff] }
 0x13b   : > { %1940 = vmatpush1.bf16.msra.mxu0 %v7155_v37  ;;  %1959 = vmatprep.mubr.bf16.mxu0 %v8519_v43  ;;  %v8529_v27 = vpack.c.bf16 %v7787_v26, %v7786_v44  ;;  %v8539_v37 = vpack.c.bf16 %v7791_v49, %v7790_v36 }
 0x13c   : > { %1941 = vmatprep.subr.bf16.mxu0 %v7163_v40  ;;  %v8543_v40 = vpack.c.bf16 %v7793_v52, %v7792_v38 }
 0x13d   : > { %1873 = vmatpush2.bf16.msra.mxu1 %v7170_v50  ;;  %v1223_v50 = vlaneseq }
 0x13e   : > { %1874 = vmatprep.subr.bf16.mxu1 %v7178_v57  ;;  %v1221_v57 = vld [vmem:[%s10381_s6] sm:$0x3] }
 0x13f   : > { %1942 = vmatpush1.bf16.msra.mxu0 %v7161_v42  ;;  %v7794_v42 = vld [vmem:[%s8020_s20 + $0x30] sm:$0xff]  ;;  %s7831_s20 = smov 6  }
 0x140   : > { %1943 = vmatprep.subr.bf16.mxu0 %v7169_v46  ;;  %v8549_v55 = vpack.c.bf16 %v7795_v22, %v7794_v42  ;;  %v7796_v46 = vld [vmem:[%s8014_s3 + $0x30] sm:$0xff] }
 0x141   : > { %1875 = vmatpush2.bf16.msra.mxu1 %v7176_v58 }
 0x142   : > { %1876 = vmatprep.subr.bf16.mxu1 %v7184_v28 }
 0x143   : > { %1944 = vmatpush2.bf16.msra.mxu0 %v7167_v23  ;;  %v7797_v23 = vld [vmem:[%s8014_s3 + $0x38] sm:$0xff] }
 0x144   : > { %1945 = vmatprep.subr.bf16.mxu0 %v7175_v53  ;;  %v8553_v60 = vpack.c.bf16 %v7797_v23, %v7796_v46  ;;  %v8559_v53 = vshrl.u32 %v1223_v50, 7 }
 0x145   : > { %1877 = vmatpush2.bf16.msra.mxu1 %v7182_v4 }
 0x146   : > { %1878 = vmatprep.subr.bf16.mxu1 %v7190_v54  ;;  %v8581_v38 = vsub.s32 0, %v8559_v53 }
 0x147   : > { %1946 = vmatpush2.bf16.msra.mxu0 %v7173_v56  ;;  %v8562_v56 = vsub.s32 1, %v8559_v53 }
 0x148   : > { %1947 = vmatprep.subr.bf16.mxu0 %v7181_v1  ;;  %10471 = vst [vmem:[#allocation8_spill] sm:$0xff] %v8581_v38  ;;  %v8584_v23 = vrot.slane %v1221_v57, %v8581_v38 }
 0x149   : > { %1879 = vmatpush2.bf16.msra.mxu1 %v7188_v62  ;;  %10470 = vst [vmem:[#allocation7_spill] sm:$0xff] %v8562_v56  ;;  %v1230_v58 = vrot.slane %v1221_v57, %v8562_v56  ;;  %v7213_v57 = vld [vmem:[%s10384_s9 + $0x38] sm:$0xff]  }
 0x14a   : > { %1880 = vmatprep.subr.bf16.mxu1 %v7196_v5 }
 0x14b   : > { %1948 = vmatpush2.bf16.msra.mxu0 %v7179_v59 }
 0x14c   : > { %1949 = vmatprep.subr.bf16.mxu0 %v7187_v48 }
 0x14d   : > { %1881 = vmatpush2.bf16.msra.mxu1 %v7194_v6 }
 0x14e   : > { %1882 = vmatprep.subr.bf16.mxu1 %v7202_v30 }
 0x14f   : > { %1950 = vmatpush2.bf16.msra.mxu0 %v7185_v2 }
 0x150   : > { %1951 = vmatprep.subr.bf16.mxu0 %v7193_v63 }
 0x151   : > { %1883 = vmatpush2.bf16.msra.mxu1 %v7200_v9 }
 0x152   : > { %1884 = vmatprep.subr.bf16.mxu1 %v7208_v29 }
 0x153   : > { %1952 = vmatpush2.bf16.msra.mxu0 %v7191_v3 }
 0x154   : > { %1953 = vmatprep.subr.bf16.mxu0 %v7199_v7 }
 0x155   : > { %1885 = vmatpush2.bf16.msra.mxu1 %v7206_v32 }
 0x156   : > { %6528 = vmatprep.subr.bf16.mxu1 %v7212_v41 }
 0x157   : > { %1954 = vmatpush2.bf16.msra.mxu0 %v7197_v14 }
 0x158   : > { %1955 = vmatprep.subr.bf16.mxu0 %v7205_v51 }
 0x15b   : > { %1956 = vmatpush2.bf16.msra.mxu0 %v7203_v0 }
 0x15c   : > { %1957 = vmatprep.subr.bf16.mxu0 %v7211_v10 }
 0x15f   : > { %1958 = vmatpush2.bf16.msra.mxu0 %v7209_v12 }
 0x162   : > { %1960 = vmatmul.mubr.bf16.vlgmr.msra.gmra.mxu0 %v8523_v25 }
 0x163   : > { %1969 = vmatprep.mubr.bf16.mxu0 %v8529_v27 }
 0x16a   : > { %1970 = vmatmul.mubr.bf16.gmra.mxu0 %v8533_v35 }
 0x16b   : > { %1979 = vmatprep.mubr.bf16.mxu0 %v8539_v37 }
 0x172   : > { %1980 = vmatmul.mubr.bf16.gmra.mxu0 %v8543_v40 }
 0x173   : > { %1989 = vmatprep.mubr.bf16.mxu0 %v8549_v55 }
 0x17a   : > { %1990 = vmatmul.mubr.bf16.gmra.mxu0 %v8553_v60 }
 0x17b   : > { %2392 = vmatprep.mubr.bf16.mxu0 %v10397_v20 }
 0x1e2   : > { %v1347_v1 = vpop.f32.mrf.mxu0 }
 0x1e4   : > { %v1349_v59 = vpop.f32.mrf.mxu0 }
 0x1e5   : > { %v1350_v28 = vadd.f32 %v1349_v59, %v1230_v58 }
 0x1e6   : > { %v1351_v4 = vpop.f32.mrf.mxu0 }
 0x1e7   : > { %v6202_v48 = vmul.f32 -1.442695, %v1350_v28 }
 0x1e8   : > { %v1353_v2 = vpop.f32.mrf.mxu0 }
 0x1e9   : > { %7380 = vpow2.f32 %v6202_v48  ;;  %v1354_v54 = vadd.f32 %v1353_v2, %v1230_v58  ;;  %v1348_v2 = vadd.f32 %v1347_v1, %v8584_v23  ;;  %v7214_v1 = vld [vmem:[%s10384_s9 + $0x70] sm:$0xff]  }
 0x1ea   : > { %v8568_v62 = vpop.f32.mrf.mxu0 }
 0x1eb   : > { %v6203_v63 = vmul.f32 -1.442695, %v1354_v54  ;;  %v1352_v54 = vadd.f32 %v1351_v4, %v8584_v23 }
 0x1ec   : > { %v1359_v3 = vpop.f32.mrf.mxu0 }
 0x1ed   : > { %7382 = vpow2.f32 %v6203_v63  ;;  %v1360_v5 = vadd.f32 %v1359_v3, %v1230_v58 }
 0x1ee   : > { %v8570_v6 = vpop.f32.mrf.mxu0 }
 0x1ef   : > { %v6204_v7 = vmul.f32 -1.442695, %v1360_v5 }
 0x1f0   : > { %v1363_v14 = vpop.f32.mrf.mxu0 }
 0x1f1   : > { %7384 = vpow2.f32 %v6204_v7  ;;  %v1364_v30 = vadd.f32 %v1363_v14, %v1230_v58  ;;  %v7798_v14 = vld [vmem:[%s8029_s19 + $0x10] sm:$0xff] }
 0x1f2   : > { %v8572_v9 = vpop.f32.mrf.mxu0 }
 0x1f3   : > { %v6205_v51 = vmul.f32 -1.442695, %v1364_v30  ;;  %v7799_v30 = vld [vmem:[%s8029_s19 + $0x18] sm:$0xff] }
 0x1f4   : > { %v1369_v0 = vpop.f32.mrf.mxu0 }
 0x1f5   : > { %7386 = vpow2.f32 %v6205_v51  ;;  %v1370_v29 = vadd.f32 %v1369_v0, %v1230_v58  ;;  %v1447_v51 = vpack.c.bf16 %v7799_v30, %v7798_v14  ;;  %v7224_v30 = vld [vmem:[%s10384_s9 + $0x48] sm:$0xff]  }
 0x1f6   : > { %v7381_v32 = vpop.eup %7380  ;;  %v8574_v10 = vpop.f32.mrf.mxu0 }
 0x1f7   : > { %v1410_v12 = vadd.f32 1.0, %v7381_v32  ;;  %v6206_v33 = vmul.f32 -1.442695, %v1370_v29 }
 0x1f8   : > { %v1373_v13 = vpop.f32.mrf.mxu0 }
 0x1f9   : > { %v1374_v15 = vadd.f32 %v1373_v13, %v1230_v58  ;;  %7388 = vpow2.f32 %v6206_v33  ;;  %v1358_v33 = vadd.f32 %v8568_v62, %v8584_v23  ;;  %v1362_v13 = vadd.f32 %v8570_v6, %v8584_v23  ;;  %v7800_v62 = vld [vmem:[%s8029_s19 + $0x20] sm:$0xff] }
 0x1fa   : > { %v7383_v41 = vpop.eup %7382  ;;  %v8576_v16 = vpop.f32.mrf.mxu0  ;;  %7390 = vrcp.f32 %v1410_v12  ;;  %v7215_v12 = vld [vmem:[%s10384_s9 + $0x30] sm:$0xff]  }
 0x1fb   : > { %v1411_v17 = vadd.f32 1.0, %v7383_v41  ;;  %v6207_v21 = vmul.f32 -1.442695, %v1374_v15  ;;  %v7216_v15 = vld [vmem:[%s10384_s9 + $0x68] sm:$0xff]  }
 0x1fc   : > { %v1379_v18 = vpop.f32.mrf.mxu0 }
 0x1fd   : > { %7392 = vrcp.f32 %v1411_v17  ;;  %v1380_v44 = vadd.f32 %v1379_v18, %v1230_v58 }
 0x1fe   : > { %v7385_v26 = vpop.eup %7384  ;;  %7394 = vpow2.f32 %v6207_v21  ;;  %v8578_v31 = vpop.f32.mrf.mxu0 }
 0x1ff   : > { %v1412_v34 = vadd.f32 1.0, %v7385_v26  ;;  %v6208_v36 = vmul.f32 -1.442695, %v1380_v44  ;;  %v7217_v26 = vld [vmem:[%s10384_s9 + $0x28] sm:$0xff]   ;;  %v1382_v14 = vadd.f32 %v8578_v31, %v8584_v23  ;;  %v7227_v31 = vld [vmem:[%s10384_s9] sm:$0xff]  }
 0x200   : > { %v1383_v49 = vpop.f32.mrf.mxu0 }
 0x201   : > { %v1384_v52 = vadd.f32 %v1383_v49, %v1230_v58  ;;  %7396 = vpow2.f32 %v6208_v36  ;;  %v7218_v49 = vld [vmem:[%s10384_s9 + $0x60] sm:$0xff]  }
 0x202   : > { %v7387_v42 = vpop.eup %7386  ;;  %7398 = vrcp.f32 %v1412_v34  ;;  %v7801_v34 = vld [vmem:[%s8029_s19 + $0x28] sm:$0xff] }
 0x203   : > { %v1413_v22 = vadd.f32 1.0, %v7387_v42  ;;  %v6209_v46 = vmul.f32 -1.442695, %v1384_v52  ;;  %v1451_v36 = vpack.c.bf16 %v7801_v34, %v7800_v62  ;;  %v7219_v52 = vld [vmem:[%s10384_s9 + $0x20] sm:$0xff]  }
 0x205   : > { %7400 = vrcp.f32 %v1413_v22  ;;  %v7220_v22 = vld [vmem:[%s10384_s9 + $0x58] sm:$0xff]  }
 0x206   : > { %7402 = vpow2.f32 %v6209_v46  ;;  %v7389_v59 = vpop.eup %7388  ;;  %v1368_v46 = vadd.f32 %v8572_v9, %v8584_v23  ;;  %v7222_v9 = vld [vmem:[%s10384_s9 + $0x50] sm:$0xff]  }
 0x207   : > { %v7391_v28 = vpop.eup %7390  ;;  %v1414_v48 = vadd.f32 1.0, %v7389_v59  ;;  %v1372_v59 = vadd.f32 %v8574_v10, %v8584_v23  ;;  %v7223_v10 = vld [vmem:[%s10384_s9 + $0x10] sm:$0xff]  }
 0x208   : > { %v1434_v3 = vmul.f32 %v7391_v28, %v1348_v2 }
 0x209   : > { %7404 = vrcp.f32 %v1414_v48 }
 0x20a   : > { %v7393_v58 = vpop.eup %7392 }
 0x20b   : > { %v7395_v63 = vpop.eup %7394  ;;  %v1435_v5 = vmul.f32 %v7393_v58, %v1352_v54  ;;  %v7221_v54 = vld [vmem:[%s10384_s9 + $0x18] sm:$0xff]   ;;  %v7802_v58 = vld [vmem:[%s8029_s19 + $0x30] sm:$0xff] }
 0x20c   : > { %v1415_v7 = vadd.f32 1.0, %v7395_v63  ;;  %v7803_v63 = vld [vmem:[%s8029_s19 + $0x38] sm:$0xff]  ;;  %s7830_s19 = smov 4  }
 0x20d   : > { %v1442_v0 = vpack.c.bf16 %v1435_v5, %v1434_v3  ;;  %v1455_v3 = vpack.c.bf16 %v7803_v63, %v7802_v58 }
 0x20e   : > { %7406 = vrcp.f32 %v1415_v7  ;;  %v7397_v4 = vpop.eup %7396 }
 0x20f   : > { %1887 = vmatmul.mubr.bf16.vlgmr.msra.gmra.mxu1 %v1442_v0  ;;  %v7399_v29 = vpop.eup %7398  ;;  %v1416_v32 = vadd.f32 1.0, %v7397_v4  ;;  %v7225_v4 = vld [vmem:[%s10384_s9 + $0x8] sm:$0xff]  }
 0x210   : > { %6529 = vmatpush3.bf16.msra.mxu1 %v7213_v57  ;;  %1896 = vmatprep.mubr.bf16.mxu1 %v1447_v51  ;;  %v1436_v21 = vmul.f32 %v7399_v29, %v1358_v33  ;;  %v1378_v57 = vadd.f32 %v8576_v16, %v8584_v23  ;;  %v7226_v16 = vld [vmem:[%s10384_s9 + $0x40] sm:$0xff]   ;;  %v7234_v23 = vld [vmem:[%s10386_s11 + $0x50] ss:$8 sps:$4 sm:$0xff]   ;;  %v7242_v33 = vld [vmem:[%s10386_s11 + $0x34] ss:$8 sps:$4 sm:$0xff]  }
 0x211   : > { %6530 = vmatprep.subr.bf16.mxu1 %v7214_v1  ;;  %7408 = vrcp.f32 %v1416_v32  ;;  %v7239_v32 = vld [vmem:[%s10386_s11 + $0x44] ss:$8 sps:$4 sm:$0xff]  }
 0x212   : > { %v7401_v41 = vpop.eup %7400 }
 0x213   : > { %v7403_v17 = vpop.eup %7402  ;;  %v1437_v18 = vmul.f32 %v7401_v41, %v1362_v13  ;;  %v7240_v13 = vld [vmem:[%s10386_s11 + $0x30] ss:$8 sps:$4 sm:$0xff]   ;;  %v7243_v41 = vld [vmem:[%s10386_s11 + $0x20] ss:$8 sps:$4 sm:$0xff]  }
 0x214   : > { %v1417_v44 = vadd.f32 1.0, %v7403_v17  ;;  %6531 = vmatpush3.bf16.msra.mxu1 %v7215_v12  ;;  %v7237_v12 = vld [vmem:[%s10386_s11 + $0x40] ss:$8 sps:$4 sm:$0xff]   ;;  %v7248_v17 = vld [vmem:[%s10386_s11 + $0x14] ss:$8 sps:$4 sm:$0xff]  }
 0x215   : > { %v1446_v6 = vpack.c.bf16 %v1437_v18, %v1436_v21  ;;  %6532 = vmatprep.subr.bf16.mxu1 %v7216_v15  ;;  %v7245_v15 = vld [vmem:[%s10386_s11 + $0x24] ss:$8 sps:$4 sm:$0xff]   ;;  %v7246_v21 = vld [vmem:[%s10386_s11 + $0x10] ss:$8 sps:$4 sm:$0xff]  }
 0x216   : > { %7410 = vrcp.f32 %v1417_v44  ;;  %v7405_v42 = vpop.eup %7404  ;;  %v7251_v18 = vld [vmem:[%s10386_s11 + $0x4] ss:$8 sps:$4 sm:$0xff]   ;;  %v7249_v44 = vld [vmem:[%s10386_s11] ss:$8 sps:$4 sm:$0xff]  }
 0x217   : > { %1897 = vmatmul.mubr.bf16.gmra.mxu1 %v1446_v6  ;;  %v1438_v48 = vmul.f32 %v7405_v42, %v1368_v46  ;;  %v8723_v42 = vld [vmem:[%s10383_s8] sm:$0x3] }
 0x218   : > { %6533 = vmatpush3.bf16.msra.mxu1 %v7217_v26  ;;  %1906 = vmatprep.mubr.bf16.mxu1 %v1451_v36  ;;  %v8711_v26 = vld [vmem:[%s10388_s13 + $0xb8] sm:$0xff]  }
 0x219   : > { %6534 = vmatprep.subr.bf16.mxu1 %v7218_v49 }
 0x21b   : > { %v7407_v28 = vpop.eup %7406 }
 0x21c   : > { %6535 = vmatpush3.bf16.msra.mxu1 %v7219_v52  ;;  %v1439_v2 = vmul.f32 %v7407_v28, %v1372_v59 }
 0x21d   : > { %6536 = vmatprep.subr.bf16.mxu1 %v7220_v22  ;;  %v1527_v22 = vrot.slane %v8723_v42, %v8581_v38 }
 0x21e   : > { %v1450_v5 = vpack.c.bf16 %v1439_v2, %v1438_v48  ;;  %v7409_v7 = vpop.eup %7408 }
 0x21f   : > { %v1440_v0 = vmul.f32 %v7409_v7, %v1378_v57 }
 0x220   : > { %1907 = vmatmul.mubr.bf16.gmra.mxu1 %v1450_v5 }
 0x221   : > { %6537 = vmatpush3.bf16.msra.mxu1 %v7221_v54  ;;  %1916 = vmatprep.mubr.bf16.mxu1 %v1455_v3 }
 0x222   : > { %6538 = vmatprep.subr.bf16.mxu1 %v7222_v9  ;;  %v1961_v62 = vpop.f32.mrf.mxu0 }
 0x223   : > { %v7411_v51 = vpop.eup %7410 }
 0x224   : > { %v1441_v1 = vmul.f32 %v7411_v51, %v1382_v14  ;;  %v8714_v34 = vpop.f32.mrf.mxu0 }
 0x225   : > { %6539 = vmatpush3.bf16.msra.mxu1 %v7223_v10 }
 0x226   : > { %v1454_v29 = vpack.c.bf16 %v1441_v1, %v1440_v0  ;;  %6540 = vmatprep.subr.bf16.mxu1 %v7224_v30  ;;  %v1965_v36 = vpop.f32.mrf.mxu0 }
 0x228   : > { %1917 = vmatmul.mubr.bf16.gmra.mxu1 %v1454_v29  ;;  %v8716_v6 = vpop.f32.mrf.mxu0 }
 0x229   : > { %6541 = vmatpush3.bf16.msra.mxu1 %v7225_v4  ;;  %2167 = vmatprep.mubr.bf16.mxu1 %v8160_v24  ;;  %v7230_v24 = vld [vmem:[%s10386_s11 + $0x74] ss:$8 sps:$4 sm:$0xff]  }
 0x22a   : > { %6542 = vmatprep.subr.bf16.mxu1 %v7226_v16  ;;  %2360 = vmatprep.subr.bf16.mxu0 %v7230_v24  ;;  %v1971_v49 = vpop.f32.mrf.mxu0 }
 0x22c   : > { %v8718_v52 = vpop.f32.mrf.mxu0 }
 0x22d   : > { %6543 = vmatpush3.bf16.msra.mxu1 %v7227_v31 }
 0x22e   : > { %v1975_v46 = vpop.f32.mrf.mxu0 }
 0x230   : > { %2168 = vmatmul.mubr.bf16.vlgmr.msra.gmra.mxu1 %v8146_v45  ;;  %v8727_v48 = vpop.f32.mrf.mxu0 }
 0x231   : > { %2175 = vmatprep.mubr.bf16.mxu1 %v8179_v11  ;;  %v7228_v11 = vld [vmem:[%s10386_s11 + $0x70] ss:$8 sps:$4 sm:$0xff]  }
 0x232   : > { %2361 = vmatpush1.bf16.msra.mxu0 %v7228_v11  ;;  %v1981_v3 = vpop.f32.mrf.mxu0 }
 0x234   : > { %v8733_v57 = vpop.f32.mrf.mxu0 }
 0x236   : > { %v1985_v1 = vpop.f32.mrf.mxu0 }
 0x238   : > { %2176 = vmatmul.mubr.bf16.gmra.mxu1 %v8191_v19  ;;  %v8739_v31 = vpop.f32.mrf.mxu0 }
 0x239   : > { %2183 = vmatprep.mubr.bf16.mxu1 %v8207_v39  ;;  %v7233_v39 = vld [vmem:[%s10386_s11 + $0x64] ss:$8 sps:$4 sm:$0xff]  }
 0x23a   : > { %2362 = vmatprep.subr.bf16.mxu0 %v7233_v39 }
 0x240   : > { %2184 = vmatmul.mubr.bf16.gmra.mxu1 %v8224_v61 }
 0x241   : > { %2191 = vmatprep.mubr.bf16.mxu1 %v8218_v47  ;;  %v7231_v47 = vld [vmem:[%s10386_s11 + $0x60] ss:$8 sps:$4 sm:$0xff]  }
 0x242   : > { %2363 = vmatpush1.bf16.msra.mxu0 %v7231_v47 }
 0x248   : > { %2192 = vmatmul.mubr.bf16.gmra.mxu1 %v8235_v8 }
 0x249   : > { %2724 = vmatprep.mubr.bf16.mxu1 %v8523_v25  ;;  %v7236_v25 = vld [vmem:[%s10386_s11 + $0x54] ss:$8 sps:$4 sm:$0xff]  }
 0x24a   : > { %2364 = vmatprep.subr.bf16.mxu0 %v7236_v25  ;;  %v1991_v25 = vpop.f32.mrf.mxu0 }
 0x24b   : > { %2365 = vmatpush1.bf16.msra.mxu0 %v7234_v23 }
 0x24c   : > { %2366 = vmatprep.subr.bf16.mxu0 %v7239_v32 }
 0x24f   : > { %2367 = vmatpush1.bf16.msra.mxu0 %v7237_v12 }
 0x250   : > { %2368 = vmatprep.subr.bf16.mxu0 %v7242_v33 }
 0x253   : > { %2369 = vmatpush1.bf16.msra.mxu0 %v7240_v13  ;;  %v8745_v13 = vpop.f32.mrf.mxu0 }
 0x254   : > { %2370 = vmatprep.subr.bf16.mxu0 %v7245_v15 }
 0x257   : > { %2371 = vmatpush1.bf16.msra.mxu0 %v7243_v41 }
 0x258   : > { %2372 = vmatprep.subr.bf16.mxu0 %v7248_v17 }
 0x25b   : > { %2373 = vmatpush1.bf16.msra.mxu0 %v7246_v21 }
 0x25c   : > { %2374 = vmatprep.subr.bf16.mxu0 %v7251_v18  ;;  %v1995_v18 = vpop.f32.mrf.mxu0 }
 0x25f   : > { %2375 = vmatpush1.bf16.msra.mxu0 %v7249_v44 }
 0x260   : > { %6788 = vmatprep.subr.bf16.mxu0 %v8711_v26 }
 0x2cf   : > { %v1888_v59 = vpop.f32.mrf.mxu1 }
 0x2d0   : > { %v1889_v28 = vadd.f32 %v1888_v59, %v1527_v22 }
 0x2d1   : > { %v8729_v2 = vpop.f32.mrf.mxu1 }
 0x2d2   : > { %v1962_v54 = vadd.f32 %v1961_v62, %v1889_v28 }
 0x2d3   : > { %v1892_v58 = vpop.f32.mrf.mxu1 }
 0x2d4   : > { %v1893_v63 = vadd.f32 %v1892_v58, %v1527_v22  ;;  %2865 = vxpose.xlu1.b32.start [1/8] (short) (narrow) %v1962_v54, 16 }
 0x2d5   : > { %v8731_v5 = vpop.f32.mrf.mxu1 }
 0x2d6   : > { %v1966_v9 = vadd.f32 %v1965_v36, %v1893_v63 }
 0x2d7   : > { %v1898_v7 = vpop.f32.mrf.mxu1 }
 0x2d8   : > { %v1899_v10 = vadd.f32 %v1898_v7, %v1527_v22  ;;  %2866 = vxpose.xlu1.b32.cont [2/8] (short) (narrow) %v1966_v9, 16 }
 0x2d9   : > { %v8735_v14 = vpop.f32.mrf.mxu1 }
 0x2da   : > { %v1972_v30 = vadd.f32 %v1971_v49, %v1899_v10 }
 0x2db   : > { %v1902_v51 = vpop.f32.mrf.mxu1 }
 0x2dc   : > { %v1903_v0 = vadd.f32 %v1902_v51, %v1527_v22  ;;  %2867 = vxpose.xlu1.b32.cont [3/8] (short) (narrow) %v1972_v30, 16 }
 0x2dd   : > { %v8737_v4 = vpop.f32.mrf.mxu1 }
 0x2de   : > { %v1976_v29 = vadd.f32 %v1975_v46, %v1903_v0  ;;  %v6274_v46 = vld [vmem:[%s10385_s10] ss:$0 sm:$0xff] }
 0x2e0   : > { %v1908_v16 = vpop.f32.mrf.mxu1  ;;  %2868 = vxpose.xlu1.b32.cont [4/8] (short) (narrow) %v1976_v29, 16 }
 0x2e1   : > { %v1909_v24 = vadd.f32 %v1908_v16, %v1527_v22 }
 0x2e2   : > { %v8741_v11 = vpop.f32.mrf.mxu1 }
 0x2e3   : > { %v1982_v39 = vadd.f32 %v1981_v3, %v1909_v24 }
 0x2e4   : > { %v1912_v47 = vpop.f32.mrf.mxu1 }
 0x2e5   : > { %v1913_v23 = vadd.f32 %v1912_v47, %v1527_v22  ;;  %2869 = vxpose.xlu1.b32.cont [5/8] (short) (narrow) %v1982_v39, 16 }
 0x2e6   : > { %v8743_v32 = vpop.f32.mrf.mxu1 }
 0x2e7   : > { %v1986_v12 = vadd.f32 %v1985_v1, %v1913_v23 }
 0x2e8   : > { %v1918_v33 = vpop.f32.mrf.mxu1 }
 0x2e9   : > { %v1919_v15 = vadd.f32 %v1918_v33, %v1527_v22  ;;  %2870 = vxpose.xlu1.b32.cont [6/8] (short) (narrow) %v1986_v12, 16 }
 0x2ea   : > { %v8747_v41 = vpop.f32.mrf.mxu1 }
 0x2eb   : > { %v1992_v17 = vadd.f32 %v1991_v25, %v1919_v15 }
 0x2ec   : > { %v1922_v21 = vpop.f32.mrf.mxu1 }
 0x2ed   : > { %v1923_v44 = vadd.f32 %v1922_v21, %v1527_v22  ;;  %2871 = vxpose.xlu1.b32.cont [7/8] (short) (narrow) %v1992_v17, 16 }
 0x2ee   : > { %v8749_v62 = vpop.f32.mrf.mxu1 }
 0x2ef   : > { %v1996_v36 = vadd.f32 %v1995_v18, %v1923_v44 }
 0x2f0   : > { %v6544_v49 = vpop.f32.mrf.mxu1 }
 0x2f1   : > { %2872 = vxpose.xlu1.b32.end [8/8] (short) (narrow) %v1996_v36, 16 }
 0x2f2   : > { %v6545_v59 = vpop.f32.mrf.mxu1 }
 0x2f3   : > { %v6546_v28 = vadd.f32 %v6545_v59, %v6544_v49 }
 0x2f4   : > { %v6547_v54 = vpop.f32.mrf.mxu1 }
 0x2f5   : > { %v2170_v58 = vadd.f32 %v6546_v28, %v6274_v46 }
 0x2f6   : > { %v6548_v63 = vpop.f32.mrf.mxu1 }
 0x2f7   : > { %v2208_v3 = vmin.f32 %v2170_v58, 0.0  ;;  %v6549_v9 = vadd.f32 %v6548_v63, %v6547_v54  ;;  %vm2200_vm0 = vcmp.gt.f32.partialorder %v2170_v58, 0.0 }
 0x2f8   : > { %v6550_v7 = vpop.f32.mrf.mxu1 }
 0x2f9   : > { %v2216_v10 = vmul.f32 1.442695, %v2208_v3  ;;  %v2173_v22 = vadd.f32 %v6549_v9, %v6274_v46 }
 0x2fa   : > { %v6551_v30 = vpop.f32.mrf.mxu1 }
 0x2fb   : > { %7412 = vpow2.f32 %v2216_v10  ;;  %v2209_v51 = vmin.f32 %v2173_v22, 0.0  ;;  %v6552_v0 = vadd.f32 %v6551_v30, %v6550_v7  ;;  %vm2201_vm1 = vcmp.gt.f32.partialorder %v2173_v22, 0.0 }
 0x2fc   : > { %v6553_v1 = vpop.f32.mrf.mxu1 }
 0x2fd   : > { %v2218_v29 = vmul.f32 1.442695, %v2209_v51  ;;  %v2178_v16 = vadd.f32 %v6552_v0, %v6274_v46 }
 0x2fe   : > { %v6554_v24 = vpop.f32.mrf.mxu1 }
 0x2ff   : > { %7414 = vpow2.f32 %v2218_v29  ;;  %v2210_v39 = vmin.f32 %v2178_v16, 0.0  ;;  %v6555_v47 = vadd.f32 %v6554_v24, %v6553_v1  ;;  %vm2202_vm2 = vcmp.gt.f32.partialorder %v2178_v16, 0.0 }
 0x300   : > { %v6556_v25 = vpop.f32.mrf.mxu1 }
 0x301   : > { %v2220_v23 = vmul.f32 1.442695, %v2210_v39  ;;  %v2181_v12 = vadd.f32 %v6555_v47, %v6274_v46 }
 0x302   : > { %v6557_v33 = vpop.f32.mrf.mxu1 }
 0x303   : > { %7416 = vpow2.f32 %v2220_v23  ;;  %v2211_v15 = vmin.f32 %v2181_v12, 0.0  ;;  %v6558_v17 = vadd.f32 %v6557_v33, %v6556_v25  ;;  %vm2203_vm3 = vcmp.gt.f32.partialorder %v2181_v12, 0.0 }
 0x304   : > { %v6559_v21 = vpop.f32.mrf.mxu1 }
 0x305   : > { %v2222_v18 = vmul.f32 1.442695, %v2211_v15  ;;  %v8754_v44 = vadd.f32 %v6558_v17, %v6274_v46 }
 0x306   : > { %v6560_v36 = vpop.f32.mrf.mxu1 }
 0x307   : > { %7418 = vpow2.f32 %v2222_v18  ;;  %v2212_v49 = vmin.f32 %v8754_v44, 0.0  ;;  %v6561_v59 = vadd.f32 %v6560_v36, %v6559_v21  ;;  %v7253_v21 = vld [vmem:[%s10388_s13 + $0xb0] sm:$0xff]   ;;  %vm2204_vm4 = vcmp.gt.f32.partialorder %v8754_v44, 0.0 }
 0x308   : > { %v7413_v28 = vpop.eup %7412  ;;  %v6562_v54 = vpop.f32.mrf.mxu1 }
 0x309   : > { %v2224_v63 = vmul.f32 1.442695, %v2212_v49  ;;  %v2189_v3 = vadd.f32 %v6561_v59, %v6274_v46  ;;  %v6291_v7 = vadd.f32 -1.0, %v7413_v28  ;;  %v7254_v59 = vld [vmem:[%s10388_s13 + $0xa8] sm:$0xff]  }
 0x30a   : > { %v6563_v9 = vpop.f32.mrf.mxu1 }
 0x30b   : > { %7420 = vpow2.f32 %v2224_v63  ;;  %v2213_v10 = vmin.f32 %v2189_v3, 0.0  ;;  %v6564_v51 = vadd.f32 %v6563_v9, %v6562_v54  ;;  %v2240_v47 = vsel %vm2200_vm0, %v2170_v58, %v6291_v7  ;;  %v7255_v7 = vld [vmem:[%s10388_s13 + $0xa0] sm:$0xff]  }
 0x30c   : > { %v7415_v30 = vpop.eup %7414  ;;  %v6565_v0 = vpop.f32.mrf.mxu1  ;;  %vm2205_vm5 = vcmp.gt.f32.partialorder %v2189_v3, 0.0 }
 0x30d   : > { %v6292_v1 = vadd.f32 -1.0, %v7415_v30  ;;  %v2226_v29 = vmul.f32 1.442695, %v2213_v10  ;;  %v8757_v24 = vadd.f32 %v6564_v51, %v6274_v46  ;;  %v7256_v51 = vld [vmem:[%s10388_s13 + $0x98] sm:$0xff]  }
 0x30e   : > { %v6566_v39 = vpop.f32.mrf.mxu1 }
 0x30f   : > { %v2241_v25 = vsel %vm2201_vm1, %v2173_v22, %v6292_v1  ;;  %7422 = vpow2.f32 %v2226_v29  ;;  %v6567_v23 = vadd.f32 %v6566_v39, %v6565_v0  ;;  %v2214_v17 = vmin.f32 %v8757_v24, 0.0  ;;  %v7257_v29 = vld [vmem:[%s10388_s13 + $0x90] sm:$0xff]  }
 0x310   : > { %v7417_v33 = vpop.eup %7416  ;;  %v2248_v15 = vpack.c.bf16 %v2241_v25, %v2240_v47  ;;  %vm2206_vm6 = vcmp.gt.f32.partialorder %v8757_v24, 0.0 }
 0x311   : > { %v2197_v18 = vadd.f32 %v6567_v23, %v6274_v46  ;;  %v2228_v36 = vmul.f32 1.442695, %v2214_v17  ;;  %v6293_v58 = vadd.f32 -1.0, %v7417_v33  ;;  %v1531_v23 = vrot.slane %v8723_v42, %v8562_v56 }
 0x312   : > { %2393 = vmatmul.mubr.bf16.vlgmr.msra.gmra.mxu0 %v2248_v15  ;;  %v1997_v15 = vpop.f32.mrf.mxu0 }
 0x313   : > { %v2215_v49 = vmin.f32 %v2197_v18, 0.0  ;;  %6789 = vmatpush3.bf16.msra.mxu0 %v8711_v26  ;;  %2402 = vmatprep.mubr.bf16.mxu0 %v10397_v20  ;;  %7424 = vpow2.f32 %v2228_v36  ;;  %v2242_v46 = vsel %vm2202_vm2, %v2178_v16, %v6293_v58  ;;  %v1925_v33 = vadd.f32 %v8749_v62, %v1531_v23 }
 0x314   : > { %v7419_v22 = vpop.eup %7418  ;;  %6790 = vmatprep.subr.bf16.mxu0 %v7253_v21  ;;  %vm2207_vm7 = vcmp.gt.f32.partialorder %v2197_v18, 0.0  ;;  %v1921_v36 = vadd.f32 %v8747_v41, %v1531_v23  ;;  %v1915_v58 = vadd.f32 %v8743_v32, %v1531_v23  ;;  %v1911_v62 = vadd.f32 %v8741_v11, %v1531_v23 }
 0x315   : > { %v2230_v28 = vmul.f32 1.442695, %v2215_v49  ;;  %v6294_v54 = vadd.f32 -1.0, %v7419_v22  ;;  %v7259_v49 = vld [vmem:[%s10388_s13 + $0x80] sm:$0xff]   ;;  %v1998_v22 = vadd.f32 %v1997_v15, %v1925_v33  ;;  %v1905_v41 = vadd.f32 %v8737_v4, %v1531_v23 }
 0x316   : > { %v1984_v32 = vadd.f32 %v8733_v57, %v1911_v62  ;;  %v1891_v4 = vadd.f32 %v8729_v2, %v1531_v23  ;;  %v7265_v2 = vld [vmem:[%s10388_s13 + $0x28] sm:$0xff]  }
 0x317   : > { %7426 = vpow2.f32 %v2230_v28  ;;  %6791 = vmatpush3.bf16.msra.mxu0 %v7253_v21  ;;  %v2243_v63 = vsel %vm2203_vm3, %v2181_v12, %v6294_v54  ;;  %v1901_v28 = vadd.f32 %v8735_v14, %v1531_v23  ;;  %v1978_v11 = vadd.f32 %v8727_v48, %v1905_v41 }
 0x318   : > { %v7421_v9 = vpop.eup %7420  ;;  %6792 = vmatprep.subr.bf16.mxu0 %v7254_v59  ;;  %v2249_v26 = vpack.c.bf16 %v2243_v63, %v2242_v46  ;;  %v1964_v48 = vadd.f32 %v8714_v34, %v1891_v4  ;;  %v7261_v34 = vld [vmem:[%s10388_s13 + $0x38] sm:$0xff]   ;;  %vm2841_vm3 = vcmp.gt.s32.totalorder %v8559_v53, 0 }
 0x319   : > { %v6295_v10 = vadd.f32 -1.0, %v7421_v9  ;;  %v1974_v14 = vadd.f32 %v8718_v52, %v1901_v28  ;;  %v7264_v52 = vld [vmem:[%s10388_s13 + $0x68] sm:$0xff]   ;;  %v7268_v46 = vld [vmem:[%s10388_s13 + $0x58] sm:$0xff]   ;;  %v7270_v9 = vld [vmem:[%s10388_s13 + $0x50] sm:$0xff]  }
 0x31a   : > { %2403 = vmatmul.mubr.bf16.gmra.mxu0 %v2249_v26  ;;  %v7269_v63 = vld [vmem:[%s10388_s13 + $0x18] sm:$0xff]   ;;  %v7271_v26 = vld [vmem:[%s10388_s13 + $0x10] sm:$0xff]  }
 0x31b   : > { %6793 = vmatpush3.bf16.msra.mxu0 %v7254_v59  ;;  %2412 = vmatprep.mubr.bf16.mxu0 %v10397_v20  ;;  %v2244_v12 = vsel %vm2204_vm4, %v8754_v44, %v6295_v10  ;;  %v7258_v44 = vld [vmem:[%s10388_s13 + $0x88] sm:$0xff]   ;;  %vm5417_vm4 = vcmask 31744  }
 0x31c   : > { %v7423_v30 = vpop.eup %7422  ;;  %6794 = vmatprep.subr.bf16.mxu0 %v7255_v7  ;;  %v7273_v10 = vld [vmem:[%s10388_s13 + $0x8] sm:$0xff]  }
 0x31d   : > { %v6296_v16 = vadd.f32 -1.0, %v7423_v30  ;;  %v7274_v30 = vld [vmem:[%s10388_s13 + $0x40] sm:$0xff]  }
 0x31f   : > { %6795 = vmatpush3.bf16.msra.mxu0 %v7255_v7  ;;  %v2245_v0 = vsel %vm2205_vm5, %v2189_v3, %v6296_v16  ;;  %v7272_v7 = vld [vmem:[%s10388_s13 + $0x48] sm:$0xff]   ;;  %vm5426_vm5 = vcmask 48128  }
 0x320   : > { %6796 = vmatprep.subr.bf16.mxu0 %v7256_v51  ;;  %v2250_v1 = vpack.c.bf16 %v2245_v0, %v2244_v12  ;;  %v7425_v39 = vpop.eup %7424 }
 0x321   : > { %v6297_v47 = vadd.f32 -1.0, %v7425_v39 }
 0x322   : > { %2413 = vmatmul.mubr.bf16.gmra.mxu0 %v2250_v1  ;;  %v2268_v1 = vld [vmem:[%s10387_s12] sm:$0x3] }
 0x323   : > { %6797 = vmatpush3.bf16.msra.mxu0 %v7256_v51  ;;  %2422 = vmatprep.mubr.bf16.mxu0 %v10397_v20  ;;  %v2246_v17 = vsel %vm2206_vm6, %v8757_v24, %v6297_v47  ;;  %v1994_v24 = vadd.f32 %v8745_v13, %v1921_v36  ;;  %v7267_v13 = vld [vmem:[%s10388_s13 + $0x20] sm:$0xff]   ;;  %vm5435_vm6 = vcmask 64512  }
 0x324   : > { %v7427_v25 = vpop.eup %7426  ;;  %6798 = vmatprep.subr.bf16.mxu0 %v7257_v29  ;;  %v7275_v51 = vld [vmem:[%s10388_s13] sm:$0xff]  }
 0x325   : > { %v6298_v3 = vadd.f32 -1.0, %v7427_v25  ;;  %v8799_v59 = vpack.c.bf16 %v1998_v22, %v1994_v24 }
 0x327   : > { %6799 = vmatpush3.bf16.msra.mxu0 %v7257_v29  ;;  %v2247_v21 = vsel %vm2207_vm7, %v2197_v18, %v6298_v3  ;;  %v1988_v18 = vadd.f32 %v8739_v31, %v1915_v58  ;;  %v8815_v31 = vpack.c.bf16 %v1978_v11, %v1974_v14  ;;  %v2277_v29 = vrot.slane %v2268_v1, %v8562_v56 }
 0x328   : > { %6800 = vmatprep.subr.bf16.mxu0 %v7258_v44  ;;  %v2251_v42 = vpack.c.bf16 %v2247_v21, %v2246_v17  ;;  %vm5444_vm7 = vcmask 80896  }
 0x329   : > { %v8806_v54 = vpack.c.bf16 %v1988_v18, %v1984_v32  ;;  %10473 = vst [vmem:[#allocation10_spill] sm:$0xff] %v8815_v31 }
 0x32a   : > { %2423 = vmatmul.mubr.bf16.gmra.mxu0 %v2251_v42 }
 0x32b   : > { %6801 = vmatpush3.bf16.msra.mxu0 %v7258_v44  ;;  %6804 = vmatprep.mubr.bf16.mxu0 %v8519_v43  ;;  %v1895_v43 = vadd.f32 %v8731_v5, %v1531_v23  ;;  %10472 = vst [vmem:[#allocation9_spill] sm:$0xff] %v8806_v54  ;;  %v7266_v5 = vld [vmem:[%s10388_s13 + $0x60] sm:$0xff]  }
 0x32c   : > { %6802 = vmatprep.subr.bf16.mxu0 %v7259_v49 }
 0x32d   : > { %v1968_v57 = vadd.f32 %v8716_v6, %v1895_v43  ;;  %v7263_v6 = vld [vmem:[%s10388_s13 + $0x30] sm:$0xff]  }
 0x32f   : > { %6803 = vmatpush3.bf16.msra.mxu0 %v7259_v49 }
 0x330   : > { %6822 = vmatprep.subr.bf16.mxu0 %v8799_v59 }
 0x332   : > { %6805 = vmatmul.mubr.bf16.vlgmr.msra.gmra.mxu0 %v8529_v27  ;;  %v8820_v27 = vpack.c.bf16 %v1968_v57, %v1964_v48 }
 0x333   : > { %6823 = vmatpush3.bf16.msra.mxu0 %v8799_v59  ;;  %6808 = vmatprep.mubr.bf16.mxu0 %v8539_v37  ;;  %v7260_v37 = vld [vmem:[%s10388_s13 + $0x78] sm:$0xff]  }
 0x334   : > { %6824 = vmatprep.subr.bf16.mxu0 %v8806_v54  ;;  %10474 = vst [vmem:[#allocation11_spill] sm:$0xff] %v8820_v27  ;;  %6568 = vmatprep.subr.bf16.mxu1 %v7260_v37 }
 0x335   : > { %6569 = vmatpush3.bf16.msra.mxu1 %v7261_v34 }
 0x337   : > { %6825 = vmatpush3.bf16.msra.mxu0 %v8806_v54 }
 0x338   : > { %6826 = vmatprep.subr.bf16.mxu0 %v8815_v31 }
 0x33a   : > { %6809 = vmatmul.mubr.bf16.gmra.mxu0 %v8549_v55  ;;  %v7262_v55 = vld [vmem:[%s10388_s13 + $0x70] sm:$0xff]  }
 0x33b   : > { %6827 = vmatpush3.bf16.msra.mxu0 %v8815_v31  ;;  %6570 = vmatprep.subr.bf16.mxu1 %v7262_v55 }
 0x33c   : > { %6828 = vmatprep.subr.bf16.mxu0 %v8820_v27  ;;  %6571 = vmatpush3.bf16.msra.mxu1 %v7263_v6 }
 0x33d   : > { %6572 = vmatprep.subr.bf16.mxu1 %v7264_v52 }
 0x33f   : > { %6829 = vmatpush3.bf16.msra.mxu0 %v8820_v27 }
 0x340   : > { %6573 = vmatpush3.bf16.msra.mxu1 %v7265_v2 }
 0x341   : > { %6574 = vmatprep.subr.bf16.mxu1 %v7266_v5 }
 0x344   : > { %6575 = vmatpush3.bf16.msra.mxu1 %v7267_v13 }
 0x345   : > { %6576 = vmatprep.subr.bf16.mxu1 %v7268_v46 }
 0x348   : > { %6577 = vmatpush3.bf16.msra.mxu1 %v7269_v63 }
 0x349   : > { %6578 = vmatprep.subr.bf16.mxu1 %v7270_v9 }
 0x34c   : > { %6579 = vmatpush3.bf16.msra.mxu1 %v7271_v26 }
 0x34d   : > { %6580 = vmatprep.subr.bf16.mxu1 %v7272_v7 }
 0x350   : > { %6581 = vmatpush3.bf16.msra.mxu1 %v7273_v10  ;;  %v2273_v10 = vrot.slane %v2268_v1, %v8581_v38 }
 0x351   : > { %6582 = vmatprep.subr.bf16.mxu1 %v7274_v30  ;;  %v2881_v16 = vpop.trf.xlu1 }
 0x354   : > { %6583 = vmatpush3.bf16.msra.mxu1 %v7275_v51 }
 0x355   : > { %v2882_v12 = vpop.trf.xlu1 }
 0x356   : > { %v8874_v0 = vpack.c.bf16 %v2882_v12, %v2881_v16 }
 0x358   : > { %7036 = vmatprep.subr.msk.bf16.mxu1 %vm2915_vm8, %v8874_v0 }
 0x3d2   : > { %v2394_v39 = vpop.f32.mrf.mxu0 }
 0x3d3   : > { %v2395_v12 = vadd.f32 %v2394_v39, %v2273_v10 }
 0x3d4   : > { %v2396_v47 = vpop.f32.mrf.mxu0 }
 0x3d5   : > { %v2397_v25 = vadd.f32 %v2396_v47, %v2277_v29 }
 0x3d6   : > { %v2398_v23 = vpop.f32.mrf.mxu0 }
 0x3d7   : > { %v6315_v44 = vmul.f32 -1.442695, %v2397_v25  ;;  %v2399_v47 = vadd.f32 %v2398_v23, %v2273_v10 }
 0x3d8   : > { %v2400_v3 = vpop.f32.mrf.mxu0 }
 0x3d9   : > { %7428 = vpow2.f32 %v6315_v44  ;;  %v2401_v33 = vadd.f32 %v2400_v3, %v2277_v29 }
 0x3da   : > { %v8882_v15 = vpop.f32.mrf.mxu0 }
 0x3db   : > { %v6316_v17 = vmul.f32 -1.442695, %v2401_v33  ;;  %v2405_v39 = vadd.f32 %v8882_v15, %v2273_v10 }
 0x3dc   : > { %v2406_v21 = vpop.f32.mrf.mxu0 }
 0x3dd   : > { %7430 = vpow2.f32 %v6316_v17  ;;  %v2407_v36 = vadd.f32 %v2406_v21, %v2277_v29  ;;  %v2917_v21 = vsel %vm2915_vm8, %v8874_v0, 0 }
 0x3de   : > { %v2408_v42 = vpop.f32.mrf.mxu0 }
 0x3df   : > { %v6317_v49 = vmul.f32 -1.442695, %v2407_v36  ;;  %v3187_v36 = vrot.slane %v8874_v0, 1  ;;  %v2409_v23 = vadd.f32 %v2408_v42, %v2273_v10 }
 0x3e0   : > { %v2410_v58 = vpop.f32.mrf.mxu0 }
 0x3e1   : > { %7432 = vpow2.f32 %v6317_v49  ;;  %v2411_v22 = vadd.f32 %v2410_v58, %v2277_v29 }
 0x3e2   : > { %v8884_v62 = vpop.f32.mrf.mxu0 }
 0x3e3   : > { %v6318_v24 = vmul.f32 -1.442695, %v2411_v22 }
 0x3e4   : > { %v2416_v41 = vpop.f32.mrf.mxu0 }
 0x3e5   : > { %7434 = vpow2.f32 %v6318_v24  ;;  %v2417_v18 = vadd.f32 %v2416_v41, %v2277_v29 }
 0x3e6   : > { %v7429_v28 = vpop.eup %7428  ;;  %v8886_v32 = vpop.f32.mrf.mxu0 }
 0x3e7   : > { %v2457_v43 = vadd.f32 1.0, %v7429_v28  ;;  %v6319_v11 = vmul.f32 -1.442695, %v2417_v18  ;;  %v2419_v15 = vadd.f32 %v8886_v32, %v2273_v10 }
 0x3e8   : > { %v2420_v4 = vpop.f32.mrf.mxu0 }
 0x3e9   : > { %v2421_v14 = vadd.f32 %v2420_v4, %v2277_v29  ;;  %7436 = vpow2.f32 %v6319_v11  ;;  %v2415_v11 = vadd.f32 %v8884_v62, %v2273_v10 }
 0x3ea   : > { %v7431_v57 = vpop.eup %7430  ;;  %v8888_v48 = vpop.f32.mrf.mxu0  ;;  %7438 = vrcp.f32 %v2457_v43 }
 0x3eb   : > { %v2458_v37 = vadd.f32 1.0, %v7431_v57  ;;  %v6320_v34 = vmul.f32 -1.442695, %v2421_v14 }
 0x3ec   : > { %v2426_v55 = vpop.f32.mrf.mxu0 }
 0x3ed   : > { %7440 = vrcp.f32 %v2458_v37  ;;  %v2427_v6 = vadd.f32 %v2426_v55, %v2277_v29 }
 0x3ee   : > { %v7433_v52 = vpop.eup %7432  ;;  %7442 = vpow2.f32 %v6320_v34  ;;  %v2428_v2 = vpop.f32.mrf.mxu0  ;;  %v2425_v34 = vadd.f32 %v8888_v48, %v2273_v10 }
 0x3ef   : > { %v2459_v5 = vadd.f32 1.0, %v7433_v52  ;;  %v6321_v13 = vmul.f32 -1.442695, %v2427_v6  ;;  %v2429_v55 = vadd.f32 %v2428_v2, %v2273_v10 }
 0x3f0   : > { %v2430_v46 = vpop.f32.mrf.mxu0 }
 0x3f1   : > { %v2431_v63 = vadd.f32 %v2430_v46, %v2277_v29  ;;  %7444 = vpow2.f32 %v6321_v13 }
 0x3f2   : > { %v7435_v9 = vpop.eup %7434  ;;  %7446 = vrcp.f32 %v2459_v5  ;;  %v6806_v13 = vpop.f32.mrf.mxu0 }
 0x3f3   : > { %v2460_v26 = vadd.f32 1.0, %v7435_v9  ;;  %v6322_v7 = vmul.f32 -1.442695, %v2431_v63 }
 0x3f4   : > { %v2791_v46 = vpop.f32.mrf.mxu0 }
 0x3f5   : > { %7448 = vrcp.f32 %v2460_v26  ;;  %v6323_v26 = vld [vmem:[%s10389_s14] ss:$0 sm:$0xff] }
 0x3f6   : > { %7450 = vpow2.f32 %v6322_v7  ;;  %v7437_v30 = vpop.eup %7436  ;;  %v6807_v7 = vpop.f32.mrf.mxu0 }
 0x3f7   : > { %v7439_v51 = vpop.eup %7438  ;;  %v2461_v16 = vadd.f32 1.0, %v7437_v30 }
 0x3f8   : > { %v2481_v3 = vmul.f32 %v7439_v51, %v2395_v12  ;;  %v2794_v10 = vpop.f32.mrf.mxu0 }
 0x3f9   : > { %7452 = vrcp.f32 %v2461_v16 }
 0x3fa   : > { %v7441_v25 = vpop.eup %7440 }
 0x3fb   : > { %v7443_v44 = vpop.eup %7442  ;;  %v2482_v33 = vmul.f32 %v7441_v25, %v2399_v47 }
 0x3fc   : > { %v2462_v29 = vadd.f32 1.0, %v7443_v44 }
 0x3fd   : > { %v2489_v17 = vpack.c.bf16 %v2482_v33, %v2481_v3 }
 0x3fe   : > { %7454 = vrcp.f32 %v2462_v29  ;;  %v7445_v1 = vpop.eup %7444 }
 0x3ff   : > { %2725 = vmatmul.mubr.bf16.vlgmr.msra.gmra.mxu1 %v2489_v17  ;;  %v7447_v49 = vpop.eup %7446  ;;  %v2463_v58 = vadd.f32 1.0, %v7445_v1 }
 0x400   : > { %2732 = vmatprep.mubr.bf16.mxu1 %v8533_v35  ;;  %6813 = vmatpush3.bf16.msra.mxu1 %v2917_v21  ;;  %v2483_v41 = vmul.f32 %v7447_v49, %v2405_v39  ;;  %v6810_v21 = vpop.f32.mrf.mxu0 }
 0x401   : > { %7037 = vmatprep.subr.msk.bf16.mxu1 %vm2915_vm8, %v3187_v36  ;;  %7456 = vrcp.f32 %v2463_v58 }
 0x402   : > { %v7449_v22 = vpop.eup %7448 }
 0x403   : > { %v7451_v24 = vpop.eup %7450  ;;  %v2484_v18 = vmul.f32 %v7449_v22, %v2409_v23  ;;  %v2807_v22 = vpop.f32.mrf.mxu0 }
 0x404   : > { %v2464_v28 = vadd.f32 1.0, %v7451_v24 }
 0x405   : > { %v2490_v43 = vpack.c.bf16 %v2484_v18, %v2483_v41 }
 0x406   : > { %7458 = vrcp.f32 %v2464_v28  ;;  %v7453_v35 = vpop.eup %7452 }
 0x407   : > { %2733 = vmatmul.mubr.bf16.gmra.mxu1 %v2490_v43  ;;  %v2485_v4 = vmul.f32 %v7453_v35, %v2415_v11  ;;  %v6811_v43 = vpop.f32.mrf.mxu0 }
 0x408   : > { %2740 = vmatprep.mubr.bf16.mxu1 %v8543_v40 }
 0x40b   : > { %v7455_v42 = vpop.eup %7454 }
 0x40c   : > { %v2486_v14 = vmul.f32 %v7455_v42, %v2419_v15  ;;  %v3201_v15 = vsel %vm2915_vm8, %v3187_v36, 0  ;;  %v3477_v42 = vrot.slane %v8874_v0, 2 }
 0x40e   : > { %v2491_v57 = vpack.c.bf16 %v2486_v14, %v2485_v4  ;;  %v7457_v37 = vpop.eup %7456 }
 0x40f   : > { %v2487_v52 = vmul.f32 %v7457_v37, %v2425_v34 }
 0x410   : > { %2741 = vmatmul.mubr.bf16.gmra.mxu1 %v2491_v57  ;;  %v2810_v57 = vpop.f32.mrf.mxu0 }
 0x411   : > { %2748 = vmatprep.mubr.bf16.mxu1 %v8553_v60 }
 0x413   : > { %v7459_v6 = vpop.eup %7458 }
 0x414   : > { %v2488_v5 = vmul.f32 %v7459_v6, %v2429_v55 }
 0x416   : > { %v2492_v40 = vpack.c.bf16 %v2488_v5, %v2487_v52 }
 0x418   : > { %2749 = vmatmul.mubr.bf16.gmra.mxu1 %v2492_v40 }
 0x4bf   : > { %v6584_v62 = vpop.f32.mrf.mxu1 }
 0x4c1   : > { %v6585_v32 = vpop.f32.mrf.mxu1 }
 0x4c2   : > { %v6586_v63 = vadd.f32 %v6585_v32, %v6584_v62 }
 0x4c3   : > { %v6587_v9 = vpop.f32.mrf.mxu1 }
 0x4c4   : > { %v2727_v48 = vadd.f32 %v6586_v63, %v6323_v26 }
 0x4c5   : > { %v6588_v60 = vpop.f32.mrf.mxu1 }
 0x4c6   : > { %v6589_v30 = vadd.f32 %v6588_v60, %v6587_v9  ;;  %v2792_v12 = vadd.f32 %v2791_v46, %v2727_v48  ;;  %v3763_v60 = vrot.slane %v8874_v0, 3 }
 0x4c7   : > { %v6590_v2 = vpop.f32.mrf.mxu1 }
 0x4c8   : > { %v2730_v51 = vadd.f32 %v6589_v30, %v6323_v26 }
 0x4c9   : > { %v6591_v16 = vpop.f32.mrf.mxu1 }
 0x4ca   : > { %v6592_v47 = vadd.f32 %v6591_v16, %v6590_v2  ;;  %v2795_v25 = vadd.f32 %v2794_v10, %v2730_v51  ;;  %v3777_v51 = vsel %vm2915_vm8, %v3763_v60, 0  ;;  %v4049_v16 = vrot.slane %v8874_v0, 4 }
 0x4cb   : > { %v6593_v44 = vpop.f32.mrf.mxu1 }
 0x4cc   : > { %v8907_v3 = vpack.c.bf16 %v2795_v25, %v2792_v12  ;;  %v2735_v29 = vadd.f32 %v6592_v47, %v6323_v26 }
 0x4cd   : > { %v6594_v33 = vpop.f32.mrf.mxu1 }
 0x4ce   : > { %v6595_v17 = vadd.f32 %v6594_v33, %v6593_v44  ;;  %3178 = vrot.lane.b32.xlu0 %v8907_v3, %s7821_s22  ;;  %6814 = vmatprep.mubr.msk.bf16.mxu1 %vm2902_vm9, %v8907_v3  ;;  %v2800_v58 = vadd.f32 %v6806_v13, %v2735_v29  ;;  %v4335_v33 = vrot.slane %v8874_v0, 5 }
 0x4d0   : > { %v2738_v1 = vadd.f32 %v6595_v17, %v6323_v26  ;;  %v6596_v49 = vpop.f32.mrf.mxu1 }
 0x4d2   : > { %v2803_v39 = vadd.f32 %v6807_v7, %v2738_v1  ;;  %v6597_v23 = vpop.f32.mrf.mxu1  ;;  %v3491_v7 = vsel %vm2915_vm8, %v3477_v42, 0 }
 0x4d3   : > { %v6598_v24 = vadd.f32 %v6597_v23, %v6596_v49  ;;  %v4349_v49 = vsel %vm2915_vm8, %v4335_v33, 0 }
 0x4d4   : > { %v2899_v41 = vpack.c.bf16 %v2803_v39, %v2800_v58  ;;  %v6599_v18 = vpop.f32.mrf.mxu1  ;;  %v4621_v58 = vrot.slane %v8874_v0, 6 }
 0x4d5   : > { %v2743_v35 = vadd.f32 %v6598_v24, %v6323_v26 }
 0x4d6   : > { %v6600_v28 = vpop.f32.mrf.mxu1  ;;  %3180 = vrot.lane.b32.xlu0 %v2899_v41, %s7821_s22  ;;  %3757 = vrot.lane.b32.xlu1 %v2899_v41, %s7822_s2 }
 0x4d7   : > { %v6601_v11 = vadd.f32 %v6600_v28, %v6599_v18  ;;  %6815 = vmatmul.mubr.msk.bf16.vlgmr.msra.gmra.mxu1 %vm2902_vm9, %v2899_v41  ;;  %v2808_v34 = vadd.f32 %v2807_v22, %v2743_v35  ;;  %v2825_v18 = vadd.s32 16, %v8559_v53  ;;  %v2832_v28 = vand.u32 127, %v1223_v50 }
 0x4d8   : > { %6839 = vmatpush3.bf16.msra.mxu1 %v3201_v15  ;;  %v6602_v4 = vpop.f32.mrf.mxu1  ;;  %v4907_v35 = vrot.slane %v8874_v0, 7  ;;  %v2824_v0 = vadd.s32 8, %v8559_v53 }
 0x4d9   : > { %v2746_v14 = vadd.f32 %v6601_v11, %v6323_v26  ;;  %7038 = vmatprep.subr.msk.bf16.mxu1 %vm2915_vm8, %v3477_v42  ;;  %vm9044_vm10 = vcmp.lt.s32.totalorder %v2832_v28, %v2825_v18  ;;  %vm9049_vm12 = vcmp.lt.s32.totalorder %v2832_v28, %v8559_v53 }
 0x4da   : > { %v6603_v37 = vpop.f32.mrf.mxu1  ;;  %4329 = vrot.lane.b32.xlu1 %v2899_v41, %s7823_s23  ;;  %vm9071_vm14 = vcmp.lt.s32.totalorder %v2832_v28, %v2824_v0 }
 0x4db   : > { %v2811_v55 = vadd.f32 %v2810_v57, %v2746_v14  ;;  %v6604_v6 = vadd.f32 %v6603_v37, %v6602_v4  ;;  %v2826_v4 = vadd.s32 24, %v8559_v53 }
 0x4dc   : > { %v6605_v52 = vpop.f32.mrf.mxu1 }
 0x4dd   : > { %v2900_v5 = vpack.c.bf16 %v2811_v55, %v2808_v34  ;;  %v2751_v40 = vadd.f32 %v6604_v6, %v6323_v26  ;;  %vm9066_vm13 = vcmp.lt.s32.totalorder %v2832_v28, %v2826_v4 }
 0x4de   : > { %v6606_v36 = vpop.f32.mrf.mxu1 }
 0x4df   : > { %v6607_v13 = vadd.f32 %v6606_v36, %v6605_v52  ;;  %3182 = vrot.lane.b32.xlu0 %v2900_v5, %s7821_s22  ;;  %6818 = vmatprep.mubr.msk.bf16.mxu1 %vm2902_vm9, %v2900_v5  ;;  %v2816_v46 = vadd.f32 %v6810_v21, %v2751_v40 }
 0x4e1   : > { %v2754_v62 = vadd.f32 %v6607_v13, %v6323_v26 }
 0x4e3   : > { %v2819_v32 = vadd.f32 %v6811_v43, %v2754_v62  ;;  %v4635_v43 = vsel %vm2915_vm8, %v4621_v58, 0 }
 0x4e5   : > { %v2901_v63 = vpack.c.bf16 %v2819_v32, %v2816_v46 }
 0x4e7   : > { %3184 = vrot.lane.b32.xlu0 %v2901_v63, %s7821_s22  ;;  %4333 = vrot.lane.b32.xlu1 %v2901_v63, %s7823_s23 }
 0x4e8   : > { %6819 = vmatmul.mubr.msk.bf16.gmra.mxu1 %vm2902_vm9, %v2901_v63 }
 0x4eb   : > { %3469 = vrot.lane.b32.xlu0 %v8907_v3, %s7824_s30  ;;  %4615 = vrot.lane.b32.xlu1 %v2899_v41, %s7825_s24 }
 0x4ef   : > { %3471 = vrot.lane.b32.xlu0 %v2899_v41, %s7824_s30  ;;  %4619 = vrot.lane.b32.xlu1 %v2901_v63, %s7825_s24 }
 0x4f3   : > { %3473 = vrot.lane.b32.xlu0 %v2900_v5, %s7824_s30  ;;  %4901 = vrot.lane.b32.xlu1 %v2899_v41, %s7826_s25 }
 0x4f7   : > { %3475 = vrot.lane.b32.xlu0 %v2901_v63, %s7824_s30  ;;  %4905 = vrot.lane.b32.xlu1 %v2901_v63, %s7826_s25 }
 0x4fb   : > { %3755 = vrot.lane.b32.xlu0 %v8907_v3, %s7822_s2  ;;  %3384 = vrot.lane.b32.xlu1 %v8806_v54, %s7821_s22 }
 0x4ff   : > { %3759 = vrot.lane.b32.xlu0 %v2900_v5, %s7822_s2  ;;  %3672 = vrot.lane.b32.xlu1 %v8799_v59, %s7824_s30 }
 0x503   : > { %3761 = vrot.lane.b32.xlu0 %v2901_v63, %s7822_s2  ;;  %3668 = vrot.lane.b32.xlu1 %v8815_v31, %s7824_s30 }
 0x507   : > { %4041 = vrot.lane.b32.xlu0 %v8907_v3, %s7827_s0  ;;  %3958 = vrot.lane.b32.xlu1 %v8799_v59, %s7822_s2 }
 0x50b   : > { %4043 = vrot.lane.b32.xlu0 %v2899_v41, %s7827_s0  ;;  %3954 = vrot.lane.b32.xlu1 %v8815_v31, %s7822_s2 }
 0x50f   : > { %4045 = vrot.lane.b32.xlu0 %v2900_v5, %s7827_s0  ;;  %4244 = vrot.lane.b32.xlu1 %v8799_v59, %s7827_s0 }
 0x513   : > { %4047 = vrot.lane.b32.xlu0 %v2901_v63, %s7827_s0  ;;  %4240 = vrot.lane.b32.xlu1 %v8815_v31, %s7827_s0 }
 0x517   : > { %4327 = vrot.lane.b32.xlu0 %v8907_v3, %s7823_s23  ;;  %4530 = vrot.lane.b32.xlu1 %v8799_v59, %s7823_s23 }
 0x51b   : > { %4331 = vrot.lane.b32.xlu0 %v2900_v5, %s7823_s23  ;;  %4526 = vrot.lane.b32.xlu1 %v8815_v31, %s7823_s23 }
 0x51f   : > { %4613 = vrot.lane.b32.xlu0 %v8907_v3, %s7825_s24  ;;  %4816 = vrot.lane.b32.xlu1 %v8799_v59, %s7825_s24 }
 0x523   : > { %4617 = vrot.lane.b32.xlu0 %v2900_v5, %s7825_s24  ;;  %4812 = vrot.lane.b32.xlu1 %v8815_v31, %s7825_s24 }
 0x527   : > { %4899 = vrot.lane.b32.xlu0 %v8907_v3, %s7826_s25  ;;  %4810 = vrot.lane.b32.xlu1 %v8820_v27, %s7825_s24  ;;  %v4063_v3 = vsel %vm2915_vm8, %v4049_v16, 0 }
 0x52b   : > { %4903 = vrot.lane.b32.xlu0 %v2900_v5, %s7826_s25 }
 0x52f   : > { %3386 = vrot.lane.b32.xlu0 %v8799_v59, %s7821_s22 }
 0x533   : > { %3382 = vrot.lane.b32.xlu0 %v8815_v31, %s7821_s22 }
 0x537   : > { %3380 = vrot.lane.b32.xlu0 %v8820_v27, %s7821_s22 }
 0x53b   : > { %3670 = vrot.lane.b32.xlu0 %v8806_v54, %s7824_s30 }
 0x53f   : > { %3666 = vrot.lane.b32.xlu0 %v8820_v27, %s7824_s30  ;;  %s7835_s30 = smov 14  }
 0x540   : > { %v3179_v9 = vpop.permute.xlu0 %3178 }
 0x541   : > { %6840 = vmatprep.mubr.msk.bf16.mxu1 %vm2902_vm9, %v3179_v9 }
 0x543   : > { %3956 = vrot.lane.b32.xlu0 %v8806_v54, %s7822_s2 }
 0x547   : > { %3952 = vrot.lane.b32.xlu0 %v8820_v27, %s7822_s2 }
 0x548   : > { %v3181_v26 = vpop.permute.xlu0 %3180 }
 0x549   : > { %6841 = vmatmul.mubr.msk.bf16.vlgmr.msra.gmra.mxu1 %vm2902_vm9, %v3181_v26 }
 0x54a   : > { %6865 = vmatpush3.bf16.msra.mxu1 %v3491_v7 }
 0x54b   : > { %4242 = vrot.lane.b32.xlu0 %v8806_v54, %s7827_s0  ;;  %7039 = vmatprep.subr.msk.bf16.mxu1 %vm2915_vm8, %v3763_v60  ;;  %v2829_v60 = vadd.s32 48, %v8559_v53 }
 0x54d   : > { %vm9097_vm15 = vcmp.lt.s32.totalorder %v2832_v28, %v2829_v60 }
 0x54f   : > { %4238 = vrot.lane.b32.xlu0 %v8820_v27, %s7827_s0  ;;  %s10597_s0 = sld [smem:[#allocation57_spill]] }
 0x551   : > { %v3183_v30 = vpop.permute.xlu0 %3182 }
 0x552   : > { %6844 = vmatprep.mubr.msk.bf16.mxu1 %vm2902_vm9, %v3183_v30  ;;  %v4921_v30 = vsel %vm2915_vm8, %v4907_v35, 0 }
 0x553   : > { %4528 = vrot.lane.b32.xlu0 %v8806_v54, %s7823_s23 }
 0x557   : > { %4524 = vrot.lane.b32.xlu0 %v8820_v27, %s7823_s23 }
 0x559   : > { %v3185_v48 = vpop.permute.xlu0 %3184 }
 0x55a   : > { %6845 = vmatmul.mubr.msk.bf16.gmra.mxu1 %vm2902_vm9, %v3185_v48  ;;  %v2827_v48 = vadd.s32 32, %v8559_v53 }
 0x55b   : > { %4814 = vrot.lane.b32.xlu0 %v8806_v54, %s7825_s24 }
 0x55c   : > { %vm9102_vm0 = vcmp.lt.s32.totalorder %v2832_v28, %v2827_v48 }
 0x55d   : > { %v3470_v2 = vpop.permute.xlu0 %3469 }
 0x55e   : > { %6866 = vmatprep.mubr.msk.bf16.mxu1 %vm2902_vm9, %v3470_v2 }
 0x55f   : > { %5102 = vrot.lane.b32.xlu0 %v8799_v59, %s7826_s25  ;;  %v3758_v59 = vpop.permute.xlu1 %3757 }
 0x561   : > { %v3472_v10 = vpop.permute.xlu0 %3471 }
 0x562   : > { %6867 = vmatmul.mubr.msk.bf16.vlgmr.msra.gmra.mxu1 %vm2902_vm9, %v3472_v10  ;;  %v2830_v10 = vadd.s32 56, %v8559_v53 }
 0x563   : > { %6891 = vmatpush3.bf16.msra.mxu1 %v3777_v51  ;;  %v4330_v24 = vpop.permute.xlu1 %4329 }
 0x564   : > { %7040 = vmatprep.subr.msk.bf16.mxu1 %vm2915_vm8, %v4049_v16  ;;  %vm9113_vm1 = vcmp.lt.s32.totalorder %v2832_v28, %v2830_v10 }
 0x565   : > { %v3474_v12 = vpop.permute.xlu0 %3473 }
 0x566   : > { %6870 = vmatprep.mubr.msk.bf16.mxu1 %vm2902_vm9, %v3474_v12  ;;  %v2828_v12 = vadd.s32 40, %v8559_v53 }
 0x567   : > { %v4334_v14 = vpop.permute.xlu1 %4333 }
 0x568   : > { %vm9123_vm2 = vcmp.lt.s32.totalorder %v2832_v28, %v2828_v12 }
 0x569   : > { %v3476_v47 = vpop.permute.xlu0 %3475 }
 0x56a   : > { %6871 = vmatmul.mubr.msk.bf16.gmra.mxu1 %vm2902_vm9, %v3476_v47 }
 0x56b   : > { %v4616_v7 = vpop.permute.xlu1 %4615 }
 0x56d   : > { %v3756_v25 = vpop.permute.xlu0 %3755 }
 0x56e   : > { %6892 = vmatprep.mubr.msk.bf16.mxu1 %vm2902_vm9, %v3756_v25 }
 0x56f   : > { %v4620_v25 = vpop.permute.xlu1 %4619 }
 0x571   : > { %v3760_v44 = vpop.permute.xlu0 %3759 }
 0x572   : > { %6893 = vmatmul.mubr.msk.bf16.vlgmr.msra.gmra.mxu1 %vm2902_vm9, %v3758_v59 }
 0x573   : > { %6917 = vmatpush3.bf16.msra.mxu1 %v4063_v3  ;;  %6896 = vmatprep.mubr.msk.bf16.mxu1 %vm2902_vm9, %v3760_v44 }
 0x574   : > { %7041 = vmatprep.subr.msk.bf16.mxu1 %vm2915_vm8, %v4335_v33 }
 0x575   : > { %v3762_v29 = vpop.permute.xlu0 %3761 }
 0x579   : > { %v4042_v17 = vpop.permute.xlu0 %4041 }
 0x57a   : > { %6897 = vmatmul.mubr.msk.bf16.gmra.mxu1 %vm2902_vm9, %v3762_v29 }
 0x57b   : > { %6918 = vmatprep.mubr.msk.bf16.mxu1 %vm2902_vm9, %v4042_v17 }
 0x57d   : > { %v4044_v21 = vpop.permute.xlu0 %4043 }
 0x581   : > { %v4046_v1 = vpop.permute.xlu0 %4045 }
 0x582   : > { %6919 = vmatmul.mubr.msk.bf16.vlgmr.msra.gmra.mxu1 %vm2902_vm9, %v4044_v21 }
 0x583   : > { %6943 = vmatpush3.bf16.msra.mxu1 %v4349_v49  ;;  %6922 = vmatprep.mubr.msk.bf16.mxu1 %vm2902_vm9, %v4046_v1 }
 0x584   : > { %7042 = vmatprep.subr.msk.bf16.mxu1 %vm2915_vm8, %v4621_v58 }
 0x585   : > { %v4048_v39 = vpop.permute.xlu0 %4047 }
 0x589   : > { %v4328_v23 = vpop.permute.xlu0 %4327 }
 0x58a   : > { %6923 = vmatmul.mubr.msk.bf16.gmra.mxu1 %vm2902_vm9, %v4048_v39 }
 0x58b   : > { %6944 = vmatprep.mubr.msk.bf16.mxu1 %vm2902_vm9, %v4328_v23  ;;  %v4902_v23 = vpop.permute.xlu1 %4901 }
 0x58d   : > { %v4332_v22 = vpop.permute.xlu0 %4331 }
 0x591   : > { %v4614_v41 = vpop.permute.xlu0 %4613 }
 0x592   : > { %6945 = vmatmul.mubr.msk.bf16.vlgmr.msra.gmra.mxu1 %vm2902_vm9, %v4330_v24  ;;  %v4906_v24 = vpop.permute.xlu1 %4905 }
 0x593   : > { %6969 = vmatpush3.bf16.msra.mxu1 %v4635_v43  ;;  %6948 = vmatprep.mubr.msk.bf16.mxu1 %vm2902_vm9, %v4332_v22 }
 0x594   : > { %7043 = vmatprep.subr.msk.bf16.mxu1 %vm2915_vm8, %v4907_v35  ;;  %vm5453_vm8 = vcmask 97280  }
 0x595   : > { %v4618_v11 = vpop.permute.xlu0 %4617 }
 0x596   : > { %v9146_v18 = vpop.permute.xlu1 %3384 }
 0x597   : > { %v6816_v42 = vpop.f32.mrf.mxu1 }
 0x598   : > { %v9057_v57 = vsel %vm9044_vm10, %v6816_v42, -10000.0 }
 0x599   : > { %v4900_v37 = vpop.permute.xlu0 %4899  ;;  %v2953_v34 = vpop.f32.mrf.mxu1  ;;  %v2999_v55 = vsel %vm2992_vm11, %v9057_v57, -inf }
 0x59a   : > { %v9063_v6 = vsel %vm9049_vm12, %v2953_v34, -10000.0  ;;  %3000 = vmax.xlane.f32.xlu0 %v2999_v55  ;;  %6949 = vmatmul.mubr.msk.bf16.gmra.mxu1 %vm2902_vm9, %v4334_v14  ;;  %v9150_v43 = vpop.permute.xlu1 %3672 }
 0x59b   : > { %v6817_v5 = vpop.f32.mrf.mxu1  ;;  %6970 = vmatprep.mubr.msk.bf16.mxu1 %vm2902_vm9, %v4614_v41  ;;  %v2993_v62 = vsel %vm2992_vm11, %v9063_v6, -inf  ;;  %10492 = vst [vmem:[#allocation13_spill] sm:$0xff] %v9150_v43 }
 0x59c   : > { %v9079_v46 = vsel %vm9066_vm13, %v6817_v5, -10000.0 }
 0x59d   : > { %v4904_v40 = vpop.permute.xlu0 %4903  ;;  %v2956_v13 = vpop.f32.mrf.mxu1  ;;  %v3002_v26 = vsel %vm2992_vm11, %v9079_v46, -inf }
 0x59e   : > { %v9083_v32 = vsel %vm9071_vm14, %v2956_v13, -10000.0  ;;  %2994 = vmax.xlane.f32.xlu0 %v2993_v62 }
 0x59f   : > { %v2996_v63 = vsel %vm2992_vm11, %v9083_v32, -inf }
 0x5a0   : > { %2997 = vmax.xlane.f32.xlu1 %v2996_v63 }
 0x5a1   : > { %v9087_v9 = vpop.permute.xlu0 %3386 }
 0x5a2   : > { %6848 = vmatprep.subr.bf16.mxu0 %v9087_v9  ;;  %3003 = vmax.xlane.f32.xlu0 %v3002_v26 }
 0x5a3   : > { %6971 = vmatmul.mubr.msk.bf16.vlgmr.msra.gmra.mxu1 %vm2902_vm9, %v4616_v7 }
 0x5a4   : > { %6995 = vmatpush3.bf16.msra.mxu1 %v4921_v30  ;;  %6974 = vmatprep.mubr.msk.bf16.mxu1 %vm2902_vm9, %v4618_v11  ;;  %v9154_v11 = vpop.permute.xlu1 %3668 }
 0x5a5   : > { %v9144_v41 = vpop.permute.xlu0 %3382  ;;  %10494 = vst [vmem:[#allocation15_spill] sm:$0xff] %v9154_v11 }
 0x5a8   : > { %v6820_v51 = vpop.f32.mrf.mxu1  ;;  %v9158_v4 = vpop.permute.xlu1 %3958 }
 0x5a9   : > { %v9109_v47 = vsel %vm9097_vm15, %v6820_v51, -10000.0  ;;  %v9148_v28 = vpop.permute.xlu0 %3380  ;;  %10496 = vst [vmem:[#allocation17_spill] sm:$0xff] %v9158_v4 }
 0x5aa   : > { %v2969_v59 = vpop.f32.mrf.mxu1  ;;  %v3011_v44 = vsel %vm2992_vm11, %v9109_v47, -inf  ;;  %10491 = vst [vmem:[#allocation12_spill] sm:$0xff] %v9148_v28 }
 0x5ab   : > { %v9119_v33 = vsel %vm9102_vm0, %v2969_v59, -10000.0  ;;  %3012 = vmax.xlane.f32.xlu1 %v3011_v44  ;;  %6975 = vmatmul.mubr.msk.bf16.gmra.mxu1 %vm2902_vm9, %v4620_v25 }
 0x5ac   : > { %v6821_v29 = vpop.f32.mrf.mxu1  ;;  %6996 = vmatprep.mubr.msk.bf16.mxu1 %vm2902_vm9, %v4900_v37  ;;  %v3005_v49 = vsel %vm2992_vm11, %v9119_v33, -inf  ;;  %v9162_v14 = vpop.permute.xlu1 %3954 }
 0x5ad   : > { %v9129_v21 = vsel %vm9113_vm1, %v6821_v29, -10000.0  ;;  %v9152_v35 = vpop.permute.xlu0 %3670  ;;  %10498 = vst [vmem:[#allocation19_spill] sm:$0xff] %v9162_v14 }
 0x5ae   : > { %v2972_v1 = vpop.f32.mrf.mxu1  ;;  %v3014_v58 = vsel %vm2992_vm11, %v9129_v21, -inf  ;;  %10493 = vst [vmem:[#allocation14_spill] sm:$0xff] %v9152_v35 }
 0x5af   : > { %v9137_v39 = vsel %vm9123_vm2, %v2972_v1, -10000.0  ;;  %3006 = vmax.xlane.f32.xlu1 %v3005_v49  ;;  %3015 = vmax.xlane.f32.xlu0 %v3014_v58 }
 0x5b0   : > { %v3008_v22 = vsel %vm2992_vm11, %v9137_v39, -inf  ;;  %v9166_v34 = vpop.permute.xlu1 %4244 }
 0x5b1   : > { %v9156_v42 = vpop.permute.xlu0 %3666  ;;  %10500 = vst [vmem:[#allocation21_spill] sm:$0xff] %v9166_v34 }
 0x5b2   : > { %10495 = vst [vmem:[#allocation16_spill] sm:$0xff] %v9156_v42 }
 0x5b3   : > { %3009 = vmax.xlane.f32.xlu0 %v3008_v22  ;;  %6997 = vmatmul.mubr.msk.bf16.vlgmr.msra.gmra.mxu1 %vm2902_vm9, %v4902_v23 }
 0x5b4   : > { %7000 = vmatprep.mubr.msk.bf16.mxu1 %vm2902_vm9, %v4904_v40  ;;  %v9170_v5 = vpop.permute.xlu1 %4240 }
 0x5b5   : > { %v9160_v0 = vpop.permute.xlu0 %3956  ;;  %10502 = vst [vmem:[#allocation23_spill] sm:$0xff] %v9170_v5 }
 0x5b6   : > { %10497 = vst [vmem:[#allocation18_spill] sm:$0xff] %v9160_v0 }
 0x5b8   : > { %v9180_v7 = vpop.permute.xlu1 %4530 }
 0x5b9   : > { %v9164_v37 = vpop.permute.xlu0 %3952  ;;  %10504 = vst [vmem:[#allocation25_spill] sm:$0xff] %v9180_v7 }
 0x5ba   : > { %10499 = vst [vmem:[#allocation20_spill] sm:$0xff] %v9164_v37 }
 0x5bb   : > { %7001 = vmatmul.mubr.msk.bf16.gmra.mxu1 %vm2902_vm9, %v4906_v24 }
 0x5bc   : > { %v9200_v44 = vpop.permute.xlu1 %4526 }
 0x5bd   : > { %v9168_v55 = vpop.permute.xlu0 %4242  ;;  %10506 = vst [vmem:[#allocation27_spill] sm:$0xff] %v9200_v44 }
 0x5be   : > { %10501 = vst [vmem:[#allocation22_spill] sm:$0xff] %v9168_v55 }
 0x5c0   : > { %v9206_v49 = vpop.permute.xlu1 %4816 }
 0x5c1   : > { %v9172_v40 = vpop.permute.xlu0 %4238  ;;  %10508 = vst [vmem:[#allocation29_spill] sm:$0xff] %v9206_v49 }
 0x5c2   : > { %10503 = vst [vmem:[#allocation24_spill] sm:$0xff] %v9172_v40 }
 0x5c5   : > { %v9186_v30 = vpop.permute.xlu0 %4528 }
 0x5c6   : > { %10505 = vst [vmem:[#allocation26_spill] sm:$0xff] %v9186_v30 }
 0x5c9   : > { %v9202_v29 = vpop.permute.xlu0 %4524 }
 0x5ca   : > { %10507 = vst [vmem:[#allocation28_spill] sm:$0xff] %v9202_v29 }
 0x5cd   : > { %v9208_v58 = vpop.permute.xlu0 %4814 }
 0x5ce   : > { %10509 = vst [vmem:[#allocation30_spill] sm:$0xff] %v9208_v58 }
 0x609   : > { %v6842_v13 = vpop.f32.mrf.mxu1 }
 0x60a   : > { %v9176_v62 = vsel %vm9044_vm10, %v6842_v13, -10000.0 }
 0x60b   : > { %v3237_v63 = vpop.f32.mrf.mxu1  ;;  %v3282_v26 = vsel %vm2992_vm11, %v9176_v62, -inf }
 0x60c   : > { %v9184_v60 = vsel %vm9049_vm12, %v3237_v63, -10000.0  ;;  %3283 = vmax.xlane.f32.xlu1 %v3282_v26 }
 0x60d   : > { %v6843_v48 = vpop.f32.mrf.mxu1  ;;  %v3276_v12 = vsel %vm2992_vm11, %v9184_v60, -inf }
 0x60e   : > { %v9190_v10 = vsel %vm9066_vm13, %v6843_v48, -10000.0  ;;  %v9220_v48 = vpop.permute.xlu1 %4812 }
 0x60f   : > { %v3240_v51 = vpop.f32.mrf.mxu1  ;;  %v3285_v25 = vsel %vm2992_vm11, %v9190_v10, -inf  ;;  %10510 = vst [vmem:[#allocation31_spill] sm:$0xff] %v9220_v48 }
 0x610   : > { %v9198_v59 = vsel %vm9071_vm14, %v3240_v51, -10000.0  ;;  %3277 = vmax.xlane.f32.xlu1 %v3276_v12  ;;  %3286 = vmax.xlane.f32.xlu0 %v3285_v25  ;;  %v9222_v51 = vpop.permute.xlu0 %5102 }
 0x611   : > { %v3279_v1 = vsel %vm2992_vm11, %v9198_v59, -inf  ;;  %10511 = vst [vmem:[#allocation32_spill] sm:$0xff] %v9222_v51 }
 0x612   : > { %v9245_v19 = vpop.permute.xlu1 %4810 }
 0x613   : > { %10512 = vst [vmem:[#allocation33_spill] sm:$0xff] %v9245_v19 }
 0x614   : > { %3280 = vmax.xlane.f32.xlu0 %v3279_v1 }
 0x61a   : > { %v6846_v23 = vpop.f32.mrf.mxu1 }
 0x61b   : > { %v9212_v22 = vsel %vm9097_vm15, %v6846_v23, -10000.0 }
 0x61c   : > { %v3253_v24 = vpop.f32.mrf.mxu1  ;;  %v3294_v13 = vsel %vm2992_vm11, %v9212_v22, -inf }
 0x61d   : > { %v9218_v63 = vsel %vm9102_vm0, %v3253_v24, -10000.0  ;;  %3295 = vmax.xlane.f32.xlu1 %v3294_v13 }
 0x61e   : > { %v6847_v26 = vpop.f32.mrf.mxu1  ;;  %v3288_v1 = vsel %vm2992_vm11, %v9218_v63, -inf }
 0x61f   : > { %v9226_v12 = vsel %vm9113_vm1, %v6847_v26, -10000.0 }
 0x620   : > { %v3256_v25 = vpop.f32.mrf.mxu1  ;;  %v3297_v23 = vsel %vm2992_vm11, %v9226_v12, -inf }
 0x621   : > { %v9234_v24 = vsel %vm9123_vm2, %v3256_v25, -10000.0  ;;  %3289 = vmax.xlane.f32.xlu1 %v3288_v1  ;;  %3298 = vmax.xlane.f32.xlu0 %v3297_v23 }
 0x622   : > { %v6868_v13 = vpop.f32.mrf.mxu1  ;;  %v3291_v61 = vsel %vm2992_vm11, %v9234_v24, -inf }
 0x623   : > { %v9238_v20 = vsel %vm9044_vm10, %v6868_v13, -10000.0  ;;  %v3001_v26 = vpop.xlane.xlu0 %3000 }
 0x624   : > { %v3019_v38 = vsub.f32 %v9057_v57, %v3001_v26  ;;  %v3527_v56 = vpop.f32.mrf.mxu1  ;;  %v3572_v8 = vsel %vm2992_vm11, %v9238_v20, -inf }
 0x625   : > { %v9249_v25 = vsel %vm9049_vm12, %v3527_v56, -10000.0  ;;  %3573 = vmax.xlane.f32.xlu1 %v3572_v8  ;;  %3292 = vmax.xlane.f32.xlu0 %v3291_v61 }
 0x626   : > { %v6869_v1 = vpop.f32.mrf.mxu1  ;;  %v3029_v23 = vmul.f32 1.442695, %v3019_v38  ;;  %v3566_v51 = vsel %vm2992_vm11, %v9249_v25, -inf }
 0x627   : > { %v9253_v57 = vsel %vm9066_vm13, %v6869_v1, -10000.0  ;;  %v2995_v13 = vpop.xlane.xlu0 %2994 }
 0x628   : > { %v3017_v26 = vsub.f32 %v9063_v6, %v2995_v13  ;;  %v3530_v45 = vpop.f32.mrf.mxu1  ;;  %v3575_v19 = vsel %vm2992_vm11, %v9253_v57, -inf  ;;  %7460 = vpow2.f32 %v3029_v23 }
 0x629   : > { %v9262_v8 = vsel %vm9071_vm14, %v3530_v45, -10000.0  ;;  %3567 = vmax.xlane.f32.xlu1 %v3566_v51  ;;  %3576 = vmax.xlane.f32.xlu0 %v3575_v19  ;;  %v2998_v61 = vpop.xlane.xlu1 %2997 }
 0x62a   : > { %v6872_v56 = vpop.f32.mrf.mxu1  ;;  %v3025_v38 = vmul.f32 1.442695, %v3017_v26  ;;  %v3018_v13 = vsub.f32 %v9083_v32, %v2998_v61  ;;  %v3569_v19 = vsel %vm2992_vm11, %v9262_v8, -inf }
 0x62b   : > { %v9266_v6 = vsel %vm9097_vm15, %v6872_v56, -10000.0  ;;  %v3004_v1 = vpop.xlane.xlu0 %3003 }
 0x62c   : > { %v3020_v48 = vsub.f32 %v9079_v46, %v3004_v1  ;;  %v3543_v58 = vpop.f32.mrf.mxu1  ;;  %v3584_v45 = vsel %vm2992_vm11, %v9266_v6, -inf  ;;  %7462 = vpow2.f32 %v3025_v38  ;;  %v3027_v46 = vmul.f32 1.442695, %v3018_v13 }
 0x62d   : > { %v9276_v51 = vsel %vm9102_vm0, %v3543_v58, -10000.0  ;;  %3585 = vmax.xlane.f32.xlu1 %v3584_v45  ;;  %3570 = vmax.xlane.f32.xlu0 %v3569_v19 }
 0x62e   : > { %v3031_v23 = vmul.f32 1.442695, %v3020_v48  ;;  %v6873_v26 = vpop.f32.mrf.mxu1  ;;  %v3578_v56 = vsel %vm2992_vm11, %v9276_v51, -inf }
 0x62f   : > { %v9280_v32 = vsel %vm9113_vm1, %v6873_v26, -10000.0 }
 0x630   : > { %7464 = vpow2.f32 %v3031_v23  ;;  %v3546_v61 = vpop.f32.mrf.mxu1  ;;  %v3587_v1 = vsel %vm2992_vm11, %v9280_v32, -inf }
 0x631   : > { %v9288_v58 = vsel %vm9123_vm2, %v3546_v61, -10000.0  ;;  %3579 = vmax.xlane.f32.xlu1 %v3578_v56  ;;  %3588 = vmax.xlane.f32.xlu0 %v3587_v1  ;;  %7466 = vpow2.f32 %v3027_v46 }
 0x632   : > { %v6894_v48 = vpop.f32.mrf.mxu1  ;;  %v3581_v45 = vsel %vm2992_vm11, %v9288_v58, -inf }
 0x633   : > { %v9292_v38 = vsel %vm9044_vm10, %v6894_v48, -10000.0 }
 0x634   : > { %v3813_v13 = vpop.f32.mrf.mxu1  ;;  %v3858_v19 = vsel %vm2992_vm11, %v9292_v38, -inf  ;;  %v3013_v61 = vpop.xlane.xlu1 %3012 }
 0x635   : > { %v9300_v23 = vsel %vm9049_vm12, %v3813_v13, -10000.0  ;;  %3582 = vmax.xlane.f32.xlu0 %v3581_v45  ;;  %3859 = vmax.xlane.f32.xlu1 %v3858_v19  ;;  %v9306_v46 = vpop.eup %7460  ;;  %v3023_v45 = vsub.f32 %v9109_v47, %v3013_v61 }
 0x636   : > { %v6895_v26 = vpop.f32.mrf.mxu1  ;;  %v3852_v1 = vsel %vm2992_vm11, %v9300_v23, -inf  ;;  %v3047_v44 = vsel %vm2992_vm11, %v9306_v46, 0.0 }
 0x637   : > { %v9304_v56 = vsel %vm9066_vm13, %v6895_v26, -10000.0 }
 0x638   : > { %v3861_v48 = vsel %vm2992_vm11, %v9304_v56, -inf  ;;  %v3816_v49 = vpop.f32.mrf.mxu1  ;;  %v3016_v19 = vpop.xlane.xlu0 %3015 }
 0x639   : > { %3853 = vmax.xlane.f32.xlu1 %v3852_v1  ;;  %3862 = vmax.xlane.f32.xlu0 %v3861_v48  ;;  %v9314_v13 = vsel %vm9071_vm14, %v3816_v49, -10000.0  ;;  %v9317_v29 = vpop.eup %7462  ;;  %v3007_v1 = vpop.xlane.xlu1 %3006  ;;  %v3037_v49 = vmul.f32 1.442695, %v3023_v45  ;;  %v3024_v40 = vsub.f32 %v9129_v21, %v3016_v19 }
 0x63a   : > { %v6898_v26 = vpop.f32.mrf.mxu1  ;;  %v3855_v30 = vsel %vm2992_vm11, %v9314_v13, -inf  ;;  %v3021_v61 = vsub.f32 %v9119_v33, %v3007_v1  ;;  %v3041_v5 = vsel %vm2992_vm11, %v9317_v29, 0.0 }
 0x63b   : > { %v9335_v37 = vsel %vm9097_vm15, %v6898_v26, -10000.0  ;;  %7468 = vpow2.f32 %v3037_v49  ;;  %v3039_v21 = vmul.f32 1.442695, %v3024_v40 }
 0x63c   : > { %v3829_v48 = vpop.f32.mrf.mxu1  ;;  %v3033_v33 = vmul.f32 1.442695, %v3021_v61  ;;  %v3870_v1 = vsel %vm2992_vm11, %v9335_v37, -inf }
 0x63d   : > { %v9323_v7 = vpop.eup %7464  ;;  %3048 = vadd.xlane.f32.xlu1 %v3047_v44  ;;  %3856 = vmax.xlane.f32.xlu0 %v3855_v30  ;;  %v3010_v44 = vpop.xlane.xlu0 %3009  ;;  %v9344_v26 = vsel %vm9102_vm0, %v3829_v48, -10000.0  ;;  %7470 = vpow2.f32 %v3039_v21 }
 0x63e   : > { %v6899_v47 = vpop.f32.mrf.mxu1  ;;  %v3050_v55 = vsel %vm2992_vm11, %v9323_v7, 0.0  ;;  %v9331_v34 = vpop.eup %7466  ;;  %v3022_v19 = vsub.f32 %v9137_v39, %v3010_v44  ;;  %7472 = vpow2.f32 %v3033_v33  ;;  %v3864_v61 = vsel %vm2992_vm11, %v9344_v26, -inf }
 0x63f   : > { %v3044_v14 = vsel %vm2992_vm11, %v9331_v34, 0.0 }
 0x640   : > { %v3832_v30 = vpop.f32.mrf.mxu1  ;;  %v3035_v39 = vmul.f32 1.442695, %v3022_v19 }
 0x641   : > { %3042 = vadd.xlane.f32.xlu1 %v3041_v5  ;;  %3051 = vadd.xlane.f32.xlu0 %v3050_v55  ;;  %v9348_v5 = vsel %vm9113_vm1, %v6899_v47, -10000.0  ;;  %v9356_v48 = vsel %vm9123_vm2, %v3832_v30, -10000.0 }
 0x642   : > { %v6920_v45 = vpop.f32.mrf.mxu1  ;;  %v3873_v49 = vsel %vm2992_vm11, %v9348_v5, -inf  ;;  %7474 = vpow2.f32 %v3035_v39  ;;  %v3867_v21 = vsel %vm2992_vm11, %v9356_v48, -inf }
 0x643   : > { %v9360_v47 = vsel %vm9044_vm10, %v6920_v45, -10000.0 }
 0x644   : > { %v4099_v55 = vpop.f32.mrf.mxu1  ;;  %v4144_v33 = vsel %vm2992_vm11, %v9360_v47, -inf }
 0x645   : > { %3871 = vmax.xlane.f32.xlu1 %v3870_v1  ;;  %3045 = vadd.xlane.f32.xlu0 %v3044_v14  ;;  %v9368_v19 = vsel %vm9049_vm12, %v4099_v55, -10000.0 }
 0x646   : > { %v6921_v40 = vpop.f32.mrf.mxu1 }
 0x647   : > { %v9372_v30 = vsel %vm9066_vm13, %v6921_v40, -10000.0 }
 0x648   : > { %v4102_v44 = vpop.f32.mrf.mxu1  ;;  %v4147_v39 = vsel %vm2992_vm11, %v9372_v30, -inf }
 0x649   : > { %3865 = vmax.xlane.f32.xlu1 %v3864_v61  ;;  %3874 = vmax.xlane.f32.xlu0 %v3873_v49  ;;  %v9374_v49 = vpop.eup %7468  ;;  %v4138_v61 = vsel %vm2992_vm11, %v9368_v19, -inf  ;;  %v9382_v55 = vsel %vm9071_vm14, %v4102_v44, -10000.0 }
 0x64a   : > { %v6924_v14 = vpop.f32.mrf.mxu1  ;;  %10513 = vst [vmem:[#allocation34_spill] sm:$0xff] %v9374_v49  ;;  %v9384_v4 = vpop.eup %7470 }
 0x64b   : > { %10514 = vst [vmem:[#allocation35_spill] sm:$0xff] %v9384_v4  ;;  %v9390_v42 = vpop.eup %7472  ;;  %v3062_v44 = vsel %vm2992_vm11, %v9384_v4, 0.0  ;;  %v9400_v27 = vsel %vm9097_vm15, %v6924_v14, -10000.0 }
 0x64c   : > { %v4115_v45 = vpop.f32.mrf.mxu1  ;;  %10515 = vst [vmem:[#allocation36_spill] sm:$0xff] %v9390_v42 }
 0x64d   : > { %4145 = vmax.xlane.f32.xlu1 %v4144_v33  ;;  %3868 = vmax.xlane.f32.xlu0 %v3867_v21  ;;  %v4141_v21 = vsel %vm2992_vm11, %v9382_v55, -inf  ;;  %v3059_v33 = vsel %vm2992_vm11, %v9374_v49, 0.0  ;;  %v9408_v49 = vsel %vm9102_vm0, %v4115_v45, -10000.0 }
 0x64e   : > { %v6925_v1 = vpop.f32.mrf.mxu1 }
 0x650   : > { %v4118_v0 = vpop.f32.mrf.mxu1 }
 0x651   : > { %4139 = vmax.xlane.f32.xlu1 %v4138_v61  ;;  %4148 = vmax.xlane.f32.xlu0 %v4147_v39  ;;  %v3053_v39 = vsel %vm2992_vm11, %v9390_v42, 0.0  ;;  %v9396_v61 = vpop.eup %7474  ;;  %v9412_v42 = vsel %vm9113_vm1, %v6925_v1, -10000.0  ;;  %v9420_v4 = vsel %vm9123_vm2, %v4118_v0, -10000.0 }
 0x652   : > { %v6946_v40 = vpop.f32.mrf.mxu1  ;;  %10516 = vst [vmem:[#allocation37_spill] sm:$0xff] %v9396_v61  ;;  %10517 = vst [vmem:[#allocation38_spill] sm:$0xff] %v9420_v4 }
 0x653   : > { %v9424_v45 = vsel %vm9044_vm10, %v6946_v40, -10000.0 }
 0x654   : > { %v4385_v11 = vpop.f32.mrf.mxu1  ;;  %10518 = vst [vmem:[#allocation39_spill] sm:$0xff] %v9424_v45  ;;  %v4430_v43 = vsel %vm2992_vm11, %v9424_v45, -inf }
 0x655   : > { %4142 = vmax.xlane.f32.xlu0 %v4141_v21  ;;  %3060 = vadd.xlane.f32.xlu1 %v3059_v33  ;;  %v3056_v21 = vsel %vm2992_vm11, %v9396_v61, 0.0  ;;  %v4156_v33 = vsel %vm2992_vm11, %v9400_v27, -inf  ;;  %v4150_v61 = vsel %vm2992_vm11, %v9408_v49, -inf  ;;  %v9432_v28 = vsel %vm9049_vm12, %v4385_v11, -10000.0 }
 0x656   : > { %v6947_v35 = vpop.f32.mrf.mxu1  ;;  %10519 = vst [vmem:[#allocation40_spill] sm:$0xff] %v9432_v28 }
 0x657   : > { %v9436_v0 = vsel %vm9066_vm13, %v6947_v35, -10000.0 }
 0x658   : > { %v4388_v54 = vpop.f32.mrf.mxu1  ;;  %10520 = vst [vmem:[#allocation41_spill] sm:$0xff] %v9436_v0 }
 0x659   : > { %3063 = vadd.xlane.f32.xlu0 %v3062_v44  ;;  %3054 = vadd.xlane.f32.xlu1 %v3053_v39  ;;  %v4159_v39 = vsel %vm2992_vm11, %v9412_v42, -inf  ;;  %v9444_v45 = vsel %vm9071_vm14, %v4388_v54, -10000.0 }
 0x65a   : > { %v6950_v31 = vpop.f32.mrf.mxu1  ;;  %10521 = vst [vmem:[#allocation42_spill] sm:$0xff] %v9444_v45 }
 0x65b   : > { %v9448_v11 = vsel %vm9097_vm15, %v6950_v31, -10000.0 }
 0x65c   : > { %v4401_v14 = vpop.f32.mrf.mxu1  ;;  %10522 = vst [vmem:[#allocation43_spill] sm:$0xff] %v9448_v11 }
 0x65d   : > { %3057 = vadd.xlane.f32.xlu0 %v3056_v21  ;;  %4157 = vmax.xlane.f32.xlu1 %v4156_v33  ;;  %v4153_v33 = vsel %vm2992_vm11, %v9420_v4, -inf  ;;  %v4424_v4 = vsel %vm2992_vm11, %v9432_v28, -inf  ;;  %v9456_v28 = vsel %vm9102_vm0, %v4401_v14, -10000.0 }
 0x65e   : > { %v6951_v44 = vpop.f32.mrf.mxu1  ;;  %10523 = vst [vmem:[#allocation44_spill] sm:$0xff] %v9456_v28 }
 0x660   : > { %v4404_v1 = vpop.f32.mrf.mxu1 }
 0x661   : > { %4160 = vmax.xlane.f32.xlu0 %v4159_v39  ;;  %4151 = vmax.xlane.f32.xlu1 %v4150_v61  ;;  %v4433_v61 = vsel %vm2992_vm11, %v9436_v0, -inf  ;;  %v4442_v0 = vsel %vm2992_vm11, %v9448_v11, -inf  ;;  %v9460_v54 = vsel %vm9123_vm2, %v4404_v1, -10000.0  ;;  %v9468_v11 = vsel %vm9113_vm1, %v6951_v44, -10000.0 }
 0x662   : > { %10524 = vst [vmem:[#allocation45_spill] sm:$0xff] %v9460_v54  ;;  %10525 = vst [vmem:[#allocation46_spill] sm:$0xff] %v9468_v11 }
 0x663   : > { %v6972_v21 = vpop.f32.mrf.mxu1 }
 0x664   : > { %v9472_v14 = vsel %vm9044_vm10, %v6972_v21, -10000.0 }
 0x665   : > { %v4671_v40 = vpop.f32.mrf.mxu1  ;;  %4154 = vmax.xlane.f32.xlu0 %v4153_v33  ;;  %4431 = vmax.xlane.f32.xlu1 %v4430_v43  ;;  %v4427_v43 = vsel %vm2992_vm11, %v9444_v45, -inf  ;;  %v4439_v45 = vsel %vm2992_vm11, %v9460_v54, -inf  ;;  %10526 = vst [vmem:[#allocation47_spill] sm:$0xff] %v9472_v14 }
 0x666   : > { %v9480_v54 = vsel %vm9049_vm12, %v4671_v40, -10000.0 }
 0x667   : > { %v6973_v39 = vpop.f32.mrf.mxu1  ;;  %10527 = vst [vmem:[#allocation48_spill] sm:$0xff] %v9480_v54 }
 0x668   : > { %v9484_v44 = vsel %vm9066_vm13, %v6973_v39, -10000.0 }
 0x669   : > { %v4674_v35 = vpop.f32.mrf.mxu1  ;;  %4434 = vmax.xlane.f32.xlu0 %v4433_v61  ;;  %4425 = vmax.xlane.f32.xlu1 %v4424_v4  ;;  %v4436_v4 = vsel %vm2992_vm11, %v9456_v28, -inf  ;;  %v4716_v28 = vsel %vm2992_vm11, %v9472_v14, -inf }
 0x66a   : > { %v9492_v14 = vsel %vm9071_vm14, %v4674_v35, -10000.0 }
 0x66b   : > { %v6976_v33 = vpop.f32.mrf.mxu1 }
 0x66c   : > { %v9496_v40 = vsel %vm9097_vm15, %v6976_v33, -10000.0 }
 0x66d   : > { %v4687_v31 = vpop.f32.mrf.mxu1  ;;  %4428 = vmax.xlane.f32.xlu0 %v4427_v43  ;;  %4443 = vmax.xlane.f32.xlu1 %v4442_v0  ;;  %v4445_v0 = vsel %vm2992_vm11, %v9468_v11, -inf  ;;  %v4719_v11 = vsel %vm2992_vm11, %v9484_v44, -inf  ;;  %10528 = vst [vmem:[#allocation49_spill] sm:$0xff] %v9496_v40 }
 0x66f   : > { %v6977_v61 = vpop.f32.mrf.mxu1 }
 0x671   : > { %v4690_v1 = vpop.f32.mrf.mxu1  ;;  %4437 = vmax.xlane.f32.xlu0 %v4436_v4  ;;  %4440 = vmax.xlane.f32.xlu1 %v4439_v45  ;;  %v4710_v45 = vsel %vm2992_vm11, %v9480_v54, -inf  ;;  %v9504_v54 = vsel %vm9102_vm0, %v4687_v31, -10000.0 }
 0x672   : > { %v9508_v35 = vsel %vm9123_vm2, %v4690_v1, -10000.0 }
 0x673   : > { %v6998_v43 = vpop.f32.mrf.mxu1  ;;  %10529 = vst [vmem:[#allocation50_spill] sm:$0xff] %v9508_v35 }
 0x674   : > { %v9520_v31 = vsel %vm9044_vm10, %v6998_v43, -10000.0  ;;  %vm5462_vm10 = vcmask 113664  }
 0x675   : > { %v4957_v21 = vpop.f32.mrf.mxu1  ;;  %4446 = vmax.xlane.f32.xlu0 %v4445_v0  ;;  %4717 = vmax.xlane.f32.xlu1 %v4716_v28  ;;  %v4713_v28 = vsel %vm2992_vm11, %v9492_v14, -inf  ;;  %v4728_v0 = vsel %vm2992_vm11, %v9496_v40, -inf  ;;  %v9516_v40 = vsel %vm9113_vm1, %v6977_v61, -10000.0 }
 0x677   : > { %v6999_v4 = vpop.f32.mrf.mxu1 }
 0x678   : > { %v9532_v61 = vsel %vm9066_vm13, %v6999_v4, -10000.0 }
 0x679   : > { %4720 = vmax.xlane.f32.xlu0 %v4719_v11  ;;  %4711 = vmax.xlane.f32.xlu1 %v4710_v45  ;;  %v4960_v39 = vpop.f32.mrf.mxu1  ;;  %v4722_v11 = vsel %vm2992_vm11, %v9504_v54, -inf  ;;  %v4725_v45 = vsel %vm2992_vm11, %v9508_v35, -inf  ;;  %v9528_v35 = vsel %vm9049_vm12, %v4957_v21, -10000.0 }
 0x67a   : > { %v4996_v43 = vsel %vm2992_vm11, %v9528_v35, -inf }
 0x67b   : > { %v7002_v33 = vpop.f32.mrf.mxu1 }
 0x67d   : > { %4714 = vmax.xlane.f32.xlu0 %v4713_v28  ;;  %4729 = vmax.xlane.f32.xlu1 %v4728_v0  ;;  %v4973_v1 = vpop.f32.mrf.mxu1  ;;  %v4731_v28 = vsel %vm2992_vm11, %v9516_v40, -inf  ;;  %v5002_v0 = vsel %vm2992_vm11, %v9520_v31, -inf }
 0x67f   : > { %v7003_v15 = vpop.f32.mrf.mxu1 }
 0x680   : > { %v9544_v50 = vsel %vm9113_vm1, %v7003_v15, -10000.0 }
 0x681   : > { %4723 = vmax.xlane.f32.xlu0 %v4722_v11  ;;  %4726 = vmax.xlane.f32.xlu1 %v4725_v45  ;;  %v5005_v11 = vsel %vm2992_vm11, %v9532_v61, -inf  ;;  %v9540_v45 = vsel %vm9071_vm14, %v4960_v39, -10000.0  ;;  %v4976_v52 = vpop.f32.mrf.mxu1  ;;  %v5017_v4 = vsel %vm2992_vm11, %v9544_v50, -inf }
 0x682   : > { %v4999_v21 = vsel %vm2992_vm11, %v9540_v45, -inf  ;;  %v9556_v36 = vsel %vm9123_vm2, %v4976_v52, -10000.0 }
 0x683   : > { %v5011_v39 = vsel %vm2992_vm11, %v9556_v36, -inf }
 0x685   : > { %4732 = vmax.xlane.f32.xlu0 %v4731_v28  ;;  %5003 = vmax.xlane.f32.xlu1 %v5002_v0  ;;  %v9552_v28 = vsel %vm9097_vm15, %v7002_v33, -10000.0  ;;  %v9564_v0 = vsel %vm9102_vm0, %v4973_v1, -10000.0 }
 0x686   : > { %v5014_v3 = vsel %vm2992_vm11, %v9552_v28, -inf  ;;  %10530 = vst [vmem:[#allocation51_spill] sm:$0xff] %v9564_v0  ;;  %v5008_v2 = vsel %vm2992_vm11, %v9564_v0, -inf }
 0x689   : > { %5006 = vmax.xlane.f32.xlu0 %v5005_v11  ;;  %4997 = vmax.xlane.f32.xlu1 %v4996_v43 }
 0x68d   : > { %5000 = vmax.xlane.f32.xlu0 %v4999_v21  ;;  %5018 = vmax.xlane.f32.xlu1 %v5017_v4 }
 0x691   : > { %5015 = vmax.xlane.f32.xlu0 %v5014_v3  ;;  %5012 = vmax.xlane.f32.xlu1 %v5011_v39 }
 0x695   : > { %5009 = vmax.xlane.f32.xlu0 %v5008_v2  ;;  %v3284_v17 = vpop.xlane.xlu1 %3283 }
 0x696   : > { %v3302_v33 = vsub.f32 %v9176_v62, %v3284_v17 }
 0x698   : > { %v3312_v15 = vmul.f32 1.442695, %v3302_v33 }
 0x699   : > { %v3287_v43 = vpop.xlane.xlu0 %3286  ;;  %v3278_v11 = vpop.xlane.xlu1 %3277 }
 0x69a   : > { %7476 = vpow2.f32 %v3312_v15  ;;  %v3303_v52 = vsub.f32 %v9190_v10, %v3287_v43  ;;  %v3300_v21 = vsub.f32 %v9184_v60, %v3278_v11 }
 0x69c   : > { %v3314_v16 = vmul.f32 1.442695, %v3303_v52  ;;  %v3308_v1 = vmul.f32 1.442695, %v3300_v21 }
 0x69d   : > { %v3281_v4 = vpop.xlane.xlu0 %3280 }
 0x69e   : > { %7478 = vpow2.f32 %v3314_v16  ;;  %v3301_v3 = vsub.f32 %v9198_v59, %v3281_v4 }
 0x69f   : > { %7480 = vpow2.f32 %v3308_v1 }
 0x6a0   : > { %v3310_v39 = vmul.f32 1.442695, %v3301_v3 }
 0x6a2   : > { %7482 = vpow2.f32 %v3310_v39 }
 0x6a6   : > { %v3296_v2 = vpop.xlane.xlu1 %3295 }
 0x6a7   : > { %v9572_v0 = vpop.eup %7476  ;;  %v3306_v62 = vsub.f32 %v9212_v22, %v3296_v2 }
 0x6a8   : > { %v3330_v17 = vsel %vm2992_vm11, %v9572_v0, 0.0 }
 0x6a9   : > { %v3320_v10 = vmul.f32 1.442695, %v3306_v62  ;;  %3331 = vadd.xlane.f32.xlu1 %v3330_v17 }
 0x6aa   : > { %v3299_v60 = vpop.xlane.xlu0 %3298  ;;  %v3290_v33 = vpop.xlane.xlu1 %3289 }
 0x6ab   : > { %v9577_v15 = vpop.eup %7478  ;;  %7484 = vpow2.f32 %v3320_v10  ;;  %v3307_v59 = vsub.f32 %v9226_v12, %v3299_v60  ;;  %v3304_v43 = vsub.f32 %v9218_v63, %v3290_v33 }
 0x6ac   : > { %v9581_v11 = vpop.eup %7480  ;;  %v3333_v52 = vsel %vm2992_vm11, %v9577_v15, 0.0 }
 0x6ad   : > { %v3322_v22 = vmul.f32 1.442695, %v3307_v59  ;;  %v3316_v21 = vmul.f32 1.442695, %v3304_v43  ;;  %3334 = vadd.xlane.f32.xlu0 %v3333_v52  ;;  %v3324_v16 = vsel %vm2992_vm11, %v9581_v11, 0.0 }
 0x6ae   : > { %v3293_v1 = vpop.xlane.xlu0 %3292  ;;  %3325 = vadd.xlane.f32.xlu1 %v3324_v16  ;;  %v3574_v4 = vpop.xlane.xlu1 %3573 }
 0x6af   : > { %v9587_v3 = vpop.eup %7482  ;;  %7486 = vpow2.f32 %v3322_v22  ;;  %v3305_v12 = vsub.f32 %v9234_v24, %v3293_v1  ;;  %v3592_v63 = vsub.f32 %v9238_v20, %v3574_v4 }
 0x6b0   : > { %7488 = vpow2.f32 %v3316_v21  ;;  %v3327_v39 = vsel %vm2992_vm11, %v9587_v3, 0.0 }
 0x6b1   : > { %v3318_v2 = vmul.f32 1.442695, %v3305_v12  ;;  %v3602_v62 = vmul.f32 1.442695, %v3592_v63  ;;  %3328 = vadd.xlane.f32.xlu0 %v3327_v39 }
 0x6b2   : > { %v3577_v17 = vpop.xlane.xlu0 %3576  ;;  %v3568_v10 = vpop.xlane.xlu1 %3567 }
 0x6b3   : > { %7490 = vpow2.f32 %v3318_v2  ;;  %v3593_v60 = vsub.f32 %v9253_v57, %v3577_v17  ;;  %v3590_v33 = vsub.f32 %v9249_v25, %v3568_v10 }
 0x6b4   : > { %7492 = vpow2.f32 %v3602_v62 }
 0x6b5   : > { %v3598_v59 = vmul.f32 1.442695, %v3590_v33  ;;  %v3604_v43 = vmul.f32 1.442695, %v3593_v60 }
 0x6b6   : > { %v3571_v24 = vpop.xlane.xlu0 %3570  ;;  %v3586_v52 = vpop.xlane.xlu1 %3585 }
 0x6b7   : > { %v3591_v20 = vsub.f32 %v9262_v8, %v3571_v24  ;;  %v3596_v22 = vsub.f32 %v9266_v6, %v3586_v52  ;;  %7494 = vpow2.f32 %v3598_v59 }
 0x6b8   : > { %v9597_v21 = vpop.eup %7484  ;;  %7496 = vpow2.f32 %v3604_v43 }
 0x6b9   : > { %v3610_v16 = vmul.f32 1.442695, %v3596_v22  ;;  %v3342_v1 = vsel %vm2992_vm11, %v9597_v21, 0.0  ;;  %v3600_v57 = vmul.f32 1.442695, %v3591_v20 }
 0x6ba   : > { %v3589_v4 = vpop.xlane.xlu0 %3588  ;;  %3343 = vadd.xlane.f32.xlu1 %v3342_v1  ;;  %v3580_v25 = vpop.xlane.xlu1 %3579 }
 0x6bb   : > { %v3597_v12 = vsub.f32 %v9280_v32, %v3589_v4  ;;  %v3594_v63 = vsub.f32 %v9276_v51, %v3580_v25  ;;  %7498 = vpow2.f32 %v3610_v16 }
 0x6bc   : > { %v9603_v39 = vpop.eup %7486  ;;  %7500 = vpow2.f32 %v3600_v57 }
 0x6bd   : > { %v9605_v8 = vpop.eup %7488  ;;  %v3606_v6 = vmul.f32 1.442695, %v3594_v63  ;;  %v3345_v2 = vsel %vm2992_vm11, %v9603_v39, 0.0  ;;  %v3612_v62 = vmul.f32 1.442695, %v3597_v12 }
 0x6be   : > { %v3583_v17 = vpop.xlane.xlu0 %3582  ;;  %3346 = vadd.xlane.f32.xlu0 %v3345_v2  ;;  %v3336_v10 = vsel %vm2992_vm11, %v9605_v8, 0.0  ;;  %v3860_v60 = vpop.xlane.xlu1 %3859 }
 0x6bf   : > { %v3595_v32 = vsub.f32 %v9288_v58, %v3583_v17  ;;  %3337 = vadd.xlane.f32.xlu1 %v3336_v10  ;;  %v3878_v51 = vsub.f32 %v9292_v38, %v3860_v60  ;;  %7502 = vpow2.f32 %v3606_v6 }
 0x6c0   : > { %v9613_v33 = vpop.eup %7490  ;;  %7504 = vpow2.f32 %v3612_v62 }
 0x6c1   : > { %v9615_v59 = vpop.eup %7492  ;;  %v3608_v43 = vmul.f32 1.442695, %v3595_v32  ;;  %v3339_v24 = vsel %vm2992_vm11, %v9613_v33, 0.0  ;;  %v3888_v52 = vmul.f32 1.442695, %v3878_v51 }
 0x6c2   : > { %v3863_v20 = vpop.xlane.xlu0 %3862  ;;  %3340 = vadd.xlane.f32.xlu0 %v3339_v24  ;;  %v3620_v22 = vsel %vm2992_vm11, %v9615_v59, 0.0  ;;  %v3854_v58 = vpop.xlane.xlu1 %3853 }
 0x6c3   : > { %7506 = vpow2.f32 %v3608_v43  ;;  %v3879_v38 = vsub.f32 %v9304_v56, %v3863_v20  ;;  %3621 = vadd.xlane.f32.xlu1 %v3620_v22  ;;  %v3876_v16 = vsub.f32 %v9300_v23, %v3854_v58 }
 0x6c4   : > { %v9623_v1 = vpop.eup %7494  ;;  %7508 = vpow2.f32 %v3888_v52 }
 0x6c5   : > { %v3890_v57 = vmul.f32 1.442695, %v3879_v38  ;;  %v3884_v4 = vmul.f32 1.442695, %v3876_v16  ;;  %v3614_v12 = vsel %vm2992_vm11, %v9623_v1, 0.0  ;;  %v9627_v6 = vpop.eup %7496 }
 0x6c6   : > { %v3857_v25 = vpop.xlane.xlu0 %3856  ;;  %v3049_v63 = vpop.xlane.xlu1 %3048  ;;  %v3623_v17 = vsel %vm2992_vm11, %v9627_v6, 0.0 }
 0x6c7   : > { %7510 = vpow2.f32 %v3890_v57  ;;  %v3877_v2 = vsub.f32 %v9314_v13, %v3857_v25  ;;  %3615 = vadd.xlane.f32.xlu1 %v3614_v12 }
 0x6c8   : > { %v9630_v56 = vpop.eup %7498  ;;  %7512 = vpow2.f32 %v3884_v4 }
 0x6c9   : > { %v3886_v62 = vmul.f32 1.442695, %v3877_v2  ;;  %v3632_v10 = vsel %vm2992_vm11, %v9630_v56, 0.0  ;;  %v9636_v32 = vpop.eup %7500 }
 0x6ca   : > { %v3052_v23 = vpop.xlane.xlu0 %3051  ;;  %v3043_v60 = vpop.xlane.xlu1 %3042  ;;  %3633 = vadd.xlane.f32.xlu0 %v3632_v10  ;;  %v3617_v43 = vsel %vm2992_vm11, %v9636_v32, 0.0 }
 0x6cb   : > { %7514 = vpow2.f32 %v3886_v62  ;;  %3624 = vadd.xlane.f32.xlu1 %v3623_v17 }
 0x6cc   : > { %7516 = vrcp.f32 %v3052_v23  ;;  %v9638_v13 = vpop.eup %7502 }
 0x6cd   : > { %7518 = vrcp.f32 %v3043_v60  ;;  %v3626_v24 = vsel %vm2992_vm11, %v9638_v13, 0.0  ;;  %v9644_v20 = vpop.eup %7504 }
 0x6ce   : > { %7520 = vrcp.f32 %v3049_v63  ;;  %v3046_v51 = vpop.xlane.xlu0 %3045  ;;  %v3872_v52 = vpop.xlane.xlu1 %3871  ;;  %3627 = vadd.xlane.f32.xlu0 %v3626_v24  ;;  %v3635_v4 = vsel %vm2992_vm11, %v9644_v20, 0.0 }
 0x6cf   : > { %7522 = vrcp.f32 %v3046_v51  ;;  %3618 = vadd.xlane.f32.xlu1 %v3617_v43  ;;  %v3882_v22 = vsub.f32 %v9335_v37, %v3872_v52 }
 0x6d0   : > { %v9647_v58 = vpop.eup %7506 }
 0x6d1   : > { %v3896_v38 = vmul.f32 1.442695, %v3882_v22  ;;  %v3629_v16 = vsel %vm2992_vm11, %v9647_v58, 0.0  ;;  %v9653_v12 = vpop.eup %7508 }
 0x6d2   : > { %v3875_v57 = vpop.xlane.xlu0 %3874  ;;  %v3866_v25 = vpop.xlane.xlu1 %3865  ;;  %3630 = vadd.xlane.f32.xlu0 %v3629_v16  ;;  %v3906_v60 = vsel %vm2992_vm11, %v9653_v12, 0.0 }
 0x6d3   : > { %7524 = vpow2.f32 %v3896_v38  ;;  %v3883_v63 = vsub.f32 %v9348_v5, %v3875_v57  ;;  %3636 = vadd.xlane.f32.xlu1 %v3635_v4  ;;  %v3880_v37 = vsub.f32 %v9344_v26, %v3866_v25 }
 0x6d4   : > { %v9657_v2 = vpop.eup %7510 }
 0x6d5   : > { %v3892_v62 = vmul.f32 1.442695, %v3880_v37  ;;  %v3909_v23 = vsel %vm2992_vm11, %v9657_v2, 0.0  ;;  %v3898_v17 = vmul.f32 1.442695, %v3883_v63  ;;  %v9663_v43 = vpop.eup %7512  ;;  %v7828_v63 = vmov 0.0  }
 0x6d6   : > { %v3869_v10 = vpop.xlane.xlu0 %3868  ;;  %v4146_v51 = vpop.xlane.xlu1 %4145  ;;  %3910 = vadd.xlane.f32.xlu0 %v3909_v23 }
 0x6d7   : > { %v3881_v5 = vsub.f32 %v9356_v48, %v3869_v10  ;;  %3907 = vadd.xlane.f32.xlu1 %v3906_v60  ;;  %v4164_v26 = vsub.f32 %v9360_v47, %v4146_v51  ;;  %7526 = vpow2.f32 %v3892_v62  ;;  %v3900_v48 = vsel %vm2992_vm11, %v9663_v43, 0.0 }
 0x6d8   : > { %v9668_v24 = vpop.eup %7514  ;;  %7528 = vpow2.f32 %v3898_v17  ;;  %v9674_v47 = vsel %vm2841_vm3, 1.0, %v7828_v63 }
 0x6d9   : > { %v7517_v52 = vpop.eup %7516  ;;  %v3894_v22 = vmul.f32 1.442695, %v3881_v5  ;;  %v3903_v38 = vsel %vm2992_vm11, %v9668_v24, 0.0  ;;  %v4174_v57 = vmul.f32 1.442695, %v4164_v26 }
 0x6da   : > { %v7519_v16 = vpop.eup %7518  ;;  %v4149_v4 = vpop.xlane.xlu0 %4148  ;;  %3904 = vadd.xlane.f32.xlu0 %v3903_v38  ;;  %v3076_v10 = vmul.f32 %v7517_v52, %v9323_v7 }
 0x6db   : > { %v4140_v25 = vpop.xlane.xlu1 %4139  ;;  %v7521_v53 = vpop.eup %7520  ;;  %7530 = vpow2.f32 %v3894_v22  ;;  %v4165_v37 = vsub.f32 %v9372_v30, %v4149_v4  ;;  %3901 = vadd.xlane.f32.xlu1 %v3900_v48  ;;  %v3073_v23 = vmul.f32 %v7519_v16, %v9317_v29 }
 0x6dc   : > { %v4162_v62 = vsub.f32 %v9368_v19, %v4140_v25  ;;  %v7523_v17 = vpop.eup %7522  ;;  %v3075_v26 = vmul.f32 %v7521_v53, %v9306_v46  ;;  %7532 = vpow2.f32 %v4174_v57 }
 0x6dd   : > { %v4176_v60 = vmul.f32 1.442695, %v4165_v37  ;;  %v3074_v51 = vmul.f32 %v7523_v17, %v9331_v34  ;;  %v3081_v5 = vmul.f32 %v9674_v47, %v3073_v23 }
 0x6de   : > { %v4170_v22 = vmul.f32 1.442695, %v4162_v62  ;;  %v4143_v63 = vpop.xlane.xlu0 %4142  ;;  %v3094_v29 = vpack.c.bf16 %v3076_v10, %v3075_v26 }
 0x6df   : > { %v3061_v30 = vpop.xlane.xlu1 %3060  ;;  %7534 = vpow2.f32 %v4176_v60  ;;  %v4163_v38 = vsub.f32 %v9382_v55, %v4143_v63  ;;  %v3093_v19 = vpack.c.bf16 %v3074_v51, %v3081_v5  ;;  %v10532_v5 = vld [vmem:[#allocation12_spill] sm:$0xff] }
 0x6e0   : > { %v9684_v4 = vpop.eup %7524  ;;  %7536 = vpow2.f32 %v4170_v22 }
 0x6e1   : > { %v4172_v16 = vmul.f32 1.442695, %v4163_v38  ;;  %6830 = vmatprep.mubr.msk.bf16.mxu0 %vm2992_vm11, %v3093_v19  ;;  %v3918_v34 = vsel %vm2992_vm11, %v9684_v4, 0.0 }
 0x6e2   : > { %v3064_v7 = vpop.xlane.xlu0 %3063  ;;  %6831 = vmatmul.mubr.msk.bf16.vlgmr.msra.gmra.mxu0 %vm2992_vm11, %v3094_v29  ;;  %3919 = vadd.xlane.f32.xlu0 %v3918_v34 }
 0x6e3   : > { %v3055_v46 = vpop.xlane.xlu1 %3054  ;;  %7538 = vpow2.f32 %v4172_v16  ;;  %6849 = vmatpush3.bf16.msra.mxu0 %v9087_v9 }
 0x6e4   : > { %7540 = vrcp.f32 %v3064_v7  ;;  %6850 = vmatprep.subr.bf16.mxu0 %v9146_v18  ;;  %v9692_v55 = vpop.eup %7526  ;;  %v10536_v7 = vld [vmem:[#allocation13_spill] sm:$0xff] }
 0x6e5   : > { %7542 = vrcp.f32 %v3055_v46  ;;  %v3912_v57 = vsel %vm2992_vm11, %v9692_v55, 0.0  ;;  %v9696_v25 = vpop.eup %7528 }
 0x6e6   : > { %7544 = vrcp.f32 %v3061_v30  ;;  %v3058_v52 = vpop.xlane.xlu0 %3057  ;;  %3913 = vadd.xlane.f32.xlu1 %v3912_v57  ;;  %v3921_v17 = vsel %vm2992_vm11, %v9696_v25, 0.0 }
 0x6e7   : > { %v4158_v48 = vpop.xlane.xlu1 %4157  ;;  %7546 = vrcp.f32 %v3058_v52  ;;  %6851 = vmatpush3.bf16.msra.mxu0 %v9146_v18 }
 0x6e8   : > { %v4168_v9 = vsub.f32 %v9400_v27, %v4158_v48  ;;  %v9700_v53 = vpop.eup %7530  ;;  %6852 = vmatprep.subr.bf16.mxu0 %v9144_v41 }
 0x6e9   : > { %v3915_v62 = vsel %vm2992_vm11, %v9700_v53, 0.0  ;;  %v9707_v60 = vpop.eup %7532 }
 0x6ea   : > { %v4182_v37 = vmul.f32 1.442695, %v4168_v9  ;;  %v4161_v23 = vpop.xlane.xlu0 %4160  ;;  %3916 = vadd.xlane.f32.xlu0 %v3915_v62  ;;  %10531 = vst [vmem:[#allocation52_spill] sm:$0xff] %v9707_v60  ;;  %3922 = vadd.xlane.f32.xlu1 %v3921_v17  ;;  %v4192_v38 = vsel %vm2992_vm11, %v9707_v60, 0.0 }
 0x6eb   : > { %v4152_v10 = vpop.xlane.xlu1 %4151  ;;  %v4169_v18 = vsub.f32 %v9412_v42, %v4161_v23  ;;  %6853 = vmatpush3.bf16.msra.mxu0 %v9144_v41  ;;  %v10533_v41 = vld [vmem:[#allocation38_spill] sm:$0xff] }
 0x6ec   : > { %7548 = vpow2.f32 %v4182_v37  ;;  %v4166_v27 = vsub.f32 %v9408_v49, %v4152_v10  ;;  %v9712_v51 = vpop.eup %7534  ;;  %6854 = vmatprep.subr.bf16.mxu0 %v10532_v5  ;;  %v10534_v49 = vld [vmem:[#allocation39_spill] sm:$0xff]  ;;  %v10537_v10 = vld [vmem:[#allocation41_spill] sm:$0xff] }
 0x6ed   : > { %v4195_v22 = vsel %vm2992_vm11, %v9712_v51, 0.0  ;;  %v4184_v63 = vmul.f32 1.442695, %v4169_v18  ;;  %v9719_v19 = vpop.eup %7536 }
 0x6ee   : > { %v4178_v26 = vmul.f32 1.442695, %v4166_v27  ;;  %v4155_v30 = vpop.xlane.xlu0 %4154  ;;  %4196 = vadd.xlane.f32.xlu0 %v4195_v22  ;;  %4193 = vadd.xlane.f32.xlu1 %v4192_v38  ;;  %v4186_v62 = vsel %vm2992_vm11, %v9719_v19, 0.0  ;;  %v10538_v27 = vld [vmem:[#allocation40_spill] sm:$0xff]  ;;  %v10539_v22 = vld [vmem:[#allocation35_spill] sm:$0xff] }
 0x6ef   : > { %v4432_v42 = vpop.xlane.xlu1 %4431  ;;  %v4167_v29 = vsub.f32 %v10533_v41, %v4155_v30  ;;  %6855 = vmatpush3.bf16.msra.mxu0 %v10532_v5  ;;  %v10541_v41 = vld [vmem:[#allocation37_spill] sm:$0xff] }
 0x6f0   : > { %v4450_v16 = vsub.f32 %v10534_v49, %v4432_v42  ;;  %v9724_v34 = vpop.eup %7538  ;;  %7550 = vpow2.f32 %v4178_v26  ;;  %6874 = vmatprep.subr.bf16.mxu0 %v10536_v7  ;;  %v10540_v42 = vld [vmem:[#allocation36_spill] sm:$0xff] }
 0x6f1   : > { %10535 = vst [vmem:[#allocation12_spill] sm:$0xff] %v9724_v34  ;;  %v7541_v46 = vpop.eup %7540  ;;  %v4180_v52 = vmul.f32 1.442695, %v4167_v29  ;;  %v4189_v57 = vsel %vm2992_vm11, %v9724_v34, 0.0  ;;  %7552 = vpow2.f32 %v4184_v63  ;;  %v10542_v34 = vld [vmem:[#allocation34_spill] sm:$0xff] }
 0x6f2   : > { %v7543_v48 = vpop.eup %7542  ;;  %v4460_v9 = vmul.f32 1.442695, %v4450_v16  ;;  %v4435_v37 = vpop.xlane.xlu0 %4434  ;;  %4190 = vadd.xlane.f32.xlu0 %v4189_v57  ;;  %4187 = vadd.xlane.f32.xlu1 %v4186_v62  ;;  %v3080_v30 = vmul.f32 %v7541_v46, %v10539_v22  ;;  %v10544_v62 = vld [vmem:[#allocation43_spill] sm:$0xff] }
 0x6f3   : > { %v4426_v23 = vpop.xlane.xlu1 %4425  ;;  %v7545_v17 = vpop.eup %7544  ;;  %7554 = vpow2.f32 %v4180_v52  ;;  %v4451_v18 = vsub.f32 %v10537_v10, %v4435_v37  ;;  %v3077_v63 = vmul.f32 %v7543_v48, %v10540_v42  ;;  %v10543_v52 = vld [vmem:[#allocation42_spill] sm:$0xff] }
 0x6f4   : > { %v4448_v5 = vsub.f32 %v10538_v27, %v4426_v23  ;;  %v7547_v26 = vpop.eup %7546  ;;  %7556 = vpow2.f32 %v4460_v9  ;;  %v3079_v60 = vmul.f32 %v7545_v17, %v10542_v34  ;;  %v10545_v17 = vld [vmem:[#allocation44_spill] sm:$0xff] }
 0x6f5   : > { %v4462_v38 = vmul.f32 1.442695, %v4451_v18  ;;  %v3078_v29 = vmul.f32 %v7547_v26, %v10541_v41  ;;  %v10546_v26 = vld [vmem:[#allocation45_spill] sm:$0xff] }
 0x6f6   : > { %v4456_v49 = vmul.f32 1.442695, %v4448_v5  ;;  %v4429_v16 = vpop.xlane.xlu0 %4428  ;;  %v3096_v46 = vpack.c.bf16 %v3080_v30, %v3079_v60 }
 0x6f7   : > { %v4444_v57 = vpop.xlane.xlu1 %4443  ;;  %7558 = vpow2.f32 %v4462_v38  ;;  %v4449_v37 = vsub.f32 %v10543_v52, %v4429_v16  ;;  %v3095_v23 = vpack.c.bf16 %v3078_v29, %v3077_v63  ;;  %v10547_v16 = vld [vmem:[#allocation46_spill] sm:$0xff]  ;;  %v10548_v52 = vld [vmem:[#allocation47_spill] sm:$0xff] }
 0x6f8   : > { %v4454_v10 = vsub.f32 %v10544_v62, %v4444_v57  ;;  %7560 = vpow2.f32 %v4456_v49 }
 0x6f9   : > { %v9739_v27 = vpop.eup %7548  ;;  %v4458_v18 = vmul.f32 1.442695, %v4449_v37  ;;  %6834 = vmatprep.mubr.msk.bf16.mxu0 %vm2992_vm11, %v3095_v23 }
 0x6fa   : > { %v4468_v22 = vmul.f32 1.442695, %v4454_v10  ;;  %v4204_v48 = vsel %vm2992_vm11, %v9739_v27, 0.0  ;;  %v4438_v9 = vpop.xlane.xlu0 %4437  ;;  %6835 = vmatmul.mubr.msk.bf16.gmra.mxu0 %vm2992_vm11, %v3096_v46 }
 0x6fb   : > { %4205 = vadd.xlane.f32.xlu0 %v4204_v48  ;;  %v4441_v34 = vpop.xlane.xlu1 %4440  ;;  %7562 = vpow2.f32 %v4458_v18  ;;  %v4452_v5 = vsub.f32 %v10545_v17, %v4438_v9  ;;  %v10549_v17 = vld [vmem:[#allocation48_spill] sm:$0xff] }
 0x6fc   : > { %v4453_v38 = vsub.f32 %v10546_v26, %v4441_v34  ;;  %7564 = vpow2.f32 %v4468_v22 }
 0x6fd   : > { %v9747_v60 = vpop.eup %7550  ;;  %v4464_v30 = vmul.f32 1.442695, %v4452_v5 }
 0x6fe   : > { %v4466_v42 = vmul.f32 1.442695, %v4453_v38  ;;  %v4447_v63 = vpop.xlane.xlu0 %4446  ;;  %v4198_v41 = vsel %vm2992_vm11, %v9747_v60, 0.0  ;;  %v9751_v49 = vpop.eup %7552 }
 0x6ff   : > { %v4718_v29 = vpop.xlane.xlu1 %4717  ;;  %7566 = vpow2.f32 %v4464_v30  ;;  %v4455_v57 = vsub.f32 %v10547_v16, %v4447_v63  ;;  %4199 = vadd.xlane.f32.xlu1 %v4198_v41  ;;  %v4207_v22 = vsel %vm2992_vm11, %v9751_v49, 0.0 }
 0x700   : > { %v4736_v37 = vsub.f32 %v10548_v52, %v4718_v29  ;;  %v9755_v62 = vpop.eup %7554  ;;  %7568 = vpow2.f32 %v4466_v42 }
 0x701   : > { %v4470_v10 = vmul.f32 1.442695, %v4455_v57  ;;  %v4201_v23 = vsel %vm2992_vm11, %v9755_v62, 0.0  ;;  %v9761_v9 = vpop.eup %7556  ;;  %v10550_v57 = vld [vmem:[#allocation49_spill] sm:$0xff] }
 0x702   : > { %v4746_v46 = vmul.f32 1.442695, %v4736_v37  ;;  %v4721_v18 = vpop.xlane.xlu0 %4720  ;;  %4202 = vadd.xlane.f32.xlu0 %v4201_v23  ;;  %v4478_v41 = vsel %vm2992_vm11, %v9761_v9, 0.0 }
 0x703   : > { %v4712_v48 = vpop.xlane.xlu1 %4711  ;;  %7570 = vpow2.f32 %v4470_v10  ;;  %v4737_v34 = vsub.f32 %v9484_v44, %v4721_v18  ;;  %4208 = vadd.xlane.f32.xlu1 %v4207_v22 }
 0x704   : > { %v4734_v5 = vsub.f32 %v10549_v17, %v4712_v48  ;;  %v9765_v26 = vpop.eup %7558  ;;  %7572 = vpow2.f32 %v4746_v46  ;;  %v10551_v17 = vld [vmem:[#allocation50_spill] sm:$0xff] }
 0x705   : > { %v4748_v38 = vmul.f32 1.442695, %v4737_v34  ;;  %v4481_v30 = vsel %vm2992_vm11, %v9765_v26, 0.0  ;;  %v9771_v16 = vpop.eup %7560 }
 0x706   : > { %v4742_v42 = vmul.f32 1.442695, %v4734_v5  ;;  %v4715_v63 = vpop.xlane.xlu0 %4714  ;;  %4482 = vadd.xlane.f32.xlu0 %v4481_v30  ;;  %v4472_v48 = vsel %vm2992_vm11, %v9771_v16, 0.0 }
 0x707   : > { %v4730_v29 = vpop.xlane.xlu1 %4729  ;;  %7574 = vpow2.f32 %v4748_v38  ;;  %v4735_v44 = vsub.f32 %v9492_v14, %v4715_v63  ;;  %4479 = vadd.xlane.f32.xlu1 %v4478_v41 }
 0x708   : > { %v4740_v52 = vsub.f32 %v10550_v57, %v4730_v29  ;;  %v9775_v37 = vpop.eup %7562  ;;  %7576 = vpow2.f32 %v4742_v42 }
 0x709   : > { %v9777_v10 = vpop.eup %7564  ;;  %v4744_v23 = vmul.f32 1.442695, %v4735_v44  ;;  %v4475_v18 = vsel %vm2992_vm11, %v9775_v37, 0.0 }
 0x70a   : > { %v4754_v46 = vmul.f32 1.442695, %v4740_v52  ;;  %v4724_v22 = vpop.xlane.xlu0 %4723  ;;  %4476 = vadd.xlane.f32.xlu0 %v4475_v18  ;;  %v4490_v30 = vsel %vm2992_vm11, %v9777_v10, 0.0 }
 0x70b   : > { %v4727_v34 = vpop.xlane.xlu1 %4726  ;;  %7578 = vpow2.f32 %v4744_v23  ;;  %v4738_v14 = vsub.f32 %v9504_v54, %v4724_v22  ;;  %4473 = vadd.xlane.f32.xlu1 %v4472_v48 }
 0x70c   : > { %v4739_v5 = vsub.f32 %v10551_v17, %v4727_v34  ;;  %v9785_v38 = vpop.eup %7566  ;;  %7580 = vpow2.f32 %v4754_v46 }
 0x70d   : > { %v4750_v63 = vmul.f32 1.442695, %v4738_v14  ;;  %v4484_v41 = vsel %vm2992_vm11, %v9785_v38, 0.0  ;;  %v9791_v29 = vpop.eup %7568 }
 0x70e   : > { %v4752_v42 = vmul.f32 1.442695, %v4739_v5  ;;  %v4733_v44 = vpop.xlane.xlu0 %4732  ;;  %4491 = vadd.xlane.f32.xlu0 %v4490_v30  ;;  %v4487_v22 = vsel %vm2992_vm11, %v9791_v29, 0.0 }
 0x70f   : > { %v5004_v57 = vpop.xlane.xlu1 %5003  ;;  %7582 = vpow2.f32 %v4750_v63  ;;  %v4741_v54 = vsub.f32 %v9516_v40, %v4733_v44  ;;  %4485 = vadd.xlane.f32.xlu1 %v4484_v41 }
 0x710   : > { %v5022_v52 = vsub.f32 %v9520_v31, %v5004_v57  ;;  %v9795_v23 = vpop.eup %7570  ;;  %7584 = vpow2.f32 %v4752_v42 }
 0x711   : > { %v4756_v46 = vmul.f32 1.442695, %v4741_v54  ;;  %v4493_v18 = vsel %vm2992_vm11, %v9795_v23, 0.0  ;;  %v9801_v17 = vpop.eup %7572 }
 0x712   : > { %v5032_v48 = vmul.f32 1.442695, %v5022_v52  ;;  %v5007_v34 = vpop.xlane.xlu0 %5006  ;;  %4488 = vadd.xlane.f32.xlu0 %v4487_v22  ;;  %v4764_v44 = vsel %vm2992_vm11, %v9801_v17, 0.0 }
 0x713   : > { %v4998_v14 = vpop.xlane.xlu1 %4997  ;;  %7586 = vpow2.f32 %v4756_v46  ;;  %v5023_v40 = vsub.f32 %v9532_v61, %v5007_v34  ;;  %4494 = vadd.xlane.f32.xlu1 %v4493_v18 }
 0x714   : > { %v5020_v31 = vsub.f32 %v9528_v35, %v4998_v14  ;;  %v9805_v5 = vpop.eup %7574  ;;  %7588 = vpow2.f32 %v5032_v48 }
 0x715   : > { %v5034_v30 = vmul.f32 1.442695, %v5023_v40  ;;  %v4767_v63 = vsel %vm2992_vm11, %v9805_v5, 0.0  ;;  %v9811_v54 = vpop.eup %7576 }
 0x716   : > { %v5028_v42 = vmul.f32 1.442695, %v5020_v31  ;;  %v5001_v41 = vpop.xlane.xlu0 %5000  ;;  %4768 = vadd.xlane.f32.xlu0 %v4767_v63  ;;  %v4758_v48 = vsel %vm2992_vm11, %v9811_v54, 0.0 }
 0x717   : > { %v5019_v57 = vpop.xlane.xlu1 %5018  ;;  %7590 = vpow2.f32 %v5034_v30  ;;  %v5021_v61 = vsub.f32 %v9540_v45, %v5001_v41  ;;  %4765 = vadd.xlane.f32.xlu1 %v4764_v44 }
 0x718   : > { %v9814_v35 = vpop.eup %7578  ;;  %7592 = vpow2.f32 %v5028_v42  ;;  %v5027_v31 = vsub.f32 %v9544_v50, %v5019_v57 }
 0x719   : > { %v5030_v52 = vmul.f32 1.442695, %v5021_v61  ;;  %v4761_v46 = vsel %vm2992_vm11, %v9814_v35, 0.0  ;;  %v9818_v18 = vpop.eup %7580 }
 0x71a   : > { %v5016_v22 = vpop.xlane.xlu0 %5015  ;;  %4762 = vadd.xlane.f32.xlu0 %v4761_v46  ;;  %v4776_v41 = vsel %vm2992_vm11, %v9818_v18, 0.0  ;;  %v5042_v46 = vmul.f32 1.442695, %v5027_v31 }
 0x71b   : > { %v5013_v34 = vpop.xlane.xlu1 %5012  ;;  %7594 = vpow2.f32 %v5030_v52  ;;  %v5026_v14 = vsub.f32 %v9552_v28, %v5016_v22  ;;  %4759 = vadd.xlane.f32.xlu1 %v4758_v48  ;;  %v10552_v28 = vld [vmem:[#allocation51_spill] sm:$0xff] }
 0x71c   : > { %v5025_v45 = vsub.f32 %v9556_v36, %v5013_v34  ;;  %v9824_v40 = vpop.eup %7582 }
 0x71d   : > { %v5040_v30 = vmul.f32 1.442695, %v5026_v14  ;;  %v4770_v42 = vsel %vm2992_vm11, %v9824_v40, 0.0  ;;  %v9831_v44 = vpop.eup %7584 }
 0x71e   : > { %v5038_v63 = vmul.f32 1.442695, %v5025_v45  ;;  %v5010_v61 = vpop.xlane.xlu0 %5009  ;;  %4777 = vadd.xlane.f32.xlu0 %v4776_v41  ;;  %v4773_v22 = vsel %vm2992_vm11, %v9831_v44, 0.0 }
 0x71f   : > { %7596 = vpow2.f32 %v5040_v30  ;;  %v5024_v52 = vsub.f32 %v10552_v28, %v5010_v61  ;;  %4771 = vadd.xlane.f32.xlu1 %v4770_v42 }
 0x720   : > { %v9834_v36 = vpop.eup %7586  ;;  %7598 = vpow2.f32 %v5038_v63 }
 0x721   : > { %v5036_v50 = vmul.f32 1.442695, %v5024_v52  ;;  %v4779_v57 = vsel %vm2992_vm11, %v9834_v36, 0.0  ;;  %v9840_v48 = vpop.eup %7588 }
 0x722   : > { %4774 = vadd.xlane.f32.xlu0 %v4773_v22  ;;  %10553 = vst [vmem:[#allocation38_spill] sm:$0xff] %v9840_v48  ;;  %v5050_v45 = vsel %vm2992_vm11, %v9840_v48, 0.0 }
 0x723   : > { %7600 = vpow2.f32 %v5036_v50  ;;  %4780 = vadd.xlane.f32.xlu1 %v4779_v57 }
 0x724   : > { %v9842_v34 = vpop.eup %7590  ;;  %7602 = vpow2.f32 %v5042_v46 }
 0x725   : > { %10554 = vst [vmem:[#allocation39_spill] sm:$0xff] %v9842_v34  ;;  %v5053_v14 = vsel %vm2992_vm11, %v9842_v34, 0.0  ;;  %v9848_v31 = vpop.eup %7592 }
 0x726   : > { %5054 = vadd.xlane.f32.xlu0 %v5053_v14  ;;  %v5044_v42 = vsel %vm2992_vm11, %v9848_v31, 0.0 }
 0x727   : > { %5051 = vadd.xlane.f32.xlu1 %v5050_v45 }
 0x728   : > { %v9850_v30 = vpop.eup %7594 }
 0x729   : > { %v5047_v63 = vsel %vm2992_vm11, %v9850_v30, 0.0 }
 0x72a   : > { %5048 = vadd.xlane.f32.xlu0 %v5047_v63 }
 0x72b   : > { %5045 = vadd.xlane.f32.xlu1 %v5044_v42 }
 0x72c   : > { %v9856_v41 = vpop.eup %7596 }
 0x72d   : > { %10555 = vst [vmem:[#allocation13_spill] sm:$0xff] %v9856_v41  ;;  %v5062_v61 = vsel %vm2992_vm11, %v9856_v41, 0.0  ;;  %v9860_v28 = vpop.eup %7598 }
 0x72e   : > { %10556 = vst [vmem:[#allocation41_spill] sm:$0xff] %v9860_v28  ;;  %5063 = vadd.xlane.f32.xlu0 %v5062_v61  ;;  %v5059_v50 = vsel %vm2992_vm11, %v9860_v28, 0.0 }
 0x730   : > { %v9862_v52 = vpop.eup %7600 }
 0x731   : > { %10557 = vst [vmem:[#allocation40_spill] sm:$0xff] %v9862_v52  ;;  %v5056_v46 = vsel %vm2992_vm11, %v9862_v52, 0.0  ;;  %v9868_v57 = vpop.eup %7602 }
 0x732   : > { %10558 = vst [vmem:[#allocation35_spill] sm:$0xff] %v9868_v57  ;;  %5057 = vadd.xlane.f32.xlu1 %v5056_v46  ;;  %5060 = vadd.xlane.f32.xlu0 %v5059_v50  ;;  %v3332_v22 = vpop.xlane.xlu1 %3331  ;;  %v5065_v14 = vsel %vm2992_vm11, %v9868_v57, 0.0  ;;  %v10559_v50 = vld [vmem:[#allocation10_spill] sm:$0xff] }
 0x736   : > { %5066 = vadd.xlane.f32.xlu1 %v5065_v14  ;;  %v3335_v45 = vpop.xlane.xlu0 %3334 }
 0x737   : > { %7604 = vrcp.f32 %v3335_v45  ;;  %v3326_v63 = vpop.xlane.xlu1 %3325  ;;  %v10560_v45 = vld [vmem:[#allocation9_spill] sm:$0xff] }
 0x738   : > { %7606 = vrcp.f32 %v3326_v63 }
 0x739   : > { %7608 = vrcp.f32 %v3332_v22 }
 0x73a   : > { %v3329_v42 = vpop.xlane.xlu0 %3328 }
 0x73b   : > { %7610 = vrcp.f32 %v3329_v42 }
 0x743   : > { %v3344_v61 = vpop.xlane.xlu1 %3343 }
 0x744   : > { %v7605_v41 = vpop.eup %7604 }
 0x745   : > { %v7607_v52 = vpop.eup %7606  ;;  %v3359_v14 = vmul.f32 %v7605_v41, %v9577_v15 }
 0x746   : > { %v3356_v28 = vmul.f32 %v7607_v52, %v9581_v11  ;;  %v7609_v48 = vpop.eup %7608  ;;  %v10561_v52 = vld [vmem:[#allocation11_spill] sm:$0xff] }
 0x747   : > { %v3347_v46 = vpop.xlane.xlu0 %3346  ;;  %5098 = vrot.lane.b32.xlu1 %v10559_v50, %s7826_s25  ;;  %v3358_v42 = vmul.f32 %v7609_v48, %v9572_v0 }
 0x748   : > { %v7611_v34 = vpop.eup %7610  ;;  %v3338_v57 = vpop.xlane.xlu1 %3337  ;;  %5100 = vrot.lane.b32.xlu0 %v10560_v45, %s7826_s25  ;;  %7612 = vrcp.f32 %v3347_v46  ;;  %v3364_v63 = vmul.f32 %v9674_v47, %v3356_v28  ;;  %v10563_v28 = vld [vmem:[#allocation15_spill] sm:$0xff] }
 0x749   : > { %v3357_v22 = vmul.f32 %v7611_v34, %v9587_v3  ;;  %7614 = vrcp.f32 %v3338_v57  ;;  %v3373_v41 = vpack.c.bf16 %v3359_v14, %v3358_v42  ;;  %v10562_v34 = vld [vmem:[#allocation14_spill] sm:$0xff] }
 0x74a   : > { %7616 = vrcp.f32 %v3344_v61 }
 0x74b   : > { %v3341_v11 = vpop.xlane.xlu0 %3340  ;;  %5096 = vrot.lane.b32.xlu1 %v10561_v52, %s7826_s25  ;;  %v3372_v50 = vpack.c.bf16 %v3357_v22, %v3364_v63  ;;  %v10564_v22 = vld [vmem:[#allocation16_spill] sm:$0xff] }
 0x74c   : > { %7618 = vrcp.f32 %v3341_v11  ;;  %v3622_v15 = vpop.xlane.xlu1 %3621 }
 0x74d   : > { %6856 = vmatprep.mubr.msk.bf16.mxu0 %vm2992_vm11, %v3372_v50 }
 0x74e   : > { %6857 = vmatmul.mubr.msk.bf16.vlgmr.msra.gmra.mxu0 %vm2992_vm11, %v3373_v41 }
 0x74f   : > { %6875 = vmatpush3.bf16.msra.mxu0 %v10536_v7 }
 0x750   : > { %v3616_v3 = vpop.xlane.xlu1 %3615  ;;  %6876 = vmatprep.subr.bf16.mxu0 %v10562_v34 }
 0x751   : > { %7620 = vrcp.f32 %v3616_v3  ;;  %v10565_v3 = vld [vmem:[#allocation17_spill] sm:$0xff] }
 0x753   : > { %6877 = vmatpush3.bf16.msra.mxu0 %v10562_v34  ;;  %v3634_v0 = vpop.xlane.xlu0 %3633 }
 0x754   : > { %v3625_v48 = vpop.xlane.xlu1 %3624  ;;  %6878 = vmatprep.subr.bf16.mxu0 %v10563_v28 }
 0x755   : > { %v7613_v57 = vpop.eup %7612  ;;  %7622 = vrcp.f32 %v3625_v48 }
 0x756   : > { %v7615_v61 = vpop.eup %7614  ;;  %7624 = vrcp.f32 %v3622_v15  ;;  %v3363_v63 = vmul.f32 %v7613_v57, %v9603_v39 }
 0x757   : > { %6879 = vmatpush3.bf16.msra.mxu0 %v10563_v28  ;;  %v7617_v46 = vpop.eup %7616  ;;  %v3628_v14 = vpop.xlane.xlu0 %3627  ;;  %v3360_v42 = vmul.f32 %v7615_v61, %v9605_v8 }
 0x758   : > { %v3619_v45 = vpop.xlane.xlu1 %3618  ;;  %6880 = vmatprep.subr.bf16.mxu0 %v10564_v22  ;;  %v3362_v52 = vmul.f32 %v7617_v46, %v9597_v21 }
 0x759   : > { %v7619_v7 = vpop.eup %7618  ;;  %7626 = vrcp.f32 %v3619_v45 }
 0x75a   : > { %v3361_v11 = vmul.f32 %v7619_v7, %v9613_v33  ;;  %7628 = vrcp.f32 %v3628_v14  ;;  %v3375_v48 = vpack.c.bf16 %v3363_v63, %v3362_v52 }
 0x75b   : > { %6881 = vmatpush3.bf16.msra.mxu0 %v10564_v22  ;;  %v3631_v50 = vpop.xlane.xlu0 %3630 }
 0x75c   : > { %v3637_v41 = vpop.xlane.xlu1 %3636  ;;  %6900 = vmatprep.subr.bf16.mxu0 %v10565_v3  ;;  %v3374_v34 = vpack.c.bf16 %v3361_v11, %v3360_v42  ;;  %7630 = vrcp.f32 %v3631_v50 }
 0x75d   : > { %7632 = vrcp.f32 %v3637_v41 }
 0x75e   : > { %6860 = vmatprep.mubr.msk.bf16.mxu0 %vm2992_vm11, %v3374_v34  ;;  %v7621_v33 = vpop.eup %7620  ;;  %7634 = vrcp.f32 %v3634_v0  ;;  %v10566_v34 = vld [vmem:[#allocation18_spill] sm:$0xff] }
 0x75f   : > { %6861 = vmatmul.mubr.msk.bf16.gmra.mxu0 %vm2992_vm11, %v3375_v48  ;;  %v3911_v39 = vpop.xlane.xlu0 %3910  ;;  %v3646_v57 = vmul.f32 %v7621_v33, %v9623_v1  ;;  %v10567_v33 = vld [vmem:[#allocation19_spill] sm:$0xff] }
 0x760   : > { %v3908_v8 = vpop.xlane.xlu1 %3907  ;;  %7636 = vrcp.f32 %v3911_v39 }
 0x761   : > { %v3654_v7 = vmul.f32 %v9674_v47, %v3646_v57 }
 0x762   : > { %v7623_v15 = vpop.eup %7622 }
 0x763   : > { %v3905_v28 = vpop.xlane.xlu0 %3904  ;;  %v7625_v61 = vpop.eup %7624  ;;  %v3649_v14 = vmul.f32 %v7623_v15, %v9627_v6 }
 0x764   : > { %v3902_v21 = vpop.xlane.xlu1 %3901  ;;  %7638 = vrcp.f32 %v3905_v28  ;;  %v3648_v0 = vmul.f32 %v7625_v61, %v9615_v59 }
 0x765   : > { %7640 = vrcp.f32 %v3902_v21 }
 0x766   : > { %v7627_v46 = vpop.eup %7626  ;;  %7642 = vrcp.f32 %v3908_v8  ;;  %v3663_v11 = vpack.c.bf16 %v3649_v14, %v3648_v0  ;;  %v10568_v14 = vld [vmem:[#allocation20_spill] sm:$0xff] }
 0x767   : > { %v7629_v45 = vpop.eup %7628  ;;  %v3647_v22 = vmul.f32 %v7627_v46, %v9636_v32 }
 0x768   : > { %v3650_v52 = vmul.f32 %v7629_v45, %v9638_v13 }
 0x769   : > { %v7631_v63 = vpop.eup %7630  ;;  %v3662_v42 = vpack.c.bf16 %v3647_v22, %v3654_v7 }
 0x76a   : > { %v3651_v1 = vmul.f32 %v7631_v63, %v9647_v58  ;;  %v7633_v50 = vpop.eup %7632 }
 0x76b   : > { %6882 = vmatprep.mubr.msk.bf16.mxu0 %vm2992_vm11, %v3662_v42  ;;  %v7635_v41 = vpop.eup %7634  ;;  %v3920_v32 = vpop.xlane.xlu0 %3919  ;;  %v3653_v59 = vmul.f32 %v7633_v50, %v9644_v20 }
 0x76c   : > { %6883 = vmatmul.mubr.msk.bf16.vlgmr.msra.gmra.mxu0 %vm2992_vm11, %v3663_v11  ;;  %v3664_v6 = vpack.c.bf16 %v3651_v1, %v3650_v52  ;;  %v3652_v58 = vmul.f32 %v7635_v41, %v9630_v56 }
 0x76d   : > { %6901 = vmatpush3.bf16.msra.mxu0 %v10565_v3  ;;  %v7637_v13 = vpop.eup %7636 }
 0x76e   : > { %6902 = vmatprep.subr.bf16.mxu0 %v10566_v34  ;;  %6886 = vmatprep.mubr.msk.bf16.mxu0 %vm2992_vm11, %v3664_v6  ;;  %v3665_v15 = vpack.c.bf16 %v3653_v59, %v3652_v58  ;;  %v3935_v61 = vmul.f32 %v7637_v13, %v9657_v2  ;;  %v10570_v2 = vld [vmem:[#allocation22_spill] sm:$0xff]  ;;  %v10571_v6 = vld [vmem:[#allocation23_spill] sm:$0xff]  ;;  %v10572_v58 = vld [vmem:[#allocation24_spill] sm:$0xff] }
 0x76f   : > { %v3914_v48 = vpop.xlane.xlu1 %3913 }
 0x770   : > { %7644 = vrcp.f32 %v3914_v48 }
 0x771   : > { %v7639_v39 = vpop.eup %7638  ;;  %6903 = vmatpush3.bf16.msra.mxu0 %v10566_v34  ;;  %7646 = vrcp.f32 %v3920_v32 }
 0x772   : > { %v7641_v8 = vpop.eup %7640  ;;  %6904 = vmatprep.subr.bf16.mxu0 %v10567_v33  ;;  %v3933_v56 = vmul.f32 %v7639_v39, %v9668_v24 }
 0x773   : > { %v3917_v3 = vpop.xlane.xlu0 %3916  ;;  %v7643_v28 = vpop.eup %7642  ;;  %v3932_v57 = vmul.f32 %v7641_v8, %v9663_v43  ;;  %v10569_v43 = vld [vmem:[#allocation21_spill] sm:$0xff] }
 0x774   : > { %7648 = vrcp.f32 %v3917_v3  ;;  %v3923_v21 = vpop.xlane.xlu1 %3922  ;;  %6887 = vmatmul.mubr.msk.bf16.gmra.mxu0 %vm2992_vm11, %v3665_v15  ;;  %v3934_v46 = vmul.f32 %v7643_v28, %v9653_v12  ;;  %v10574_v15 = vld [vmem:[#allocation52_spill] sm:$0xff] }
 0x775   : > { %7650 = vrcp.f32 %v3923_v21  ;;  %6905 = vmatpush3.bf16.msra.mxu0 %v10567_v33  ;;  %v3940_v20 = vmul.f32 %v9674_v47, %v3932_v57  ;;  %v10575_v57 = vld [vmem:[#allocation12_spill] sm:$0xff] }
 0x776   : > { %6906 = vmatprep.subr.bf16.mxu0 %v10568_v14  ;;  %v3949_v0 = vpack.c.bf16 %v3935_v61, %v3934_v46 }
 0x777   : > { %v4197_v45 = vpop.xlane.xlu0 %4196  ;;  %v3948_v7 = vpack.c.bf16 %v3933_v56, %v3940_v20 }
 0x778   : > { %v4194_v22 = vpop.xlane.xlu1 %4193  ;;  %7652 = vrcp.f32 %v4197_v45 }
 0x779   : > { %6907 = vmatpush3.bf16.msra.mxu0 %v10568_v14  ;;  %6908 = vmatprep.mubr.msk.bf16.mxu0 %vm2992_vm11, %v3948_v7  ;;  %7654 = vrcp.f32 %v4194_v22 }
 0x77a   : > { %6926 = vmatprep.subr.bf16.mxu0 %v10569_v43 }
 0x77b   : > { %v4191_v24 = vpop.xlane.xlu0 %4190 }
 0x77c   : > { %7656 = vrcp.f32 %v4191_v24  ;;  %v4188_v63 = vpop.xlane.xlu1 %4187  ;;  %6909 = vmatmul.mubr.msk.bf16.vlgmr.msra.gmra.mxu0 %vm2992_vm11, %v3949_v0  ;;  %v10577_v0 = vld [vmem:[#allocation27_spill] sm:$0xff] }
 0x77d   : > { %7658 = vrcp.f32 %v4188_v63  ;;  %6927 = vmatpush3.bf16.msra.mxu0 %v10569_v43  ;;  %v7645_v12 = vpop.eup %7644 }
 0x77e   : > { %6928 = vmatprep.subr.bf16.mxu0 %v10570_v2  ;;  %v7647_v42 = vpop.eup %7646  ;;  %v3936_v1 = vmul.f32 %v7645_v12, %v9692_v55 }
 0x77f   : > { %v3938_v41 = vmul.f32 %v7647_v42, %v9684_v4  ;;  %v10573_v4 = vld [vmem:[#allocation25_spill] sm:$0xff] }
 0x781   : > { %v7649_v11 = vpop.eup %7648  ;;  %6929 = vmatpush3.bf16.msra.mxu0 %v10570_v2 }
 0x782   : > { %v7651_v52 = vpop.eup %7650  ;;  %v3937_v50 = vmul.f32 %v7649_v11, %v9700_v53  ;;  %6930 = vmatprep.subr.bf16.mxu0 %v10571_v6 }
 0x783   : > { %v3939_v32 = vmul.f32 %v7651_v52, %v9696_v25 }
 0x784   : > { %v3950_v34 = vpack.c.bf16 %v3937_v50, %v3936_v1  ;;  %v4206_v13 = vpop.xlane.xlu0 %4205 }
 0x785   : > { %v3951_v59 = vpack.c.bf16 %v3939_v32, %v3938_v41  ;;  %6931 = vmatpush3.bf16.msra.mxu0 %v10571_v6  ;;  %v7653_v48 = vpop.eup %7652  ;;  %v10578_v6 = vld [vmem:[#allocation28_spill] sm:$0xff] }
 0x786   : > { %6912 = vmatprep.mubr.msk.bf16.mxu0 %vm2992_vm11, %v3950_v34  ;;  %6932 = vmatprep.subr.bf16.mxu0 %v10572_v58  ;;  %v7655_v55 = vpop.eup %7654  ;;  %v4221_v3 = vmul.f32 %v7653_v48, %v9712_v51  ;;  %v10579_v48 = vld [vmem:[#allocation29_spill] sm:$0xff] }
 0x787   : > { %6913 = vmatmul.mubr.msk.bf16.gmra.mxu0 %vm2992_vm11, %v3951_v59  ;;  %v4220_v28 = vmul.f32 %v7655_v55, %v10574_v15 }
 0x788   : > { %v4200_v53 = vpop.xlane.xlu1 %4199 }
 0x789   : > { %v7657_v39 = vpop.eup %7656  ;;  %6933 = vmatpush3.bf16.msra.mxu0 %v10572_v58  ;;  %7660 = vrcp.f32 %v4200_v53  ;;  %v4235_v14 = vpack.c.bf16 %v4221_v3, %v4220_v28 }
 0x78a   : > { %v7659_v8 = vpop.eup %7658  ;;  %7662 = vrcp.f32 %v4206_v13  ;;  %6952 = vmatprep.subr.bf16.mxu0 %v10573_v4  ;;  %v4219_v56 = vmul.f32 %v7657_v39, %v10575_v57 }
 0x78b   : > { %v4203_v25 = vpop.xlane.xlu0 %4202  ;;  %v4218_v33 = vmul.f32 %v7659_v8, %v9719_v19  ;;  %v10576_v19 = vld [vmem:[#allocation26_spill] sm:$0xff] }
 0x78c   : > { %7664 = vrcp.f32 %v4203_v25  ;;  %v4209_v21 = vpop.xlane.xlu1 %4208 }
 0x78d   : > { %7666 = vrcp.f32 %v4209_v21  ;;  %v4226_v20 = vmul.f32 %v9674_v47, %v4218_v33 }
 0x78f   : > { %v4483_v61 = vpop.xlane.xlu0 %4482  ;;  %v4234_v46 = vpack.c.bf16 %v4219_v56, %v4226_v20  ;;  %v10580_v20 = vld [vmem:[#allocation30_spill] sm:$0xff] }
 0x790   : > { %v4480_v45 = vpop.xlane.xlu1 %4479  ;;  %7668 = vrcp.f32 %v4483_v61 }
 0x791   : > { %6934 = vmatprep.mubr.msk.bf16.mxu0 %vm2992_vm11, %v4234_v46  ;;  %7670 = vrcp.f32 %v4480_v45 }
 0x792   : > { %6935 = vmatmul.mubr.msk.bf16.vlgmr.msra.gmra.mxu0 %vm2992_vm11, %v4235_v14 }
 0x793   : > { %6953 = vmatpush3.bf16.msra.mxu0 %v10573_v4  ;;  %v4477_v51 = vpop.xlane.xlu0 %4476 }
 0x794   : > { %6954 = vmatprep.subr.bf16.mxu0 %v10576_v19  ;;  %7672 = vrcp.f32 %v4477_v51  ;;  %v4474_v22 = vpop.xlane.xlu1 %4473 }
 0x795   : > { %7674 = vrcp.f32 %v4474_v22 }
 0x796   : > { %v7661_v7 = vpop.eup %7660 }
 0x797   : > { %6955 = vmatpush3.bf16.msra.mxu0 %v10576_v19  ;;  %v4492_v43 = vpop.xlane.xlu0 %4491  ;;  %v7663_v24 = vpop.eup %7662  ;;  %v4222_v42 = vmul.f32 %v7661_v7, %v9747_v60  ;;  %v10581_v19 = vld [vmem:[#allocation31_spill] sm:$0xff] }
 0x798   : > { %6956 = vmatprep.subr.bf16.mxu0 %v10577_v0  ;;  %v4486_v63 = vpop.xlane.xlu1 %4485  ;;  %v4224_v1 = vmul.f32 %v7663_v24, %v9739_v27 }
 0x799   : > { %v7665_v12 = vpop.eup %7664  ;;  %7676 = vrcp.f32 %v4486_v63 }
 0x79a   : > { %v7667_v2 = vpop.eup %7666  ;;  %v4223_v11 = vmul.f32 %v7665_v12, %v9755_v62  ;;  %v10582_v12 = vld [vmem:[#allocation33_spill] sm:$0xff] }
 0x79b   : > { %6957 = vmatpush3.bf16.msra.mxu0 %v10577_v0  ;;  %v4489_v52 = vpop.xlane.xlu0 %4488  ;;  %v4225_v50 = vmul.f32 %v7667_v2, %v9751_v49 }
 0x79c   : > { %6958 = vmatprep.subr.bf16.mxu0 %v10578_v6  ;;  %7678 = vrcp.f32 %v4489_v52  ;;  %v4495_v41 = vpop.xlane.xlu1 %4494  ;;  %v4236_v32 = vpack.c.bf16 %v4223_v11, %v4222_v42 }
 0x79d   : > { %7680 = vrcp.f32 %v4495_v41  ;;  %v4237_v34 = vpack.c.bf16 %v4225_v50, %v4224_v1  ;;  %v7669_v60 = vpop.eup %7668 }
 0x79e   : > { %7682 = vrcp.f32 %v4492_v43  ;;  %6938 = vmatprep.mubr.msk.bf16.mxu0 %vm2992_vm11, %v4236_v32  ;;  %v7671_v59 = vpop.eup %7670  ;;  %v4507_v53 = vmul.f32 %v7669_v60, %v9765_v26 }
 0x79f   : > { %6959 = vmatpush3.bf16.msra.mxu0 %v10578_v6  ;;  %v4769_v62 = vpop.xlane.xlu0 %4768  ;;  %v4506_v39 = vmul.f32 %v7671_v59, %v9761_v9  ;;  %v10583_v6 = vld [vmem:[#allocation32_spill] sm:$0xff] }
 0x7a0   : > { %6978 = vmatprep.subr.bf16.mxu0 %v10579_v48  ;;  %6939 = vmatmul.mubr.msk.bf16.gmra.mxu0 %vm2992_vm11, %v4237_v34  ;;  %v4766_v27 = vpop.xlane.xlu1 %4765  ;;  %7684 = vrcp.f32 %v4769_v62 }
 0x7a1   : > { %v7673_v49 = vpop.eup %7672  ;;  %7686 = vrcp.f32 %v4766_v27  ;;  %v4521_v28 = vpack.c.bf16 %v4507_v53, %v4506_v39 }
 0x7a2   : > { %v7675_v13 = vpop.eup %7674  ;;  %v4505_v4 = vmul.f32 %v7673_v49, %v9775_v37 }
 0x7a3   : > { %v4763_v58 = vpop.xlane.xlu0 %4762  ;;  %v4504_v55 = vmul.f32 %v7675_v13, %v9771_v16 }
 0x7a4   : > { %7688 = vrcp.f32 %v4763_v58  ;;  %v4760_v8 = vpop.xlane.xlu1 %4759 }
 0x7a5   : > { %7690 = vrcp.f32 %v4760_v8  ;;  %v4512_v25 = vmul.f32 %v9674_v47, %v4504_v55  ;;  %v10584_v8 = vld [vmem:[#allocation39_spill] sm:$0xff] }
 0x7a6   : > { %v7677_v33 = vpop.eup %7676 }
 0x7a7   : > { %v4778_v3 = vpop.xlane.xlu0 %4777  ;;  %v4520_v15 = vpack.c.bf16 %v4505_v4, %v4512_v25  ;;  %v4508_v9 = vmul.f32 %v7677_v33, %v9785_v38  ;;  %v10585_v25 = vld [vmem:[#allocation38_spill] sm:$0xff] }
 0x7a8   : > { %v4772_v21 = vpop.xlane.xlu1 %4771 }
 0x7a9   : > { %v7679_v57 = vpop.eup %7678  ;;  %6960 = vmatprep.mubr.msk.bf16.mxu0 %vm2992_vm11, %v4520_v15  ;;  %7692 = vrcp.f32 %v4772_v21 }
 0x7aa   : > { %v7681_v16 = vpop.eup %7680  ;;  %6961 = vmatmul.mubr.msk.bf16.vlgmr.msra.gmra.mxu0 %vm2992_vm11, %v4521_v28  ;;  %v4509_v26 = vmul.f32 %v7679_v57, %v9791_v29 }
 0x7ab   : > { %v7683_v56 = vpop.eup %7682  ;;  %6979 = vmatpush3.bf16.msra.mxu0 %v10579_v48  ;;  %v4775_v37 = vpop.xlane.xlu0 %4774  ;;  %v4511_v14 = vmul.f32 %v7681_v16, %v9795_v23 }
 0x7ac   : > { %6980 = vmatprep.subr.bf16.mxu0 %v10580_v20  ;;  %7694 = vrcp.f32 %v4775_v37  ;;  %v4781_v61 = vpop.xlane.xlu1 %4780  ;;  %v4522_v46 = vpack.c.bf16 %v4509_v26, %v4508_v9  ;;  %v4510_v45 = vmul.f32 %v7683_v56, %v9777_v10  ;;  %v10587_v9 = vld [vmem:[#allocation40_spill] sm:$0xff]  ;;  %v10588_v37 = vld [vmem:[#allocation35_spill] sm:$0xff] }
 0x7ad   : > { %7696 = vrcp.f32 %v4781_v61  ;;  %v7685_v38 = vpop.eup %7684  ;;  %v10589_v61 = vld [vmem:[#allocation13_spill] sm:$0xff] }
 0x7ae   : > { %7698 = vrcp.f32 %v4778_v3  ;;  %6964 = vmatprep.mubr.msk.bf16.mxu0 %vm2992_vm11, %v4522_v46  ;;  %v7687_v51 = vpop.eup %7686  ;;  %v4523_v7 = vpack.c.bf16 %v4511_v14, %v4510_v45  ;;  %v4793_v10 = vmul.f32 %v7685_v38, %v9805_v5  ;;  %v10590_v45 = vmov 0   ;;  %v10011_v38 = vpop.f32.mrf.mxu0 }
 0x7af   : > { %6981 = vmatpush3.bf16.msra.mxu0 %v10580_v20  ;;  %v5055_v29 = vpop.xlane.xlu0 %5054  ;;  %v4792_v63 = vmul.f32 %v7687_v51, %v9801_v17 }
 0x7b0   : > { %6982 = vmatprep.subr.bf16.mxu0 %v10581_v19  ;;  %v5052_v22 = vpop.xlane.xlu1 %5051  ;;  %7700 = vrcp.f32 %v5055_v29  ;;  %v10013_v29 = vpop.f32.mrf.mxu0 }
 0x7b1   : > { %v7689_v43 = vpop.eup %7688 }
 0x7b2   : > { %v7691_v24 = vpop.eup %7690  ;;  %6965 = vmatmul.mubr.msk.bf16.gmra.mxu0 %vm2992_vm11, %v4523_v7  ;;  %v4791_v42 = vmul.f32 %v7689_v43, %v9814_v35  ;;  %v10015_v51 = vpop.f32.mrf.mxu0 }
 0x7b3   : > { %6983 = vmatpush3.bf16.msra.mxu0 %v10581_v19  ;;  %v5049_v23 = vpop.xlane.xlu0 %5048  ;;  %v4790_v0 = vmul.f32 %v7691_v24, %v9811_v54  ;;  %v4807_v54 = vpack.c.bf16 %v4793_v10, %v4792_v63 }
 0x7b4   : > { %6984 = vmatprep.subr.bf16.mxu0 %v10582_v12  ;;  %7702 = vrcp.f32 %v5049_v23  ;;  %v5046_v2 = vpop.xlane.xlu1 %5045  ;;  %v10017_v19 = vpop.f32.mrf.mxu0 }
 0x7b5   : > { %7704 = vrcp.f32 %v5046_v2  ;;  %v4798_v11 = vmul.f32 %v9674_v47, %v4790_v0 }
 0x7b6   : > { %7706 = vrcp.f32 %v5052_v22  ;;  %v7693_v52 = vpop.eup %7692 }
 0x7b7   : > { %6985 = vmatpush3.bf16.msra.mxu0 %v10582_v12  ;;  %v5064_v1 = vpop.xlane.xlu0 %5063  ;;  %v4806_v50 = vpack.c.bf16 %v4791_v42, %v4798_v11  ;;  %v4794_v41 = vmul.f32 %v7693_v52, %v9824_v40 }
 0x7b8   : > { %7004 = vmatprep.subr.bf16.mxu0 %v10583_v6 }
 0x7b9   : > { %v7695_v5 = vpop.eup %7694  ;;  %6986 = vmatprep.mubr.msk.bf16.mxu0 %vm2992_vm11, %v4806_v50 }
 0x7ba   : > { %v7697_v17 = vpop.eup %7696  ;;  %6987 = vmatmul.mubr.msk.bf16.vlgmr.msra.gmra.mxu0 %vm2992_vm11, %v4807_v54  ;;  %v4795_v35 = vmul.f32 %v7695_v5, %v9831_v44  ;;  %v10019_v22 = vpop.f32.mrf.mxu0 }
 0x7bb   : > { %v7699_v32 = vpop.eup %7698  ;;  %7005 = vmatpush3.bf16.msra.mxu0 %v10583_v6  ;;  %v5061_v34 = vpop.xlane.xlu0 %5060  ;;  %v4797_v59 = vmul.f32 %v7697_v17, %v9834_v36 }
 0x7bc   : > { %v5058_v60 = vpop.xlane.xlu1 %5057  ;;  %7708 = vrcp.f32 %v5061_v34  ;;  %v4808_v62 = vpack.c.bf16 %v4795_v35, %v4794_v41  ;;  %v4796_v48 = vmul.f32 %v7699_v32, %v9818_v18  ;;  %v10021_v7 = vpop.f32.mrf.mxu0 }
 0x7bd   : > { %7710 = vrcp.f32 %v5058_v60  ;;  %v7701_v40 = vpop.eup %7700 }
 0x7be   : > { %6990 = vmatprep.mubr.msk.bf16.mxu0 %vm2992_vm11, %v4808_v62  ;;  %7712 = vrcp.f32 %v5064_v1  ;;  %v4809_v44 = vpack.c.bf16 %v4797_v59, %v4796_v48  ;;  %v5079_v4 = vmul.f32 %v7701_v40, %v10584_v8  ;;  %v10023_v43 = vpop.f32.mrf.mxu0 }
 0x7bf   : > { %v5101_v27 = vpop.permute.xlu0 %5100 }
 0x7c0   : > { %v5067_v49 = vpop.xlane.xlu1 %5066  ;;  %7006 = vmatprep.subr.bf16.mxu0 %v5101_v27  ;;  %v10025_v24 = vpop.f32.mrf.mxu0 }
 0x7c1   : > { %7714 = vrcp.f32 %v5067_v49  ;;  %v7703_v13 = vpop.eup %7702  ;;  %7007 = vmatpush3.bf16.msra.mxu0 %v5101_v27 }
 0x7c2   : > { %v7705_v58 = vpop.eup %7704  ;;  %6991 = vmatmul.mubr.msk.bf16.gmra.mxu0 %vm2992_vm11, %v4809_v44  ;;  %v5077_v18 = vmul.f32 %v7703_v13, %v9850_v30 }
 0x7c3   : > { %v7707_v55 = vpop.eup %7706  ;;  %v5076_v36 = vmul.f32 %v7705_v58, %v9848_v31  ;;  %v10586_v31 = vld [vmem:[#allocation41_spill] sm:$0xff] }
 0x7c4   : > { %v5099_v53 = vpop.permute.xlu1 %5098  ;;  %v5078_v33 = vmul.f32 %v7707_v55, %v10585_v25 }
 0x7c5   : > { %7008 = vmatprep.subr.bf16.mxu0 %v5099_v53  ;;  %v5084_v39 = vmul.f32 %v9674_v47, %v5076_v36 }
 0x7c6   : > { %7009 = vmatpush3.bf16.msra.mxu0 %v5099_v53  ;;  %v5093_v57 = vpack.c.bf16 %v5079_v4, %v5078_v33 }
 0x7c7   : > { %v5092_v15 = vpack.c.bf16 %v5077_v18, %v5084_v39 }
 0x7c8   : > { %v5097_v3 = vpop.permute.xlu1 %5096 }
 0x7c9   : > { %7010 = vmatprep.subr.bf16.mxu0 %v5097_v3  ;;  %v7709_v28 = vpop.eup %7708  ;;  %7012 = vmatprep.mubr.msk.bf16.mxu0 %vm2992_vm11, %v5092_v15 }
 0x7ca   : > { %7011 = vmatpush3.bf16.msra.mxu0 %v5097_v3  ;;  %v7711_v21 = vpop.eup %7710  ;;  %v5081_v16 = vmul.f32 %v7709_v28, %v10586_v31 }
 0x7cb   : > { %v5080_v26 = vmul.f32 %v7711_v21, %v10587_v9  ;;  %v7713_v30 = vpop.eup %7712  ;;  %v7276_v9 = vld [vmem:[%s10390_s15 + $0x78] sm:$0xff]  }
 0x7cc   : > { %v5082_v46 = vmul.f32 %v7713_v30, %v10589_v61  ;;  %v7277_v30 = vld [vmem:[%s10390_s15 + $0x38] sm:$0xff]   ;;  %6724 = vmatprep.subr.bf16.mxu1 %v7276_v9  ;;  %v7280_v61 = vld [vmem:[%s10390_s15 + $0x68] sm:$0xff]  }
 0x7cd   : > { %7013 = vmatmul.mubr.msk.bf16.vlgmr.msra.gmra.mxu0 %vm2992_vm11, %v5093_v57  ;;  %v5094_v56 = vpack.c.bf16 %v5081_v16, %v5080_v26  ;;  %6725 = vmatpush3.bf16.msra.mxu1 %v7277_v30 }
 0x7ce   : > { %v7715_v47 = vpop.eup %7714 }
 0x7cf   : > { %v5083_v20 = vmul.f32 %v7715_v47, %v10588_v37  ;;  %7016 = vmatprep.mubr.msk.bf16.mxu0 %vm2992_vm11, %v5094_v56  ;;  %v7278_v56 = vld [vmem:[%s10390_s15 + $0x70] sm:$0xff]  }
 0x7d0   : > { %6726 = vmatprep.subr.bf16.mxu1 %v7278_v56 }
 0x7d1   : > { %v5095_v14 = vpack.c.bf16 %v5083_v20, %v5082_v46  ;;  %v7279_v20 = vld [vmem:[%s10390_s15 + $0x30] sm:$0xff]  }
 0x7d2   : > { %6727 = vmatpush3.bf16.msra.mxu1 %v7279_v20 }
 0x7d3   : > { %6728 = vmatprep.subr.bf16.mxu1 %v7280_v61 }
 0x7d5   : > { %7017 = vmatmul.mubr.msk.bf16.gmra.mxu0 %vm2992_vm11, %v5095_v14  ;;  %vm5471_vm11 = vcmask 130048  }
 0x7d6   : > { %5924 = vmatprep.mubr.bf16.mxu0 %v10590_v45 }
 0x80e   : > { %v6858_v23 = vpop.f32.mrf.mxu0 }
 0x80f   : > { %5197 = vrot.lane.b32.xlu0 %v6858_v23, %s7829_s26  ;;  %v7281_v23 = vld [vmem:[%s10390_s15 + $0x28] sm:$0xff]  }
 0x810   : > { %v3438_v0 = vpop.f32.mrf.mxu0  ;;  %6729 = vmatpush3.bf16.msra.mxu1 %v7281_v23 }
 0x812   : > { %v6859_v10 = vpop.f32.mrf.mxu0 }
 0x813   : > { %5193 = vrot.lane.b32.xlu0 %v3438_v0, %s7829_s26  ;;  %5199 = vrot.lane.b32.xlu1 %v6859_v10, %s7829_s26  ;;  %v7282_v10 = vld [vmem:[%s10390_s15 + $0x60] sm:$0xff]  }
 0x814   : > { %v3441_v63 = vpop.f32.mrf.mxu0  ;;  %6730 = vmatprep.subr.bf16.mxu1 %v7282_v10 }
 0x817   : > { %5195 = vrot.lane.b32.xlu1 %v3441_v63, %s7829_s26  ;;  %v7283_v63 = vld [vmem:[%s10390_s15 + $0x20] sm:$0xff]  }
 0x818   : > { %6731 = vmatpush3.bf16.msra.mxu1 %v7283_v63 }
 0x81f   : > { %v6862_v12 = vpop.f32.mrf.mxu0 }
 0x820   : > { %5205 = vrot.lane.b32.xlu0 %v6862_v12, %s7829_s26 }
 0x821   : > { %v3454_v2 = vpop.f32.mrf.mxu0 }
 0x823   : > { %v6863_v42 = vpop.f32.mrf.mxu0 }
 0x824   : > { %5201 = vrot.lane.b32.xlu0 %v3454_v2, %s7829_s26  ;;  %5207 = vrot.lane.b32.xlu1 %v6863_v42, %s7829_s26  ;;  %v7284_v42 = vld [vmem:[%s10390_s15 + $0x58] sm:$0xff]  }
 0x825   : > { %v3457_v11 = vpop.f32.mrf.mxu0  ;;  %6732 = vmatprep.subr.bf16.mxu1 %v7284_v42 }
 0x828   : > { %5203 = vrot.lane.b32.xlu1 %v3457_v11, %s7829_s26 }
 0x82c   : > { %v6884_v52 = vpop.f32.mrf.mxu0 }
 0x82d   : > { %5229 = vrot.lane.b32.xlu0 %v6884_v52, %s7830_s19  ;;  %v7285_v52 = vld [vmem:[%s10390_s15 + $0x18] sm:$0xff]  }
 0x82e   : > { %v3724_v1 = vpop.f32.mrf.mxu0  ;;  %6733 = vmatpush3.bf16.msra.mxu1 %v7285_v52 }
 0x830   : > { %v6885_v50 = vpop.f32.mrf.mxu0 }
 0x831   : > { %5225 = vrot.lane.b32.xlu0 %v3724_v1, %s7830_s19  ;;  %5231 = vrot.lane.b32.xlu1 %v6885_v50, %s7830_s19 }
 0x832   : > { %v3727_v54 = vpop.f32.mrf.mxu0 }
 0x834   : > { %v6888_v6 = vpop.f32.mrf.mxu0 }
 0x835   : > { %5227 = vrot.lane.b32.xlu1 %v3727_v54, %s7830_s19  ;;  %5237 = vrot.lane.b32.xlu0 %v6888_v6, %s7830_s19 }
 0x836   : > { %v3740_v5 = vpop.f32.mrf.mxu0 }
 0x838   : > { %v6889_v17 = vpop.f32.mrf.mxu0 }
 0x839   : > { %5233 = vrot.lane.b32.xlu0 %v3740_v5, %s7830_s19  ;;  %5239 = vrot.lane.b32.xlu1 %v6889_v17, %s7830_s19  ;;  %v7286_v5 = vld [vmem:[%s10390_s15 + $0x50] sm:$0xff]  }
 0x83a   : > { %v3743_v41 = vpop.f32.mrf.mxu0  ;;  %v7287_v17 = vld [vmem:[%s10390_s15 + $0x10] sm:$0xff]   ;;  %6734 = vmatprep.subr.bf16.mxu1 %v7286_v5 }
 0x83b   : > { %6735 = vmatpush3.bf16.msra.mxu1 %v7287_v17 }
 0x83c   : > { %v6910_v35 = vpop.f32.mrf.mxu0 }
 0x83d   : > { %5235 = vrot.lane.b32.xlu1 %v3743_v41, %s7830_s19  ;;  %5261 = vrot.lane.b32.xlu0 %v6910_v35, %s7831_s20 }
 0x83e   : > { %v4010_v32 = vpop.f32.mrf.mxu0 }
 0x840   : > { %v6911_v34 = vpop.f32.mrf.mxu0 }
 0x841   : > { %5257 = vrot.lane.b32.xlu0 %v4010_v32, %s7831_s20  ;;  %5263 = vrot.lane.b32.xlu1 %v6911_v34, %s7831_s20  ;;  %v7288_v32 = vld [vmem:[%s10390_s15 + $0x48] sm:$0xff]  }
 0x842   : > { %v4013_v60 = vpop.f32.mrf.mxu0  ;;  %6736 = vmatprep.subr.bf16.mxu1 %v7288_v32 }
 0x845   : > { %5259 = vrot.lane.b32.xlu1 %v4013_v60, %s7831_s20  ;;  %v7289_v60 = vld [vmem:[%s10390_s15 + $0x8] sm:$0xff]  }
 0x846   : > { %6737 = vmatpush3.bf16.msra.mxu1 %v7289_v60 }
 0x847   : > { %v10031_v62 = vpop.f32.mrf.mxu0 }
 0x849   : > { %v4026_v59 = vpop.f32.mrf.mxu0 }
 0x84a   : > { %5265 = vrot.lane.b32.xlu0 %v4026_v59, %s7831_s20  ;;  %v7290_v59 = vld [vmem:[%s10390_s15 + $0x40] sm:$0xff]  }
 0x84b   : > { %v10034_v48 = vpop.f32.mrf.mxu0  ;;  %6738 = vmatprep.subr.bf16.mxu1 %v7290_v59 }
 0x84d   : > { %v4029_v27 = vpop.f32.mrf.mxu0 }
 0x84e   : > { %5267 = vrot.lane.b32.xlu1 %v4029_v27, %s7831_s20 }
 0x852   : > { %v6936_v49 = vpop.f32.mrf.mxu0 }
 0x853   : > { %5293 = vrot.lane.b32.xlu0 %v6936_v49, %s7832_s27 }
 0x854   : > { %v4296_v40 = vpop.f32.mrf.mxu0 }
 0x856   : > { %v6937_v44 = vpop.f32.mrf.mxu0 }
 0x857   : > { %5289 = vrot.lane.b32.xlu0 %v4296_v40, %s7832_s27  ;;  %5295 = vrot.lane.b32.xlu1 %v6937_v44, %s7832_s27  ;;  %v7291_v40 = vld [vmem:[%s10390_s15] sm:$0xff]  }
 0x858   : > { %v4299_v13 = vpop.f32.mrf.mxu0  ;;  %6739 = vmatpush3.bf16.msra.mxu1 %v7291_v40 }
 0x85b   : > { %5291 = vrot.lane.b32.xlu1 %v4299_v13, %s7832_s27 }
 0x860   : > { %v10041_v58 = vpop.f32.mrf.mxu0 }
 0x862   : > { %v4312_v55 = vpop.f32.mrf.mxu0 }
 0x863   : > { %5297 = vrot.lane.b32.xlu0 %v4312_v55, %s7832_s27 }
 0x864   : > { %v10044_v53 = vpop.f32.mrf.mxu0 }
 0x866   : > { %v4315_v36 = vpop.f32.mrf.mxu0 }
 0x867   : > { %5299 = vrot.lane.b32.xlu1 %v4315_v36, %s7832_s27 }
 0x86a   : > { %v6962_v18 = vpop.f32.mrf.mxu0 }
 0x86b   : > { %5325 = vrot.lane.b32.xlu0 %v6962_v18, %s7833_s29 }
 0x86c   : > { %v4582_v39 = vpop.f32.mrf.mxu0 }
 0x86e   : > { %v6963_v8 = vpop.f32.mrf.mxu0 }
 0x86f   : > { %5321 = vrot.lane.b32.xlu0 %v4582_v39, %s7833_s29  ;;  %5327 = vrot.lane.b32.xlu1 %v6963_v8, %s7833_s29 }
 0x870   : > { %v4585_v4 = vpop.f32.mrf.mxu0 }
 0x872   : > { %v10050_v25 = vpop.f32.mrf.mxu0 }
 0x873   : > { %5323 = vrot.lane.b32.xlu1 %v4585_v4, %s7833_s29 }
 0x874   : > { %v4598_v33 = vpop.f32.mrf.mxu0 }
 0x875   : > { %5329 = vrot.lane.b32.xlu0 %v4598_v33, %s7833_s29 }
 0x876   : > { %v10054_v3 = vpop.f32.mrf.mxu0 }
 0x878   : > { %v4601_v15 = vpop.f32.mrf.mxu0 }
 0x879   : > { %5331 = vrot.lane.b32.xlu1 %v4601_v15, %s7833_s29 }
 0x87a   : > { %v6988_v28 = vpop.f32.mrf.mxu0 }
 0x87b   : > { %5357 = vrot.lane.b32.xlu0 %v6988_v28, %s7834_s21 }
 0x87c   : > { %v4868_v21 = vpop.f32.mrf.mxu0 }
 0x87e   : > { %v6989_v57 = vpop.f32.mrf.mxu0 }
 0x87f   : > { %5353 = vrot.lane.b32.xlu0 %v4868_v21, %s7834_s21  ;;  %5359 = vrot.lane.b32.xlu1 %v6989_v57, %s7834_s21 }
 0x880   : > { %v4871_v31 = vpop.f32.mrf.mxu0 }
 0x881   : > { %v5198_v46 = vpop.permute.xlu0 %5197 }
 0x882   : > { %v10060_v16 = vpop.f32.mrf.mxu0 }
 0x883   : > { %5355 = vrot.lane.b32.xlu1 %v4871_v31, %s7834_s21 }
 0x884   : > { %v4884_v26 = vpop.f32.mrf.mxu0 }
 0x885   : > { %5361 = vrot.lane.b32.xlu0 %v4884_v26, %s7834_s21  ;;  %v5200_v12 = vpop.permute.xlu1 %5199  ;;  %v10097_v11 = vpop.permute.xlu0 %5193 }
 0x886   : > { %v10070_v47 = vpop.f32.mrf.mxu0 }
 0x888   : > { %v4887_v37 = vpop.f32.mrf.mxu0 }
 0x889   : > { %5363 = vrot.lane.b32.xlu1 %v4887_v37, %s7834_s21  ;;  %v10105_v50 = vpop.permute.xlu1 %5195 }
 0x88d   : > { %v7014_v14 = vpop.f32.mrf.mxu0 }
 0x88e   : > { %5389 = vrot.lane.b32.xlu0 %v7014_v14, %s7835_s30 }
 0x88f   : > { %v5154_v0 = vpop.f32.mrf.mxu0 }
 0x891   : > { %v7015_v2 = vpop.f32.mrf.mxu0 }
 0x892   : > { %5385 = vrot.lane.b32.xlu0 %v5154_v0, %s7835_s30  ;;  %5391 = vrot.lane.b32.xlu1 %v7015_v2, %s7835_s30  ;;  %v5206_v54 = vpop.permute.xlu0 %5205 }
 0x893   : > { %v5157_v1 = vpop.f32.mrf.mxu0  ;;  %v5415_v36 = vsel %vm2902_vm9, %v10019_v22, %v5206_v54  ;;  %v5409_v54 = vsel %vm2902_vm9, %v10013_v29, %v10097_v11  ;;  %v5410_v11 = vsel %vm2902_vm9, %v10017_v19, %v10105_v50 }
 0x895   : > { %v7018_v6 = vpop.f32.mrf.mxu0 }
 0x896   : > { %5269 = vrot.lane.b32.xlu0 %v10031_v62, %s7831_s20  ;;  %5387 = vrot.lane.b32.xlu1 %v5157_v1, %s7835_s30  ;;  %v5208_v41 = vpop.permute.xlu1 %5207  ;;  %v5202_v34 = vpop.permute.xlu0 %5201 }
 0x897   : > { %v5170_v35 = vpop.f32.mrf.mxu0  ;;  %v5416_v4 = vsel %vm2902_vm9, %v10023_v43, %v5208_v41 }
 0x899   : > { %v7019_v62 = vpop.f32.mrf.mxu0 }
 0x89a   : > { %5301 = vrot.lane.b32.xlu0 %v10041_v58, %s7832_s27  ;;  %5271 = vrot.lane.b32.xlu1 %v10034_v48, %s7831_s20  ;;  %v5411_v48 = vsel %vm2902_vm9, %v10011_v38, %v5198_v46  ;;  %v5204_v27 = vpop.permute.xlu1 %5203  ;;  %v5412_v58 = vsel %vm2902_vm9, %v10015_v51, %v5200_v12  ;;  %v5413_v51 = vsel %vm2902_vm9, %v10021_v7, %v5202_v34 }
 0x89b   : > { %v5173_v13 = vpop.f32.mrf.mxu0  ;;  %v5414_v15 = vsel %vm2902_vm9, %v10025_v24, %v5204_v27 }
 0x89e   : > { %5333 = vrot.lane.b32.xlu0 %v10050_v25, %s7833_s29  ;;  %5303 = vrot.lane.b32.xlu1 %v10044_v53, %s7832_s27  ;;  %s10342_s27 = scalar_lea.vmem %s10597_s0, %s7999_s28 }
 0x89f   : > { %v5230_v49 = vpop.permute.xlu0 %5229 }
 0x8a0   : > { %v5420_v44 = vsel %vm5417_vm4, %v5411_v48, %v5230_v49 }
 0x8a2   : > { %5335 = vrot.lane.b32.xlu1 %v10054_v3, %s7833_s29  ;;  %5393 = vrot.lane.b32.xlu0 %v5170_v35, %s7835_s30 }
 0x8a3   : > { %v5226_v38 = vpop.permute.xlu0 %5225  ;;  %v5232_v55 = vpop.permute.xlu1 %5231 }
 0x8a4   : > { %v5421_v53 = vsel %vm5417_vm4, %v5412_v58, %v5232_v55  ;;  %v5418_v5 = vsel %vm5417_vm4, %v5409_v54, %v5226_v38 }
 0x8a6   : > { %5365 = vrot.lane.b32.xlu0 %v10060_v16, %s7834_s21  ;;  %5395 = vrot.lane.b32.xlu1 %v5173_v13, %s7835_s30 }
 0x8a7   : > { %v5238_v18 = vpop.permute.xlu0 %5237  ;;  %v5228_v39 = vpop.permute.xlu1 %5227 }
 0x8a8   : > { %v10148_v8 = vsel %vm5417_vm4, %v5415_v36, %v5238_v18  ;;  %v5419_v40 = vsel %vm5417_vm4, %v5410_v11, %v5228_v39 }
 0x8aa   : > { %5397 = vrot.lane.b32.xlu0 %v7018_v6, %s7835_s30  ;;  %5367 = vrot.lane.b32.xlu1 %v10070_v47, %s7834_s21 }
 0x8ab   : > { %v5234_v25 = vpop.permute.xlu0 %5233  ;;  %v5240_v33 = vpop.permute.xlu1 %5239 }
 0x8ac   : > { %v10158_v22 = vsel %vm5417_vm4, %v5413_v51, %v5234_v25  ;;  %v10161_v3 = vsel %vm5417_vm4, %v5416_v4, %v5240_v33 }
 0x8ae   : > { %5399 = vrot.lane.b32.xlu1 %v7019_v62, %s7835_s30 }
 0x8af   : > { %v5236_v28 = vpop.permute.xlu1 %5235  ;;  %v5262_v7 = vpop.permute.xlu0 %5261 }
 0x8b0   : > { %v10167_v21 = vsel %vm5417_vm4, %v5414_v15, %v5236_v28  ;;  %v5429_v52 = vsel %vm5426_vm5, %v5420_v44, %v5262_v7 }
 0x8b3   : > { %v5264_v57 = vpop.permute.xlu1 %5263  ;;  %v5258_v43 = vpop.permute.xlu0 %5257 }
 0x8b4   : > { %v5427_v32 = vsel %vm5426_vm5, %v5418_v5, %v5258_v43  ;;  %v5430_v34 = vsel %vm5426_vm5, %v5421_v53, %v5264_v57 }
 0x8b7   : > { %v5260_v31 = vpop.permute.xlu1 %5259 }
 0x8b8   : > { %v5428_v55 = vsel %vm5426_vm5, %v5419_v40, %v5260_v31 }
 0x8bc   : > { %v10169_v16 = vpop.permute.xlu0 %5265 }
 0x8c0   : > { %v10171_v9 = vpop.permute.xlu1 %5267 }
 0x8c5   : > { %v5294_v26 = vpop.permute.xlu0 %5293 }
 0x8c6   : > { %v5438_v1 = vsel %vm5435_vm6, %v5429_v52, %v5294_v26  ;;  %v5432_v52 = vsel %vm5426_vm5, %v10167_v21, %v10171_v9 }
 0x8c9   : > { %v5296_v30 = vpop.permute.xlu1 %5295  ;;  %v5290_v47 = vpop.permute.xlu0 %5289 }
 0x8ca   : > { %v5436_v62 = vsel %vm5435_vm6, %v5427_v32, %v5290_v47  ;;  %v5439_v59 = vsel %vm5435_vm6, %v5430_v34, %v5296_v30 }
 0x8cd   : > { %v5292_v56 = vpop.permute.xlu1 %5291 }
 0x8ce   : > { %v5437_v50 = vsel %vm5435_vm6, %v5428_v55, %v5292_v56 }
 0x8d5   : > { %v10173_v37 = vpop.permute.xlu0 %5297 }
 0x8d9   : > { %v10175_v20 = vpop.permute.xlu1 %5299 }
 0x8dd   : > { %v5326_v24 = vpop.permute.xlu0 %5325 }
 0x8de   : > { %v5447_v6 = vsel %vm5444_vm7, %v5438_v1, %v5326_v24 }
 0x8e1   : > { %v5328_v61 = vpop.permute.xlu1 %5327  ;;  %v5322_v46 = vpop.permute.xlu0 %5321 }
 0x8e2   : > { %v5445_v48 = vsel %vm5444_vm7, %v5436_v62, %v5322_v46  ;;  %v5448_v27 = vsel %vm5444_vm7, %v5439_v59, %v5328_v61  ;;  %v5431_v46 = vsel %vm5426_vm5, %v10158_v22, %v10169_v16  ;;  %v5441_v22 = vsel %vm5435_vm6, %v5432_v52, %v10175_v20 }
 0x8e5   : > { %v5324_v14 = vpop.permute.xlu1 %5323 }
 0x8e6   : > { %v5446_v51 = vsel %vm5444_vm7, %v5437_v50, %v5324_v14  ;;  %v5440_v14 = vsel %vm5435_vm6, %v5431_v46, %v10173_v37  ;;  %v10593_v46 = vld [vmem:[#allocation5_spill] sm:$0xff] }
 0x8e7   : > { %v10177_v23 = vpop.permute.xlu0 %5329 }
 0x8eb   : > { %v10179_v0 = vpop.permute.xlu1 %5331 }
 0x8ec   : > { %v5450_v37 = vsel %vm5444_vm7, %v5441_v22, %v10179_v0  ;;  %v7292_v22 = vld [vmem:[%s10392_s17 + $0x70] ss:$8 sps:$4 sm:$0xff]  }
 0x8ed   : > { %v5358_v10 = vpop.permute.xlu0 %5357 }
 0x8ee   : > { %v5456_v17 = vsel %vm5453_vm8, %v5447_v6, %v5358_v10  ;;  %v5449_v10 = vsel %vm5444_vm7, %v5440_v14, %v10177_v23 }
 0x8f1   : > { %v5360_v63 = vpop.permute.xlu1 %5359  ;;  %v5354_v12 = vpop.permute.xlu0 %5353 }
 0x8f2   : > { %v5454_v44 = vsel %vm5453_vm8, %v5445_v48, %v5354_v12  ;;  %v5457_v13 = vsel %vm5453_vm8, %v5448_v27, %v5360_v63 }
 0x8f5   : > { %v5356_v2 = vpop.permute.xlu1 %5355 }
 0x8f6   : > { %v5455_v25 = vsel %vm5453_vm8, %v5446_v51, %v5356_v2 }
 0x8f7   : > { %v5362_v42 = vpop.permute.xlu0 %5361 }
 0x8f8   : > { %v5458_v63 = vsel %vm5453_vm8, %v5449_v10, %v5362_v42 }
 0x8fb   : > { %v5364_v41 = vpop.permute.xlu1 %5363 }
 0x8fc   : > { %v5459_v42 = vsel %vm5453_vm8, %v5450_v37, %v5364_v41  ;;  %v7295_v37 = vld [vmem:[%s10392_s17 + $0x60] ss:$8 sps:$4 sm:$0xff]  }
 0x900   : > { %v5390_v35 = vpop.permute.xlu0 %5389 }
 0x901   : > { %v5465_v60 = vsel %vm5462_vm10, %v5456_v17, %v5390_v35 }
 0x902   : > { %v10195_v29 = vsel %vm5471_vm11, %v5465_v60, 0.0 }
 0x903   : > { %v5490_v49 = vmin.f32 %v10195_v29, 0.0  ;;  %vm5482_vm9 = vcmp.gt.f32.partialorder %v10195_v29, 0.0 }
 0x904   : > { %v5386_v58 = vpop.permute.xlu0 %5385  ;;  %v5392_v38 = vpop.permute.xlu1 %5391 }
 0x905   : > { %v5500_v53 = vmul.f32 1.442695, %v5490_v49  ;;  %v5463_v36 = vsel %vm5462_vm10, %v5454_v44, %v5386_v58  ;;  %v5466_v19 = vsel %vm5462_vm10, %v5457_v13, %v5392_v38 }
 0x906   : > { %v10211_v18 = vsel %vm5471_vm11, %v5463_v36, 0.0  ;;  %v5475_v39 = vsel %vm5471_vm11, %v5466_v19, 0.0 }
 0x907   : > { %v5488_v4 = vmin.f32 %v10211_v18, 0.0  ;;  %v5491_v33 = vmin.f32 %v5475_v39, 0.0  ;;  %7716 = vpow2.f32 %v5500_v53  ;;  %vm5483_vm12 = vcmp.gt.f32.partialorder %v5475_v39, 0.0 }
 0x908   : > { %v5270_v15 = vpop.permute.xlu0 %5269  ;;  %v5388_v28 = vpop.permute.xlu1 %5387  ;;  %vm5480_vm13 = vcmp.gt.f32.partialorder %v10211_v18, 0.0 }
 0x909   : > { %v5496_v7 = vmul.f32 1.442695, %v5488_v4  ;;  %v5464_v57 = vsel %vm5462_vm10, %v5455_v25, %v5388_v28  ;;  %v5502_v43 = vmul.f32 1.442695, %v5491_v33  ;;  %v5433_v17 = vsel %vm5426_vm5, %v10148_v8, %v5270_v15 }
 0x90a   : > { %v5473_v31 = vsel %vm5471_vm11, %v5464_v57, 0.0 }
 0x90b   : > { %7718 = vpow2.f32 %v5496_v7  ;;  %v5489_v26 = vmin.f32 %v5473_v31, 0.0  ;;  %vm5481_vm14 = vcmp.gt.f32.partialorder %v5473_v31, 0.0  ;;  %v10591_v7 = vld [vmem:[#allocation3_spill] sm:$0xff] }
 0x90c   : > { %7720 = vpow2.f32 %v5502_v43  ;;  %v5302_v30 = vpop.permute.xlu0 %5301  ;;  %v5272_v47 = vpop.permute.xlu1 %5271 }
 0x90d   : > { %v5498_v56 = vmul.f32 1.442695, %v5489_v26  ;;  %v5442_v34 = vsel %vm5435_vm6, %v5433_v17, %v5302_v30  ;;  %v5434_v0 = vsel %vm5426_vm5, %v10161_v3, %v5272_v47  ;;  %v7309_v17 = vld [vmem:[%s10392_s17 + $0x24] ss:$8 sps:$4 sm:$0xff]  }
 0x90f   : > { %7722 = vpow2.f32 %v5498_v56 }
 0x910   : > { %v5334_v24 = vpop.permute.xlu0 %5333  ;;  %v5304_v61 = vpop.permute.xlu1 %5303 }
 0x911   : > { %v5451_v62 = vsel %vm5444_vm7, %v5442_v34, %v5334_v24  ;;  %v5443_v8 = vsel %vm5435_vm6, %v5434_v0, %v5304_v61  ;;  %v7315_v34 = vld [vmem:[%s10392_s17 + $0x4] ss:$8 sps:$4 sm:$0xff]   ;;  %v7313_v0 = vld [vmem:[%s10392_s17] ss:$8 sps:$4 sm:$0xff]  }
 0x914   : > { %v5394_v12 = vpop.permute.xlu0 %5393  ;;  %v5336_v2 = vpop.permute.xlu1 %5335 }
 0x915   : > { %v5467_v1 = vsel %vm5462_vm10, %v5458_v63, %v5394_v12  ;;  %v7717_v54 = vpop.eup %7716  ;;  %v5452_v55 = vsel %vm5444_vm7, %v5443_v8, %v5336_v2 }
 0x916   : > { %v5476_v16 = vsel %vm5471_vm11, %v5467_v1, 0.0  ;;  %v6415_v32 = vadd.f32 -1.0, %v7717_v54  ;;  %v10594_v1 = vld [vmem:[#allocation6_spill] sm:$0xff] }
 0x917   : > { %v5492_v23 = vmin.f32 %v5476_v16, 0.0  ;;  %vm5484_vm15 = vcmp.gt.f32.partialorder %v5476_v16, 0.0  ;;  %v7294_v54 = vld [vmem:[%s10392_s17 + $0x74] ss:$8 sps:$4 sm:$0xff]  }
 0x918   : > { %v7719_v6 = vpop.eup %7718  ;;  %v5366_v5 = vpop.permute.xlu0 %5365  ;;  %v5522_v38 = vsel %vm5482_vm9, %v10195_v29, %v6415_v32  ;;  %5892 = vmatprep.subr.bf16.mxu0 %v7294_v54  ;;  %7020 = vmatprep.subr.bf16.mxu1 %v7294_v54  ;;  %v7310_v32 = vld [vmem:[%s10392_s17 + $0x10] ss:$8 sps:$4 sm:$0xff]  }
 0x919   : > { %v5396_v21 = vpop.permute.xlu1 %5395  ;;  %v7721_v9 = vpop.eup %7720  ;;  %v5504_v35 = vmul.f32 1.442695, %v5492_v23  ;;  %v6413_v11 = vadd.f32 -1.0, %v7719_v6  ;;  %v5460_v27 = vsel %vm5453_vm8, %v5451_v62, %v5366_v5  ;;  %5893 = vmatpush1.bf16.msra.mxu0 %v7292_v22  ;;  %v7300_v23 = vld [vmem:[%s10392_s17 + $0x54] ss:$8 sps:$4 sm:$0xff]  }
 0x91a   : > { %v5468_v20 = vsel %vm5462_vm10, %v5459_v42, %v5396_v21  ;;  %v6416_v60 = vadd.f32 -1.0, %v7721_v9  ;;  %v7298_v6 = vld [vmem:[%s10392_s17 + $0x50] ss:$8 sps:$4 sm:$0xff]   ;;  %v7303_v42 = vld [vmem:[%s10392_s17 + $0x44] ss:$8 sps:$4 sm:$0xff]  }
 0x91b   : > { %v5477_v41 = vsel %vm5471_vm11, %v5468_v20, 0.0  ;;  %7724 = vpow2.f32 %v5504_v35  ;;  %v5520_v50 = vsel %vm5480_vm13, %v10211_v18, %v6413_v11  ;;  %v10592_v18 = vld [vmem:[#allocation4_spill] sm:$0xff]  ;;  %v7306_v21 = vld [vmem:[%s10392_s17 + $0x34] ss:$8 sps:$4 sm:$0xff]   ;;  %v7304_v9 = vld [vmem:[%s10392_s17 + $0x30] ss:$8 sps:$4 sm:$0xff]  }
 0x91c   : > { %v5493_v59 = vmin.f32 %v5477_v41, 0.0  ;;  %v7723_v48 = vpop.eup %7722  ;;  %v5398_v49 = vpop.permute.xlu0 %5397  ;;  %v5523_v44 = vsel %vm5483_vm12, %v5475_v39, %v6416_v60  ;;  %vm5485_vm0 = vcmp.gt.f32.partialorder %v5477_v41, 0.0  ;;  %v7301_v5 = vld [vmem:[%s10392_s17 + $0x40] ss:$8 sps:$4 sm:$0xff]   ;;  %v7312_v20 = vld [vmem:[%s10392_s17 + $0x14] ss:$8 sps:$4 sm:$0xff]  }
 0x91d   : > { %v5368_v40 = vpop.permute.xlu1 %5367  ;;  %v5469_v13 = vsel %vm5462_vm10, %v5460_v27, %v5398_v49  ;;  %v6414_v58 = vadd.f32 -1.0, %v7723_v48  ;;  %v5529_v36 = vpack.c.bf16 %v5523_v44, %v5522_v38  ;;  %v7307_v35 = vld [vmem:[%s10392_s17 + $0x20] ss:$8 sps:$4 sm:$0xff]  }
 0x91e   : > { %v5506_v3 = vmul.f32 1.442695, %v5493_v59  ;;  %v5478_v53 = vsel %vm5471_vm11, %v5469_v13, 0.0  ;;  %v5461_v51 = vsel %vm5453_vm8, %v5452_v55, %v5368_v40  ;;  %v6421_v60 = vld [vmem:[%s10391_s16] ss:$0 sm:$0xff] }
 0x91f   : > { %v5494_v19 = vmin.f32 %v5478_v53, 0.0  ;;  %v5521_v39 = vsel %vm5481_vm14, %v5473_v31, %v6414_v58  ;;  %vm5486_vm1 = vcmp.gt.f32.partialorder %v5478_v53, 0.0 }
 0x920   : > { %7726 = vpow2.f32 %v5506_v3  ;;  %v5528_v25 = vpack.c.bf16 %v5521_v39, %v5520_v50 }
 0x921   : > { %v5400_v4 = vpop.permute.xlu1 %5399  ;;  %v5508_v33 = vmul.f32 1.442695, %v5494_v19 }
 0x922   : > { %v5470_v29 = vsel %vm5462_vm10, %v5461_v51, %v5400_v4  ;;  %5699 = vmatprep.mubr.bf16.mxu1 %v5528_v25 }
 0x923   : > { %v5479_v15 = vsel %vm5471_vm11, %v5470_v29, 0.0  ;;  %7728 = vpow2.f32 %v5508_v33  ;;  %5700 = vmatmul.mubr.bf16.vlgmr.msra.gmra.mxu1 %v10591_v7 }
 0x924   : > { %v5495_v28 = vmin.f32 %v5479_v15, 0.0  ;;  %5707 = vmatprep.mubr.bf16.mxu1 %v5529_v36  ;;  %vm5487_vm2 = vcmp.gt.f32.partialorder %v5479_v15, 0.0  ;;  %7028 = vmatpush1.bf16.msra.mxu1 %v7292_v22 }
 0x926   : > { %v5510_v57 = vmul.f32 1.442695, %v5495_v28 }
 0x928   : > { %7730 = vpow2.f32 %v5510_v57  ;;  %v7725_v43 = vpop.eup %7724 }
 0x929   : > { %v6417_v31 = vadd.f32 -1.0, %v7725_v43 }
 0x92b   : > { %5708 = vmatmul.mubr.bf16.gmra.mxu1 %v10592_v18  ;;  %v5524_v47 = vsel %vm5484_vm15, %v5476_v16, %v6417_v31  ;;  %v7297_v16 = vld [vmem:[%s10392_s17 + $0x64] ss:$8 sps:$4 sm:$0xff]  }
 0x92c   : > { %5894 = vmatprep.subr.bf16.mxu0 %v7297_v16  ;;  %7021 = vmatprep.subr.bf16.mxu1 %v7297_v16 }
 0x92d   : > { %v7727_v26 = vpop.eup %7726  ;;  %5895 = vmatpush1.bf16.msra.mxu0 %v7295_v37  ;;  %7029 = vmatpush1.bf16.msra.mxu1 %v7295_v37 }
 0x92e   : > { %v6418_v30 = vadd.f32 -1.0, %v7727_v26  ;;  %5896 = vmatprep.subr.bf16.mxu0 %v7300_v23  ;;  %7022 = vmatprep.subr.bf16.mxu1 %v7300_v23 }
 0x930   : > { %v5525_v56 = vsel %vm5485_vm0, %v5477_v41, %v6418_v30  ;;  %v7729_v24 = vpop.eup %7728 }
 0x931   : > { %v5530_v61 = vpack.c.bf16 %v5525_v56, %v5524_v47  ;;  %v6419_v14 = vadd.f32 -1.0, %v7729_v24  ;;  %5897 = vmatpush1.bf16.msra.mxu0 %v7298_v6  ;;  %7030 = vmatpush1.bf16.msra.mxu1 %v7298_v6 }
 0x932   : > { %5898 = vmatprep.subr.bf16.mxu0 %v7303_v42  ;;  %7023 = vmatprep.subr.bf16.mxu1 %v7303_v42 }
 0x933   : > { %5715 = vmatprep.mubr.bf16.mxu1 %v5530_v61  ;;  %v5526_v12 = vsel %vm5486_vm1, %v5478_v53, %v6419_v14 }
 0x934   : > { %5716 = vmatmul.mubr.bf16.gmra.mxu1 %v10593_v46 }
 0x935   : > { %v7731_v10 = vpop.eup %7730  ;;  %5899 = vmatpush1.bf16.msra.mxu0 %v7301_v5  ;;  %7031 = vmatpush1.bf16.msra.mxu1 %v7301_v5 }
 0x936   : > { %v6420_v63 = vadd.f32 -1.0, %v7731_v10  ;;  %5900 = vmatprep.subr.bf16.mxu0 %v7306_v21  ;;  %7024 = vmatprep.subr.bf16.mxu1 %v7306_v21 }
 0x938   : > { %v5527_v2 = vsel %vm5487_vm2, %v5479_v15, %v6420_v63 }
 0x939   : > { %v5531_v52 = vpack.c.bf16 %v5527_v2, %v5526_v12  ;;  %5901 = vmatpush1.bf16.msra.mxu0 %v7304_v9  ;;  %7032 = vmatpush1.bf16.msra.mxu1 %v7304_v9 }
 0x93a   : > { %5902 = vmatprep.subr.bf16.mxu0 %v7309_v17  ;;  %7025 = vmatprep.subr.bf16.mxu1 %v7309_v17 }
 0x93b   : > { %5723 = vmatprep.mubr.bf16.mxu1 %v5531_v52 }
 0x93c   : > { %5724 = vmatmul.mubr.bf16.gmra.mxu1 %v10594_v1 }
 0x93d   : > { %5954 = vmatprep.mubr.bf16.mxu1 %v10590_v45  ;;  %5903 = vmatpush1.bf16.msra.mxu0 %v7307_v35 }
 0x93e   : > { %7033 = vmatpush1.bf16.msra.mxu1 %v7307_v35  ;;  %5904 = vmatprep.subr.bf16.mxu0 %v7312_v20 }
 0x93f   : > { %7026 = vmatprep.subr.bf16.mxu1 %v7312_v20 }
 0x941   : > { %5905 = vmatpush1.bf16.msra.mxu0 %v7310_v32 }
 0x942   : > { %7034 = vmatpush1.bf16.msra.mxu1 %v7310_v32  ;;  %5906 = vmatprep.subr.bf16.mxu0 %v7315_v34 }
 0x943   : > { %7027 = vmatprep.subr.bf16.mxu1 %v7315_v34 }
 0x945   : > { %5907 = vmatpush1.bf16.msra.mxu0 %v7313_v0 }
 0x946   : > { %7035 = vmatpush1.bf16.msra.mxu1 %v7313_v0 }
 0x9e3   : > { %v6740_v41 = vpop.f32.mrf.mxu1 }
 0x9e5   : > { %v6741_v62 = vpop.f32.mrf.mxu1 }
 0x9e6   : > { %v6742_v59 = vadd.f32 %v6741_v62, %v6740_v41 }
 0x9e7   : > { %v6743_v11 = vpop.f32.mrf.mxu1 }
 0x9e8   : > { %v5702_v48 = vadd.f32 %v6742_v59, %v6421_v60 }
 0x9e9   : > { %v6744_v8 = vpop.f32.mrf.mxu1 }
 0x9ea   : > { %v5740_v27 = vmin.f32 %v5702_v48, 0.0  ;;  %v6745_v49 = vadd.f32 %v6744_v8, %v6743_v11  ;;  %vm5732_vm3 = vcmp.gt.f32.partialorder %v5702_v48, 0.0 }
 0x9eb   : > { %v6746_v40 = vpop.f32.mrf.mxu1 }
 0x9ec   : > { %v5748_v44 = vmul.f32 1.442695, %v5740_v27  ;;  %v5705_v3 = vadd.f32 %v6745_v49, %v6421_v60 }
 0x9ed   : > { %v6747_v13 = vpop.f32.mrf.mxu1 }
 0x9ee   : > { %7732 = vpow2.f32 %v5748_v44  ;;  %v5741_v58 = vmin.f32 %v5705_v3, 0.0  ;;  %v6748_v38 = vadd.f32 %v6747_v13, %v6746_v40  ;;  %vm5733_vm4 = vcmp.gt.f32.partialorder %v5705_v3, 0.0 }
 0x9ef   : > { %v6749_v55 = vpop.f32.mrf.mxu1 }
 0x9f0   : > { %v5750_v53 = vmul.f32 1.442695, %v5741_v58  ;;  %v5710_v36 = vadd.f32 %v6748_v38, %v6421_v60  ;;  %v10595_v38 = vld [vmem:[#allocation7_spill] sm:$0xff] }
 0x9f1   : > { %v6750_v19 = vpop.f32.mrf.mxu1 }
 0x9f2   : > { %7734 = vpow2.f32 %v5750_v53  ;;  %v5742_v50 = vmin.f32 %v5710_v36, 0.0  ;;  %v6751_v39 = vadd.f32 %v6750_v19, %v6749_v55  ;;  %vm5734_vm5 = vcmp.gt.f32.partialorder %v5710_v36, 0.0 }
 0x9f4   : > { %v6752_v51 = vpop.f32.mrf.mxu1  ;;  %v5752_v4 = vmul.f32 1.442695, %v5742_v50  ;;  %v5713_v25 = vadd.f32 %v6751_v39, %v6421_v60 }
 0x9f6   : > { %v6753_v33 = vpop.f32.mrf.mxu1  ;;  %7736 = vpow2.f32 %v5752_v4  ;;  %v5743_v29 = vmin.f32 %v5713_v25, 0.0  ;;  %vm5735_vm6 = vcmp.gt.f32.partialorder %v5713_v25, 0.0 }
 0x9f7   : > { %v6754_v15 = vadd.f32 %v6753_v33, %v6752_v51 }
 0x9f8   : > { %v6755_v28 = vpop.f32.mrf.mxu1  ;;  %v5754_v7 = vmul.f32 1.442695, %v5743_v29 }
 0x9f9   : > { %v5718_v57 = vadd.f32 %v6754_v15, %v6421_v60 }
 0x9fa   : > { %v6756_v43 = vpop.f32.mrf.mxu1  ;;  %7738 = vpow2.f32 %v5754_v7 }
 0x9fb   : > { %v5744_v18 = vmin.f32 %v5718_v57, 0.0  ;;  %v6757_v31 = vadd.f32 %v6756_v43, %v6755_v28  ;;  %v7733_v26 = vpop.eup %7732  ;;  %vm5736_vm7 = vcmp.gt.f32.partialorder %v5718_v57, 0.0 }
 0x9fc   : > { %v6758_v30 = vpop.f32.mrf.mxu1  ;;  %v6438_v61 = vadd.f32 -1.0, %v7733_v26 }
 0x9fd   : > { %v5756_v47 = vmul.f32 1.442695, %v5744_v18  ;;  %v5721_v56 = vadd.f32 %v6757_v31, %v6421_v60 }
 0x9fe   : > { %v6759_v24 = vpop.f32.mrf.mxu1  ;;  %v5772_v54 = vsel %vm5732_vm3, %v5702_v48, %v6438_v61 }
 0x9ff   : > { %7740 = vpow2.f32 %v5756_v47  ;;  %v5745_v46 = vmin.f32 %v5721_v56, 0.0  ;;  %v7735_v14 = vpop.eup %7734  ;;  %v6760_v10 = vadd.f32 %v6759_v24, %v6758_v30  ;;  %vm5737_vm8 = vcmp.gt.f32.partialorder %v5721_v56, 0.0 }
 0xa00   : > { %v6761_v63 = vpop.f32.mrf.mxu1  ;;  %v6439_v12 = vadd.f32 -1.0, %v7735_v14 }
 0xa01   : > { %v5758_v2 = vmul.f32 1.442695, %v5745_v46  ;;  %v5726_v52 = vadd.f32 %v6760_v10, %v6421_v60 }
 0xa02   : > { %v6762_v1 = vpop.f32.mrf.mxu1  ;;  %v5773_v22 = vsel %vm5733_vm4, %v5705_v3, %v6439_v12 }
 0xa03   : > { %7742 = vpow2.f32 %v5758_v2  ;;  %v6763_v16 = vadd.f32 %v6762_v1, %v6761_v63  ;;  %v7737_v37 = vpop.eup %7736  ;;  %v5780_v23 = vpack.c.bf16 %v5773_v22, %v5772_v54  ;;  %v5746_v6 = vmin.f32 %v5726_v52, 0.0 }
 0xa04   : > { %v6440_v21 = vadd.f32 -1.0, %v7737_v37  ;;  %vm5738_vm10 = vcmp.gt.f32.partialorder %v5726_v52, 0.0 }
 0xa05   : > { %v5729_v42 = vadd.f32 %v6763_v16, %v6421_v60  ;;  %v5760_v5 = vmul.f32 1.442695, %v5746_v6  ;;  %5925 = vmatmul.mubr.bf16.vlgmr.msra.gmra.mxu0 %v5780_v23  ;;  %v10596_v6 = vld [vmem:[#allocation8_spill] sm:$0xff] }
 0xa06   : > { %5934 = vmatprep.mubr.bf16.mxu0 %v10590_v45  ;;  %v5774_v32 = vsel %vm5734_vm5, %v5710_v36, %v6440_v21 }
 0xa07   : > { %v5747_v9 = vmin.f32 %v5729_v42, 0.0  ;;  %v7739_v17 = vpop.eup %7738  ;;  %7744 = vpow2.f32 %v5760_v5  ;;  %vm5739_vm11 = vcmp.gt.f32.partialorder %v5729_v42, 0.0 }
 0xa08   : > { %v6441_v35 = vadd.f32 -1.0, %v7739_v17 }
 0xa09   : > { %v5762_v20 = vmul.f32 1.442695, %v5747_v9 }
 0xa0a   : > { %v5775_v34 = vsel %vm5735_vm6, %v5713_v25, %v6441_v35 }
 0xa0b   : > { %7746 = vpow2.f32 %v5762_v20  ;;  %v5781_v41 = vpack.c.bf16 %v5775_v34, %v5774_v32 }
 0xa0c   : > { %v7741_v0 = vpop.eup %7740 }
 0xa0d   : > { %5935 = vmatmul.mubr.bf16.gmra.mxu0 %v5781_v41  ;;  %v6442_v62 = vadd.f32 -1.0, %v7741_v0  ;;  %v7804_v41 = vld [vmem:[%s8014_s3] sm:$0xff] }
 0xa0e   : > { %5944 = vmatprep.mubr.bf16.mxu0 %v10590_v45  ;;  %v5800_v45 = vld [vmem:[%s10393_s18] sm:$0x3] }
 0xa0f   : > { %v5776_v11 = vsel %vm5736_vm7, %v5718_v57, %v6442_v62  ;;  %v5809_v55 = vrot.slane %v5800_v45, %v10595_v38 }
 0xa10   : > { %v7743_v60 = vpop.eup %7742 }
 0xa11   : > { %v6443_v59 = vadd.f32 -1.0, %v7743_v60 }
 0xa13   : > { %v5777_v48 = vsel %vm5737_vm8, %v5721_v56, %v6443_v59 }
 0xa14   : > { %v5782_v8 = vpack.c.bf16 %v5777_v48, %v5776_v11  ;;  %v7745_v27 = vpop.eup %7744 }
 0xa15   : > { %v6444_v49 = vadd.f32 -1.0, %v7745_v27  ;;  %v7805_v27 = vld [vmem:[%s8014_s3 + $0x8] sm:$0xff] }
 0xa16   : > { %5945 = vmatmul.mubr.bf16.gmra.mxu0 %v5782_v8 }
 0xa17   : > { %v5778_v3 = vsel %vm5738_vm10, %v5726_v52, %v6444_v49 }
 0xa18   : > { %v7747_v40 = vpop.eup %7746 }
 0xa19   : > { %v6445_v44 = vadd.f32 -1.0, %v7747_v40 }
 0xa1b   : > { %v5779_v13 = vsel %vm5739_vm11, %v5729_v42, %v6445_v44  ;;  %v10335_v42 = vrot.slane %v5800_v45, %v10596_v6  ;;  %v7806_v45 = vld [vmem:[%s8014_s3 + $0x10] sm:$0xff] }
 0xa1c   : > { %v5783_v58 = vpack.c.bf16 %v5779_v13, %v5778_v3 }
 0xa1e   : > { %5955 = vmatmul.mubr.bf16.vlgmr.msra.gmra.mxu1 %v5783_v58 }
 0xac5   : > { %v5926_v53 = vpop.f32.mrf.mxu0 }
 0xac6   : > { %v5927_v35 = vadd.f32 %v5926_v53, %v10335_v42 }
 0xac7   : > { %v5928_v36 = vpop.f32.mrf.mxu0 }
 0xac8   : > { %v5929_v19 = vadd.f32 %v5928_v36, %v5809_v55 }
 0xac9   : > { %v5930_v50 = vpop.f32.mrf.mxu0 }
 0xaca   : > { %v6462_v39 = vmul.f32 -1.442695, %v5929_v19  ;;  %v5931_v60 = vadd.f32 %v5930_v50, %v10335_v42 }
 0xacb   : > { %v5932_v51 = vpop.f32.mrf.mxu0 }
 0xacc   : > { %7748 = vpow2.f32 %v6462_v39  ;;  %v5933_v4 = vadd.f32 %v5932_v51, %v5809_v55  ;;  %v7807_v39 = vld [vmem:[%s8014_s3 + $0x18] sm:$0xff] }
 0xacd   : > { %v5936_v25 = vpop.f32.mrf.mxu0 }
 0xace   : > { %v6463_v33 = vmul.f32 -1.442695, %v5933_v4  ;;  %v5937_v40 = vadd.f32 %v5936_v25, %v10335_v42 }
 0xacf   : > { %v5938_v29 = vpop.f32.mrf.mxu0 }
 0xad0   : > { %7750 = vpow2.f32 %v6463_v33  ;;  %v5939_v15 = vadd.f32 %v5938_v29, %v5809_v55  ;;  %v7808_v29 = vld [vmem:[%s8014_s3 + $0x20] sm:$0xff] }
 0xad1   : > { %v10324_v28 = vpop.f32.mrf.mxu0 }
 0xad2   : > { %v6464_v7 = vmul.f32 -1.442695, %v5939_v15 }
 0xad3   : > { %v5942_v57 = vpop.f32.mrf.mxu0 }
 0xad4   : > { %7752 = vpow2.f32 %v6464_v7  ;;  %v5943_v43 = vadd.f32 %v5942_v57, %v5809_v55 }
 0xad6   : > { %v10326_v18 = vpop.f32.mrf.mxu0  ;;  %v6465_v31 = vmul.f32 -1.442695, %v5943_v43  ;;  %v7809_v43 = vld [vmem:[%s8014_s3 + $0x28] sm:$0xff] }
 0xad7   : > { %v5947_v4 = vadd.f32 %v10326_v18, %v10335_v42 }
 0xad8   : > { %v5948_v26 = vpop.f32.mrf.mxu0  ;;  %7754 = vpow2.f32 %v6465_v31 }
 0xad9   : > { %v5949_v30 = vadd.f32 %v5948_v26, %v5809_v55  ;;  %v7749_v47 = vpop.eup %7748 }
 0xada   : > { %v10328_v56 = vpop.f32.mrf.mxu0  ;;  %v5989_v24 = vadd.f32 1.0, %v7749_v47  ;;  %v7810_v47 = vld [vmem:[%s8014_s3 + $0x30] sm:$0xff] }
 0xadb   : > { %v6466_v61 = vmul.f32 -1.442695, %v5949_v30 }
 0xadc   : > { %v5952_v46 = vpop.f32.mrf.mxu0  ;;  %7756 = vrcp.f32 %v5989_v24 }
 0xadd   : > { %v5953_v14 = vadd.f32 %v5952_v46, %v5809_v55  ;;  %v7751_v10 = vpop.eup %7750  ;;  %7758 = vpow2.f32 %v6466_v61 }
 0xade   : > { %v10330_v63 = vpop.f32.mrf.mxu1  ;;  %v5990_v12 = vadd.f32 1.0, %v7751_v10 }
 0xadf   : > { %v6467_v2 = vmul.f32 -1.442695, %v5953_v14  ;;  %v5957_v18 = vadd.f32 %v10330_v63, %v10335_v42  ;;  %v7811_v14 = vld [vmem:[%s8014_s3 + $0x38] sm:$0xff] }
 0xae0   : > { %v5958_v52 = vpop.f32.mrf.mxu1  ;;  %7760 = vrcp.f32 %v5990_v12 }
 0xae1   : > { %v5959_v1 = vadd.f32 %v5958_v52, %v5809_v55  ;;  %v7753_v54 = vpop.eup %7752  ;;  %7762 = vpow2.f32 %v6467_v2 }
 0xae2   : > { %v10332_v22 = vpop.f32.mrf.mxu1  ;;  %v5991_v16 = vadd.f32 1.0, %v7753_v54 }
 0xae3   : > { %v6468_v37 = vmul.f32 -1.442695, %v5959_v1  ;;  %v5961_v61 = vadd.f32 %v10332_v22, %v10335_v42 }
 0xae4   : > { %v5962_v23 = vpop.f32.mrf.mxu1  ;;  %7764 = vrcp.f32 %v5991_v16 }
 0xae5   : > { %v5963_v5 = vadd.f32 %v5962_v23, %v5809_v55  ;;  %v7755_v21 = vpop.eup %7754  ;;  %7766 = vpow2.f32 %v6468_v37  ;;  %v5941_v55 = vadd.f32 %v10324_v28, %v10335_v42  ;;  %v5951_v28 = vadd.f32 %v10328_v56, %v10335_v42 }
 0xae6   : > { %v5992_v9 = vadd.f32 1.0, %v7755_v21 }
 0xae7   : > { %v6469_v17 = vmul.f32 -1.442695, %v5963_v5 }
 0xae8   : > { %7768 = vrcp.f32 %v5992_v9 }
 0xae9   : > { %v7757_v20 = vpop.eup %7756  ;;  %7770 = vpow2.f32 %v6469_v17 }
 0xaea   : > { %v7759_v32 = vpop.eup %7758  ;;  %v6013_v34 = vmul.f32 %v7757_v20, %v5927_v35 }
 0xaeb   : > { %v5993_v0 = vadd.f32 1.0, %v7759_v32 }
 0xaec   : > { %v6021_v62 = vadd.f32 %v7804_v41, %v6013_v34 }
 0xaed   : > { %v7761_v59 = vpop.eup %7760  ;;  %7772 = vrcp.f32 %v5993_v0 }
 0xaee   : > { %v7763_v11 = vpop.eup %7762  ;;  %6029 = vst [vmem:[%s10342_s27] sm:$0xff] %v6021_v62  ;;  %v6014_v48 = vmul.f32 %v7761_v59, %v5931_v60 }
 0xaef   : > { %v5994_v8 = vadd.f32 1.0, %v7763_v11 }
 0xaf0   : > { %v6022_v49 = vadd.f32 %v7805_v27, %v6014_v48 }
 0xaf1   : > { %v7765_v44 = vpop.eup %7764  ;;  %7774 = vrcp.f32 %v5994_v8 }
 0xaf2   : > { %v7767_v3 = vpop.eup %7766  ;;  %6030 = vst [vmem:[%s10342_s27 + $0x8] sm:$0xff] %v6022_v49  ;;  %v6015_v13 = vmul.f32 %v7765_v44, %v5937_v40 }
 0xaf3   : > { %v5995_v58 = vadd.f32 1.0, %v7767_v3 }
 0xaf4   : > { %v6023_v38 = vadd.f32 %v7806_v45, %v6015_v13 }
 0xaf5   : > { %v7769_v53 = vpop.eup %7768  ;;  %7776 = vrcp.f32 %v5995_v58 }
 0xaf6   : > { %v7771_v36 = vpop.eup %7770  ;;  %6031 = vst [vmem:[%s10342_s27 + $0x10] sm:$0xff] %v6023_v38  ;;  %v6016_v19 = vmul.f32 %v7769_v53, %v5941_v55 }
 0xaf7   : > { %v5996_v50 = vadd.f32 1.0, %v7771_v36 }
 0xaf8   : > { %v6024_v51 = vadd.f32 %v7807_v39, %v6016_v19 }
 0xaf9   : > { %7778 = vrcp.f32 %v5996_v50 }
 0xafa   : > { %v7773_v25 = vpop.eup %7772  ;;  %6032 = vst [vmem:[%s10342_s27 + $0x18] sm:$0xff] %v6024_v51 }
 0xafb   : > { %v6017_v33 = vmul.f32 %v7773_v25, %v5947_v4 }
 0xafd   : > { %v6025_v15 = vadd.f32 %v7808_v29, %v6017_v33 }
 0xafe   : > { %v7775_v7 = vpop.eup %7774 }
 0xaff   : > { %6033 = vst [vmem:[%s10342_s27 + $0x20] sm:$0xff] %v6025_v15  ;;  %v6018_v57 = vmul.f32 %v7775_v7, %v5951_v28 }
 0xb01   : > { %v6026_v31 = vadd.f32 %v7809_v43, %v6018_v57 }
 0xb02   : > { %v7777_v26 = vpop.eup %7776 }
 0xb03   : > { %6034 = vst [vmem:[%s10342_s27 + $0x28] sm:$0xff] %v6026_v31  ;;  %v6019_v30 = vmul.f32 %v7777_v26, %v5957_v18 }
 0xb05   : > { %v6027_v24 = vadd.f32 %v7810_v47, %v6019_v30 }
 0xb06   : > { %v7779_v46 = vpop.eup %7778 }
 0xb07   : > { %6035 = vst [vmem:[%s10342_s27 + $0x30] sm:$0xff] %v6027_v24  ;;  %v6020_v56 = vmul.f32 %v7779_v46, %v5961_v61 }
 0xb09   : > { %v6028_v10 = vadd.f32 %v7811_v14, %v6020_v56 }
 0xb0b   : > { %6036 = vst [vmem:[%s10342_s27 + $0x38] sm:$0xff] %v6028_v10 }
 0xb0c PF: > { %s10598_s28 = sld [smem:[#allocation2_spill]] }
 0xb12   : > { %s29_s0 = sadd.s32 1, %s10598_s28  }
 0xb13   : > { %p26_p4 = scmp.ge.s32.totalorder %s29_s0, 4  }
 0xb15   :  { %28 = sbr.rel (!%p26_p4) target bundleno = 6 (0x6), region = 132 }

</bundles_post_ra>
